<compile_context>
chip_gen: v6e
topology: v6e:2x2x1
jax: 0.10.0
libtpu: 0.0.40
codegen_flags: <defaults>
</compile_context>

<pallas_src>
import functools

import jax
import jax.numpy as jnp
from jax.experimental import pallas as pl
from jax.experimental.pallas import tpu as pltpu


# ----------------------------- Pallas kernels ------------------------------

def _mm_kernel(a_ref, b_ref, o_ref):
    o_ref[...] = jnp.dot(a_ref[...], b_ref[...],
                         preferred_element_type=jnp.float32)


def _mm_bias_kernel(a_ref, b_ref, bias_ref, o_ref):
    o_ref[...] = (jnp.dot(a_ref[...], b_ref[...],
                          preferred_element_type=jnp.float32) + bias_ref[...])


def _mm_dual_bn_relu_kernel(a_ref, w1_ref, ws_ref, scale_ref, shift_ref,
                            o1_ref, os_ref, *, cin):
    """3x3/stride-2 conv with fused BN2+ReLU epilogue, plus the 1x1/stride-2
    shortcut conv computed from the centre tap (columns [4*cin, 5*cin)) of the
    same im2col patch matrix."""
    a = a_ref[...]
    acc = jnp.dot(a, w1_ref[...], preferred_element_type=jnp.float32)
    o1_ref[...] = jnp.maximum(acc * scale_ref[...] + shift_ref[...], 0.0)
    centre = a[:, 4 * cin:5 * cin]
    os_ref[...] = jnp.dot(centre, ws_ref[...],
                          preferred_element_type=jnp.float32)


def _mm_add_bn_relu_kernel(a_ref, b_ref, r_ref, scale_ref, shift_ref, o_ref):
    """3x3/stride-1 conv + residual add + (next stage's) folded BN + ReLU."""
    acc = (jnp.dot(a_ref[...], b_ref[...],
                   preferred_element_type=jnp.float32) + r_ref[...])
    o_ref[...] = jnp.maximum(acc * scale_ref[...] + shift_ref[...], 0.0)


def _pool_bn_relu_kernel(we_ref, wo_ref, scale_ref, shift_ref, o_ref):
    """2x2/stride-2 max-pool fused with folded BN + ReLU.

    Inputs are the even-W / odd-W columns of the conv output; rows are
    (batch, h//2), lanes are (h%2, w//2, c).  All lane offsets are multiples
    of 128 so the slices and stores stay lane-dense / unmasked.
    """
    half = o_ref.shape[-1]
    m = jnp.maximum(we_ref[...], wo_ref[...])          # max over the W pair
    m = jnp.maximum(m[:, :half], m[:, half:])          # max over the H pair
    o_ref[...] = jnp.maximum(m * scale_ref[...] + shift_ref[...], 0.0)


# ------------------------------ call wrappers --------------------------------

def _row_tile(m):
    """Two 'parallel' row tiles when legal (keeps both v7x TensorCores busy),
    otherwise the full row extent (always (8,128)-legal as a full dim)."""
    if m >= 32 and m % 2 == 0 and (m // 2) % 8 == 0:
        return m // 2
    return m


def _params():
    return pltpu.CompilerParams(dimension_semantics=("parallel",))


def matmul(a, b):
    M, K = a.shape
    _, N = b.shape
    tm = _row_tile(M)
    return pl.pallas_call(
        _mm_kernel,
        out_shape=jax.ShapeDtypeStruct((M, N), jnp.float32),
        grid=(M // tm,),
        in_specs=[pl.BlockSpec((tm, K), lambda i: (i, 0)),
                  pl.BlockSpec((K, N), lambda i: (0, 0))],
        out_specs=pl.BlockSpec((tm, N), lambda i: (i, 0)),
        compiler_params=_params(),
    )(a, b)


def matmul_bias(a, b, bias):
    M, K = a.shape
    _, N = b.shape
    tm = _row_tile(M)
    return pl.pallas_call(
        _mm_bias_kernel,
        out_shape=jax.ShapeDtypeStruct((M, N), jnp.float32),
        grid=(M // tm,),
        in_specs=[pl.BlockSpec((tm, K), lambda i: (i, 0)),
                  pl.BlockSpec((K, N), lambda i: (0, 0)),
                  pl.BlockSpec((1, N), lambda i: (0, 0))],
        out_specs=pl.BlockSpec((tm, N), lambda i: (i, 0)),
        compiler_params=_params(),
    )(a, b, bias)


def matmul_dual_bn_relu(a, w1, ws, scale, shift, cin):
    M, K = a.shape
    _, N = w1.shape
    tm = _row_tile(M)
    kern = functools.partial(_mm_dual_bn_relu_kernel, cin=cin)
    return pl.pallas_call(
        kern,
        out_shape=(jax.ShapeDtypeStruct((M, N), jnp.float32),
                   jax.ShapeDtypeStruct((M, N), jnp.float32)),
        grid=(M // tm,),
        in_specs=[pl.BlockSpec((tm, K), lambda i: (i, 0)),
                  pl.BlockSpec((K, N), lambda i: (0, 0)),
                  pl.BlockSpec((cin, N), lambda i: (0, 0)),
                  pl.BlockSpec((1, N), lambda i: (0, 0)),
                  pl.BlockSpec((1, N), lambda i: (0, 0))],
        out_specs=(pl.BlockSpec((tm, N), lambda i: (i, 0)),
                   pl.BlockSpec((tm, N), lambda i: (i, 0))),
        compiler_params=_params(),
    )(a, w1, ws, scale, shift)


def matmul_add_bn_relu(a, b, resid, scale, shift):
    M, K = a.shape
    _, N = b.shape
    tm = _row_tile(M)
    return pl.pallas_call(
        _mm_add_bn_relu_kernel,
        out_shape=jax.ShapeDtypeStruct((M, N), jnp.float32),
        grid=(M // tm,),
        in_specs=[pl.BlockSpec((tm, K), lambda i: (i, 0)),
                  pl.BlockSpec((K, N), lambda i: (0, 0)),
                  pl.BlockSpec((tm, N), lambda i: (i, 0)),
                  pl.BlockSpec((1, N), lambda i: (0, 0)),
                  pl.BlockSpec((1, N), lambda i: (0, 0))],
        out_specs=pl.BlockSpec((tm, N), lambda i: (i, 0)),
        compiler_params=_params(),
    )(a, b, resid, scale, shift)


def maxpool_bn_relu(x, scale_tiled, shift_tiled):
    """2x2 stride-2 max-pool over NHWC `x`, fused with the following folded
    BatchNorm + ReLU.  scale/shift are pre-tiled to (1, (W//2)*C)."""
    B, H, W, C = x.shape
    Ho, Wo = H // 2, W // 2
    # Even / odd W columns; rows = (b, h//2), lanes = (h%2, w//2, c).
    we = x[:, :, 0::2, :].reshape(B * Ho, 2 * Wo * C)
    wo = x[:, :, 1::2, :].reshape(B * Ho, 2 * Wo * C)
    R, L = we.shape
    tr = _row_tile(R)
    out = pl.pallas_call(
        _pool_bn_relu_kernel,
        out_shape=jax.ShapeDtypeStruct((R, Wo * C), jnp.float32),
        grid=(R // tr,),
        in_specs=[pl.BlockSpec((tr, L), lambda i: (i, 0)),
                  pl.BlockSpec((tr, L), lambda i: (i, 0)),
                  pl.BlockSpec((1, Wo * C), lambda i: (0, 0)),
                  pl.BlockSpec((1, Wo * C), lambda i: (0, 0))],
        out_specs=pl.BlockSpec((tr, Wo * C), lambda i: (i, 0)),
        compiler_params=_params(),
    )(we, wo, scale_tiled, shift_tiled)
    return out.reshape(B, Ho, Wo, C)


# ------------------------------ JAX glue ops --------------------------------

def im2col(x, kh, kw, stride, pad):
    """x: (B,H,W,C) NHWC -> patches (B*Ho*Wo, kh*kw*C), tap-major / C-minor."""
    if pad > 0:
        x = jnp.pad(x, ((0, 0), (pad, pad), (pad, pad), (0, 0)))
    B, H, W, C = x.shape
    Ho = (H - kh) // stride + 1
    Wo = (W - kw) // stride + 1
    cols = []
    for i in range(kh):
        for j in range(kw):
            cols.append(x[:, i:i + stride * (Ho - 1) + 1:stride,
                          j:j + stride * (Wo - 1) + 1:stride, :])
    patches = jnp.stack(cols, axis=3)                 # (B, Ho, Wo, kh*kw, C)
    return patches.reshape(B * Ho * Wo, kh * kw * C), (B, Ho, Wo)


def preact_block(h, p, next_scale, next_shift):
    """Pre-activation residual block (stride 2, 1x1 shortcut).

    `h` is already relu(bn1(x)) -- applied by the previous stage's fused
    epilogue.  Returns relu(next_bn(conv2(relu(bn2(conv1(h)))) + shortcut(h))),
    i.e. the next stage's bn1+relu (or the final flatten-ReLU) is fused in.
    """
    B, H, W, Cin = h.shape
    Cout = p["w_conv1"].shape[1]
    patches, (_, Ho, Wo) = im2col(h, 3, 3, stride=2, pad=1)
    t, sc = matmul_dual_bn_relu(patches, p["w_conv1"], p["w_short"],
                                p["bn2_scale"], p["bn2_shift"], Cin)
    t = t.reshape(B, Ho, Wo, Cout)
    patches2, _ = im2col(t, 3, 3, stride=1, pad=1)
    o = matmul_add_bn_relu(patches2, p["w_conv2"], sc, next_scale, next_shift)
    return o.reshape(B, Ho, Wo, Cout)


# --------------------------- parameter handling ------------------------------

def fold_bn(gamma, beta, mean, var, eps=1e-5):
    scale = gamma / jnp.sqrt(var + eps)
    shift = beta - mean * scale
    return scale.reshape(1, -1), shift.reshape(1, -1)


def _conv_w_to_mat(w):
    """(Cout, Cin, kh, kw) PyTorch conv weight -> (kh*kw*Cin, Cout) matmul
    weight matching the im2col column order (tap-major, channel-minor)."""
    cout, cin, kh, kw = w.shape
    return jnp.transpose(w, (2, 3, 1, 0)).reshape(kh * kw * cin, cout)


def init_params(key):
    """Raw parameters in PyTorch layout (the spec's layout)."""
    keys = jax.random.split(key, 12)

    def conv_w(k, cout, cin, kh, kw):
        return 0.05 * jax.random.normal(k, (cout, cin, kh, kw), jnp.float32)

    def bn(c):
        # PyTorch eval-mode defaults: gamma=1, beta=0, running stats (0, 1).
        return (jnp.ones((c,), jnp.float32), jnp.zeros((c,), jnp.float32),
                jnp.zeros((c,), jnp.float32), jnp.ones((c,), jnp.float32))

    def block(kws, cin, cout):
        return {"bn1": bn(cin), "bn2": bn(cout),
                "w_conv1": conv_w(kws[0], cout, cin, 3, 3),
                "w_conv2": conv_w(kws[1], cout, cout, 3, 3),
                "w_short": conv_w(kws[2], cout, cin, 1, 1)}

    return {
        "w_conv": conv_w(keys[0], 32, 3, 5, 5),
        "layer1": block(keys[1:4], 32, 32),
        "layer2": block(keys[4:7], 32, 64),
        "layer3": block(keys[7:10], 64, 128),
        # fc_x / fc_y / fc_z / fc_phi stacked as rows of a (4, 1920) weight.
        "fc_w": 0.02 * jax.random.normal(keys[10], (4, 1920), jnp.float32),
        "fc_b": 0.02 * jax.random.normal(keys[11], (4,), jnp.float32),
    }


def prepare_params(raw):
    """One-time conversion to the fused inference form: folded BN scale/shift,
    matmul-shaped conv weights, fc columns permuted from PyTorch's (C,H,W)
    flatten order to the kernel pipeline's NHWC (H,W,C) order (exact math)."""
    def block(b):
        s1, h1 = fold_bn(*b["bn1"])
        s2, h2 = fold_bn(*b["bn2"])
        return {"bn1_scale": s1, "bn1_shift": h1,
                "bn2_scale": s2, "bn2_shift": h2,
                "w_conv1": _conv_w_to_mat(b["w_conv1"]),
                "w_conv2": _conv_w_to_mat(b["w_conv2"]),
                "w_short": _conv_w_to_mat(b["w_short"])}

    l1, l2, l3 = block(raw["layer1"]), block(raw["layer2"]), block(raw["layer3"])

    C, H, W = 128, 3, 5                               # final feature map -> 1920
    c = jnp.arange(C); h = jnp.arange(H); w = jnp.arange(W)
    perm = (h[:, None, None] * W + w[None, :, None]
            + c[None, None, :] * (H * W)).reshape(-1)
    fc_w = raw["fc_w"][:, perm].T                     # (1920, 4), NHWC order

    return {"w_conv": _conv_w_to_mat(raw["w_conv"]),
            "layer1": l1, "layer2": l2, "layer3": l3,
            "fc_w": fc_w, "fc_b": raw["fc_b"].reshape(1, -1)}


# ------------------------------- forward ------------------------------------

def dronet_forward(p, x_nchw):
    # PyTorch gives NCHW; compute in NHWC.
    x = jnp.transpose(x_nchw, (0, 2, 3, 1)).astype(jnp.float32)
    B = x.shape[0]

    # conv 5x5 / stride 2 / pad 2 (bias=False)                  -> (B, 48, 80, 32)
    patches, (_, Ho, Wo) = im2col(x, 5, 5, stride=2, pad=2)
    o0 = matmul(patches, p["w_conv"]).reshape(B, Ho, Wo, 32)

    # 2x2 max-pool fused with layer1's bn1 + relu               -> (B, 24, 40, 32)
    Wp = o0.shape[2] // 2
    s_t = jnp.tile(p["layer1"]["bn1_scale"], (1, Wp))
    b_t = jnp.tile(p["layer1"]["bn1_shift"], (1, Wp))
    h = maxpool_bn_relu(o0, s_t, b_t)

    # Residual stages; each conv2 epilogue applies the *next* stage's BN+ReLU.
    h = preact_block(h, p["layer1"],
                     p["layer2"]["bn1_scale"], p["layer2"]["bn1_shift"])   # (B,12,20,32)
    h = preact_block(h, p["layer2"],
                     p["layer3"]["bn1_scale"], p["layer3"]["bn1_shift"])   # (B, 6,10,64)
    h = preact_block(h, p["layer3"],
                     jnp.ones((1, 128), jnp.float32),
                     jnp.zeros((1, 128), jnp.float32))                     # (B, 3, 5,128)
    # ^ identity scale/shift -> this epilogue is exactly the post-flatten ReLU.

    # Flatten in NHWC order; fc weights were permuted to match PyTorch's
    # out.view(B, -1) on NCHW, so no activation transpose is needed.
    flat = h.reshape(B, -1)                                                # (B, 1920)
    # TODO(synk): nn.Dropout() is eval-mode identity here (no RNG drop).
    fc = matmul_bias(flat, p["fc_w"], p["fc_b"])                           # (B, 4)
    return [fc[:, 0:1], fc[:, 1:2], fc[:, 2:3], fc[:, 3:4]]


# --------------------------------- main --------------------------------------

if __name__ == "__main__":
    key = jax.random.PRNGKey(0)
    k_x, k_p = jax.random.split(key)
    # Input chosen so the final feature map is (B, 3, 5, 128) -> fcSize = 1920.
    x = jax.random.normal(k_x, (2, 3, 96, 160), jnp.float32)

    raw = init_params(k_p)
    params = prepare_params(raw)

    fwd = jax.jit(dronet_forward)
    outs = fwd(params, x)
    for o in outs:
        jax.block_until_ready(o)

    assert len(outs) == 4
    for o in outs:
        assert o.shape == (2, 1) and o.dtype == jnp.float32

    print("KERNEL_OK")
</pallas_src>

<mosaic_0001>
module attributes {stable_mosaic.version = 11 : i64} {
  func.func @_mm_kernel(%arg0: i32, %arg1: memref<3840x75xf32, #tpu.memory_space<vmem>>, %arg2: memref<75x32xf32, #tpu.memory_space<vmem>>, %arg3: memref<3840x32xf32, #tpu.memory_space<vmem>>) attributes {dimension_semantics = [#tpu.dimension_semantics<parallel>], iteration_bounds = array<i64: 2>, scalar_prefetch = 0 : i64, scratch_operands = 0 : i64, tpu.core_type = #tpu.core_type<tc>, window_params = [{transform_indices = @transform_0, window_bounds = array<i64: 3840, 75>}, {pipeline_mode = #tpu.pipeline_mode<synchronous>, transform_indices = @transform_1, window_bounds = array<i64: 75, 32>}, {transform_indices = @transform_2, window_bounds = array<i64: 3840, 32>}]} {
    %c0 = arith.constant 0 : index
    %c0_0 = arith.constant 0 : index
    %0 = vector.load %arg1[%c0, %c0_0] : memref<3840x75xf32, #tpu.memory_space<vmem>>, vector<3840x75xf32>
    %c0_1 = arith.constant 0 : index
    %c0_2 = arith.constant 0 : index
    %1 = vector.load %arg2[%c0_1, %c0_2] : memref<75x32xf32, #tpu.memory_space<vmem>>, vector<75x32xf32>
    %cst = arith.constant dense<0.000000e+00> : vector<3840x32xf32>
    %2 = tpu.matmul %0, %1, %cst {dimension_numbers = #tpu.dot_dimension_numbers<[1], [0], [0], [1], [0, 0, 1, 1], [], []>} : vector<3840x75xf32>, vector<75x32xf32>, vector<3840x32xf32> -> vector<3840x32xf32>
    %c0_3 = arith.constant 0 : index
    %c0_4 = arith.constant 0 : index
    %3 = vector.load %arg3[%c0_3, %c0_4] : memref<3840x32xf32, #tpu.memory_space<vmem>>, vector<3840x32xf32>
    tpu.vector_store %arg3[%c0_3, %c0_4], %2 {strides = array<i32>} : memref<3840x32xf32, #tpu.memory_space<vmem>>, vector<3840x32xf32>,
    return
  }
  func.func @transform_0(%arg0: i32) -> (i32, i32) {
    %c0_i32 = arith.constant 0 : i32
    %c0_i32_0 = arith.constant 0 : i32
    return %arg0, %c0_i32 : i32, i32
  }
  func.func @transform_1(%arg0: i32) -> (i32, i32) {
    %c0_i32 = arith.constant 0 : i32
    %c0_i32_0 = arith.constant 0 : i32
    %c0_i32_1 = arith.constant 0 : i32
    return %c0_i32, %c0_i32_0 : i32, i32
  }
  func.func @transform_2(%arg0: i32) -> (i32, i32) {
    %c0_i32 = arith.constant 0 : i32
    %c0_i32_0 = arith.constant 0 : i32
    return %arg0, %c0_i32 : i32, i32
  }
}

module attributes {stable_mosaic.version = 11 : i64} {
  func.func @_pool_bn_relu_kernel(%arg0: i32, %arg1: memref<24x2560xf32, #tpu.memory_space<vmem>>, %arg2: memref<24x2560xf32, #tpu.memory_space<vmem>>, %arg3: memref<1x1280xf32, #tpu.memory_space<vmem>>, %arg4: memref<1x1280xf32, #tpu.memory_space<vmem>>, %arg5: memref<24x1280xf32, #tpu.memory_space<vmem>>) attributes {dimension_semantics = [#tpu.dimension_semantics<parallel>], iteration_bounds = array<i64: 2>, scalar_prefetch = 0 : i64, scratch_operands = 0 : i64, tpu.core_type = #tpu.core_type<tc>, window_params = [{transform_indices = @transform_0, window_bounds = array<i64: 24, 2560>}, {transform_indices = @transform_1, window_bounds = array<i64: 24, 2560>}, {pipeline_mode = #tpu.pipeline_mode<synchronous>, transform_indices = @transform_2, window_bounds = array<i64: 1, 1280>}, {pipeline_mode = #tpu.pipeline_mode<synchronous>, transform_indices = @transform_3, window_bounds = array<i64: 1, 1280>}, {transform_indices = @transform_4, window_bounds = array<i64: 24, 1280>}]} {
    %c0 = arith.constant 0 : index
    %c0_0 = arith.constant 0 : index
    %0 = vector.load %arg1[%c0, %c0_0] : memref<24x2560xf32, #tpu.memory_space<vmem>>, vector<24x2560xf32>
    %c0_1 = arith.constant 0 : index
    %c0_2 = arith.constant 0 : index
    %1 = vector.load %arg2[%c0_1, %c0_2] : memref<24x2560xf32, #tpu.memory_space<vmem>>, vector<24x2560xf32>
    %2 = arith.maximumf %0, %1 : vector<24x2560xf32>
    %3 = vector.extract_strided_slice %2 {offsets = [0, 0], sizes = [24, 1280], strides = [1, 1]} : vector<24x2560xf32> to vector<24x1280xf32>
    %4 = vector.extract_strided_slice %2 {offsets = [0, 1280], sizes = [24, 1280], strides = [1, 1]} : vector<24x2560xf32> to vector<24x1280xf32>
    %5 = arith.maximumf %3, %4 : vector<24x1280xf32>
    %c0_3 = arith.constant 0 : index
    %c0_4 = arith.constant 0 : index
    %6 = vector.load %arg3[%c0_3, %c0_4] : memref<1x1280xf32, #tpu.memory_space<vmem>>, vector<1x1280xf32>
    %7 = vector.broadcast %6 : vector<1x1280xf32> to vector<24x1280xf32>
    %8 = arith.mulf %5, %7 : vector<24x1280xf32>
    %c0_5 = arith.constant 0 : index
    %c0_6 = arith.constant 0 : index
    %9 = vector.load %arg4[%c0_5, %c0_6] : memref<1x1280xf32, #tpu.memory_space<vmem>>, vector<1x1280xf32>
    %10 = vector.broadcast %9 : vector<1x1280xf32> to vector<24x1280xf32>
    %11 = arith.addf %8, %10 : vector<24x1280xf32>
    %cst = arith.constant 0.000000e+00 : f32
    %12 = vector.broadcast %cst : f32 to vector<24x1280xf32>
    %13 = arith.maximumf %11, %12 : vector<24x1280xf32>
    %c0_7 = arith.constant 0 : index
    %c0_8 = arith.constant 0 : index
    %14 = vector.load %arg5[%c0_7, %c0_8] : memref<24x1280xf32, #tpu.memory_space<vmem>>, vector<24x1280xf32>
    tpu.vector_store %arg5[%c0_7, %c0_8], %13 {strides = array<i32>} : memref<24x1280xf32, #tpu.memory_space<vmem>>, vector<24x1280xf32>,
    return
  }
  func.func @transform_0(%arg0: i32) -> (i32, i32) {
    %c0_i32 = arith.constant 0 : i32
    %c0_i32_0 = arith.constant 0 : i32
    return %arg0, %c0_i32 : i32, i32
  }
  func.func @transform_1(%arg0: i32) -> (i32, i32) {
    %c0_i32 = arith.constant 0 : i32
    %c0_i32_0 = arith.constant 0 : i32
    return %arg0, %c0_i32 : i32, i32
  }
  func.func @transform_2(%arg0: i32) -> (i32, i32) {
    %c0_i32 = arith.constant 0 : i32
    %c0_i32_0 = arith.constant 0 : i32
    %c0_i32_1 = arith.constant 0 : i32
    return %c0_i32, %c0_i32_0 : i32, i32
  }
  func.func @transform_3(%arg0: i32) -> (i32, i32) {
    %c0_i32 = arith.constant 0 : i32
    %c0_i32_0 = arith.constant 0 : i32
    %c0_i32_1 = arith.constant 0 : i32
    return %c0_i32, %c0_i32_0 : i32, i32
  }
  func.func @transform_4(%arg0: i32) -> (i32, i32) {
    %c0_i32 = arith.constant 0 : i32
    %c0_i32_0 = arith.constant 0 : i32
    return %arg0, %c0_i32 : i32, i32
  }
}

module attributes {stable_mosaic.version = 11 : i64} {
  func.func @_mm_dual_bn_relu_kernel(%arg0: i32, %arg1: memref<240x288xf32, #tpu.memory_space<vmem>>, %arg2: memref<288x32xf32, #tpu.memory_space<vmem>>, %arg3: memref<32x32xf32, #tpu.memory_space<vmem>>, %arg4: memref<1x32xf32, #tpu.memory_space<vmem>>, %arg5: memref<1x32xf32, #tpu.memory_space<vmem>>, %arg6: memref<240x32xf32, #tpu.memory_space<vmem>>, %arg7: memref<240x32xf32, #tpu.memory_space<vmem>>) attributes {dimension_semantics = [#tpu.dimension_semantics<parallel>], iteration_bounds = array<i64: 2>, scalar_prefetch = 0 : i64, scratch_operands = 0 : i64, tpu.core_type = #tpu.core_type<tc>, window_params = [{transform_indices = @transform_0, window_bounds = array<i64: 240, 288>}, {pipeline_mode = #tpu.pipeline_mode<synchronous>, transform_indices = @transform_1, window_bounds = array<i64: 288, 32>}, {pipeline_mode = #tpu.pipeline_mode<synchronous>, transform_indices = @transform_2, window_bounds = array<i64: 32, 32>}, {pipeline_mode = #tpu.pipeline_mode<synchronous>, transform_indices = @transform_3, window_bounds = array<i64: 1, 32>}, {pipeline_mode = #tpu.pipeline_mode<synchronous>, transform_indices = @transform_4, window_bounds = array<i64: 1, 32>}, {transform_indices = @transform_5, window_bounds = array<i64: 240, 32>}, {transform_indices = @transform_6, window_bounds = array<i64: 240, 32>}]} {
    %c0 = arith.constant 0 : index
    %c0_0 = arith.constant 0 : index
    %0 = vector.load %arg1[%c0, %c0_0] : memref<240x288xf32, #tpu.memory_space<vmem>>, vector<240x288xf32>
    %c0_1 = arith.constant 0 : index
    %c0_2 = arith.constant 0 : index
    %1 = vector.load %arg2[%c0_1, %c0_2] : memref<288x32xf32, #tpu.memory_space<vmem>>, vector<288x32xf32>
    %cst = arith.constant dense<0.000000e+00> : vector<240x32xf32>
    %2 = tpu.matmul %0, %1, %cst {dimension_numbers = #tpu.dot_dimension_numbers<[1], [0], [0], [1], [0, 0, 1, 1], [], []>} : vector<240x288xf32>, vector<288x32xf32>, vector<240x32xf32> -> vector<240x32xf32>
    %c0_3 = arith.constant 0 : index
    %c0_4 = arith.constant 0 : index
    %3 = vector.load %arg4[%c0_3, %c0_4] : memref<1x32xf32, #tpu.memory_space<vmem>>, vector<1x32xf32>
    %4 = vector.broadcast %3 : vector<1x32xf32> to vector<240x32xf32>
    %5 = arith.mulf %2, %4 : vector<240x32xf32>
    %c0_5 = arith.constant 0 : index
    %c0_6 = arith.constant 0 : index
    %6 = vector.load %arg5[%c0_5, %c0_6] : memref<1x32xf32, #tpu.memory_space<vmem>>, vector<1x32xf32>
    %7 = vector.broadcast %6 : vector<1x32xf32> to vector<240x32xf32>
    %8 = arith.addf %5, %7 : vector<240x32xf32>
    %cst_7 = arith.constant 0.000000e+00 : f32
    %9 = vector.broadcast %cst_7 : f32 to vector<240x32xf32>
    %10 = arith.maximumf %8, %9 : vector<240x32xf32>
    %c0_8 = arith.constant 0 : index
    %c0_9 = arith.constant 0 : index
    %11 = vector.load %arg6[%c0_8, %c0_9] : memref<240x32xf32, #tpu.memory_space<vmem>>, vector<240x32xf32>
    tpu.vector_store %arg6[%c0_8, %c0_9], %10 {strides = array<i32>} : memref<240x32xf32, #tpu.memory_space<vmem>>, vector<240x32xf32>,
    %12 = vector.extract_strided_slice %0 {offsets = [0, 128], sizes = [240, 32], strides = [1, 1]} : vector<240x288xf32> to vector<240x32xf32>
    %c0_10 = arith.constant 0 : index
    %c0_11 = arith.constant 0 : index
    %13 = vector.load %arg3[%c0_10, %c0_11] : memref<32x32xf32, #tpu.memory_space<vmem>>, vector<32x32xf32>
    %cst_12 = arith.constant dense<0.000000e+00> : vector<240x32xf32>
    %14 = tpu.matmul %12, %13, %cst_12 {dimension_numbers = #tpu.dot_dimension_numbers<[1], [0], [0], [1], [0, 0, 1, 1], [], []>} : vector<240x32xf32>, vector<32x32xf32>, vector<240x32xf32> -> vector<240x32xf32>
    %c0_13 = arith.constant 0 : index
    %c0_14 = arith.constant 0 : index
    %15 = vector.load %arg7[%c0_13, %c0_14] : memref<240x32xf32, #tpu.memory_space<vmem>>, vector<240x32xf32>
    tpu.vector_store %arg7[%c0_13, %c0_14], %14 {strides = array<i32>} : memref<240x32xf32, #tpu.memory_space<vmem>>, vector<240x32xf32>,
    return
  }
  func.func @transform_0(%arg0: i32) -> (i32, i32) {
    %c0_i32 = arith.constant 0 : i32
    %c0_i32_0 = arith.constant 0 : i32
    return %arg0, %c0_i32 : i32, i32
  }
  func.func @transform_1(%arg0: i32) -> (i32, i32) {
    %c0_i32 = arith.constant 0 : i32
    %c0_i32_0 = arith.constant 0 : i32
    %c0_i32_1 = arith.constant 0 : i32
    return %c0_i32, %c0_i32_0 : i32, i32
  }
  func.func @transform_2(%arg0: i32) -> (i32, i32) {
    %c0_i32 = arith.constant 0 : i32
    %c0_i32_0 = arith.constant 0 : i32
    %c0_i32_1 = arith.constant 0 : i32
    return %c0_i32, %c0_i32_0 : i32, i32
  }
  func.func @transform_3(%arg0: i32) -> (i32, i32) {
    %c0_i32 = arith.constant 0 : i32
    %c0_i32_0 = arith.constant 0 : i32
    %c0_i32_1 = arith.constant 0 : i32
    return %c0_i32, %c0_i32_0 : i32, i32
  }
  func.func @transform_4(%arg0: i32) -> (i32, i32) {
    %c0_i32 = arith.constant 0 : i32
    %c0_i32_0 = arith.constant 0 : i32
    %c0_i32_1 = arith.constant 0 : i32
    return %c0_i32, %c0_i32_0 : i32, i32
  }
  func.func @transform_5(%arg0: i32) -> (i32, i32) {
    %c0_i32 = arith.constant 0 : i32
    %c0_i32_0 = arith.constant 0 : i32
    return %arg0, %c0_i32 : i32, i32
  }
  func.func @transform_6(%arg0: i32) -> (i32, i32) {
    %c0_i32 = arith.constant 0 : i32
    %c0_i32_0 = arith.constant 0 : i32
    return %arg0, %c0_i32 : i32, i32
  }
}

module attributes {stable_mosaic.version = 11 : i64} {
  func.func @_mm_add_bn_relu_kernel(%arg0: i32, %arg1: memref<240x288xf32, #tpu.memory_space<vmem>>, %arg2: memref<288x32xf32, #tpu.memory_space<vmem>>, %arg3: memref<240x32xf32, #tpu.memory_space<vmem>>, %arg4: memref<1x32xf32, #tpu.memory_space<vmem>>, %arg5: memref<1x32xf32, #tpu.memory_space<vmem>>, %arg6: memref<240x32xf32, #tpu.memory_space<vmem>>) attributes {dimension_semantics = [#tpu.dimension_semantics<parallel>], iteration_bounds = array<i64: 2>, scalar_prefetch = 0 : i64, scratch_operands = 0 : i64, tpu.core_type = #tpu.core_type<tc>, window_params = [{transform_indices = @transform_0, window_bounds = array<i64: 240, 288>}, {pipeline_mode = #tpu.pipeline_mode<synchronous>, transform_indices = @transform_1, window_bounds = array<i64: 288, 32>}, {transform_indices = @transform_2, window_bounds = array<i64: 240, 32>}, {pipeline_mode = #tpu.pipeline_mode<synchronous>, transform_indices = @transform_3, window_bounds = array<i64: 1, 32>}, {pipeline_mode = #tpu.pipeline_mode<synchronous>, transform_indices = @transform_4, window_bounds = array<i64: 1, 32>}, {transform_indices = @transform_5, window_bounds = array<i64: 240, 32>}]} {
    %c0 = arith.constant 0 : index
    %c0_0 = arith.constant 0 : index
    %0 = vector.load %arg1[%c0, %c0_0] : memref<240x288xf32, #tpu.memory_space<vmem>>, vector<240x288xf32>
    %c0_1 = arith.constant 0 : index
    %c0_2 = arith.constant 0 : index
    %1 = vector.load %arg2[%c0_1, %c0_2] : memref<288x32xf32, #tpu.memory_space<vmem>>, vector<288x32xf32>
    %cst = arith.constant dense<0.000000e+00> : vector<240x32xf32>
    %2 = tpu.matmul %0, %1, %cst {dimension_numbers = #tpu.dot_dimension_numbers<[1], [0], [0], [1], [0, 0, 1, 1], [], []>} : vector<240x288xf32>, vector<288x32xf32>, vector<240x32xf32> -> vector<240x32xf32>
    %c0_3 = arith.constant 0 : index
    %c0_4 = arith.constant 0 : index
    %3 = vector.load %arg3[%c0_3, %c0_4] : memref<240x32xf32, #tpu.memory_space<vmem>>, vector<240x32xf32>
    %4 = arith.addf %2, %3 : vector<240x32xf32>
    %c0_5 = arith.constant 0 : index
    %c0_6 = arith.constant 0 : index
    %5 = vector.load %arg4[%c0_5, %c0_6] : memref<1x32xf32, #tpu.memory_space<vmem>>, vector<1x32xf32>
    %6 = vector.broadcast %5 : vector<1x32xf32> to vector<240x32xf32>
    %7 = arith.mulf %4, %6 : vector<240x32xf32>
    %c0_7 = arith.constant 0 : index
    %c0_8 = arith.constant 0 : index
    %8 = vector.load %arg5[%c0_7, %c0_8] : memref<1x32xf32, #tpu.memory_space<vmem>>, vector<1x32xf32>
    %9 = vector.broadcast %8 : vector<1x32xf32> to vector<240x32xf32>
    %10 = arith.addf %7, %9 : vector<240x32xf32>
    %cst_9 = arith.constant 0.000000e+00 : f32
    %11 = vector.broadcast %cst_9 : f32 to vector<240x32xf32>
    %12 = arith.maximumf %10, %11 : vector<240x32xf32>
    %c0_10 = arith.constant 0 : index
    %c0_11 = arith.constant 0 : index
    %13 = vector.load %arg6[%c0_10, %c0_11] : memref<240x32xf32, #tpu.memory_space<vmem>>, vector<240x32xf32>
    tpu.vector_store %arg6[%c0_10, %c0_11], %12 {strides = array<i32>} : memref<240x32xf32, #tpu.memory_space<vmem>>, vector<240x32xf32>,
    return
  }
  func.func @transform_0(%arg0: i32) -> (i32, i32) {
    %c0_i32 = arith.constant 0 : i32
    %c0_i32_0 = arith.constant 0 : i32
    return %arg0, %c0_i32 : i32, i32
  }
  func.func @transform_1(%arg0: i32) -> (i32, i32) {
    %c0_i32 = arith.constant 0 : i32
    %c0_i32_0 = arith.constant 0 : i32
    %c0_i32_1 = arith.constant 0 : i32
    return %c0_i32, %c0_i32_0 : i32, i32
  }
  func.func @transform_2(%arg0: i32) -> (i32, i32) {
    %c0_i32 = arith.constant 0 : i32
    %c0_i32_0 = arith.constant 0 : i32
    return %arg0, %c0_i32 : i32, i32
  }
  func.func @transform_3(%arg0: i32) -> (i32, i32) {
    %c0_i32 = arith.constant 0 : i32
    %c0_i32_0 = arith.constant 0 : i32
    %c0_i32_1 = arith.constant 0 : i32
    return %c0_i32, %c0_i32_0 : i32, i32
  }
  func.func @transform_4(%arg0: i32) -> (i32, i32) {
    %c0_i32 = arith.constant 0 : i32
    %c0_i32_0 = arith.constant 0 : i32
    %c0_i32_1 = arith.constant 0 : i32
    return %c0_i32, %c0_i32_0 : i32, i32
  }
  func.func @transform_5(%arg0: i32) -> (i32, i32) {
    %c0_i32 = arith.constant 0 : i32
    %c0_i32_0 = arith.constant 0 : i32
    return %arg0, %c0_i32 : i32, i32
  }
}

module attributes {stable_mosaic.version = 11 : i64} {
  func.func @_mm_dual_bn_relu_kernel(%arg0: i32, %arg1: memref<120x288xf32, #tpu.memory_space<vmem>>, %arg2: memref<288x64xf32, #tpu.memory_space<vmem>>, %arg3: memref<32x64xf32, #tpu.memory_space<vmem>>, %arg4: memref<1x64xf32, #tpu.memory_space<vmem>>, %arg5: memref<1x64xf32, #tpu.memory_space<vmem>>, %arg6: memref<120x64xf32, #tpu.memory_space<vmem>>, %arg7: memref<120x64xf32, #tpu.memory_space<vmem>>) attributes {dimension_semantics = [#tpu.dimension_semantics<parallel>], iteration_bounds = array<i64: 1>, scalar_prefetch = 0 : i64, scratch_operands = 0 : i64, tpu.core_type = #tpu.core_type<tc>, window_params = [{transform_indices = @transform_0, window_bounds = array<i64: 120, 288>}, {pipeline_mode = #tpu.pipeline_mode<synchronous>, transform_indices = @transform_1, window_bounds = array<i64: 288, 64>}, {pipeline_mode = #tpu.pipeline_mode<synchronous>, transform_indices = @transform_2, window_bounds = array<i64: 32, 64>}, {pipeline_mode = #tpu.pipeline_mode<synchronous>, transform_indices = @transform_3, window_bounds = array<i64: 1, 64>}, {pipeline_mode = #tpu.pipeline_mode<synchronous>, transform_indices = @transform_4, window_bounds = array<i64: 1, 64>}, {transform_indices = @transform_5, window_bounds = array<i64: 120, 64>}, {transform_indices = @transform_6, window_bounds = array<i64: 120, 64>}]} {
    %c0 = arith.constant 0 : index
    %c0_0 = arith.constant 0 : index
    %0 = vector.load %arg1[%c0, %c0_0] : memref<120x288xf32, #tpu.memory_space<vmem>>, vector<120x288xf32>
    %c0_1 = arith.constant 0 : index
    %c0_2 = arith.constant 0 : index
    %1 = vector.load %arg2[%c0_1, %c0_2] : memref<288x64xf32, #tpu.memory_space<vmem>>, vector<288x64xf32>
    %cst = arith.constant dense<0.000000e+00> : vector<120x64xf32>
    %2 = tpu.matmul %0, %1, %cst {dimension_numbers = #tpu.dot_dimension_numbers<[1], [0], [0], [1], [0, 0, 1, 1], [], []>} : vector<120x288xf32>, vector<288x64xf32>, vector<120x64xf32> -> vector<120x64xf32>
    %c0_3 = arith.constant 0 : index
    %c0_4 = arith.constant 0 : index
    %3 = vector.load %arg4[%c0_3, %c0_4] : memref<1x64xf32, #tpu.memory_space<vmem>>, vector<1x64xf32>
    %4 = vector.broadcast %3 : vector<1x64xf32> to vector<120x64xf32>
    %5 = arith.mulf %2, %4 : vector<120x64xf32>
    %c0_5 = arith.constant 0 : index
    %c0_6 = arith.constant 0 : index
    %6 = vector.load %arg5[%c0_5, %c0_6] : memref<1x64xf32, #tpu.memory_space<vmem>>, vector<1x64xf32>
    %7 = vector.broadcast %6 : vector<1x64xf32> to vector<120x64xf32>
    %8 = arith.addf %5, %7 : vector<120x64xf32>
    %cst_7 = arith.constant 0.000000e+00 : f32
    %9 = vector.broadcast %cst_7 : f32 to vector<120x64xf32>
    %10 = arith.maximumf %8, %9 : vector<120x64xf32>
    %c0_8 = arith.constant 0 : index
    %c0_9 = arith.constant 0 : index
    %11 = vector.load %arg6[%c0_8, %c0_9] : memref<120x64xf32, #tpu.memory_space<vmem>>, vector<120x64xf32>
    tpu.vector_store %arg6[%c0_8, %c0_9], %10 {strides = array<i32>} : memref<120x64xf32, #tpu.memory_space<vmem>>, vector<120x64xf32>,
    %12 = vector.extract_strided_slice %0 {offsets = [0, 128], sizes = [120, 32], strides = [1, 1]} : vector<120x288xf32> to vector<120x32xf32>
    %c0_10 = arith.constant 0 : index
    %c0_11 = arith.constant 0 : index
    %13 = vector.load %arg3[%c0_10, %c0_11] : memref<32x64xf32, #tpu.memory_space<vmem>>, vector<32x64xf32>
    %cst_12 = arith.constant dense<0.000000e+00> : vector<120x64xf32>
    %14 = tpu.matmul %12, %13, %cst_12 {dimension_numbers = #tpu.dot_dimension_numbers<[1], [0], [0], [1], [0, 0, 1, 1], [], []>} : vector<120x32xf32>, vector<32x64xf32>, vector<120x64xf32> -> vector<120x64xf32>
    %c0_13 = arith.constant 0 : index
    %c0_14 = arith.constant 0 : index
    %15 = vector.load %arg7[%c0_13, %c0_14] : memref<120x64xf32, #tpu.memory_space<vmem>>, vector<120x64xf32>
    tpu.vector_store %arg7[%c0_13, %c0_14], %14 {strides = array<i32>} : memref<120x64xf32, #tpu.memory_space<vmem>>, vector<120x64xf32>,
    return
  }
  func.func @transform_0(%arg0: i32) -> (i32, i32) {
    %c0_i32 = arith.constant 0 : i32
    %c0_i32_0 = arith.constant 0 : i32
    return %arg0, %c0_i32 : i32, i32
  }
  func.func @transform_1(%arg0: i32) -> (i32, i32) {
    %c0_i32 = arith.constant 0 : i32
    %c0_i32_0 = arith.constant 0 : i32
    %c0_i32_1 = arith.constant 0 : i32
    return %c0_i32, %c0_i32_0 : i32, i32
  }
  func.func @transform_2(%arg0: i32) -> (i32, i32) {
    %c0_i32 = arith.constant 0 : i32
    %c0_i32_0 = arith.constant 0 : i32
    %c0_i32_1 = arith.constant 0 : i32
    return %c0_i32, %c0_i32_0 : i32, i32
  }
  func.func @transform_3(%arg0: i32) -> (i32, i32) {
    %c0_i32 = arith.constant 0 : i32
    %c0_i32_0 = arith.constant 0 : i32
    %c0_i32_1 = arith.constant 0 : i32
    return %c0_i32, %c0_i32_0 : i32, i32
  }
  func.func @transform_4(%arg0: i32) -> (i32, i32) {
    %c0_i32 = arith.constant 0 : i32
    %c0_i32_0 = arith.constant 0 : i32
    %c0_i32_1 = arith.constant 0 : i32
    return %c0_i32, %c0_i32_0 : i32, i32
  }
  func.func @transform_5(%arg0: i32) -> (i32, i32) {
    %c0_i32 = arith.constant 0 : i32
    %c0_i32_0 = arith.constant 0 : i32
    return %arg0, %c0_i32 : i32, i32
  }
  func.func @transform_6(%arg0: i32) -> (i32, i32) {
    %c0_i32 = arith.constant 0 : i32
    %c0_i32_0 = arith.constant 0 : i32
    return %arg0, %c0_i32 : i32, i32
  }
}

module attributes {stable_mosaic.version = 11 : i64} {
  func.func @_mm_add_bn_relu_kernel(%arg0: i32, %arg1: memref<120x576xf32, #tpu.memory_space<vmem>>, %arg2: memref<576x64xf32, #tpu.memory_space<vmem>>, %arg3: memref<120x64xf32, #tpu.memory_space<vmem>>, %arg4: memref<1x64xf32, #tpu.memory_space<vmem>>, %arg5: memref<1x64xf32, #tpu.memory_space<vmem>>, %arg6: memref<120x64xf32, #tpu.memory_space<vmem>>) attributes {dimension_semantics = [#tpu.dimension_semantics<parallel>], iteration_bounds = array<i64: 1>, scalar_prefetch = 0 : i64, scratch_operands = 0 : i64, tpu.core_type = #tpu.core_type<tc>, window_params = [{transform_indices = @transform_0, window_bounds = array<i64: 120, 576>}, {pipeline_mode = #tpu.pipeline_mode<synchronous>, transform_indices = @transform_1, window_bounds = array<i64: 576, 64>}, {transform_indices = @transform_2, window_bounds = array<i64: 120, 64>}, {pipeline_mode = #tpu.pipeline_mode<synchronous>, transform_indices = @transform_3, window_bounds = array<i64: 1, 64>}, {pipeline_mode = #tpu.pipeline_mode<synchronous>, transform_indices = @transform_4, window_bounds = array<i64: 1, 64>}, {transform_indices = @transform_5, window_bounds = array<i64: 120, 64>}]} {
    %c0 = arith.constant 0 : index
    %c0_0 = arith.constant 0 : index
    %0 = vector.load %arg1[%c0, %c0_0] : memref<120x576xf32, #tpu.memory_space<vmem>>, vector<120x576xf32>
    %c0_1 = arith.constant 0 : index
    %c0_2 = arith.constant 0 : index
    %1 = vector.load %arg2[%c0_1, %c0_2] : memref<576x64xf32, #tpu.memory_space<vmem>>, vector<576x64xf32>
    %cst = arith.constant dense<0.000000e+00> : vector<120x64xf32>
    %2 = tpu.matmul %0, %1, %cst {dimension_numbers = #tpu.dot_dimension_numbers<[1], [0], [0], [1], [0, 0, 1, 1], [], []>} : vector<120x576xf32>, vector<576x64xf32>, vector<120x64xf32> -> vector<120x64xf32>
    %c0_3 = arith.constant 0 : index
    %c0_4 = arith.constant 0 : index
    %3 = vector.load %arg3[%c0_3, %c0_4] : memref<120x64xf32, #tpu.memory_space<vmem>>, vector<120x64xf32>
    %4 = arith.addf %2, %3 : vector<120x64xf32>
    %c0_5 = arith.constant 0 : index
    %c0_6 = arith.constant 0 : index
    %5 = vector.load %arg4[%c0_5, %c0_6] : memref<1x64xf32, #tpu.memory_space<vmem>>, vector<1x64xf32>
    %6 = vector.broadcast %5 : vector<1x64xf32> to vector<120x64xf32>
    %7 = arith.mulf %4, %6 : vector<120x64xf32>
    %c0_7 = arith.constant 0 : index
    %c0_8 = arith.constant 0 : index
    %8 = vector.load %arg5[%c0_7, %c0_8] : memref<1x64xf32, #tpu.memory_space<vmem>>, vector<1x64xf32>
    %9 = vector.broadcast %8 : vector<1x64xf32> to vector<120x64xf32>
    %10 = arith.addf %7, %9 : vector<120x64xf32>
    %cst_9 = arith.constant 0.000000e+00 : f32
    %11 = vector.broadcast %cst_9 : f32 to vector<120x64xf32>
    %12 = arith.maximumf %10, %11 : vector<120x64xf32>
    %c0_10 = arith.constant 0 : index
    %c0_11 = arith.constant 0 : index
    %13 = vector.load %arg6[%c0_10, %c0_11] : memref<120x64xf32, #tpu.memory_space<vmem>>, vector<120x64xf32>
    tpu.vector_store %arg6[%c0_10, %c0_11], %12 {strides = array<i32>} : memref<120x64xf32, #tpu.memory_space<vmem>>, vector<120x64xf32>,
    return
  }
  func.func @transform_0(%arg0: i32) -> (i32, i32) {
    %c0_i32 = arith.constant 0 : i32
    %c0_i32_0 = arith.constant 0 : i32
    return %arg0, %c0_i32 : i32, i32
  }
  func.func @transform_1(%arg0: i32) -> (i32, i32) {
    %c0_i32 = arith.constant 0 : i32
    %c0_i32_0 = arith.constant 0 : i32
    %c0_i32_1 = arith.constant 0 : i32
    return %c0_i32, %c0_i32_0 : i32, i32
  }
  func.func @transform_2(%arg0: i32) -> (i32, i32) {
    %c0_i32 = arith.constant 0 : i32
    %c0_i32_0 = arith.constant 0 : i32
    return %arg0, %c0_i32 : i32, i32
  }
  func.func @transform_3(%arg0: i32) -> (i32, i32) {
    %c0_i32 = arith.constant 0 : i32
    %c0_i32_0 = arith.constant 0 : i32
    %c0_i32_1 = arith.constant 0 : i32
    return %c0_i32, %c0_i32_0 : i32, i32
  }
  func.func @transform_4(%arg0: i32) -> (i32, i32) {
    %c0_i32 = arith.constant 0 : i32
    %c0_i32_0 = arith.constant 0 : i32
    %c0_i32_1 = arith.constant 0 : i32
    return %c0_i32, %c0_i32_0 : i32, i32
  }
  func.func @transform_5(%arg0: i32) -> (i32, i32) {
    %c0_i32 = arith.constant 0 : i32
    %c0_i32_0 = arith.constant 0 : i32
    return %arg0, %c0_i32 : i32, i32
  }
}

module attributes {stable_mosaic.version = 11 : i64} {
  func.func @_mm_dual_bn_relu_kernel(%arg0: i32, %arg1: memref<30x576xf32, #tpu.memory_space<vmem>>, %arg2: memref<576x128xf32, #tpu.memory_space<vmem>>, %arg3: memref<64x128xf32, #tpu.memory_space<vmem>>, %arg4: memref<1x128xf32, #tpu.memory_space<vmem>>, %arg5: memref<1x128xf32, #tpu.memory_space<vmem>>, %arg6: memref<30x128xf32, #tpu.memory_space<vmem>>, %arg7: memref<30x128xf32, #tpu.memory_space<vmem>>) attributes {dimension_semantics = [#tpu.dimension_semantics<parallel>], iteration_bounds = array<i64: 1>, scalar_prefetch = 0 : i64, scratch_operands = 0 : i64, tpu.core_type = #tpu.core_type<tc>, window_params = [{transform_indices = @transform_0, window_bounds = array<i64: 30, 576>}, {pipeline_mode = #tpu.pipeline_mode<synchronous>, transform_indices = @transform_1, window_bounds = array<i64: 576, 128>}, {pipeline_mode = #tpu.pipeline_mode<synchronous>, transform_indices = @transform_2, window_bounds = array<i64: 64, 128>}, {pipeline_mode = #tpu.pipeline_mode<synchronous>, transform_indices = @transform_3, window_bounds = array<i64: 1, 128>}, {pipeline_mode = #tpu.pipeline_mode<synchronous>, transform_indices = @transform_4, window_bounds = array<i64: 1, 128>}, {transform_indices = @transform_5, window_bounds = array<i64: 30, 128>}, {transform_indices = @transform_6, window_bounds = array<i64: 30, 128>}]} {
    %c0 = arith.constant 0 : index
    %c0_0 = arith.constant 0 : index
    %0 = vector.load %arg1[%c0, %c0_0] : memref<30x576xf32, #tpu.memory_space<vmem>>, vector<30x576xf32>
    %c0_1 = arith.constant 0 : index
    %c0_2 = arith.constant 0 : index
    %1 = vector.load %arg2[%c0_1, %c0_2] : memref<576x128xf32, #tpu.memory_space<vmem>>, vector<576x128xf32>
    %cst = arith.constant dense<0.000000e+00> : vector<30x128xf32>
    %2 = tpu.matmul %0, %1, %cst {dimension_numbers = #tpu.dot_dimension_numbers<[1], [0], [0], [1], [0, 0, 1, 1], [], []>} : vector<30x576xf32>, vector<576x128xf32>, vector<30x128xf32> -> vector<30x128xf32>
    %c0_3 = arith.constant 0 : index
    %c0_4 = arith.constant 0 : index
    %3 = vector.load %arg4[%c0_3, %c0_4] : memref<1x128xf32, #tpu.memory_space<vmem>>, vector<1x128xf32>
    %4 = vector.broadcast %3 : vector<1x128xf32> to vector<30x128xf32>
    %5 = arith.mulf %2, %4 : vector<30x128xf32>
    %c0_5 = arith.constant 0 : index
    %c0_6 = arith.constant 0 : index
    %6 = vector.load %arg5[%c0_5, %c0_6] : memref<1x128xf32, #tpu.memory_space<vmem>>, vector<1x128xf32>
    %7 = vector.broadcast %6 : vector<1x128xf32> to vector<30x128xf32>
    %8 = arith.addf %5, %7 : vector<30x128xf32>
    %cst_7 = arith.constant 0.000000e+00 : f32
    %9 = vector.broadcast %cst_7 : f32 to vector<30x128xf32>
    %10 = arith.maximumf %8, %9 : vector<30x128xf32>
    %c0_8 = arith.constant 0 : index
    %c0_9 = arith.constant 0 : index
    %11 = vector.load %arg6[%c0_8, %c0_9] : memref<30x128xf32, #tpu.memory_space<vmem>>, vector<30x128xf32>
    tpu.vector_store %arg6[%c0_8, %c0_9], %10 {strides = array<i32>} : memref<30x128xf32, #tpu.memory_space<vmem>>, vector<30x128xf32>,
    %12 = vector.extract_strided_slice %0 {offsets = [0, 256], sizes = [30, 64], strides = [1, 1]} : vector<30x576xf32> to vector<30x64xf32>
    %c0_10 = arith.constant 0 : index
    %c0_11 = arith.constant 0 : index
    %13 = vector.load %arg3[%c0_10, %c0_11] : memref<64x128xf32, #tpu.memory_space<vmem>>, vector<64x128xf32>
    %cst_12 = arith.constant dense<0.000000e+00> : vector<30x128xf32>
    %14 = tpu.matmul %12, %13, %cst_12 {dimension_numbers = #tpu.dot_dimension_numbers<[1], [0], [0], [1], [0, 0, 1, 1], [], []>} : vector<30x64xf32>, vector<64x128xf32>, vector<30x128xf32> -> vector<30x128xf32>
    %c0_13 = arith.constant 0 : index
    %c0_14 = arith.constant 0 : index
    %15 = vector.load %arg7[%c0_13, %c0_14] : memref<30x128xf32, #tpu.memory_space<vmem>>, vector<30x128xf32>
    tpu.vector_store %arg7[%c0_13, %c0_14], %14 {strides = array<i32>} : memref<30x128xf32, #tpu.memory_space<vmem>>, vector<30x128xf32>,
    return
  }
  func.func @transform_0(%arg0: i32) -> (i32, i32) {
    %c0_i32 = arith.constant 0 : i32
    %c0_i32_0 = arith.constant 0 : i32
    return %arg0, %c0_i32 : i32, i32
  }
  func.func @transform_1(%arg0: i32) -> (i32, i32) {
    %c0_i32 = arith.constant 0 : i32
    %c0_i32_0 = arith.constant 0 : i32
    %c0_i32_1 = arith.constant 0 : i32
    return %c0_i32, %c0_i32_0 : i32, i32
  }
  func.func @transform_2(%arg0: i32) -> (i32, i32) {
    %c0_i32 = arith.constant 0 : i32
    %c0_i32_0 = arith.constant 0 : i32
    %c0_i32_1 = arith.constant 0 : i32
    return %c0_i32, %c0_i32_0 : i32, i32
  }
  func.func @transform_3(%arg0: i32) -> (i32, i32) {
    %c0_i32 = arith.constant 0 : i32
    %c0_i32_0 = arith.constant 0 : i32
    %c0_i32_1 = arith.constant 0 : i32
    return %c0_i32, %c0_i32_0 : i32, i32
  }
  func.func @transform_4(%arg0: i32) -> (i32, i32) {
    %c0_i32 = arith.constant 0 : i32
    %c0_i32_0 = arith.constant 0 : i32
    %c0_i32_1 = arith.constant 0 : i32
    return %c0_i32, %c0_i32_0 : i32, i32
  }
  func.func @transform_5(%arg0: i32) -> (i32, i32) {
    %c0_i32 = arith.constant 0 : i32
    %c0_i32_0 = arith.constant 0 : i32
    return %arg0, %c0_i32 : i32, i32
  }
  func.func @transform_6(%arg0: i32) -> (i32, i32) {
    %c0_i32 = arith.constant 0 : i32
    %c0_i32_0 = arith.constant 0 : i32
    return %arg0, %c0_i32 : i32, i32
  }
}

module attributes {stable_mosaic.version = 11 : i64} {
  func.func @_mm_bias_kernel(%arg0: i32, %arg1: memref<2x1920xf32, #tpu.memory_space<vmem>>, %arg2: memref<1920x4xf32, #tpu.memory_space<vmem>>, %arg3: memref<1x4xf32, #tpu.memory_space<vmem>>, %arg4: memref<2x4xf32, #tpu.memory_space<vmem>>) attributes {dimension_semantics = [#tpu.dimension_semantics<parallel>], iteration_bounds = array<i64: 1>, scalar_prefetch = 0 : i64, scratch_operands = 0 : i64, tpu.core_type = #tpu.core_type<tc>, window_params = [{transform_indices = @transform_0, window_bounds = array<i64: 2, 1920>}, {pipeline_mode = #tpu.pipeline_mode<synchronous>, transform_indices = @transform_1, window_bounds = array<i64: 1920, 4>}, {pipeline_mode = #tpu.pipeline_mode<synchronous>, transform_indices = @transform_2, window_bounds = array<i64: 1, 4>}, {transform_indices = @transform_3, window_bounds = array<i64: 2, 4>}]} {
    %c0 = arith.constant 0 : index
    %c0_0 = arith.constant 0 : index
    %0 = vector.load %arg1[%c0, %c0_0] : memref<2x1920xf32, #tpu.memory_space<vmem>>, vector<2x1920xf32>
    %c0_1 = arith.constant 0 : index
    %c0_2 = arith.constant 0 : index
    %1 = vector.load %arg2[%c0_1, %c0_2] : memref<1920x4xf32, #tpu.memory_space<vmem>>, vector<1920x4xf32>
    %cst = arith.constant dense<0.000000e+00> : vector<2x4xf32>
    %2 = tpu.matmul %0, %1, %cst {dimension_numbers = #tpu.dot_dimension_numbers<[1], [0], [0], [1], [0, 0, 1, 1], [], []>} : vector<2x1920xf32>, vector<1920x4xf32>, vector<2x4xf32> -> vector<2x4xf32>
    %c0_3 = arith.constant 0 : index
    %c0_4 = arith.constant 0 : index
    %3 = vector.load %arg3[%c0_3, %c0_4] : memref<1x4xf32, #tpu.memory_space<vmem>>, vector<1x4xf32>
    %4 = vector.broadcast %3 : vector<1x4xf32> to vector<2x4xf32>
    %5 = arith.addf %2, %4 : vector<2x4xf32>
    %c0_5 = arith.constant 0 : index
    %c0_6 = arith.constant 0 : index
    %6 = vector.load %arg4[%c0_5, %c0_6] : memref<2x4xf32, #tpu.memory_space<vmem>>, vector<2x4xf32>
    tpu.vector_store %arg4[%c0_5, %c0_6], %5 {strides = array<i32>} : memref<2x4xf32, #tpu.memory_space<vmem>>, vector<2x4xf32>,
    return
  }
  func.func @transform_0(%arg0: i32) -> (i32, i32) {
    %c0_i32 = arith.constant 0 : i32
    %c0_i32_0 = arith.constant 0 : i32
    return %arg0, %c0_i32 : i32, i32
  }
  func.func @transform_1(%arg0: i32) -> (i32, i32) {
    %c0_i32 = arith.constant 0 : i32
    %c0_i32_0 = arith.constant 0 : i32
    %c0_i32_1 = arith.constant 0 : i32
    return %c0_i32, %c0_i32_0 : i32, i32
  }
  func.func @transform_2(%arg0: i32) -> (i32, i32) {
    %c0_i32 = arith.constant 0 : i32
    %c0_i32_0 = arith.constant 0 : i32
    %c0_i32_1 = arith.constant 0 : i32
    return %c0_i32, %c0_i32_0 : i32, i32
  }
  func.func @transform_3(%arg0: i32) -> (i32, i32) {
    %c0_i32 = arith.constant 0 : i32
    %c0_i32_0 = arith.constant 0 : i32
    return %arg0, %c0_i32 : i32, i32
  }
}

module attributes {stable_mosaic.version = 11 : i64} {
  func.func @_mm_add_bn_relu_kernel(%arg0: i32, %arg1: memref<30x1152xf32, #tpu.memory_space<vmem>>, %arg2: memref<1152x128xf32, #tpu.memory_space<vmem>>, %arg3: memref<30x128xf32, #tpu.memory_space<vmem>>, %arg4: memref<1x128xf32, #tpu.memory_space<vmem>>, %arg5: memref<1x128xf32, #tpu.memory_space<vmem>>, %arg6: memref<30x128xf32, #tpu.memory_space<vmem>>) attributes {dimension_semantics = [#tpu.dimension_semantics<parallel>], iteration_bounds = array<i64: 1>, scalar_prefetch = 0 : i64, scratch_operands = 0 : i64, tpu.core_type = #tpu.core_type<tc>, window_params = [{transform_indices = @transform_0, window_bounds = array<i64: 30, 1152>}, {pipeline_mode = #tpu.pipeline_mode<synchronous>, transform_indices = @transform_1, window_bounds = array<i64: 1152, 128>}, {transform_indices = @transform_2, window_bounds = array<i64: 30, 128>}, {pipeline_mode = #tpu.pipeline_mode<synchronous>, transform_indices = @transform_3, window_bounds = array<i64: 1, 128>}, {pipeline_mode = #tpu.pipeline_mode<synchronous>, transform_indices = @transform_4, window_bounds = array<i64: 1, 128>}, {transform_indices = @transform_5, window_bounds = array<i64: 30, 128>}]} {
    %c0 = arith.constant 0 : index
    %c0_0 = arith.constant 0 : index
    %0 = vector.load %arg1[%c0, %c0_0] : memref<30x1152xf32, #tpu.memory_space<vmem>>, vector<30x1152xf32>
    %c0_1 = arith.constant 0 : index
    %c0_2 = arith.constant 0 : index
    %1 = vector.load %arg2[%c0_1, %c0_2] : memref<1152x128xf32, #tpu.memory_space<vmem>>, vector<1152x128xf32>
    %cst = arith.constant dense<0.000000e+00> : vector<30x128xf32>
    %2 = tpu.matmul %0, %1, %cst {dimension_numbers = #tpu.dot_dimension_numbers<[1], [0], [0], [1], [0, 0, 1, 1], [], []>} : vector<30x1152xf32>, vector<1152x128xf32>, vector<30x128xf32> -> vector<30x128xf32>
    %c0_3 = arith.constant 0 : index
    %c0_4 = arith.constant 0 : index
    %3 = vector.load %arg3[%c0_3, %c0_4] : memref<30x128xf32, #tpu.memory_space<vmem>>, vector<30x128xf32>
    %4 = arith.addf %2, %3 : vector<30x128xf32>
    %c0_5 = arith.constant 0 : index
    %c0_6 = arith.constant 0 : index
    %5 = vector.load %arg4[%c0_5, %c0_6] : memref<1x128xf32, #tpu.memory_space<vmem>>, vector<1x128xf32>
    %6 = vector.broadcast %5 : vector<1x128xf32> to vector<30x128xf32>
    %7 = arith.mulf %4, %6 : vector<30x128xf32>
    %c0_7 = arith.constant 0 : index
    %c0_8 = arith.constant 0 : index
    %8 = vector.load %arg5[%c0_7, %c0_8] : memref<1x128xf32, #tpu.memory_space<vmem>>, vector<1x128xf32>
    %9 = vector.broadcast %8 : vector<1x128xf32> to vector<30x128xf32>
    %10 = arith.addf %7, %9 : vector<30x128xf32>
    %cst_9 = arith.constant 0.000000e+00 : f32
    %11 = vector.broadcast %cst_9 : f32 to vector<30x128xf32>
    %12 = arith.maximumf %10, %11 : vector<30x128xf32>
    %c0_10 = arith.constant 0 : index
    %c0_11 = arith.constant 0 : index
    %13 = vector.load %arg6[%c0_10, %c0_11] : memref<30x128xf32, #tpu.memory_space<vmem>>, vector<30x128xf32>
    tpu.vector_store %arg6[%c0_10, %c0_11], %12 {strides = array<i32>} : memref<30x128xf32, #tpu.memory_space<vmem>>, vector<30x128xf32>,
    return
  }
  func.func @transform_0(%arg0: i32) -> (i32, i32) {
    %c0_i32 = arith.constant 0 : i32
    %c0_i32_0 = arith.constant 0 : i32
    return %arg0, %c0_i32 : i32, i32
  }
  func.func @transform_1(%arg0: i32) -> (i32, i32) {
    %c0_i32 = arith.constant 0 : i32
    %c0_i32_0 = arith.constant 0 : i32
    %c0_i32_1 = arith.constant 0 : i32
    return %c0_i32, %c0_i32_0 : i32, i32
  }
  func.func @transform_2(%arg0: i32) -> (i32, i32) {
    %c0_i32 = arith.constant 0 : i32
    %c0_i32_0 = arith.constant 0 : i32
    return %arg0, %c0_i32 : i32, i32
  }
  func.func @transform_3(%arg0: i32) -> (i32, i32) {
    %c0_i32 = arith.constant 0 : i32
    %c0_i32_0 = arith.constant 0 : i32
    %c0_i32_1 = arith.constant 0 : i32
    return %c0_i32, %c0_i32_0 : i32, i32
  }
  func.func @transform_4(%arg0: i32) -> (i32, i32) {
    %c0_i32 = arith.constant 0 : i32
    %c0_i32_0 = arith.constant 0 : i32
    %c0_i32_1 = arith.constant 0 : i32
    return %c0_i32, %c0_i32_0 : i32, i32
  }
  func.func @transform_5(%arg0: i32) -> (i32, i32) {
    %c0_i32 = arith.constant 0 : i32
    %c0_i32_0 = arith.constant 0 : i32
    return %arg0, %c0_i32 : i32, i32
  }
}

</mosaic_0001>

<bundles_post_ra>
// kernel: dronet_forward.9
= control target key start
LH: loop header
LB: loop body
LE: loop exit
PB: predicated region body
PF: predicated region fallthrough
CT: control target
= control target key end

     0   :  { %s6855_s9 = smov 0   ;;  %s8833_s0 = inlined_call_operand.vmem [shape: f32[7680,75], index: 0, kind: input, shape index: {}]   ;;  %s8834_s1 = inlined_call_operand.vmem [shape: f32[75,32], index: 1, kind: input, shape index: {}]   ;;  %s8835_s2 = inlined_call_operand.vmem [shape: f32[7680,32], index: 2, kind: output, shape index: {}]  }
   0x1 LB: > { %s5084_s10 = sadd.s32 4294967295, %s6838_s9   ;;  %p5088_p0 = scmp.ge.s32.totalorder %s6838_s9, 1  ;;  %s6838_s9 = sphi %s6855_s9, %s12_s9  }
   0x2   : > { %p113_p1 = scmp.lt.s32.totalorder %s6838_s9, 3 }
   0x4   : > { %p114_p2 = pnand %p5088_p0, %p113_p1 }
   0x5   : > { %s135_s15 = smul.u32 (!%p114_p2), 480, %s5084_s10 }
   0x6   : > { %117 = sbr.rel (%p114_p2) target bundleno = 705 (0x2c1), region = 28 }
   0x7   : > { %p136_p3 = scmp.lt.s32.totalorder (!%p114_p2), %s135_s15, 959 }
   0xb   : > { %v636_v0 = vld [vmem:[%s8834_s1 + $0x48] sm:$0x7]  ;;  %vm2078_vm0 = vcmask 1042432   ;;  %v635_v1 = vld [vmem:[%s8834_s1 + $0x40] sm:$0xff]  ;;  %v634_v2 = vld [vmem:[%s8834_s1 + $0x38] sm:$0xff]  ;;  %s8837_s15 = smov (!%p136_p3, %s135_s15), 959 }
   0xc   : > { %6064 = vmatprep.subr.msk.mxu0 %vm2078_vm0, %v636_v0  ;;  %6804 = vmatprep.subr.msk.mxu1 %vm2078_vm0, %v636_v0  ;;  %v633_v3 = vld [vmem:[%s8834_s1 + $0x30] sm:$0xff]  ;;  %v632_v4 = vld [vmem:[%s8834_s1 + $0x28] sm:$0xff]  ;;  %v631_v5 = vld [vmem:[%s8834_s1 + $0x20] sm:$0xff]  ;;  %s5089_s28 = sshll.u32 %s8837_s15, 3  ;;  %vm637_vm1 = vcmask 613376   ;;  %vm4547_vm2 = vcmask 261120  }
   0xd   : > { %6065 = vmatpush3.msk.msra.mxu0 %vm2078_vm0, %v636_v0  ;;  %6814 = vmatpush3.msk.msra.mxu1 %vm2078_vm0, %v636_v0  ;;  %v630_v6 = vld [vmem:[%s8834_s1 + $0x18] sm:$0xff]  ;;  %v629_v7 = vld [vmem:[%s8834_s1 + $0x10] sm:$0xff]  ;;  %v628_v8 = vld [vmem:[%s8834_s1 + $0x8] sm:$0xff]  ;;  %s6898_s5 = scalar_lea.vmem %s8833_s0, %s5089_s28  ;;  %s7298_s11 = scalar_lea.vmem %s8835_s2, %s5089_s28 }
   0xe   : > { %6066 = vmatprep.subr.mxu0 %v635_v1  ;;  %6805 = vmatprep.subr.mxu1 %v635_v1  ;;  %v627_v9 = vld [vmem:[%s8834_s1] sm:$0xff]  ;;  %v148_v12 = vld [vmem:[%s6898_s5 + $0x8] sm:$0xff]  ;;  %v149_v14 = vld [vmem:[%s6898_s5 + $0x10] sm:$0xff] }
   0xf   : > { %6067 = vmatpush3.msra.mxu0 %v635_v1  ;;  %6815 = vmatpush3.msra.mxu1 %v635_v1  ;;  %v147_v10 = vld [vmem:[%s6898_s5] sm:$0xff]  ;;  %v388_v13 = vld [vmem:[%s6898_s5 + $0x788] sm:$0xff]  ;;  %v389_v15 = vld [vmem:[%s6898_s5 + $0x790] sm:$0xff] }
  0x10   : > { %6068 = vmatprep.subr.mxu0 %v634_v2  ;;  %6806 = vmatprep.subr.mxu1 %v634_v2  ;;  %v387_v11 = vld [vmem:[%s6898_s5 + $0x780] sm:$0xff]  ;;  %v150_v16 = vld [vmem:[%s6898_s5 + $0x18] sm:$0xff]  ;;  %v152_v20 = vld [vmem:[%s6898_s5 + $0x28] sm:$0xff] }
  0x11   : > { %6069 = vmatpush3.msra.mxu0 %v634_v2  ;;  %6816 = vmatpush3.msra.mxu1 %v634_v2  ;;  %v390_v17 = vld [vmem:[%s6898_s5 + $0x798] sm:$0xff]  ;;  %v151_v18 = vld [vmem:[%s6898_s5 + $0x20] sm:$0xff]  ;;  %v392_v21 = vld [vmem:[%s6898_s5 + $0x7a8] sm:$0xff] }
  0x12   : > { %6070 = vmatprep.subr.mxu0 %v633_v3  ;;  %6807 = vmatprep.subr.mxu1 %v633_v3  ;;  %v391_v19 = vld [vmem:[%s6898_s5 + $0x7a0] sm:$0xff]  ;;  %v153_v22 = vld [vmem:[%s6898_s5 + $0x30] sm:$0xff]  ;;  %v154_v24 = vld [vmem:[%s6898_s5 + $0x38] sm:$0xff] }
  0x13   : > { %6071 = vmatpush3.msra.mxu0 %v633_v3  ;;  %6817 = vmatpush3.msra.mxu1 %v633_v3  ;;  %v393_v23 = vld [vmem:[%s6898_s5 + $0x7b0] sm:$0xff]  ;;  %v394_v25 = vld [vmem:[%s6898_s5 + $0x7b8] sm:$0xff]  ;;  %v155_v26 = vld [vmem:[%s6898_s5 + $0x40] sm:$0xff] }
  0x14   : > { %6072 = vmatprep.subr.mxu0 %v632_v4  ;;  %6808 = vmatprep.subr.mxu1 %v632_v4  ;;  %v395_v27 = vld [vmem:[%s6898_s5 + $0x7c0] sm:$0xff]  ;;  %v156_v28 = vld [vmem:[%s6898_s5 + $0x48] sm:$0xff]  ;;  %v157_v30 = vld [vmem:[%s6898_s5 + $0x50] sm:$0xff] }
  0x15   : > { %6073 = vmatpush3.msra.mxu0 %v632_v4  ;;  %6818 = vmatpush3.msra.mxu1 %v632_v4  ;;  %v396_v29 = vld [vmem:[%s6898_s5 + $0x7c8] sm:$0xff]  ;;  %v397_v31 = vld [vmem:[%s6898_s5 + $0x7d0] sm:$0xff]  ;;  %v158_v32 = vld [vmem:[%s6898_s5 + $0x58] sm:$0xff] }
  0x16   : > { %6074 = vmatprep.subr.mxu0 %v631_v5  ;;  %6809 = vmatprep.subr.mxu1 %v631_v5  ;;  %v398_v33 = vld [vmem:[%s6898_s5 + $0x7d8] sm:$0xff]  ;;  %v159_v34 = vld [vmem:[%s6898_s5 + $0x60] sm:$0xff]  ;;  %v160_v36 = vld [vmem:[%s6898_s5 + $0x68] sm:$0xff] }
  0x17   : > { %6075 = vmatpush3.msra.mxu0 %v631_v5  ;;  %6819 = vmatpush3.msra.mxu1 %v631_v5  ;;  %v399_v35 = vld [vmem:[%s6898_s5 + $0x7e0] sm:$0xff]  ;;  %v400_v37 = vld [vmem:[%s6898_s5 + $0x7e8] sm:$0xff]  ;;  %v161_v38 = vld [vmem:[%s6898_s5 + $0x70] sm:$0xff] }
  0x18   : > { %6076 = vmatprep.subr.mxu0 %v630_v6  ;;  %6810 = vmatprep.subr.mxu1 %v630_v6  ;;  %v401_v39 = vld [vmem:[%s6898_s5 + $0x7f0] sm:$0xff]  ;;  %v162_v40 = vld [vmem:[%s6898_s5 + $0x78] sm:$0xff]  ;;  %v163_v42 = vld [vmem:[%s6898_s5 + $0x80] sm:$0xff] }
  0x19   : > { %6077 = vmatpush3.msra.mxu0 %v630_v6  ;;  %6820 = vmatpush3.msra.mxu1 %v630_v6  ;;  %v402_v41 = vld [vmem:[%s6898_s5 + $0x7f8] sm:$0xff]  ;;  %v403_v43 = vld [vmem:[%s6898_s5 + $0x800] sm:$0xff]  ;;  %v164_v44 = vld [vmem:[%s6898_s5 + $0x88] sm:$0xff] }
  0x1a   : > { %6078 = vmatprep.subr.mxu0 %v629_v7  ;;  %6811 = vmatprep.subr.mxu1 %v629_v7  ;;  %v404_v45 = vld [vmem:[%s6898_s5 + $0x808] sm:$0xff]  ;;  %v165_v46 = vld [vmem:[%s6898_s5 + $0x90] sm:$0xff]  ;;  %v166_v48 = vld [vmem:[%s6898_s5 + $0x98] sm:$0xff] }
  0x1b   : > { %6079 = vmatpush3.msra.mxu0 %v629_v7  ;;  %6821 = vmatpush3.msra.mxu1 %v629_v7  ;;  %v405_v47 = vld [vmem:[%s6898_s5 + $0x810] sm:$0xff]  ;;  %v406_v49 = vld [vmem:[%s6898_s5 + $0x818] sm:$0xff]  ;;  %v167_v50 = vld [vmem:[%s6898_s5 + $0xa0] sm:$0xff] }
  0x1c   : > { %6080 = vmatprep.subr.mxu0 %v628_v8  ;;  %6812 = vmatprep.subr.mxu1 %v628_v8  ;;  %v407_v51 = vld [vmem:[%s6898_s5 + $0x820] sm:$0xff]  ;;  %v168_v52 = vld [vmem:[%s6898_s5 + $0xa8] sm:$0xff]  ;;  %v169_v54 = vld [vmem:[%s6898_s5 + $0xb0] sm:$0xff] }
  0x1d   : > { %6081 = vmatpush3.msra.mxu0 %v628_v8  ;;  %6822 = vmatpush3.msra.mxu1 %v628_v8  ;;  %v408_v53 = vld [vmem:[%s6898_s5 + $0x828] sm:$0xff]  ;;  %v409_v55 = vld [vmem:[%s6898_s5 + $0x830] sm:$0xff]  ;;  %v170_v56 = vld [vmem:[%s6898_s5 + $0xb8] sm:$0xff] }
  0x1e   : > { %6082 = vmatprep.subr.mxu0 %v627_v9  ;;  %6813 = vmatprep.subr.mxu1 %v627_v9  ;;  %v410_v57 = vld [vmem:[%s6898_s5 + $0x838] sm:$0xff]  ;;  %v171_v58 = vld [vmem:[%s6898_s5 + $0xc0] sm:$0xff]  ;;  %v172_v60 = vld [vmem:[%s6898_s5 + $0xc8] sm:$0xff] }
  0x1f   : > { %6083 = vmatpush3.msra.mxu0 %v627_v9  ;;  %6823 = vmatpush3.msra.mxu1 %v627_v9  ;;  %v411_v59 = vld [vmem:[%s6898_s5 + $0x840] sm:$0xff]  ;;  %v412_v61 = vld [vmem:[%s6898_s5 + $0x848] sm:$0xff]  ;;  %v173_v62 = vld [vmem:[%s6898_s5 + $0xd0] sm:$0xff] }
  0x20   : > { %6084 = vmatprep.mubr.msk.f32.mxu0 %vm637_vm1, %v147_v10  ;;  %6444 = vmatprep.mubr.msk.f32.mxu1 %vm637_vm1, %v387_v11  ;;  %v413_v63 = vld [vmem:[%s6898_s5 + $0x850] sm:$0xff]  ;;  %v174_v0 = vld [vmem:[%s6898_s5 + $0xd8] sm:$0xff]  ;;  %v175_v2 = vld [vmem:[%s6898_s5 + $0xe0] sm:$0xff] }
  0x21   : > { %6085 = vmatmul.mubr.msk.f32.vlgmr.msra.gmra.mxu0 %vm637_vm1, %v148_v12  ;;  %6445 = vmatmul.mubr.msk.f32.vlgmr.msra.gmra.mxu1 %vm637_vm1, %v388_v13  ;;  %v414_v1 = vld [vmem:[%s6898_s5 + $0x858] sm:$0xff]  ;;  %v415_v3 = vld [vmem:[%s6898_s5 + $0x860] sm:$0xff]  ;;  %v176_v4 = vld [vmem:[%s6898_s5 + $0xe8] sm:$0xff] }
  0x22   : > { %6087 = vmatprep.mubr.msk.f32.mxu0 %vm637_vm1, %v149_v14  ;;  %6447 = vmatprep.mubr.msk.f32.mxu1 %vm637_vm1, %v389_v15  ;;  %v416_v5 = vld [vmem:[%s6898_s5 + $0x868] sm:$0xff]  ;;  %v177_v6 = vld [vmem:[%s6898_s5 + $0xf0] sm:$0xff]  ;;  %v178_v8 = vld [vmem:[%s6898_s5 + $0xf8] sm:$0xff] }
  0x23   : > { %v417_v7 = vld [vmem:[%s6898_s5 + $0x870] sm:$0xff]  ;;  %v418_v9 = vld [vmem:[%s6898_s5 + $0x878] sm:$0xff]  ;;  %v179_v10 = vld [vmem:[%s6898_s5 + $0x100] sm:$0xff] }
  0x24   : > { %v419_v11 = vld [vmem:[%s6898_s5 + $0x880] sm:$0xff]  ;;  %v180_v12 = vld [vmem:[%s6898_s5 + $0x108] sm:$0xff]  ;;  %v181_v14 = vld [vmem:[%s6898_s5 + $0x110] sm:$0xff] }
  0x25   : > { %6088 = vmatmul.mubr.msk.f32.gmra.mxu0 %vm637_vm1, %v150_v16  ;;  %6448 = vmatmul.mubr.msk.f32.gmra.mxu1 %vm637_vm1, %v390_v17  ;;  %v420_v13 = vld [vmem:[%s6898_s5 + $0x888] sm:$0xff]  ;;  %v421_v15 = vld [vmem:[%s6898_s5 + $0x890] sm:$0xff]  ;;  %v182_v16 = vld [vmem:[%s6898_s5 + $0x118] sm:$0xff] }
  0x26   : > { %6090 = vmatprep.mubr.msk.f32.mxu0 %vm637_vm1, %v151_v18  ;;  %6450 = vmatprep.mubr.msk.f32.mxu1 %vm637_vm1, %v391_v19  ;;  %v422_v17 = vld [vmem:[%s6898_s5 + $0x898] sm:$0xff]  ;;  %v183_v18 = vld [vmem:[%s6898_s5 + $0x120] sm:$0xff] }
  0x27   : > { %v423_v19 = vld [vmem:[%s6898_s5 + $0x8a0] sm:$0xff] }
  0x29   : > { %6091 = vmatmul.mubr.msk.f32.gmra.mxu0 %vm637_vm1, %v152_v20  ;;  %6451 = vmatmul.mubr.msk.f32.gmra.mxu1 %vm637_vm1, %v392_v21  ;;  %v184_v20 = vld [vmem:[%s6898_s5 + $0x128] sm:$0xff] }
  0x2a   : > { %6093 = vmatprep.mubr.msk.f32.mxu0 %vm637_vm1, %v153_v22  ;;  %6453 = vmatprep.mubr.msk.f32.mxu1 %vm637_vm1, %v393_v23  ;;  %v424_v21 = vld [vmem:[%s6898_s5 + $0x8a8] sm:$0xff]  ;;  %v185_v22 = vld [vmem:[%s6898_s5 + $0x130] sm:$0xff] }
  0x2b   : > { %v425_v23 = vld [vmem:[%s6898_s5 + $0x8b0] sm:$0xff] }
  0x2d   : > { %6094 = vmatmul.mubr.msk.f32.gmra.mxu0 %vm637_vm1, %v154_v24  ;;  %6454 = vmatmul.mubr.msk.f32.gmra.mxu1 %vm637_vm1, %v394_v25  ;;  %v186_v24 = vld [vmem:[%s6898_s5 + $0x138] sm:$0xff] }
  0x2e   : > { %6096 = vmatprep.mubr.msk.f32.mxu0 %vm637_vm1, %v155_v26  ;;  %6456 = vmatprep.mubr.msk.f32.mxu1 %vm637_vm1, %v395_v27  ;;  %v426_v25 = vld [vmem:[%s6898_s5 + $0x8b8] sm:$0xff]  ;;  %v187_v26 = vld [vmem:[%s6898_s5 + $0x140] sm:$0xff] }
  0x2f   : > { %v427_v27 = vld [vmem:[%s6898_s5 + $0x8c0] sm:$0xff] }
  0x31   : > { %6097 = vmatmul.mubr.msk.f32.gmra.mxu0 %vm637_vm1, %v156_v28  ;;  %6457 = vmatmul.mubr.msk.f32.gmra.mxu1 %vm637_vm1, %v396_v29  ;;  %v188_v28 = vld [vmem:[%s6898_s5 + $0x148] sm:$0xff] }
  0x32   : > { %6099 = vmatprep.mubr.msk.f32.mxu0 %vm637_vm1, %v157_v30  ;;  %6459 = vmatprep.mubr.msk.f32.mxu1 %vm637_vm1, %v397_v31  ;;  %v428_v29 = vld [vmem:[%s6898_s5 + $0x8c8] sm:$0xff]  ;;  %v189_v30 = vld [vmem:[%s6898_s5 + $0x150] sm:$0xff] }
  0x33   : > { %v429_v31 = vld [vmem:[%s6898_s5 + $0x8d0] sm:$0xff] }
  0x35   : > { %6100 = vmatmul.mubr.msk.f32.gmra.mxu0 %vm637_vm1, %v158_v32  ;;  %6460 = vmatmul.mubr.msk.f32.gmra.mxu1 %vm637_vm1, %v398_v33  ;;  %v190_v32 = vld [vmem:[%s6898_s5 + $0x158] sm:$0xff] }
  0x36   : > { %6102 = vmatprep.mubr.msk.f32.mxu0 %vm637_vm1, %v159_v34  ;;  %6462 = vmatprep.mubr.msk.f32.mxu1 %vm637_vm1, %v399_v35  ;;  %v430_v33 = vld [vmem:[%s6898_s5 + $0x8d8] sm:$0xff]  ;;  %v191_v34 = vld [vmem:[%s6898_s5 + $0x160] sm:$0xff] }
  0x37   : > { %v431_v35 = vld [vmem:[%s6898_s5 + $0x8e0] sm:$0xff] }
  0x39   : > { %6103 = vmatmul.mubr.msk.f32.gmra.mxu0 %vm637_vm1, %v160_v36  ;;  %6463 = vmatmul.mubr.msk.f32.gmra.mxu1 %vm637_vm1, %v400_v37  ;;  %v192_v36 = vld [vmem:[%s6898_s5 + $0x168] sm:$0xff] }
  0x3a   : > { %6105 = vmatprep.mubr.msk.f32.mxu0 %vm637_vm1, %v161_v38  ;;  %6465 = vmatprep.mubr.msk.f32.mxu1 %vm637_vm1, %v401_v39  ;;  %v432_v37 = vld [vmem:[%s6898_s5 + $0x8e8] sm:$0xff]  ;;  %v193_v38 = vld [vmem:[%s6898_s5 + $0x170] sm:$0xff] }
  0x3b   : > { %v433_v39 = vld [vmem:[%s6898_s5 + $0x8f0] sm:$0xff] }
  0x3d   : > { %6106 = vmatmul.mubr.msk.f32.gmra.mxu0 %vm637_vm1, %v162_v40  ;;  %6466 = vmatmul.mubr.msk.f32.gmra.mxu1 %vm637_vm1, %v402_v41  ;;  %v194_v40 = vld [vmem:[%s6898_s5 + $0x178] sm:$0xff] }
  0x3e   : > { %6108 = vmatprep.mubr.msk.f32.mxu0 %vm637_vm1, %v163_v42  ;;  %6468 = vmatprep.mubr.msk.f32.mxu1 %vm637_vm1, %v403_v43  ;;  %v434_v41 = vld [vmem:[%s6898_s5 + $0x8f8] sm:$0xff]  ;;  %v195_v42 = vld [vmem:[%s6898_s5 + $0x180] sm:$0xff] }
  0x3f   : > { %v435_v43 = vld [vmem:[%s6898_s5 + $0x900] sm:$0xff] }
  0x41   : > { %6109 = vmatmul.mubr.msk.f32.gmra.mxu0 %vm637_vm1, %v164_v44  ;;  %6469 = vmatmul.mubr.msk.f32.gmra.mxu1 %vm637_vm1, %v404_v45  ;;  %v196_v44 = vld [vmem:[%s6898_s5 + $0x188] sm:$0xff] }
  0x42   : > { %6111 = vmatprep.mubr.msk.f32.mxu0 %vm637_vm1, %v165_v46  ;;  %6471 = vmatprep.mubr.msk.f32.mxu1 %vm637_vm1, %v405_v47  ;;  %v436_v45 = vld [vmem:[%s6898_s5 + $0x908] sm:$0xff]  ;;  %v197_v46 = vld [vmem:[%s6898_s5 + $0x190] sm:$0xff] }
  0x43   : > { %v437_v47 = vld [vmem:[%s6898_s5 + $0x910] sm:$0xff] }
  0x45   : > { %6112 = vmatmul.mubr.msk.f32.gmra.mxu0 %vm637_vm1, %v166_v48  ;;  %6472 = vmatmul.mubr.msk.f32.gmra.mxu1 %vm637_vm1, %v406_v49  ;;  %v198_v48 = vld [vmem:[%s6898_s5 + $0x198] sm:$0xff] }
  0x46   : > { %6114 = vmatprep.mubr.msk.f32.mxu0 %vm637_vm1, %v167_v50  ;;  %6474 = vmatprep.mubr.msk.f32.mxu1 %vm637_vm1, %v407_v51  ;;  %v438_v49 = vld [vmem:[%s6898_s5 + $0x918] sm:$0xff]  ;;  %v199_v50 = vld [vmem:[%s6898_s5 + $0x1a0] sm:$0xff] }
  0x47   : > { %v439_v51 = vld [vmem:[%s6898_s5 + $0x920] sm:$0xff] }
  0x49   : > { %6115 = vmatmul.mubr.msk.f32.gmra.mxu0 %vm637_vm1, %v168_v52  ;;  %6475 = vmatmul.mubr.msk.f32.gmra.mxu1 %vm637_vm1, %v408_v53  ;;  %v200_v52 = vld [vmem:[%s6898_s5 + $0x1a8] sm:$0xff] }
  0x4a   : > { %6117 = vmatprep.mubr.msk.f32.mxu0 %vm637_vm1, %v169_v54  ;;  %6477 = vmatprep.mubr.msk.f32.mxu1 %vm637_vm1, %v409_v55  ;;  %v440_v53 = vld [vmem:[%s6898_s5 + $0x928] sm:$0xff]  ;;  %v201_v54 = vld [vmem:[%s6898_s5 + $0x1b0] sm:$0xff] }
  0x4b   : > { %v441_v55 = vld [vmem:[%s6898_s5 + $0x930] sm:$0xff] }
  0x4d   : > { %6118 = vmatmul.mubr.msk.f32.gmra.mxu0 %vm637_vm1, %v170_v56  ;;  %6478 = vmatmul.mubr.msk.f32.gmra.mxu1 %vm637_vm1, %v410_v57  ;;  %v202_v56 = vld [vmem:[%s6898_s5 + $0x1b8] sm:$0xff] }
  0x4e   : > { %6120 = vmatprep.mubr.msk.f32.mxu0 %vm637_vm1, %v171_v58  ;;  %6480 = vmatprep.mubr.msk.f32.mxu1 %vm637_vm1, %v411_v59  ;;  %v442_v57 = vld [vmem:[%s6898_s5 + $0x938] sm:$0xff]  ;;  %v203_v58 = vld [vmem:[%s6898_s5 + $0x1c0] sm:$0xff] }
  0x4f   : > { %v443_v59 = vld [vmem:[%s6898_s5 + $0x940] sm:$0xff] }
  0x51   : > { %6121 = vmatmul.mubr.msk.f32.gmra.mxu0 %vm637_vm1, %v172_v60  ;;  %6481 = vmatmul.mubr.msk.f32.gmra.mxu1 %vm637_vm1, %v412_v61  ;;  %v204_v60 = vld [vmem:[%s6898_s5 + $0x1c8] sm:$0xff] }
  0x52   : > { %6123 = vmatprep.mubr.msk.f32.mxu0 %vm637_vm1, %v173_v62  ;;  %6483 = vmatprep.mubr.msk.f32.mxu1 %vm637_vm1, %v413_v63  ;;  %v444_v61 = vld [vmem:[%s6898_s5 + $0x948] sm:$0xff]  ;;  %v205_v62 = vld [vmem:[%s6898_s5 + $0x1d0] sm:$0xff] }
  0x53   : > { %v445_v63 = vld [vmem:[%s6898_s5 + $0x950] sm:$0xff] }
  0x55   : > { %6124 = vmatmul.mubr.msk.f32.gmra.mxu0 %vm637_vm1, %v174_v0  ;;  %6484 = vmatmul.mubr.msk.f32.gmra.mxu1 %vm637_vm1, %v414_v1  ;;  %v206_v0 = vld [vmem:[%s6898_s5 + $0x1d8] sm:$0xff] }
  0x56   : > { %6126 = vmatprep.mubr.msk.f32.mxu0 %vm637_vm1, %v175_v2  ;;  %6486 = vmatprep.mubr.msk.f32.mxu1 %vm637_vm1, %v415_v3  ;;  %v446_v1 = vld [vmem:[%s6898_s5 + $0x958] sm:$0xff]  ;;  %v207_v2 = vld [vmem:[%s6898_s5 + $0x1e0] sm:$0xff] }
  0x57   : > { %v447_v3 = vld [vmem:[%s6898_s5 + $0x960] sm:$0xff] }
  0x59   : > { %6127 = vmatmul.mubr.msk.f32.gmra.mxu0 %vm637_vm1, %v176_v4  ;;  %6487 = vmatmul.mubr.msk.f32.gmra.mxu1 %vm637_vm1, %v416_v5  ;;  %v208_v4 = vld [vmem:[%s6898_s5 + $0x1e8] sm:$0xff] }
  0x5a   : > { %6129 = vmatprep.mubr.msk.f32.mxu0 %vm637_vm1, %v177_v6  ;;  %6489 = vmatprep.mubr.msk.f32.mxu1 %vm637_vm1, %v417_v7  ;;  %v448_v5 = vld [vmem:[%s6898_s5 + $0x968] sm:$0xff]  ;;  %v209_v6 = vld [vmem:[%s6898_s5 + $0x1f0] sm:$0xff] }
  0x5b   : > { %v449_v7 = vld [vmem:[%s6898_s5 + $0x970] sm:$0xff] }
  0x5d   : > { %6130 = vmatmul.mubr.msk.f32.gmra.mxu0 %vm637_vm1, %v178_v8  ;;  %6490 = vmatmul.mubr.msk.f32.gmra.mxu1 %vm637_vm1, %v418_v9  ;;  %v210_v8 = vld [vmem:[%s6898_s5 + $0x1f8] sm:$0xff] }
  0x5e   : > { %6132 = vmatprep.mubr.msk.f32.mxu0 %vm637_vm1, %v179_v10  ;;  %6492 = vmatprep.mubr.msk.f32.mxu1 %vm637_vm1, %v419_v11  ;;  %v450_v9 = vld [vmem:[%s6898_s5 + $0x978] sm:$0xff]  ;;  %v211_v10 = vld [vmem:[%s6898_s5 + $0x200] sm:$0xff] }
  0x5f   : > { %v451_v11 = vld [vmem:[%s6898_s5 + $0x980] sm:$0xff] }
  0x61   : > { %6133 = vmatmul.mubr.msk.f32.gmra.mxu0 %vm637_vm1, %v180_v12  ;;  %6493 = vmatmul.mubr.msk.f32.gmra.mxu1 %vm637_vm1, %v420_v13  ;;  %v212_v12 = vld [vmem:[%s6898_s5 + $0x208] sm:$0xff] }
  0x62   : > { %6135 = vmatprep.mubr.msk.f32.mxu0 %vm637_vm1, %v181_v14  ;;  %6495 = vmatprep.mubr.msk.f32.mxu1 %vm637_vm1, %v421_v15  ;;  %v452_v13 = vld [vmem:[%s6898_s5 + $0x988] sm:$0xff]  ;;  %v213_v14 = vld [vmem:[%s6898_s5 + $0x210] sm:$0xff] }
  0x63   : > { %v453_v15 = vld [vmem:[%s6898_s5 + $0x990] sm:$0xff] }
  0x65   : > { %6136 = vmatmul.mubr.msk.f32.gmra.mxu0 %vm637_vm1, %v182_v16  ;;  %6496 = vmatmul.mubr.msk.f32.gmra.mxu1 %vm637_vm1, %v422_v17  ;;  %v214_v16 = vld [vmem:[%s6898_s5 + $0x218] sm:$0xff] }
  0x66   : > { %6138 = vmatprep.mubr.msk.f32.mxu0 %vm637_vm1, %v183_v18  ;;  %6498 = vmatprep.mubr.msk.f32.mxu1 %vm637_vm1, %v423_v19  ;;  %v454_v17 = vld [vmem:[%s6898_s5 + $0x998] sm:$0xff]  ;;  %v215_v18 = vld [vmem:[%s6898_s5 + $0x220] sm:$0xff] }
  0x67   : > { %v455_v19 = vld [vmem:[%s6898_s5 + $0x9a0] sm:$0xff] }
  0x69   : > { %6139 = vmatmul.mubr.msk.f32.gmra.mxu0 %vm637_vm1, %v184_v20  ;;  %6499 = vmatmul.mubr.msk.f32.gmra.mxu1 %vm637_vm1, %v424_v21  ;;  %v216_v20 = vld [vmem:[%s6898_s5 + $0x228] sm:$0xff] }
  0x6a   : > { %6141 = vmatprep.mubr.msk.f32.mxu0 %vm637_vm1, %v185_v22  ;;  %6501 = vmatprep.mubr.msk.f32.mxu1 %vm637_vm1, %v425_v23  ;;  %v456_v21 = vld [vmem:[%s6898_s5 + $0x9a8] sm:$0xff]  ;;  %v217_v22 = vld [vmem:[%s6898_s5 + $0x230] sm:$0xff] }
  0x6b   : > { %v457_v23 = vld [vmem:[%s6898_s5 + $0x9b0] sm:$0xff] }
  0x6d   : > { %6142 = vmatmul.mubr.msk.f32.gmra.mxu0 %vm637_vm1, %v186_v24  ;;  %6502 = vmatmul.mubr.msk.f32.gmra.mxu1 %vm637_vm1, %v426_v25  ;;  %v218_v24 = vld [vmem:[%s6898_s5 + $0x238] sm:$0xff] }
  0x6e   : > { %6144 = vmatprep.mubr.msk.f32.mxu0 %vm637_vm1, %v187_v26  ;;  %6504 = vmatprep.mubr.msk.f32.mxu1 %vm637_vm1, %v427_v27  ;;  %v458_v25 = vld [vmem:[%s6898_s5 + $0x9b8] sm:$0xff]  ;;  %v219_v26 = vld [vmem:[%s6898_s5 + $0x240] sm:$0xff] }
  0x6f   : > { %v459_v27 = vld [vmem:[%s6898_s5 + $0x9c0] sm:$0xff] }
  0x71   : > { %6145 = vmatmul.mubr.msk.f32.gmra.mxu0 %vm637_vm1, %v188_v28  ;;  %6505 = vmatmul.mubr.msk.f32.gmra.mxu1 %vm637_vm1, %v428_v29  ;;  %v220_v28 = vld [vmem:[%s6898_s5 + $0x248] sm:$0xff] }
  0x72   : > { %6147 = vmatprep.mubr.msk.f32.mxu0 %vm637_vm1, %v189_v30  ;;  %6507 = vmatprep.mubr.msk.f32.mxu1 %vm637_vm1, %v429_v31  ;;  %v460_v29 = vld [vmem:[%s6898_s5 + $0x9c8] sm:$0xff]  ;;  %v221_v30 = vld [vmem:[%s6898_s5 + $0x250] sm:$0xff] }
  0x73   : > { %v461_v31 = vld [vmem:[%s6898_s5 + $0x9d0] sm:$0xff] }
  0x75   : > { %6148 = vmatmul.mubr.msk.f32.gmra.mxu0 %vm637_vm1, %v190_v32  ;;  %6508 = vmatmul.mubr.msk.f32.gmra.mxu1 %vm637_vm1, %v430_v33  ;;  %v222_v32 = vld [vmem:[%s6898_s5 + $0x258] sm:$0xff] }
  0x76   : > { %6150 = vmatprep.mubr.msk.f32.mxu0 %vm637_vm1, %v191_v34  ;;  %6510 = vmatprep.mubr.msk.f32.mxu1 %vm637_vm1, %v431_v35  ;;  %v462_v33 = vld [vmem:[%s6898_s5 + $0x9d8] sm:$0xff]  ;;  %v223_v34 = vld [vmem:[%s6898_s5 + $0x260] sm:$0xff] }
  0x77   : > { %v463_v35 = vld [vmem:[%s6898_s5 + $0x9e0] sm:$0xff] }
  0x79   : > { %6151 = vmatmul.mubr.msk.f32.gmra.mxu0 %vm637_vm1, %v192_v36  ;;  %6511 = vmatmul.mubr.msk.f32.gmra.mxu1 %vm637_vm1, %v432_v37  ;;  %v224_v36 = vld [vmem:[%s6898_s5 + $0x268] sm:$0xff] }
  0x7a   : > { %6153 = vmatprep.mubr.msk.f32.mxu0 %vm637_vm1, %v193_v38  ;;  %6513 = vmatprep.mubr.msk.f32.mxu1 %vm637_vm1, %v433_v39  ;;  %v464_v37 = vld [vmem:[%s6898_s5 + $0x9e8] sm:$0xff]  ;;  %v225_v38 = vld [vmem:[%s6898_s5 + $0x270] sm:$0xff] }
  0x7b   : > { %v465_v39 = vld [vmem:[%s6898_s5 + $0x9f0] sm:$0xff] }
  0x7d   : > { %6154 = vmatmul.mubr.msk.f32.gmra.mxu0 %vm637_vm1, %v194_v40  ;;  %6514 = vmatmul.mubr.msk.f32.gmra.mxu1 %vm637_vm1, %v434_v41  ;;  %v226_v40 = vld [vmem:[%s6898_s5 + $0x278] sm:$0xff] }
  0x7e   : > { %6156 = vmatprep.mubr.msk.f32.mxu0 %vm637_vm1, %v195_v42  ;;  %6516 = vmatprep.mubr.msk.f32.mxu1 %vm637_vm1, %v435_v43  ;;  %v466_v41 = vld [vmem:[%s6898_s5 + $0x9f8] sm:$0xff]  ;;  %v227_v42 = vld [vmem:[%s6898_s5 + $0x280] sm:$0xff] }
  0x7f   : > { %v467_v43 = vld [vmem:[%s6898_s5 + $0xa00] sm:$0xff] }
  0x81   : > { %6157 = vmatmul.mubr.msk.f32.gmra.mxu0 %vm637_vm1, %v196_v44  ;;  %6517 = vmatmul.mubr.msk.f32.gmra.mxu1 %vm637_vm1, %v436_v45  ;;  %v228_v44 = vld [vmem:[%s6898_s5 + $0x288] sm:$0xff] }
  0x82   : > { %6159 = vmatprep.mubr.msk.f32.mxu0 %vm637_vm1, %v197_v46  ;;  %6519 = vmatprep.mubr.msk.f32.mxu1 %vm637_vm1, %v437_v47  ;;  %v468_v45 = vld [vmem:[%s6898_s5 + $0xa08] sm:$0xff]  ;;  %v229_v46 = vld [vmem:[%s6898_s5 + $0x290] sm:$0xff] }
  0x83   : > { %v469_v47 = vld [vmem:[%s6898_s5 + $0xa10] sm:$0xff] }
  0x85   : > { %6160 = vmatmul.mubr.msk.f32.gmra.mxu0 %vm637_vm1, %v198_v48  ;;  %6520 = vmatmul.mubr.msk.f32.gmra.mxu1 %vm637_vm1, %v438_v49  ;;  %v230_v48 = vld [vmem:[%s6898_s5 + $0x298] sm:$0xff] }
  0x86   : > { %6162 = vmatprep.mubr.msk.f32.mxu0 %vm637_vm1, %v199_v50  ;;  %6522 = vmatprep.mubr.msk.f32.mxu1 %vm637_vm1, %v439_v51  ;;  %v470_v49 = vld [vmem:[%s6898_s5 + $0xa18] sm:$0xff]  ;;  %v231_v50 = vld [vmem:[%s6898_s5 + $0x2a0] sm:$0xff] }
  0x87   : > { %v471_v51 = vld [vmem:[%s6898_s5 + $0xa20] sm:$0xff] }
  0x89   : > { %6163 = vmatmul.mubr.msk.f32.gmra.mxu0 %vm637_vm1, %v200_v52  ;;  %6523 = vmatmul.mubr.msk.f32.gmra.mxu1 %vm637_vm1, %v440_v53  ;;  %v232_v52 = vld [vmem:[%s6898_s5 + $0x2a8] sm:$0xff] }
  0x8a   : > { %6165 = vmatprep.mubr.msk.f32.mxu0 %vm637_vm1, %v201_v54  ;;  %6525 = vmatprep.mubr.msk.f32.mxu1 %vm637_vm1, %v441_v55  ;;  %v472_v53 = vld [vmem:[%s6898_s5 + $0xa28] sm:$0xff]  ;;  %v233_v54 = vld [vmem:[%s6898_s5 + $0x2b0] sm:$0xff] }
  0x8b   : > { %v473_v55 = vld [vmem:[%s6898_s5 + $0xa30] sm:$0xff] }
  0x8d   : > { %6166 = vmatmul.mubr.msk.f32.gmra.mxu0 %vm637_vm1, %v202_v56  ;;  %6526 = vmatmul.mubr.msk.f32.gmra.mxu1 %vm637_vm1, %v442_v57  ;;  %v234_v56 = vld [vmem:[%s6898_s5 + $0x2b8] sm:$0xff] }
  0x8e   : > { %6168 = vmatprep.mubr.msk.f32.mxu0 %vm637_vm1, %v203_v58  ;;  %6528 = vmatprep.mubr.msk.f32.mxu1 %vm637_vm1, %v443_v59  ;;  %v474_v57 = vld [vmem:[%s6898_s5 + $0xa38] sm:$0xff]  ;;  %v235_v58 = vld [vmem:[%s6898_s5 + $0x2c0] sm:$0xff] }
  0x8f   : > { %v475_v59 = vld [vmem:[%s6898_s5 + $0xa40] sm:$0xff] }
  0x91   : > { %6169 = vmatmul.mubr.msk.f32.gmra.mxu0 %vm637_vm1, %v204_v60  ;;  %6529 = vmatmul.mubr.msk.f32.gmra.mxu1 %vm637_vm1, %v444_v61  ;;  %v236_v60 = vld [vmem:[%s6898_s5 + $0x2c8] sm:$0xff] }
  0x92   : > { %6171 = vmatprep.mubr.msk.f32.mxu0 %vm637_vm1, %v205_v62  ;;  %6531 = vmatprep.mubr.msk.f32.mxu1 %vm637_vm1, %v445_v63  ;;  %v476_v61 = vld [vmem:[%s6898_s5 + $0xa48] sm:$0xff]  ;;  %v237_v62 = vld [vmem:[%s6898_s5 + $0x2d0] sm:$0xff] }
  0x93   : > { %v477_v63 = vld [vmem:[%s6898_s5 + $0xa50] sm:$0xff] }
  0x95   : > { %6172 = vmatmul.mubr.msk.f32.gmra.mxu0 %vm637_vm1, %v206_v0  ;;  %6532 = vmatmul.mubr.msk.f32.gmra.mxu1 %vm637_vm1, %v446_v1  ;;  %v238_v0 = vld [vmem:[%s6898_s5 + $0x2d8] sm:$0xff] }
  0x96   : > { %6174 = vmatprep.mubr.msk.f32.mxu0 %vm637_vm1, %v207_v2  ;;  %6534 = vmatprep.mubr.msk.f32.mxu1 %vm637_vm1, %v447_v3  ;;  %v478_v1 = vld [vmem:[%s6898_s5 + $0xa58] sm:$0xff]  ;;  %v239_v2 = vld [vmem:[%s6898_s5 + $0x2e0] sm:$0xff] }
  0x97   : > { %v479_v3 = vld [vmem:[%s6898_s5 + $0xa60] sm:$0xff] }
  0x99   : > { %6175 = vmatmul.mubr.msk.f32.gmra.mxu0 %vm637_vm1, %v208_v4  ;;  %6535 = vmatmul.mubr.msk.f32.gmra.mxu1 %vm637_vm1, %v448_v5  ;;  %v240_v4 = vld [vmem:[%s6898_s5 + $0x2e8] sm:$0xff] }
  0x9a   : > { %6177 = vmatprep.mubr.msk.f32.mxu0 %vm637_vm1, %v209_v6  ;;  %6537 = vmatprep.mubr.msk.f32.mxu1 %vm637_vm1, %v449_v7  ;;  %v480_v5 = vld [vmem:[%s6898_s5 + $0xa68] sm:$0xff]  ;;  %v241_v6 = vld [vmem:[%s6898_s5 + $0x2f0] sm:$0xff] }
  0x9b   : > { %v481_v7 = vld [vmem:[%s6898_s5 + $0xa70] sm:$0xff] }
  0x9d   : > { %6178 = vmatmul.mubr.msk.f32.gmra.mxu0 %vm637_vm1, %v210_v8  ;;  %6538 = vmatmul.mubr.msk.f32.gmra.mxu1 %vm637_vm1, %v450_v9  ;;  %v242_v8 = vld [vmem:[%s6898_s5 + $0x2f8] sm:$0xff] }
  0x9e   : > { %6180 = vmatprep.mubr.msk.f32.mxu0 %vm637_vm1, %v211_v10  ;;  %6540 = vmatprep.mubr.msk.f32.mxu1 %vm637_vm1, %v451_v11  ;;  %v482_v9 = vld [vmem:[%s6898_s5 + $0xa78] sm:$0xff]  ;;  %v243_v10 = vld [vmem:[%s6898_s5 + $0x300] sm:$0xff] }
  0x9f   : > { %v483_v11 = vld [vmem:[%s6898_s5 + $0xa80] sm:$0xff] }
  0xa1   : > { %6181 = vmatmul.mubr.msk.f32.gmra.mxu0 %vm637_vm1, %v212_v12  ;;  %6541 = vmatmul.mubr.msk.f32.gmra.mxu1 %vm637_vm1, %v452_v13  ;;  %v244_v12 = vld [vmem:[%s6898_s5 + $0x308] sm:$0xff] }
  0xa2   : > { %6183 = vmatprep.mubr.msk.f32.mxu0 %vm637_vm1, %v213_v14  ;;  %6543 = vmatprep.mubr.msk.f32.mxu1 %vm637_vm1, %v453_v15  ;;  %v484_v13 = vld [vmem:[%s6898_s5 + $0xa88] sm:$0xff]  ;;  %v245_v14 = vld [vmem:[%s6898_s5 + $0x310] sm:$0xff] }
  0xa3   : > { %v485_v15 = vld [vmem:[%s6898_s5 + $0xa90] sm:$0xff] }
  0xa5   : > { %6184 = vmatmul.mubr.msk.f32.gmra.mxu0 %vm637_vm1, %v214_v16  ;;  %6544 = vmatmul.mubr.msk.f32.gmra.mxu1 %vm637_vm1, %v454_v17 }
  0xa6   : > { %6186 = vmatprep.mubr.msk.f32.mxu0 %vm637_vm1, %v215_v18  ;;  %6546 = vmatprep.mubr.msk.f32.mxu1 %vm637_vm1, %v455_v19  ;;  %v246_v18 = vld [vmem:[%s6898_s5 + $0x318] sm:$0xff] }
  0xa7   : > { %v486_v19 = vld [vmem:[%s6898_s5 + $0xa98] sm:$0xff] }
  0xa9   : > { %6187 = vmatmul.mubr.msk.f32.gmra.mxu0 %vm637_vm1, %v216_v20  ;;  %6547 = vmatmul.mubr.msk.f32.gmra.mxu1 %vm637_vm1, %v456_v21 }
  0xaa   : > { %6189 = vmatprep.mubr.msk.f32.mxu0 %vm637_vm1, %v217_v22  ;;  %6549 = vmatprep.mubr.msk.f32.mxu1 %vm637_vm1, %v457_v23  ;;  %v247_v22 = vld [vmem:[%s6898_s5 + $0x320] sm:$0xff] }
  0xab   : > { %v487_v23 = vld [vmem:[%s6898_s5 + $0xaa0] sm:$0xff] }
  0xad   : > { %6190 = vmatmul.mubr.msk.f32.gmra.mxu0 %vm637_vm1, %v218_v24  ;;  %6550 = vmatmul.mubr.msk.f32.gmra.mxu1 %vm637_vm1, %v458_v25 }
  0xae   : > { %6192 = vmatprep.mubr.msk.f32.mxu0 %vm637_vm1, %v219_v26  ;;  %6552 = vmatprep.mubr.msk.f32.mxu1 %vm637_vm1, %v459_v27  ;;  %v248_v26 = vld [vmem:[%s6898_s5 + $0x328] sm:$0xff] }
  0xaf   : > { %v488_v27 = vld [vmem:[%s6898_s5 + $0xaa8] sm:$0xff] }
  0xb1   : > { %6193 = vmatmul.mubr.msk.f32.gmra.mxu0 %vm637_vm1, %v220_v28  ;;  %6553 = vmatmul.mubr.msk.f32.gmra.mxu1 %vm637_vm1, %v460_v29 }
  0xb2   : > { %6195 = vmatprep.mubr.msk.f32.mxu0 %vm637_vm1, %v221_v30  ;;  %6555 = vmatprep.mubr.msk.f32.mxu1 %vm637_vm1, %v461_v31  ;;  %v249_v30 = vld [vmem:[%s6898_s5 + $0x330] sm:$0xff] }
  0xb3   : > { %v489_v31 = vld [vmem:[%s6898_s5 + $0xab0] sm:$0xff] }
  0xb5   : > { %6196 = vmatmul.mubr.msk.f32.gmra.mxu0 %vm637_vm1, %v222_v32  ;;  %6556 = vmatmul.mubr.msk.f32.gmra.mxu1 %vm637_vm1, %v462_v33 }
  0xb6   : > { %6198 = vmatprep.mubr.msk.f32.mxu0 %vm637_vm1, %v223_v34  ;;  %6558 = vmatprep.mubr.msk.f32.mxu1 %vm637_vm1, %v463_v35  ;;  %v250_v34 = vld [vmem:[%s6898_s5 + $0x338] sm:$0xff] }
  0xb7   : > { %v490_v35 = vld [vmem:[%s6898_s5 + $0xab8] sm:$0xff] }
  0xb9   : > { %6199 = vmatmul.mubr.msk.f32.gmra.mxu0 %vm637_vm1, %v224_v36  ;;  %6559 = vmatmul.mubr.msk.f32.gmra.mxu1 %vm637_vm1, %v464_v37 }
  0xba   : > { %6201 = vmatprep.mubr.msk.f32.mxu0 %vm637_vm1, %v225_v38  ;;  %6561 = vmatprep.mubr.msk.f32.mxu1 %vm637_vm1, %v465_v39  ;;  %v251_v38 = vld [vmem:[%s6898_s5 + $0x340] sm:$0xff] }
  0xbb   : > { %v491_v39 = vld [vmem:[%s6898_s5 + $0xac0] sm:$0xff] }
  0xbd   : > { %6202 = vmatmul.mubr.msk.f32.gmra.mxu0 %vm637_vm1, %v226_v40  ;;  %6562 = vmatmul.mubr.msk.f32.gmra.mxu1 %vm637_vm1, %v466_v41 }
  0xbe   : > { %6204 = vmatprep.mubr.msk.f32.mxu0 %vm637_vm1, %v227_v42  ;;  %6564 = vmatprep.mubr.msk.f32.mxu1 %vm637_vm1, %v467_v43  ;;  %v252_v42 = vld [vmem:[%s6898_s5 + $0x348] sm:$0xff] }
  0xbf   : > { %v492_v43 = vld [vmem:[%s6898_s5 + $0xac8] sm:$0xff] }
  0xc1   : > { %6205 = vmatmul.mubr.msk.f32.gmra.mxu0 %vm637_vm1, %v228_v44  ;;  %6565 = vmatmul.mubr.msk.f32.gmra.mxu1 %vm637_vm1, %v468_v45 }
  0xc2   : > { %6207 = vmatprep.mubr.msk.f32.mxu0 %vm637_vm1, %v229_v46  ;;  %6567 = vmatprep.mubr.msk.f32.mxu1 %vm637_vm1, %v469_v47  ;;  %v253_v46 = vld [vmem:[%s6898_s5 + $0x350] sm:$0xff] }
  0xc3   : > { %v493_v47 = vld [vmem:[%s6898_s5 + $0xad0] sm:$0xff] }
  0xc5   : > { %6208 = vmatmul.mubr.msk.f32.gmra.mxu0 %vm637_vm1, %v230_v48  ;;  %6568 = vmatmul.mubr.msk.f32.gmra.mxu1 %vm637_vm1, %v470_v49 }
  0xc6   : > { %6210 = vmatprep.mubr.msk.f32.mxu0 %vm637_vm1, %v231_v50  ;;  %6570 = vmatprep.mubr.msk.f32.mxu1 %vm637_vm1, %v471_v51  ;;  %v254_v50 = vld [vmem:[%s6898_s5 + $0x358] sm:$0xff] }
  0xc7   : > { %v494_v51 = vld [vmem:[%s6898_s5 + $0xad8] sm:$0xff] }
  0xc9   : > { %6211 = vmatmul.mubr.msk.f32.gmra.mxu0 %vm637_vm1, %v232_v52  ;;  %6571 = vmatmul.mubr.msk.f32.gmra.mxu1 %vm637_vm1, %v472_v53 }
  0xca   : > { %6213 = vmatprep.mubr.msk.f32.mxu0 %vm637_vm1, %v233_v54  ;;  %6573 = vmatprep.mubr.msk.f32.mxu1 %vm637_vm1, %v473_v55  ;;  %v255_v54 = vld [vmem:[%s6898_s5 + $0x360] sm:$0xff] }
  0xcb   : > { %v495_v55 = vld [vmem:[%s6898_s5 + $0xae0] sm:$0xff] }
  0xcd   : > { %6214 = vmatmul.mubr.msk.f32.gmra.mxu0 %vm637_vm1, %v234_v56  ;;  %6574 = vmatmul.mubr.msk.f32.gmra.mxu1 %vm637_vm1, %v474_v57 }
  0xce   : > { %6216 = vmatprep.mubr.msk.f32.mxu0 %vm637_vm1, %v235_v58  ;;  %6576 = vmatprep.mubr.msk.f32.mxu1 %vm637_vm1, %v475_v59  ;;  %v256_v58 = vld [vmem:[%s6898_s5 + $0x368] sm:$0xff] }
  0xcf   : > { %v496_v59 = vld [vmem:[%s6898_s5 + $0xae8] sm:$0xff] }
  0xd1   : > { %6217 = vmatmul.mubr.msk.f32.gmra.mxu0 %vm637_vm1, %v236_v60  ;;  %6577 = vmatmul.mubr.msk.f32.gmra.mxu1 %vm637_vm1, %v476_v61 }
  0xd2   : > { %6219 = vmatprep.mubr.msk.f32.mxu0 %vm637_vm1, %v237_v62  ;;  %6579 = vmatprep.mubr.msk.f32.mxu1 %vm637_vm1, %v477_v63  ;;  %v257_v62 = vld [vmem:[%s6898_s5 + $0x370] sm:$0xff] }
  0xd3   : > { %v497_v63 = vld [vmem:[%s6898_s5 + $0xaf0] sm:$0xff] }
  0xd5   : > { %6220 = vmatmul.mubr.msk.f32.gmra.mxu0 %vm637_vm1, %v238_v0  ;;  %6580 = vmatmul.mubr.msk.f32.gmra.mxu1 %vm637_vm1, %v478_v1 }
  0xd6   : > { %6222 = vmatprep.mubr.msk.f32.mxu0 %vm637_vm1, %v239_v2  ;;  %6582 = vmatprep.mubr.msk.f32.mxu1 %vm637_vm1, %v479_v3  ;;  %v258_v2 = vld [vmem:[%s6898_s5 + $0x378] sm:$0xff] }
  0xd7   : > { %v498_v3 = vld [vmem:[%s6898_s5 + $0xaf8] sm:$0xff] }
  0xd9   : > { %6223 = vmatmul.mubr.msk.f32.gmra.mxu0 %vm637_vm1, %v240_v4  ;;  %6583 = vmatmul.mubr.msk.f32.gmra.mxu1 %vm637_vm1, %v480_v5 }
  0xda   : > { %6225 = vmatprep.mubr.msk.f32.mxu0 %vm637_vm1, %v241_v6  ;;  %6585 = vmatprep.mubr.msk.f32.mxu1 %vm637_vm1, %v481_v7  ;;  %v259_v6 = vld [vmem:[%s6898_s5 + $0x380] sm:$0xff] }
  0xdb   : > { %v499_v7 = vld [vmem:[%s6898_s5 + $0xb00] sm:$0xff] }
  0xdd   : > { %6226 = vmatmul.mubr.msk.f32.gmra.mxu0 %vm637_vm1, %v242_v8  ;;  %6586 = vmatmul.mubr.msk.f32.gmra.mxu1 %vm637_vm1, %v482_v9 }
  0xde   : > { %6228 = vmatprep.mubr.msk.f32.mxu0 %vm637_vm1, %v243_v10  ;;  %6588 = vmatprep.mubr.msk.f32.mxu1 %vm637_vm1, %v483_v11  ;;  %v260_v10 = vld [vmem:[%s6898_s5 + $0x388] sm:$0xff] }
  0xdf   : > { %v500_v11 = vld [vmem:[%s6898_s5 + $0xb08] sm:$0xff] }
  0xe1   : > { %v6086_v16 = vpop.f32.mrf.mxu0  ;;  %6229 = vmatmul.mubr.msk.f32.gmra.mxu0 %vm637_vm1, %v244_v12  ;;  %v6446_v17 = vpop.f32.mrf.mxu1  ;;  %6589 = vmatmul.mubr.msk.f32.gmra.mxu1 %vm637_vm1, %v484_v13 }
  0xe2   : > { %4549 = vst.msk [vmem:[%s7298_s11 + $0x8] sm:$0xff] %vm4547_vm2, %v6086_v16  ;;  %4789 = vst.msk [vmem:[%s7298_s11 + $0x788] sm:$0xff] %vm4547_vm2, %v6446_v17  ;;  %6231 = vmatprep.mubr.msk.f32.mxu0 %vm637_vm1, %v245_v14  ;;  %6591 = vmatprep.mubr.msk.f32.mxu1 %vm637_vm1, %v485_v15  ;;  %v261_v14 = vld [vmem:[%s6898_s5 + $0x390] sm:$0xff] }
  0xe3   : > { %v2148_v20 = vpop.f32.mrf.mxu0  ;;  %v3348_v21 = vpop.f32.mrf.mxu1  ;;  %v501_v15 = vld [vmem:[%s6898_s5 + $0xb10] sm:$0xff] }
  0xe4   : > { %4548 = vst.msk [vmem:[%s7298_s11] sm:$0xff] %vm4547_vm2, %v2148_v20  ;;  %4788 = vst.msk [vmem:[%s7298_s11 + $0x780] sm:$0xff] %vm4547_vm2, %v3348_v21 }
  0xe5   : > { %v6089_v24 = vpop.f32.mrf.mxu0  ;;  %6232 = vmatmul.mubr.msk.f32.gmra.mxu0 %vm637_vm1, %v246_v18  ;;  %v6449_v25 = vpop.f32.mrf.mxu1  ;;  %6592 = vmatmul.mubr.msk.f32.gmra.mxu1 %vm637_vm1, %v486_v19  ;;  %v262_v18 = vld [vmem:[%s6898_s5 + $0x398] sm:$0xff] }
  0xe6   : > { %4551 = vst.msk [vmem:[%s7298_s11 + $0x18] sm:$0xff] %vm4547_vm2, %v6089_v24  ;;  %4791 = vst.msk [vmem:[%s7298_s11 + $0x798] sm:$0xff] %vm4547_vm2, %v6449_v25  ;;  %6234 = vmatprep.mubr.msk.f32.mxu0 %vm637_vm1, %v247_v22  ;;  %6594 = vmatprep.mubr.msk.f32.mxu1 %vm637_vm1, %v487_v23  ;;  %v502_v19 = vld [vmem:[%s6898_s5 + $0xb18] sm:$0xff]  ;;  %v263_v22 = vld [vmem:[%s6898_s5 + $0x3a0] sm:$0xff] }
  0xe7   : > { %v2158_v28 = vpop.f32.mrf.mxu0  ;;  %v3358_v29 = vpop.f32.mrf.mxu1  ;;  %v503_v23 = vld [vmem:[%s6898_s5 + $0xb20] sm:$0xff] }
  0xe8   : > { %4550 = vst.msk [vmem:[%s7298_s11 + $0x10] sm:$0xff] %vm4547_vm2, %v2158_v28  ;;  %4790 = vst.msk [vmem:[%s7298_s11 + $0x790] sm:$0xff] %vm4547_vm2, %v3358_v29 }
  0xe9   : > { %v6092_v32 = vpop.f32.mrf.mxu0  ;;  %6235 = vmatmul.mubr.msk.f32.gmra.mxu0 %vm637_vm1, %v248_v26  ;;  %v6452_v33 = vpop.f32.mrf.mxu1  ;;  %6595 = vmatmul.mubr.msk.f32.gmra.mxu1 %vm637_vm1, %v488_v27  ;;  %v264_v26 = vld [vmem:[%s6898_s5 + $0x3a8] sm:$0xff] }
  0xea   : > { %4553 = vst.msk [vmem:[%s7298_s11 + $0x28] sm:$0xff] %vm4547_vm2, %v6092_v32  ;;  %4793 = vst.msk [vmem:[%s7298_s11 + $0x7a8] sm:$0xff] %vm4547_vm2, %v6452_v33  ;;  %6237 = vmatprep.mubr.msk.f32.mxu0 %vm637_vm1, %v249_v30  ;;  %6597 = vmatprep.mubr.msk.f32.mxu1 %vm637_vm1, %v489_v31  ;;  %v504_v27 = vld [vmem:[%s6898_s5 + $0xb28] sm:$0xff]  ;;  %v265_v30 = vld [vmem:[%s6898_s5 + $0x3b0] sm:$0xff] }
  0xeb   : > { %v2168_v36 = vpop.f32.mrf.mxu0  ;;  %v3368_v37 = vpop.f32.mrf.mxu1  ;;  %v505_v31 = vld [vmem:[%s6898_s5 + $0xb30] sm:$0xff] }
  0xec   : > { %4552 = vst.msk [vmem:[%s7298_s11 + $0x20] sm:$0xff] %vm4547_vm2, %v2168_v36  ;;  %4792 = vst.msk [vmem:[%s7298_s11 + $0x7a0] sm:$0xff] %vm4547_vm2, %v3368_v37 }
  0xed   : > { %v6095_v40 = vpop.f32.mrf.mxu0  ;;  %6238 = vmatmul.mubr.msk.f32.gmra.mxu0 %vm637_vm1, %v250_v34  ;;  %v6455_v41 = vpop.f32.mrf.mxu1  ;;  %6598 = vmatmul.mubr.msk.f32.gmra.mxu1 %vm637_vm1, %v490_v35  ;;  %v266_v34 = vld [vmem:[%s6898_s5 + $0x3b8] sm:$0xff] }
  0xee   : > { %4555 = vst.msk [vmem:[%s7298_s11 + $0x38] sm:$0xff] %vm4547_vm2, %v6095_v40  ;;  %4795 = vst.msk [vmem:[%s7298_s11 + $0x7b8] sm:$0xff] %vm4547_vm2, %v6455_v41  ;;  %6240 = vmatprep.mubr.msk.f32.mxu0 %vm637_vm1, %v251_v38  ;;  %6600 = vmatprep.mubr.msk.f32.mxu1 %vm637_vm1, %v491_v39  ;;  %v506_v35 = vld [vmem:[%s6898_s5 + $0xb38] sm:$0xff]  ;;  %v267_v38 = vld [vmem:[%s6898_s5 + $0x3c0] sm:$0xff] }
  0xef   : > { %v2178_v44 = vpop.f32.mrf.mxu0  ;;  %v3378_v45 = vpop.f32.mrf.mxu1  ;;  %v507_v39 = vld [vmem:[%s6898_s5 + $0xb40] sm:$0xff] }
  0xf0   : > { %4554 = vst.msk [vmem:[%s7298_s11 + $0x30] sm:$0xff] %vm4547_vm2, %v2178_v44  ;;  %4794 = vst.msk [vmem:[%s7298_s11 + $0x7b0] sm:$0xff] %vm4547_vm2, %v3378_v45 }
  0xf1   : > { %v6098_v48 = vpop.f32.mrf.mxu0  ;;  %6241 = vmatmul.mubr.msk.f32.gmra.mxu0 %vm637_vm1, %v252_v42  ;;  %v6458_v49 = vpop.f32.mrf.mxu1  ;;  %6601 = vmatmul.mubr.msk.f32.gmra.mxu1 %vm637_vm1, %v492_v43  ;;  %v268_v42 = vld [vmem:[%s6898_s5 + $0x3c8] sm:$0xff] }
  0xf2   : > { %4557 = vst.msk [vmem:[%s7298_s11 + $0x48] sm:$0xff] %vm4547_vm2, %v6098_v48  ;;  %4797 = vst.msk [vmem:[%s7298_s11 + $0x7c8] sm:$0xff] %vm4547_vm2, %v6458_v49  ;;  %6243 = vmatprep.mubr.msk.f32.mxu0 %vm637_vm1, %v253_v46  ;;  %6603 = vmatprep.mubr.msk.f32.mxu1 %vm637_vm1, %v493_v47  ;;  %v508_v43 = vld [vmem:[%s6898_s5 + $0xb48] sm:$0xff]  ;;  %v269_v46 = vld [vmem:[%s6898_s5 + $0x3d0] sm:$0xff] }
  0xf3   : > { %v2188_v52 = vpop.f32.mrf.mxu0  ;;  %v3388_v53 = vpop.f32.mrf.mxu1  ;;  %v509_v47 = vld [vmem:[%s6898_s5 + $0xb50] sm:$0xff] }
  0xf4   : > { %4556 = vst.msk [vmem:[%s7298_s11 + $0x40] sm:$0xff] %vm4547_vm2, %v2188_v52  ;;  %4796 = vst.msk [vmem:[%s7298_s11 + $0x7c0] sm:$0xff] %vm4547_vm2, %v3388_v53 }
  0xf5   : > { %v6101_v56 = vpop.f32.mrf.mxu0  ;;  %6244 = vmatmul.mubr.msk.f32.gmra.mxu0 %vm637_vm1, %v254_v50  ;;  %v6461_v57 = vpop.f32.mrf.mxu1  ;;  %6604 = vmatmul.mubr.msk.f32.gmra.mxu1 %vm637_vm1, %v494_v51  ;;  %v270_v50 = vld [vmem:[%s6898_s5 + $0x3d8] sm:$0xff] }
  0xf6   : > { %4559 = vst.msk [vmem:[%s7298_s11 + $0x58] sm:$0xff] %vm4547_vm2, %v6101_v56  ;;  %4799 = vst.msk [vmem:[%s7298_s11 + $0x7d8] sm:$0xff] %vm4547_vm2, %v6461_v57  ;;  %6246 = vmatprep.mubr.msk.f32.mxu0 %vm637_vm1, %v255_v54  ;;  %6606 = vmatprep.mubr.msk.f32.mxu1 %vm637_vm1, %v495_v55  ;;  %v510_v51 = vld [vmem:[%s6898_s5 + $0xb58] sm:$0xff]  ;;  %v271_v54 = vld [vmem:[%s6898_s5 + $0x3e0] sm:$0xff] }
  0xf7   : > { %v2198_v60 = vpop.f32.mrf.mxu0  ;;  %v3398_v61 = vpop.f32.mrf.mxu1  ;;  %v511_v55 = vld [vmem:[%s6898_s5 + $0xb60] sm:$0xff] }
  0xf8   : > { %4558 = vst.msk [vmem:[%s7298_s11 + $0x50] sm:$0xff] %vm4547_vm2, %v2198_v60  ;;  %4798 = vst.msk [vmem:[%s7298_s11 + $0x7d0] sm:$0xff] %vm4547_vm2, %v3398_v61 }
  0xf9   : > { %v6104_v0 = vpop.f32.mrf.mxu0  ;;  %6247 = vmatmul.mubr.msk.f32.gmra.mxu0 %vm637_vm1, %v256_v58  ;;  %v6464_v1 = vpop.f32.mrf.mxu1  ;;  %6607 = vmatmul.mubr.msk.f32.gmra.mxu1 %vm637_vm1, %v496_v59  ;;  %v272_v58 = vld [vmem:[%s6898_s5 + $0x3e8] sm:$0xff] }
  0xfa   : > { %4561 = vst.msk [vmem:[%s7298_s11 + $0x68] sm:$0xff] %vm4547_vm2, %v6104_v0  ;;  %4801 = vst.msk [vmem:[%s7298_s11 + $0x7e8] sm:$0xff] %vm4547_vm2, %v6464_v1  ;;  %6249 = vmatprep.mubr.msk.f32.mxu0 %vm637_vm1, %v257_v62  ;;  %6609 = vmatprep.mubr.msk.f32.mxu1 %vm637_vm1, %v497_v63  ;;  %v512_v59 = vld [vmem:[%s6898_s5 + $0xb68] sm:$0xff]  ;;  %v273_v62 = vld [vmem:[%s6898_s5 + $0x3f0] sm:$0xff] }
  0xfb   : > { %v2208_v4 = vpop.f32.mrf.mxu0  ;;  %v3408_v5 = vpop.f32.mrf.mxu1  ;;  %v513_v63 = vld [vmem:[%s6898_s5 + $0xb70] sm:$0xff] }
  0xfc   : > { %4560 = vst.msk [vmem:[%s7298_s11 + $0x60] sm:$0xff] %vm4547_vm2, %v2208_v4  ;;  %4800 = vst.msk [vmem:[%s7298_s11 + $0x7e0] sm:$0xff] %vm4547_vm2, %v3408_v5 }
  0xfd   : > { %v6107_v8 = vpop.f32.mrf.mxu0  ;;  %6250 = vmatmul.mubr.msk.f32.gmra.mxu0 %vm637_vm1, %v258_v2  ;;  %v6467_v9 = vpop.f32.mrf.mxu1  ;;  %6610 = vmatmul.mubr.msk.f32.gmra.mxu1 %vm637_vm1, %v498_v3  ;;  %v274_v2 = vld [vmem:[%s6898_s5 + $0x3f8] sm:$0xff] }
  0xfe   : > { %4563 = vst.msk [vmem:[%s7298_s11 + $0x78] sm:$0xff] %vm4547_vm2, %v6107_v8  ;;  %4803 = vst.msk [vmem:[%s7298_s11 + $0x7f8] sm:$0xff] %vm4547_vm2, %v6467_v9  ;;  %6252 = vmatprep.mubr.msk.f32.mxu0 %vm637_vm1, %v259_v6  ;;  %6612 = vmatprep.mubr.msk.f32.mxu1 %vm637_vm1, %v499_v7  ;;  %v514_v3 = vld [vmem:[%s6898_s5 + $0xb78] sm:$0xff]  ;;  %v275_v6 = vld [vmem:[%s6898_s5 + $0x400] sm:$0xff] }
  0xff   : > { %v2218_v12 = vpop.f32.mrf.mxu0  ;;  %v3418_v13 = vpop.f32.mrf.mxu1  ;;  %v515_v7 = vld [vmem:[%s6898_s5 + $0xb80] sm:$0xff] }
 0x100   : > { %4562 = vst.msk [vmem:[%s7298_s11 + $0x70] sm:$0xff] %vm4547_vm2, %v2218_v12  ;;  %4802 = vst.msk [vmem:[%s7298_s11 + $0x7f0] sm:$0xff] %vm4547_vm2, %v3418_v13 }
 0x101   : > { %v6110_v16 = vpop.f32.mrf.mxu0  ;;  %6253 = vmatmul.mubr.msk.f32.gmra.mxu0 %vm637_vm1, %v260_v10  ;;  %v6470_v17 = vpop.f32.mrf.mxu1  ;;  %6613 = vmatmul.mubr.msk.f32.gmra.mxu1 %vm637_vm1, %v500_v11  ;;  %v276_v10 = vld [vmem:[%s6898_s5 + $0x408] sm:$0xff] }
 0x102   : > { %4565 = vst.msk [vmem:[%s7298_s11 + $0x88] sm:$0xff] %vm4547_vm2, %v6110_v16  ;;  %4805 = vst.msk [vmem:[%s7298_s11 + $0x808] sm:$0xff] %vm4547_vm2, %v6470_v17  ;;  %6255 = vmatprep.mubr.msk.f32.mxu0 %vm637_vm1, %v261_v14  ;;  %6615 = vmatprep.mubr.msk.f32.mxu1 %vm637_vm1, %v501_v15  ;;  %v516_v11 = vld [vmem:[%s6898_s5 + $0xb88] sm:$0xff]  ;;  %v277_v14 = vld [vmem:[%s6898_s5 + $0x410] sm:$0xff] }
 0x103   : > { %v2228_v20 = vpop.f32.mrf.mxu0  ;;  %v3428_v21 = vpop.f32.mrf.mxu1  ;;  %v517_v15 = vld [vmem:[%s6898_s5 + $0xb90] sm:$0xff] }
 0x104   : > { %4564 = vst.msk [vmem:[%s7298_s11 + $0x80] sm:$0xff] %vm4547_vm2, %v2228_v20  ;;  %4804 = vst.msk [vmem:[%s7298_s11 + $0x800] sm:$0xff] %vm4547_vm2, %v3428_v21 }
 0x105   : > { %v6113_v24 = vpop.f32.mrf.mxu0  ;;  %6256 = vmatmul.mubr.msk.f32.gmra.mxu0 %vm637_vm1, %v262_v18  ;;  %v6473_v25 = vpop.f32.mrf.mxu1  ;;  %6616 = vmatmul.mubr.msk.f32.gmra.mxu1 %vm637_vm1, %v502_v19  ;;  %v278_v18 = vld [vmem:[%s6898_s5 + $0x418] sm:$0xff] }
 0x106   : > { %4567 = vst.msk [vmem:[%s7298_s11 + $0x98] sm:$0xff] %vm4547_vm2, %v6113_v24  ;;  %4807 = vst.msk [vmem:[%s7298_s11 + $0x818] sm:$0xff] %vm4547_vm2, %v6473_v25  ;;  %6258 = vmatprep.mubr.msk.f32.mxu0 %vm637_vm1, %v263_v22  ;;  %6618 = vmatprep.mubr.msk.f32.mxu1 %vm637_vm1, %v503_v23  ;;  %v518_v19 = vld [vmem:[%s6898_s5 + $0xb98] sm:$0xff]  ;;  %v279_v22 = vld [vmem:[%s6898_s5 + $0x420] sm:$0xff] }
 0x107   : > { %v2238_v28 = vpop.f32.mrf.mxu0  ;;  %v3438_v29 = vpop.f32.mrf.mxu1  ;;  %v519_v23 = vld [vmem:[%s6898_s5 + $0xba0] sm:$0xff] }
 0x108   : > { %4566 = vst.msk [vmem:[%s7298_s11 + $0x90] sm:$0xff] %vm4547_vm2, %v2238_v28  ;;  %4806 = vst.msk [vmem:[%s7298_s11 + $0x810] sm:$0xff] %vm4547_vm2, %v3438_v29 }
 0x109   : > { %v6116_v32 = vpop.f32.mrf.mxu0  ;;  %6259 = vmatmul.mubr.msk.f32.gmra.mxu0 %vm637_vm1, %v264_v26  ;;  %v6476_v33 = vpop.f32.mrf.mxu1  ;;  %6619 = vmatmul.mubr.msk.f32.gmra.mxu1 %vm637_vm1, %v504_v27  ;;  %v280_v26 = vld [vmem:[%s6898_s5 + $0x428] sm:$0xff] }
 0x10a   : > { %4569 = vst.msk [vmem:[%s7298_s11 + $0xa8] sm:$0xff] %vm4547_vm2, %v6116_v32  ;;  %4809 = vst.msk [vmem:[%s7298_s11 + $0x828] sm:$0xff] %vm4547_vm2, %v6476_v33  ;;  %6261 = vmatprep.mubr.msk.f32.mxu0 %vm637_vm1, %v265_v30  ;;  %6621 = vmatprep.mubr.msk.f32.mxu1 %vm637_vm1, %v505_v31  ;;  %v520_v27 = vld [vmem:[%s6898_s5 + $0xba8] sm:$0xff]  ;;  %v281_v30 = vld [vmem:[%s6898_s5 + $0x430] sm:$0xff] }
 0x10b   : > { %v2248_v36 = vpop.f32.mrf.mxu0  ;;  %v3448_v37 = vpop.f32.mrf.mxu1  ;;  %v521_v31 = vld [vmem:[%s6898_s5 + $0xbb0] sm:$0xff] }
 0x10c   : > { %4568 = vst.msk [vmem:[%s7298_s11 + $0xa0] sm:$0xff] %vm4547_vm2, %v2248_v36  ;;  %4808 = vst.msk [vmem:[%s7298_s11 + $0x820] sm:$0xff] %vm4547_vm2, %v3448_v37 }
 0x10d   : > { %v6119_v40 = vpop.f32.mrf.mxu0  ;;  %6262 = vmatmul.mubr.msk.f32.gmra.mxu0 %vm637_vm1, %v266_v34  ;;  %v6479_v41 = vpop.f32.mrf.mxu1  ;;  %6622 = vmatmul.mubr.msk.f32.gmra.mxu1 %vm637_vm1, %v506_v35  ;;  %v282_v34 = vld [vmem:[%s6898_s5 + $0x438] sm:$0xff] }
 0x10e   : > { %4571 = vst.msk [vmem:[%s7298_s11 + $0xb8] sm:$0xff] %vm4547_vm2, %v6119_v40  ;;  %4811 = vst.msk [vmem:[%s7298_s11 + $0x838] sm:$0xff] %vm4547_vm2, %v6479_v41  ;;  %6264 = vmatprep.mubr.msk.f32.mxu0 %vm637_vm1, %v267_v38  ;;  %6624 = vmatprep.mubr.msk.f32.mxu1 %vm637_vm1, %v507_v39  ;;  %v522_v35 = vld [vmem:[%s6898_s5 + $0xbb8] sm:$0xff]  ;;  %v283_v38 = vld [vmem:[%s6898_s5 + $0x440] sm:$0xff] }
 0x10f   : > { %v2258_v44 = vpop.f32.mrf.mxu0  ;;  %v3458_v45 = vpop.f32.mrf.mxu1  ;;  %v523_v39 = vld [vmem:[%s6898_s5 + $0xbc0] sm:$0xff] }
 0x110   : > { %4570 = vst.msk [vmem:[%s7298_s11 + $0xb0] sm:$0xff] %vm4547_vm2, %v2258_v44  ;;  %4810 = vst.msk [vmem:[%s7298_s11 + $0x830] sm:$0xff] %vm4547_vm2, %v3458_v45 }
 0x111   : > { %v6122_v48 = vpop.f32.mrf.mxu0  ;;  %6265 = vmatmul.mubr.msk.f32.gmra.mxu0 %vm637_vm1, %v268_v42  ;;  %v6482_v49 = vpop.f32.mrf.mxu1  ;;  %6625 = vmatmul.mubr.msk.f32.gmra.mxu1 %vm637_vm1, %v508_v43  ;;  %v284_v42 = vld [vmem:[%s6898_s5 + $0x448] sm:$0xff] }
 0x112   : > { %4573 = vst.msk [vmem:[%s7298_s11 + $0xc8] sm:$0xff] %vm4547_vm2, %v6122_v48  ;;  %4813 = vst.msk [vmem:[%s7298_s11 + $0x848] sm:$0xff] %vm4547_vm2, %v6482_v49  ;;  %6267 = vmatprep.mubr.msk.f32.mxu0 %vm637_vm1, %v269_v46  ;;  %6627 = vmatprep.mubr.msk.f32.mxu1 %vm637_vm1, %v509_v47  ;;  %v524_v43 = vld [vmem:[%s6898_s5 + $0xbc8] sm:$0xff]  ;;  %v285_v46 = vld [vmem:[%s6898_s5 + $0x450] sm:$0xff] }
 0x113   : > { %v2268_v52 = vpop.f32.mrf.mxu0  ;;  %v3468_v53 = vpop.f32.mrf.mxu1  ;;  %v525_v47 = vld [vmem:[%s6898_s5 + $0xbd0] sm:$0xff] }
 0x114   : > { %4572 = vst.msk [vmem:[%s7298_s11 + $0xc0] sm:$0xff] %vm4547_vm2, %v2268_v52  ;;  %4812 = vst.msk [vmem:[%s7298_s11 + $0x840] sm:$0xff] %vm4547_vm2, %v3468_v53 }
 0x115   : > { %v6125_v56 = vpop.f32.mrf.mxu0  ;;  %6268 = vmatmul.mubr.msk.f32.gmra.mxu0 %vm637_vm1, %v270_v50  ;;  %v6485_v57 = vpop.f32.mrf.mxu1  ;;  %6628 = vmatmul.mubr.msk.f32.gmra.mxu1 %vm637_vm1, %v510_v51  ;;  %v286_v50 = vld [vmem:[%s6898_s5 + $0x458] sm:$0xff] }
 0x116   : > { %4575 = vst.msk [vmem:[%s7298_s11 + $0xd8] sm:$0xff] %vm4547_vm2, %v6125_v56  ;;  %4815 = vst.msk [vmem:[%s7298_s11 + $0x858] sm:$0xff] %vm4547_vm2, %v6485_v57  ;;  %6270 = vmatprep.mubr.msk.f32.mxu0 %vm637_vm1, %v271_v54  ;;  %6630 = vmatprep.mubr.msk.f32.mxu1 %vm637_vm1, %v511_v55  ;;  %v526_v51 = vld [vmem:[%s6898_s5 + $0xbd8] sm:$0xff]  ;;  %v287_v54 = vld [vmem:[%s6898_s5 + $0x460] sm:$0xff] }
 0x117   : > { %v2278_v60 = vpop.f32.mrf.mxu0  ;;  %v3478_v61 = vpop.f32.mrf.mxu1  ;;  %v527_v55 = vld [vmem:[%s6898_s5 + $0xbe0] sm:$0xff] }
 0x118   : > { %4574 = vst.msk [vmem:[%s7298_s11 + $0xd0] sm:$0xff] %vm4547_vm2, %v2278_v60  ;;  %4814 = vst.msk [vmem:[%s7298_s11 + $0x850] sm:$0xff] %vm4547_vm2, %v3478_v61 }
 0x119   : > { %v6128_v0 = vpop.f32.mrf.mxu0  ;;  %6271 = vmatmul.mubr.msk.f32.gmra.mxu0 %vm637_vm1, %v272_v58  ;;  %v6488_v1 = vpop.f32.mrf.mxu1  ;;  %6631 = vmatmul.mubr.msk.f32.gmra.mxu1 %vm637_vm1, %v512_v59  ;;  %v288_v58 = vld [vmem:[%s6898_s5 + $0x468] sm:$0xff] }
 0x11a   : > { %4577 = vst.msk [vmem:[%s7298_s11 + $0xe8] sm:$0xff] %vm4547_vm2, %v6128_v0  ;;  %4817 = vst.msk [vmem:[%s7298_s11 + $0x868] sm:$0xff] %vm4547_vm2, %v6488_v1  ;;  %6273 = vmatprep.mubr.msk.f32.mxu0 %vm637_vm1, %v273_v62  ;;  %6633 = vmatprep.mubr.msk.f32.mxu1 %vm637_vm1, %v513_v63  ;;  %v528_v59 = vld [vmem:[%s6898_s5 + $0xbe8] sm:$0xff]  ;;  %v289_v62 = vld [vmem:[%s6898_s5 + $0x470] sm:$0xff] }
 0x11b   : > { %v2288_v4 = vpop.f32.mrf.mxu0  ;;  %v3488_v5 = vpop.f32.mrf.mxu1  ;;  %v529_v63 = vld [vmem:[%s6898_s5 + $0xbf0] sm:$0xff] }
 0x11c   : > { %4576 = vst.msk [vmem:[%s7298_s11 + $0xe0] sm:$0xff] %vm4547_vm2, %v2288_v4  ;;  %4816 = vst.msk [vmem:[%s7298_s11 + $0x860] sm:$0xff] %vm4547_vm2, %v3488_v5 }
 0x11d   : > { %v6131_v8 = vpop.f32.mrf.mxu0  ;;  %6274 = vmatmul.mubr.msk.f32.gmra.mxu0 %vm637_vm1, %v274_v2  ;;  %v6491_v9 = vpop.f32.mrf.mxu1  ;;  %6634 = vmatmul.mubr.msk.f32.gmra.mxu1 %vm637_vm1, %v514_v3  ;;  %v290_v2 = vld [vmem:[%s6898_s5 + $0x478] sm:$0xff] }
 0x11e   : > { %4579 = vst.msk [vmem:[%s7298_s11 + $0xf8] sm:$0xff] %vm4547_vm2, %v6131_v8  ;;  %4819 = vst.msk [vmem:[%s7298_s11 + $0x878] sm:$0xff] %vm4547_vm2, %v6491_v9  ;;  %6276 = vmatprep.mubr.msk.f32.mxu0 %vm637_vm1, %v275_v6  ;;  %6636 = vmatprep.mubr.msk.f32.mxu1 %vm637_vm1, %v515_v7  ;;  %v530_v3 = vld [vmem:[%s6898_s5 + $0xbf8] sm:$0xff]  ;;  %v291_v6 = vld [vmem:[%s6898_s5 + $0x480] sm:$0xff] }
 0x11f   : > { %v2298_v12 = vpop.f32.mrf.mxu0  ;;  %v3498_v13 = vpop.f32.mrf.mxu1  ;;  %v531_v7 = vld [vmem:[%s6898_s5 + $0xc00] sm:$0xff] }
 0x120   : > { %4578 = vst.msk [vmem:[%s7298_s11 + $0xf0] sm:$0xff] %vm4547_vm2, %v2298_v12  ;;  %4818 = vst.msk [vmem:[%s7298_s11 + $0x870] sm:$0xff] %vm4547_vm2, %v3498_v13 }
 0x121   : > { %v6134_v16 = vpop.f32.mrf.mxu0  ;;  %6277 = vmatmul.mubr.msk.f32.gmra.mxu0 %vm637_vm1, %v276_v10  ;;  %v6494_v17 = vpop.f32.mrf.mxu1  ;;  %6637 = vmatmul.mubr.msk.f32.gmra.mxu1 %vm637_vm1, %v516_v11  ;;  %v292_v10 = vld [vmem:[%s6898_s5 + $0x488] sm:$0xff] }
 0x122   : > { %4581 = vst.msk [vmem:[%s7298_s11 + $0x108] sm:$0xff] %vm4547_vm2, %v6134_v16  ;;  %4821 = vst.msk [vmem:[%s7298_s11 + $0x888] sm:$0xff] %vm4547_vm2, %v6494_v17  ;;  %6279 = vmatprep.mubr.msk.f32.mxu0 %vm637_vm1, %v277_v14  ;;  %6639 = vmatprep.mubr.msk.f32.mxu1 %vm637_vm1, %v517_v15  ;;  %v532_v11 = vld [vmem:[%s6898_s5 + $0xc08] sm:$0xff]  ;;  %v293_v14 = vld [vmem:[%s6898_s5 + $0x490] sm:$0xff] }
 0x123   : > { %v2308_v20 = vpop.f32.mrf.mxu0  ;;  %v3508_v21 = vpop.f32.mrf.mxu1  ;;  %v533_v15 = vld [vmem:[%s6898_s5 + $0xc10] sm:$0xff] }
 0x124   : > { %4580 = vst.msk [vmem:[%s7298_s11 + $0x100] sm:$0xff] %vm4547_vm2, %v2308_v20  ;;  %4820 = vst.msk [vmem:[%s7298_s11 + $0x880] sm:$0xff] %vm4547_vm2, %v3508_v21 }
 0x125   : > { %v6137_v24 = vpop.f32.mrf.mxu0  ;;  %6280 = vmatmul.mubr.msk.f32.gmra.mxu0 %vm637_vm1, %v278_v18  ;;  %v6497_v25 = vpop.f32.mrf.mxu1  ;;  %6640 = vmatmul.mubr.msk.f32.gmra.mxu1 %vm637_vm1, %v518_v19  ;;  %v294_v18 = vld [vmem:[%s6898_s5 + $0x498] sm:$0xff] }
 0x126   : > { %4583 = vst.msk [vmem:[%s7298_s11 + $0x118] sm:$0xff] %vm4547_vm2, %v6137_v24  ;;  %4823 = vst.msk [vmem:[%s7298_s11 + $0x898] sm:$0xff] %vm4547_vm2, %v6497_v25  ;;  %6282 = vmatprep.mubr.msk.f32.mxu0 %vm637_vm1, %v279_v22  ;;  %6642 = vmatprep.mubr.msk.f32.mxu1 %vm637_vm1, %v519_v23  ;;  %v534_v19 = vld [vmem:[%s6898_s5 + $0xc18] sm:$0xff]  ;;  %v295_v22 = vld [vmem:[%s6898_s5 + $0x4a0] sm:$0xff] }
 0x127   : > { %v2318_v28 = vpop.f32.mrf.mxu0  ;;  %v3518_v29 = vpop.f32.mrf.mxu1  ;;  %v535_v23 = vld [vmem:[%s6898_s5 + $0xc20] sm:$0xff] }
 0x128   : > { %4582 = vst.msk [vmem:[%s7298_s11 + $0x110] sm:$0xff] %vm4547_vm2, %v2318_v28  ;;  %4822 = vst.msk [vmem:[%s7298_s11 + $0x890] sm:$0xff] %vm4547_vm2, %v3518_v29 }
 0x129   : > { %v6140_v32 = vpop.f32.mrf.mxu0  ;;  %6283 = vmatmul.mubr.msk.f32.gmra.mxu0 %vm637_vm1, %v280_v26  ;;  %v6500_v33 = vpop.f32.mrf.mxu1  ;;  %6643 = vmatmul.mubr.msk.f32.gmra.mxu1 %vm637_vm1, %v520_v27  ;;  %v296_v26 = vld [vmem:[%s6898_s5 + $0x4a8] sm:$0xff] }
 0x12a   : > { %4585 = vst.msk [vmem:[%s7298_s11 + $0x128] sm:$0xff] %vm4547_vm2, %v6140_v32  ;;  %4825 = vst.msk [vmem:[%s7298_s11 + $0x8a8] sm:$0xff] %vm4547_vm2, %v6500_v33  ;;  %6285 = vmatprep.mubr.msk.f32.mxu0 %vm637_vm1, %v281_v30  ;;  %6645 = vmatprep.mubr.msk.f32.mxu1 %vm637_vm1, %v521_v31  ;;  %v536_v27 = vld [vmem:[%s6898_s5 + $0xc28] sm:$0xff]  ;;  %v297_v30 = vld [vmem:[%s6898_s5 + $0x4b0] sm:$0xff] }
 0x12b   : > { %v2328_v36 = vpop.f32.mrf.mxu0  ;;  %v3528_v37 = vpop.f32.mrf.mxu1  ;;  %v537_v31 = vld [vmem:[%s6898_s5 + $0xc30] sm:$0xff] }
 0x12c   : > { %4584 = vst.msk [vmem:[%s7298_s11 + $0x120] sm:$0xff] %vm4547_vm2, %v2328_v36  ;;  %4824 = vst.msk [vmem:[%s7298_s11 + $0x8a0] sm:$0xff] %vm4547_vm2, %v3528_v37 }
 0x12d   : > { %v6143_v40 = vpop.f32.mrf.mxu0  ;;  %6286 = vmatmul.mubr.msk.f32.gmra.mxu0 %vm637_vm1, %v282_v34  ;;  %v6503_v41 = vpop.f32.mrf.mxu1  ;;  %6646 = vmatmul.mubr.msk.f32.gmra.mxu1 %vm637_vm1, %v522_v35  ;;  %v298_v34 = vld [vmem:[%s6898_s5 + $0x4b8] sm:$0xff] }
 0x12e   : > { %4587 = vst.msk [vmem:[%s7298_s11 + $0x138] sm:$0xff] %vm4547_vm2, %v6143_v40  ;;  %4827 = vst.msk [vmem:[%s7298_s11 + $0x8b8] sm:$0xff] %vm4547_vm2, %v6503_v41  ;;  %6288 = vmatprep.mubr.msk.f32.mxu0 %vm637_vm1, %v283_v38  ;;  %6648 = vmatprep.mubr.msk.f32.mxu1 %vm637_vm1, %v523_v39  ;;  %v538_v35 = vld [vmem:[%s6898_s5 + $0xc38] sm:$0xff]  ;;  %v299_v38 = vld [vmem:[%s6898_s5 + $0x4c0] sm:$0xff] }
 0x12f   : > { %v2338_v44 = vpop.f32.mrf.mxu0  ;;  %v3538_v45 = vpop.f32.mrf.mxu1  ;;  %v539_v39 = vld [vmem:[%s6898_s5 + $0xc40] sm:$0xff] }
 0x130   : > { %4586 = vst.msk [vmem:[%s7298_s11 + $0x130] sm:$0xff] %vm4547_vm2, %v2338_v44  ;;  %4826 = vst.msk [vmem:[%s7298_s11 + $0x8b0] sm:$0xff] %vm4547_vm2, %v3538_v45 }
 0x131   : > { %v6146_v48 = vpop.f32.mrf.mxu0  ;;  %6289 = vmatmul.mubr.msk.f32.gmra.mxu0 %vm637_vm1, %v284_v42  ;;  %v6506_v49 = vpop.f32.mrf.mxu1  ;;  %6649 = vmatmul.mubr.msk.f32.gmra.mxu1 %vm637_vm1, %v524_v43  ;;  %v300_v42 = vld [vmem:[%s6898_s5 + $0x4c8] sm:$0xff] }
 0x132   : > { %4589 = vst.msk [vmem:[%s7298_s11 + $0x148] sm:$0xff] %vm4547_vm2, %v6146_v48  ;;  %4829 = vst.msk [vmem:[%s7298_s11 + $0x8c8] sm:$0xff] %vm4547_vm2, %v6506_v49  ;;  %6291 = vmatprep.mubr.msk.f32.mxu0 %vm637_vm1, %v285_v46  ;;  %6651 = vmatprep.mubr.msk.f32.mxu1 %vm637_vm1, %v525_v47  ;;  %v540_v43 = vld [vmem:[%s6898_s5 + $0xc48] sm:$0xff]  ;;  %v301_v46 = vld [vmem:[%s6898_s5 + $0x4d0] sm:$0xff] }
 0x133   : > { %v2348_v52 = vpop.f32.mrf.mxu0  ;;  %v3548_v53 = vpop.f32.mrf.mxu1  ;;  %v541_v47 = vld [vmem:[%s6898_s5 + $0xc50] sm:$0xff] }
 0x134   : > { %4588 = vst.msk [vmem:[%s7298_s11 + $0x140] sm:$0xff] %vm4547_vm2, %v2348_v52  ;;  %4828 = vst.msk [vmem:[%s7298_s11 + $0x8c0] sm:$0xff] %vm4547_vm2, %v3548_v53 }
 0x135   : > { %v6149_v56 = vpop.f32.mrf.mxu0  ;;  %6292 = vmatmul.mubr.msk.f32.gmra.mxu0 %vm637_vm1, %v286_v50  ;;  %v6509_v57 = vpop.f32.mrf.mxu1  ;;  %6652 = vmatmul.mubr.msk.f32.gmra.mxu1 %vm637_vm1, %v526_v51  ;;  %v302_v50 = vld [vmem:[%s6898_s5 + $0x4d8] sm:$0xff] }
 0x136   : > { %4591 = vst.msk [vmem:[%s7298_s11 + $0x158] sm:$0xff] %vm4547_vm2, %v6149_v56  ;;  %4831 = vst.msk [vmem:[%s7298_s11 + $0x8d8] sm:$0xff] %vm4547_vm2, %v6509_v57  ;;  %6294 = vmatprep.mubr.msk.f32.mxu0 %vm637_vm1, %v287_v54  ;;  %6654 = vmatprep.mubr.msk.f32.mxu1 %vm637_vm1, %v527_v55  ;;  %v542_v51 = vld [vmem:[%s6898_s5 + $0xc58] sm:$0xff]  ;;  %v303_v54 = vld [vmem:[%s6898_s5 + $0x4e0] sm:$0xff] }
 0x137   : > { %v2358_v60 = vpop.f32.mrf.mxu0  ;;  %v3558_v61 = vpop.f32.mrf.mxu1  ;;  %v543_v55 = vld [vmem:[%s6898_s5 + $0xc60] sm:$0xff] }
 0x138   : > { %4590 = vst.msk [vmem:[%s7298_s11 + $0x150] sm:$0xff] %vm4547_vm2, %v2358_v60  ;;  %4830 = vst.msk [vmem:[%s7298_s11 + $0x8d0] sm:$0xff] %vm4547_vm2, %v3558_v61 }
 0x139   : > { %v6152_v0 = vpop.f32.mrf.mxu0  ;;  %6295 = vmatmul.mubr.msk.f32.gmra.mxu0 %vm637_vm1, %v288_v58  ;;  %v6512_v1 = vpop.f32.mrf.mxu1  ;;  %6655 = vmatmul.mubr.msk.f32.gmra.mxu1 %vm637_vm1, %v528_v59  ;;  %v304_v58 = vld [vmem:[%s6898_s5 + $0x4e8] sm:$0xff] }
 0x13a   : > { %4593 = vst.msk [vmem:[%s7298_s11 + $0x168] sm:$0xff] %vm4547_vm2, %v6152_v0  ;;  %4833 = vst.msk [vmem:[%s7298_s11 + $0x8e8] sm:$0xff] %vm4547_vm2, %v6512_v1  ;;  %6297 = vmatprep.mubr.msk.f32.mxu0 %vm637_vm1, %v289_v62  ;;  %6657 = vmatprep.mubr.msk.f32.mxu1 %vm637_vm1, %v529_v63  ;;  %v544_v59 = vld [vmem:[%s6898_s5 + $0xc68] sm:$0xff]  ;;  %v305_v62 = vld [vmem:[%s6898_s5 + $0x4f0] sm:$0xff] }
 0x13b   : > { %v2368_v4 = vpop.f32.mrf.mxu0  ;;  %v3568_v5 = vpop.f32.mrf.mxu1  ;;  %v545_v63 = vld [vmem:[%s6898_s5 + $0xc70] sm:$0xff] }
 0x13c   : > { %4592 = vst.msk [vmem:[%s7298_s11 + $0x160] sm:$0xff] %vm4547_vm2, %v2368_v4  ;;  %4832 = vst.msk [vmem:[%s7298_s11 + $0x8e0] sm:$0xff] %vm4547_vm2, %v3568_v5 }
 0x13d   : > { %v6155_v8 = vpop.f32.mrf.mxu0  ;;  %6298 = vmatmul.mubr.msk.f32.gmra.mxu0 %vm637_vm1, %v290_v2  ;;  %v6515_v9 = vpop.f32.mrf.mxu1  ;;  %6658 = vmatmul.mubr.msk.f32.gmra.mxu1 %vm637_vm1, %v530_v3  ;;  %v306_v2 = vld [vmem:[%s6898_s5 + $0x4f8] sm:$0xff] }
 0x13e   : > { %4595 = vst.msk [vmem:[%s7298_s11 + $0x178] sm:$0xff] %vm4547_vm2, %v6155_v8  ;;  %4835 = vst.msk [vmem:[%s7298_s11 + $0x8f8] sm:$0xff] %vm4547_vm2, %v6515_v9  ;;  %6300 = vmatprep.mubr.msk.f32.mxu0 %vm637_vm1, %v291_v6  ;;  %6660 = vmatprep.mubr.msk.f32.mxu1 %vm637_vm1, %v531_v7  ;;  %v546_v3 = vld [vmem:[%s6898_s5 + $0xc78] sm:$0xff]  ;;  %v307_v6 = vld [vmem:[%s6898_s5 + $0x500] sm:$0xff] }
 0x13f   : > { %v2378_v12 = vpop.f32.mrf.mxu0  ;;  %v3578_v13 = vpop.f32.mrf.mxu1  ;;  %v547_v7 = vld [vmem:[%s6898_s5 + $0xc80] sm:$0xff] }
 0x140   : > { %4594 = vst.msk [vmem:[%s7298_s11 + $0x170] sm:$0xff] %vm4547_vm2, %v2378_v12  ;;  %4834 = vst.msk [vmem:[%s7298_s11 + $0x8f0] sm:$0xff] %vm4547_vm2, %v3578_v13 }
 0x141   : > { %v6158_v16 = vpop.f32.mrf.mxu0  ;;  %6301 = vmatmul.mubr.msk.f32.gmra.mxu0 %vm637_vm1, %v292_v10  ;;  %v6518_v17 = vpop.f32.mrf.mxu1  ;;  %6661 = vmatmul.mubr.msk.f32.gmra.mxu1 %vm637_vm1, %v532_v11  ;;  %v308_v10 = vld [vmem:[%s6898_s5 + $0x508] sm:$0xff] }
 0x142   : > { %4597 = vst.msk [vmem:[%s7298_s11 + $0x188] sm:$0xff] %vm4547_vm2, %v6158_v16  ;;  %4837 = vst.msk [vmem:[%s7298_s11 + $0x908] sm:$0xff] %vm4547_vm2, %v6518_v17  ;;  %6303 = vmatprep.mubr.msk.f32.mxu0 %vm637_vm1, %v293_v14  ;;  %6663 = vmatprep.mubr.msk.f32.mxu1 %vm637_vm1, %v533_v15  ;;  %v548_v11 = vld [vmem:[%s6898_s5 + $0xc88] sm:$0xff]  ;;  %v309_v14 = vld [vmem:[%s6898_s5 + $0x510] sm:$0xff] }
 0x143   : > { %v2388_v20 = vpop.f32.mrf.mxu0  ;;  %v3588_v21 = vpop.f32.mrf.mxu1  ;;  %v549_v15 = vld [vmem:[%s6898_s5 + $0xc90] sm:$0xff] }
 0x144   : > { %4596 = vst.msk [vmem:[%s7298_s11 + $0x180] sm:$0xff] %vm4547_vm2, %v2388_v20  ;;  %4836 = vst.msk [vmem:[%s7298_s11 + $0x900] sm:$0xff] %vm4547_vm2, %v3588_v21 }
 0x145   : > { %v6161_v24 = vpop.f32.mrf.mxu0  ;;  %6304 = vmatmul.mubr.msk.f32.gmra.mxu0 %vm637_vm1, %v294_v18  ;;  %v6521_v25 = vpop.f32.mrf.mxu1  ;;  %6664 = vmatmul.mubr.msk.f32.gmra.mxu1 %vm637_vm1, %v534_v19  ;;  %v310_v18 = vld [vmem:[%s6898_s5 + $0x518] sm:$0xff] }
 0x146   : > { %4599 = vst.msk [vmem:[%s7298_s11 + $0x198] sm:$0xff] %vm4547_vm2, %v6161_v24  ;;  %4839 = vst.msk [vmem:[%s7298_s11 + $0x918] sm:$0xff] %vm4547_vm2, %v6521_v25  ;;  %6306 = vmatprep.mubr.msk.f32.mxu0 %vm637_vm1, %v295_v22  ;;  %6666 = vmatprep.mubr.msk.f32.mxu1 %vm637_vm1, %v535_v23  ;;  %v550_v19 = vld [vmem:[%s6898_s5 + $0xc98] sm:$0xff]  ;;  %v311_v22 = vld [vmem:[%s6898_s5 + $0x520] sm:$0xff] }
 0x147   : > { %v2398_v28 = vpop.f32.mrf.mxu0  ;;  %v3598_v29 = vpop.f32.mrf.mxu1  ;;  %v551_v23 = vld [vmem:[%s6898_s5 + $0xca0] sm:$0xff] }
 0x148   : > { %4598 = vst.msk [vmem:[%s7298_s11 + $0x190] sm:$0xff] %vm4547_vm2, %v2398_v28  ;;  %4838 = vst.msk [vmem:[%s7298_s11 + $0x910] sm:$0xff] %vm4547_vm2, %v3598_v29 }
 0x149   : > { %v6164_v32 = vpop.f32.mrf.mxu0  ;;  %6307 = vmatmul.mubr.msk.f32.gmra.mxu0 %vm637_vm1, %v296_v26  ;;  %v6524_v33 = vpop.f32.mrf.mxu1  ;;  %6667 = vmatmul.mubr.msk.f32.gmra.mxu1 %vm637_vm1, %v536_v27  ;;  %v312_v26 = vld [vmem:[%s6898_s5 + $0x528] sm:$0xff] }
 0x14a   : > { %4601 = vst.msk [vmem:[%s7298_s11 + $0x1a8] sm:$0xff] %vm4547_vm2, %v6164_v32  ;;  %4841 = vst.msk [vmem:[%s7298_s11 + $0x928] sm:$0xff] %vm4547_vm2, %v6524_v33  ;;  %6309 = vmatprep.mubr.msk.f32.mxu0 %vm637_vm1, %v297_v30  ;;  %6669 = vmatprep.mubr.msk.f32.mxu1 %vm637_vm1, %v537_v31  ;;  %v552_v27 = vld [vmem:[%s6898_s5 + $0xca8] sm:$0xff]  ;;  %v313_v30 = vld [vmem:[%s6898_s5 + $0x530] sm:$0xff] }
 0x14b   : > { %v2408_v36 = vpop.f32.mrf.mxu0  ;;  %v3608_v37 = vpop.f32.mrf.mxu1  ;;  %v553_v31 = vld [vmem:[%s6898_s5 + $0xcb0] sm:$0xff] }
 0x14c   : > { %4600 = vst.msk [vmem:[%s7298_s11 + $0x1a0] sm:$0xff] %vm4547_vm2, %v2408_v36  ;;  %4840 = vst.msk [vmem:[%s7298_s11 + $0x920] sm:$0xff] %vm4547_vm2, %v3608_v37 }
 0x14d   : > { %v6167_v40 = vpop.f32.mrf.mxu0  ;;  %6310 = vmatmul.mubr.msk.f32.gmra.mxu0 %vm637_vm1, %v298_v34  ;;  %v6527_v41 = vpop.f32.mrf.mxu1  ;;  %6670 = vmatmul.mubr.msk.f32.gmra.mxu1 %vm637_vm1, %v538_v35  ;;  %v314_v34 = vld [vmem:[%s6898_s5 + $0x538] sm:$0xff] }
 0x14e   : > { %4603 = vst.msk [vmem:[%s7298_s11 + $0x1b8] sm:$0xff] %vm4547_vm2, %v6167_v40  ;;  %4843 = vst.msk [vmem:[%s7298_s11 + $0x938] sm:$0xff] %vm4547_vm2, %v6527_v41  ;;  %6312 = vmatprep.mubr.msk.f32.mxu0 %vm637_vm1, %v299_v38  ;;  %6672 = vmatprep.mubr.msk.f32.mxu1 %vm637_vm1, %v539_v39  ;;  %v554_v35 = vld [vmem:[%s6898_s5 + $0xcb8] sm:$0xff]  ;;  %v315_v38 = vld [vmem:[%s6898_s5 + $0x540] sm:$0xff] }
 0x14f   : > { %v2418_v44 = vpop.f32.mrf.mxu0  ;;  %v3618_v45 = vpop.f32.mrf.mxu1  ;;  %v555_v39 = vld [vmem:[%s6898_s5 + $0xcc0] sm:$0xff] }
 0x150   : > { %4602 = vst.msk [vmem:[%s7298_s11 + $0x1b0] sm:$0xff] %vm4547_vm2, %v2418_v44  ;;  %4842 = vst.msk [vmem:[%s7298_s11 + $0x930] sm:$0xff] %vm4547_vm2, %v3618_v45 }
 0x151   : > { %v6170_v48 = vpop.f32.mrf.mxu0  ;;  %6313 = vmatmul.mubr.msk.f32.gmra.mxu0 %vm637_vm1, %v300_v42  ;;  %v6530_v49 = vpop.f32.mrf.mxu1  ;;  %6673 = vmatmul.mubr.msk.f32.gmra.mxu1 %vm637_vm1, %v540_v43  ;;  %v316_v42 = vld [vmem:[%s6898_s5 + $0x548] sm:$0xff] }
 0x152   : > { %4605 = vst.msk [vmem:[%s7298_s11 + $0x1c8] sm:$0xff] %vm4547_vm2, %v6170_v48  ;;  %4845 = vst.msk [vmem:[%s7298_s11 + $0x948] sm:$0xff] %vm4547_vm2, %v6530_v49  ;;  %6315 = vmatprep.mubr.msk.f32.mxu0 %vm637_vm1, %v301_v46  ;;  %6675 = vmatprep.mubr.msk.f32.mxu1 %vm637_vm1, %v541_v47  ;;  %v556_v43 = vld [vmem:[%s6898_s5 + $0xcc8] sm:$0xff]  ;;  %v317_v46 = vld [vmem:[%s6898_s5 + $0x550] sm:$0xff] }
 0x153   : > { %v2428_v52 = vpop.f32.mrf.mxu0  ;;  %v3628_v53 = vpop.f32.mrf.mxu1  ;;  %v557_v47 = vld [vmem:[%s6898_s5 + $0xcd0] sm:$0xff] }
 0x154   : > { %4604 = vst.msk [vmem:[%s7298_s11 + $0x1c0] sm:$0xff] %vm4547_vm2, %v2428_v52  ;;  %4844 = vst.msk [vmem:[%s7298_s11 + $0x940] sm:$0xff] %vm4547_vm2, %v3628_v53 }
 0x155   : > { %v6173_v56 = vpop.f32.mrf.mxu0  ;;  %6316 = vmatmul.mubr.msk.f32.gmra.mxu0 %vm637_vm1, %v302_v50  ;;  %v6533_v57 = vpop.f32.mrf.mxu1  ;;  %6676 = vmatmul.mubr.msk.f32.gmra.mxu1 %vm637_vm1, %v542_v51  ;;  %v318_v50 = vld [vmem:[%s6898_s5 + $0x558] sm:$0xff] }
 0x156   : > { %4607 = vst.msk [vmem:[%s7298_s11 + $0x1d8] sm:$0xff] %vm4547_vm2, %v6173_v56  ;;  %4847 = vst.msk [vmem:[%s7298_s11 + $0x958] sm:$0xff] %vm4547_vm2, %v6533_v57  ;;  %6318 = vmatprep.mubr.msk.f32.mxu0 %vm637_vm1, %v303_v54  ;;  %6678 = vmatprep.mubr.msk.f32.mxu1 %vm637_vm1, %v543_v55  ;;  %v558_v51 = vld [vmem:[%s6898_s5 + $0xcd8] sm:$0xff]  ;;  %v319_v54 = vld [vmem:[%s6898_s5 + $0x560] sm:$0xff] }
 0x157   : > { %v2438_v60 = vpop.f32.mrf.mxu0  ;;  %v3638_v61 = vpop.f32.mrf.mxu1  ;;  %v559_v55 = vld [vmem:[%s6898_s5 + $0xce0] sm:$0xff] }
 0x158   : > { %4606 = vst.msk [vmem:[%s7298_s11 + $0x1d0] sm:$0xff] %vm4547_vm2, %v2438_v60  ;;  %4846 = vst.msk [vmem:[%s7298_s11 + $0x950] sm:$0xff] %vm4547_vm2, %v3638_v61 }
 0x159   : > { %v6176_v0 = vpop.f32.mrf.mxu0  ;;  %6319 = vmatmul.mubr.msk.f32.gmra.mxu0 %vm637_vm1, %v304_v58  ;;  %v6536_v1 = vpop.f32.mrf.mxu1  ;;  %6679 = vmatmul.mubr.msk.f32.gmra.mxu1 %vm637_vm1, %v544_v59  ;;  %v320_v58 = vld [vmem:[%s6898_s5 + $0x568] sm:$0xff] }
 0x15a   : > { %4609 = vst.msk [vmem:[%s7298_s11 + $0x1e8] sm:$0xff] %vm4547_vm2, %v6176_v0  ;;  %4849 = vst.msk [vmem:[%s7298_s11 + $0x968] sm:$0xff] %vm4547_vm2, %v6536_v1  ;;  %6321 = vmatprep.mubr.msk.f32.mxu0 %vm637_vm1, %v305_v62  ;;  %6681 = vmatprep.mubr.msk.f32.mxu1 %vm637_vm1, %v545_v63  ;;  %v560_v59 = vld [vmem:[%s6898_s5 + $0xce8] sm:$0xff]  ;;  %v321_v62 = vld [vmem:[%s6898_s5 + $0x570] sm:$0xff] }
 0x15b   : > { %v2448_v4 = vpop.f32.mrf.mxu0  ;;  %v3648_v5 = vpop.f32.mrf.mxu1  ;;  %v561_v63 = vld [vmem:[%s6898_s5 + $0xcf0] sm:$0xff] }
 0x15c   : > { %4608 = vst.msk [vmem:[%s7298_s11 + $0x1e0] sm:$0xff] %vm4547_vm2, %v2448_v4  ;;  %4848 = vst.msk [vmem:[%s7298_s11 + $0x960] sm:$0xff] %vm4547_vm2, %v3648_v5 }
 0x15d   : > { %v6179_v8 = vpop.f32.mrf.mxu0  ;;  %6322 = vmatmul.mubr.msk.f32.gmra.mxu0 %vm637_vm1, %v306_v2  ;;  %v6539_v9 = vpop.f32.mrf.mxu1  ;;  %6682 = vmatmul.mubr.msk.f32.gmra.mxu1 %vm637_vm1, %v546_v3  ;;  %v322_v2 = vld [vmem:[%s6898_s5 + $0x578] sm:$0xff] }
 0x15e   : > { %4611 = vst.msk [vmem:[%s7298_s11 + $0x1f8] sm:$0xff] %vm4547_vm2, %v6179_v8  ;;  %4851 = vst.msk [vmem:[%s7298_s11 + $0x978] sm:$0xff] %vm4547_vm2, %v6539_v9  ;;  %6324 = vmatprep.mubr.msk.f32.mxu0 %vm637_vm1, %v307_v6  ;;  %6684 = vmatprep.mubr.msk.f32.mxu1 %vm637_vm1, %v547_v7  ;;  %v562_v3 = vld [vmem:[%s6898_s5 + $0xcf8] sm:$0xff]  ;;  %v323_v6 = vld [vmem:[%s6898_s5 + $0x580] sm:$0xff] }
 0x15f   : > { %v2458_v12 = vpop.f32.mrf.mxu0  ;;  %v3658_v13 = vpop.f32.mrf.mxu1  ;;  %v563_v7 = vld [vmem:[%s6898_s5 + $0xd00] sm:$0xff] }
 0x160   : > { %4610 = vst.msk [vmem:[%s7298_s11 + $0x1f0] sm:$0xff] %vm4547_vm2, %v2458_v12  ;;  %4850 = vst.msk [vmem:[%s7298_s11 + $0x970] sm:$0xff] %vm4547_vm2, %v3658_v13 }
 0x161   : > { %v6182_v16 = vpop.f32.mrf.mxu0  ;;  %6325 = vmatmul.mubr.msk.f32.gmra.mxu0 %vm637_vm1, %v308_v10  ;;  %v6542_v17 = vpop.f32.mrf.mxu1  ;;  %6685 = vmatmul.mubr.msk.f32.gmra.mxu1 %vm637_vm1, %v548_v11  ;;  %v324_v10 = vld [vmem:[%s6898_s5 + $0x588] sm:$0xff] }
 0x162   : > { %4613 = vst.msk [vmem:[%s7298_s11 + $0x208] sm:$0xff] %vm4547_vm2, %v6182_v16  ;;  %4853 = vst.msk [vmem:[%s7298_s11 + $0x988] sm:$0xff] %vm4547_vm2, %v6542_v17  ;;  %6327 = vmatprep.mubr.msk.f32.mxu0 %vm637_vm1, %v309_v14  ;;  %6687 = vmatprep.mubr.msk.f32.mxu1 %vm637_vm1, %v549_v15  ;;  %v564_v11 = vld [vmem:[%s6898_s5 + $0xd08] sm:$0xff]  ;;  %v325_v14 = vld [vmem:[%s6898_s5 + $0x590] sm:$0xff] }
 0x163   : > { %v2468_v20 = vpop.f32.mrf.mxu0  ;;  %v3668_v21 = vpop.f32.mrf.mxu1  ;;  %v565_v15 = vld [vmem:[%s6898_s5 + $0xd10] sm:$0xff] }
 0x164   : > { %4612 = vst.msk [vmem:[%s7298_s11 + $0x200] sm:$0xff] %vm4547_vm2, %v2468_v20  ;;  %4852 = vst.msk [vmem:[%s7298_s11 + $0x980] sm:$0xff] %vm4547_vm2, %v3668_v21 }
 0x165   : > { %v6185_v24 = vpop.f32.mrf.mxu0  ;;  %6328 = vmatmul.mubr.msk.f32.gmra.mxu0 %vm637_vm1, %v310_v18  ;;  %v6545_v25 = vpop.f32.mrf.mxu1  ;;  %6688 = vmatmul.mubr.msk.f32.gmra.mxu1 %vm637_vm1, %v550_v19  ;;  %v326_v18 = vld [vmem:[%s6898_s5 + $0x598] sm:$0xff] }
 0x166   : > { %4615 = vst.msk [vmem:[%s7298_s11 + $0x218] sm:$0xff] %vm4547_vm2, %v6185_v24  ;;  %4855 = vst.msk [vmem:[%s7298_s11 + $0x998] sm:$0xff] %vm4547_vm2, %v6545_v25  ;;  %6330 = vmatprep.mubr.msk.f32.mxu0 %vm637_vm1, %v311_v22  ;;  %6690 = vmatprep.mubr.msk.f32.mxu1 %vm637_vm1, %v551_v23  ;;  %v566_v19 = vld [vmem:[%s6898_s5 + $0xd18] sm:$0xff]  ;;  %v327_v22 = vld [vmem:[%s6898_s5 + $0x5a0] sm:$0xff] }
 0x167   : > { %v2478_v28 = vpop.f32.mrf.mxu0  ;;  %v3678_v29 = vpop.f32.mrf.mxu1  ;;  %v567_v23 = vld [vmem:[%s6898_s5 + $0xd20] sm:$0xff] }
 0x168   : > { %4614 = vst.msk [vmem:[%s7298_s11 + $0x210] sm:$0xff] %vm4547_vm2, %v2478_v28  ;;  %4854 = vst.msk [vmem:[%s7298_s11 + $0x990] sm:$0xff] %vm4547_vm2, %v3678_v29 }
 0x169   : > { %v6188_v32 = vpop.f32.mrf.mxu0  ;;  %6331 = vmatmul.mubr.msk.f32.gmra.mxu0 %vm637_vm1, %v312_v26  ;;  %v6548_v33 = vpop.f32.mrf.mxu1  ;;  %6691 = vmatmul.mubr.msk.f32.gmra.mxu1 %vm637_vm1, %v552_v27  ;;  %v328_v26 = vld [vmem:[%s6898_s5 + $0x5a8] sm:$0xff] }
 0x16a   : > { %4617 = vst.msk [vmem:[%s7298_s11 + $0x228] sm:$0xff] %vm4547_vm2, %v6188_v32  ;;  %4857 = vst.msk [vmem:[%s7298_s11 + $0x9a8] sm:$0xff] %vm4547_vm2, %v6548_v33  ;;  %6333 = vmatprep.mubr.msk.f32.mxu0 %vm637_vm1, %v313_v30  ;;  %6693 = vmatprep.mubr.msk.f32.mxu1 %vm637_vm1, %v553_v31  ;;  %v568_v27 = vld [vmem:[%s6898_s5 + $0xd28] sm:$0xff]  ;;  %v329_v30 = vld [vmem:[%s6898_s5 + $0x5b0] sm:$0xff] }
 0x16b   : > { %v2488_v36 = vpop.f32.mrf.mxu0  ;;  %v3688_v37 = vpop.f32.mrf.mxu1  ;;  %v569_v31 = vld [vmem:[%s6898_s5 + $0xd30] sm:$0xff] }
 0x16c   : > { %4616 = vst.msk [vmem:[%s7298_s11 + $0x220] sm:$0xff] %vm4547_vm2, %v2488_v36  ;;  %4856 = vst.msk [vmem:[%s7298_s11 + $0x9a0] sm:$0xff] %vm4547_vm2, %v3688_v37 }
 0x16d   : > { %v6191_v40 = vpop.f32.mrf.mxu0  ;;  %6334 = vmatmul.mubr.msk.f32.gmra.mxu0 %vm637_vm1, %v314_v34  ;;  %v6551_v41 = vpop.f32.mrf.mxu1  ;;  %6694 = vmatmul.mubr.msk.f32.gmra.mxu1 %vm637_vm1, %v554_v35  ;;  %v330_v34 = vld [vmem:[%s6898_s5 + $0x5b8] sm:$0xff] }
 0x16e   : > { %4619 = vst.msk [vmem:[%s7298_s11 + $0x238] sm:$0xff] %vm4547_vm2, %v6191_v40  ;;  %4859 = vst.msk [vmem:[%s7298_s11 + $0x9b8] sm:$0xff] %vm4547_vm2, %v6551_v41  ;;  %6336 = vmatprep.mubr.msk.f32.mxu0 %vm637_vm1, %v315_v38  ;;  %6696 = vmatprep.mubr.msk.f32.mxu1 %vm637_vm1, %v555_v39  ;;  %v570_v35 = vld [vmem:[%s6898_s5 + $0xd38] sm:$0xff]  ;;  %v331_v38 = vld [vmem:[%s6898_s5 + $0x5c0] sm:$0xff] }
 0x16f   : > { %v2498_v44 = vpop.f32.mrf.mxu0  ;;  %v3698_v45 = vpop.f32.mrf.mxu1  ;;  %v571_v39 = vld [vmem:[%s6898_s5 + $0xd40] sm:$0xff] }
 0x170   : > { %4618 = vst.msk [vmem:[%s7298_s11 + $0x230] sm:$0xff] %vm4547_vm2, %v2498_v44  ;;  %4858 = vst.msk [vmem:[%s7298_s11 + $0x9b0] sm:$0xff] %vm4547_vm2, %v3698_v45 }
 0x171   : > { %v6194_v48 = vpop.f32.mrf.mxu0  ;;  %6337 = vmatmul.mubr.msk.f32.gmra.mxu0 %vm637_vm1, %v316_v42  ;;  %v6554_v49 = vpop.f32.mrf.mxu1  ;;  %6697 = vmatmul.mubr.msk.f32.gmra.mxu1 %vm637_vm1, %v556_v43  ;;  %v332_v42 = vld [vmem:[%s6898_s5 + $0x5c8] sm:$0xff] }
 0x172   : > { %4621 = vst.msk [vmem:[%s7298_s11 + $0x248] sm:$0xff] %vm4547_vm2, %v6194_v48  ;;  %4861 = vst.msk [vmem:[%s7298_s11 + $0x9c8] sm:$0xff] %vm4547_vm2, %v6554_v49  ;;  %6339 = vmatprep.mubr.msk.f32.mxu0 %vm637_vm1, %v317_v46  ;;  %6699 = vmatprep.mubr.msk.f32.mxu1 %vm637_vm1, %v557_v47  ;;  %v572_v43 = vld [vmem:[%s6898_s5 + $0xd48] sm:$0xff]  ;;  %v333_v46 = vld [vmem:[%s6898_s5 + $0x5d0] sm:$0xff] }
 0x173   : > { %v2508_v52 = vpop.f32.mrf.mxu0  ;;  %v3708_v53 = vpop.f32.mrf.mxu1  ;;  %v573_v47 = vld [vmem:[%s6898_s5 + $0xd50] sm:$0xff] }
 0x174   : > { %4620 = vst.msk [vmem:[%s7298_s11 + $0x240] sm:$0xff] %vm4547_vm2, %v2508_v52  ;;  %4860 = vst.msk [vmem:[%s7298_s11 + $0x9c0] sm:$0xff] %vm4547_vm2, %v3708_v53 }
 0x175   : > { %v6197_v56 = vpop.f32.mrf.mxu0  ;;  %6340 = vmatmul.mubr.msk.f32.gmra.mxu0 %vm637_vm1, %v318_v50  ;;  %v6557_v57 = vpop.f32.mrf.mxu1  ;;  %6700 = vmatmul.mubr.msk.f32.gmra.mxu1 %vm637_vm1, %v558_v51  ;;  %v334_v50 = vld [vmem:[%s6898_s5 + $0x5d8] sm:$0xff] }
 0x176   : > { %4623 = vst.msk [vmem:[%s7298_s11 + $0x258] sm:$0xff] %vm4547_vm2, %v6197_v56  ;;  %4863 = vst.msk [vmem:[%s7298_s11 + $0x9d8] sm:$0xff] %vm4547_vm2, %v6557_v57  ;;  %6342 = vmatprep.mubr.msk.f32.mxu0 %vm637_vm1, %v319_v54  ;;  %6702 = vmatprep.mubr.msk.f32.mxu1 %vm637_vm1, %v559_v55  ;;  %v574_v51 = vld [vmem:[%s6898_s5 + $0xd58] sm:$0xff]  ;;  %v335_v54 = vld [vmem:[%s6898_s5 + $0x5e0] sm:$0xff] }
 0x177   : > { %v2518_v60 = vpop.f32.mrf.mxu0  ;;  %v3718_v61 = vpop.f32.mrf.mxu1  ;;  %v575_v55 = vld [vmem:[%s6898_s5 + $0xd60] sm:$0xff] }
 0x178   : > { %4622 = vst.msk [vmem:[%s7298_s11 + $0x250] sm:$0xff] %vm4547_vm2, %v2518_v60  ;;  %4862 = vst.msk [vmem:[%s7298_s11 + $0x9d0] sm:$0xff] %vm4547_vm2, %v3718_v61 }
 0x179   : > { %v6200_v0 = vpop.f32.mrf.mxu0  ;;  %6343 = vmatmul.mubr.msk.f32.gmra.mxu0 %vm637_vm1, %v320_v58  ;;  %v6560_v1 = vpop.f32.mrf.mxu1  ;;  %6703 = vmatmul.mubr.msk.f32.gmra.mxu1 %vm637_vm1, %v560_v59  ;;  %v336_v58 = vld [vmem:[%s6898_s5 + $0x5e8] sm:$0xff] }
 0x17a   : > { %4625 = vst.msk [vmem:[%s7298_s11 + $0x268] sm:$0xff] %vm4547_vm2, %v6200_v0  ;;  %4865 = vst.msk [vmem:[%s7298_s11 + $0x9e8] sm:$0xff] %vm4547_vm2, %v6560_v1  ;;  %6345 = vmatprep.mubr.msk.f32.mxu0 %vm637_vm1, %v321_v62  ;;  %6705 = vmatprep.mubr.msk.f32.mxu1 %vm637_vm1, %v561_v63  ;;  %v576_v59 = vld [vmem:[%s6898_s5 + $0xd68] sm:$0xff]  ;;  %v337_v62 = vld [vmem:[%s6898_s5 + $0x5f0] sm:$0xff] }
 0x17b   : > { %v2528_v4 = vpop.f32.mrf.mxu0  ;;  %v3728_v5 = vpop.f32.mrf.mxu1  ;;  %v577_v63 = vld [vmem:[%s6898_s5 + $0xd70] sm:$0xff] }
 0x17c   : > { %4624 = vst.msk [vmem:[%s7298_s11 + $0x260] sm:$0xff] %vm4547_vm2, %v2528_v4  ;;  %4864 = vst.msk [vmem:[%s7298_s11 + $0x9e0] sm:$0xff] %vm4547_vm2, %v3728_v5 }
 0x17d   : > { %v6203_v8 = vpop.f32.mrf.mxu0  ;;  %6346 = vmatmul.mubr.msk.f32.gmra.mxu0 %vm637_vm1, %v322_v2  ;;  %v6563_v9 = vpop.f32.mrf.mxu1  ;;  %6706 = vmatmul.mubr.msk.f32.gmra.mxu1 %vm637_vm1, %v562_v3  ;;  %v338_v2 = vld [vmem:[%s6898_s5 + $0x5f8] sm:$0xff] }
 0x17e   : > { %4627 = vst.msk [vmem:[%s7298_s11 + $0x278] sm:$0xff] %vm4547_vm2, %v6203_v8  ;;  %4867 = vst.msk [vmem:[%s7298_s11 + $0x9f8] sm:$0xff] %vm4547_vm2, %v6563_v9  ;;  %6348 = vmatprep.mubr.msk.f32.mxu0 %vm637_vm1, %v323_v6  ;;  %6708 = vmatprep.mubr.msk.f32.mxu1 %vm637_vm1, %v563_v7  ;;  %v578_v3 = vld [vmem:[%s6898_s5 + $0xd78] sm:$0xff]  ;;  %v339_v6 = vld [vmem:[%s6898_s5 + $0x600] sm:$0xff] }
 0x17f   : > { %v2538_v12 = vpop.f32.mrf.mxu0  ;;  %v3738_v13 = vpop.f32.mrf.mxu1  ;;  %v579_v7 = vld [vmem:[%s6898_s5 + $0xd80] sm:$0xff] }
 0x180   : > { %4626 = vst.msk [vmem:[%s7298_s11 + $0x270] sm:$0xff] %vm4547_vm2, %v2538_v12  ;;  %4866 = vst.msk [vmem:[%s7298_s11 + $0x9f0] sm:$0xff] %vm4547_vm2, %v3738_v13 }
 0x181   : > { %v6206_v16 = vpop.f32.mrf.mxu0  ;;  %6349 = vmatmul.mubr.msk.f32.gmra.mxu0 %vm637_vm1, %v324_v10  ;;  %v6566_v17 = vpop.f32.mrf.mxu1  ;;  %6709 = vmatmul.mubr.msk.f32.gmra.mxu1 %vm637_vm1, %v564_v11  ;;  %v340_v10 = vld [vmem:[%s6898_s5 + $0x608] sm:$0xff] }
 0x182   : > { %4629 = vst.msk [vmem:[%s7298_s11 + $0x288] sm:$0xff] %vm4547_vm2, %v6206_v16  ;;  %4869 = vst.msk [vmem:[%s7298_s11 + $0xa08] sm:$0xff] %vm4547_vm2, %v6566_v17  ;;  %6351 = vmatprep.mubr.msk.f32.mxu0 %vm637_vm1, %v325_v14  ;;  %6711 = vmatprep.mubr.msk.f32.mxu1 %vm637_vm1, %v565_v15  ;;  %v580_v11 = vld [vmem:[%s6898_s5 + $0xd88] sm:$0xff]  ;;  %v341_v14 = vld [vmem:[%s6898_s5 + $0x610] sm:$0xff] }
 0x183   : > { %v2548_v20 = vpop.f32.mrf.mxu0  ;;  %v3748_v21 = vpop.f32.mrf.mxu1  ;;  %v581_v15 = vld [vmem:[%s6898_s5 + $0xd90] sm:$0xff] }
 0x184   : > { %4628 = vst.msk [vmem:[%s7298_s11 + $0x280] sm:$0xff] %vm4547_vm2, %v2548_v20  ;;  %4868 = vst.msk [vmem:[%s7298_s11 + $0xa00] sm:$0xff] %vm4547_vm2, %v3748_v21 }
 0x185   : > { %v6209_v24 = vpop.f32.mrf.mxu0  ;;  %6352 = vmatmul.mubr.msk.f32.gmra.mxu0 %vm637_vm1, %v326_v18  ;;  %v6569_v25 = vpop.f32.mrf.mxu1  ;;  %6712 = vmatmul.mubr.msk.f32.gmra.mxu1 %vm637_vm1, %v566_v19  ;;  %v342_v18 = vld [vmem:[%s6898_s5 + $0x618] sm:$0xff] }
 0x186   : > { %4631 = vst.msk [vmem:[%s7298_s11 + $0x298] sm:$0xff] %vm4547_vm2, %v6209_v24  ;;  %4871 = vst.msk [vmem:[%s7298_s11 + $0xa18] sm:$0xff] %vm4547_vm2, %v6569_v25  ;;  %6354 = vmatprep.mubr.msk.f32.mxu0 %vm637_vm1, %v327_v22  ;;  %6714 = vmatprep.mubr.msk.f32.mxu1 %vm637_vm1, %v567_v23  ;;  %v582_v19 = vld [vmem:[%s6898_s5 + $0xd98] sm:$0xff]  ;;  %v343_v22 = vld [vmem:[%s6898_s5 + $0x620] sm:$0xff] }
 0x187   : > { %v2558_v28 = vpop.f32.mrf.mxu0  ;;  %v3758_v29 = vpop.f32.mrf.mxu1  ;;  %v583_v23 = vld [vmem:[%s6898_s5 + $0xda0] sm:$0xff] }
 0x188   : > { %4630 = vst.msk [vmem:[%s7298_s11 + $0x290] sm:$0xff] %vm4547_vm2, %v2558_v28  ;;  %4870 = vst.msk [vmem:[%s7298_s11 + $0xa10] sm:$0xff] %vm4547_vm2, %v3758_v29 }
 0x189   : > { %v6212_v32 = vpop.f32.mrf.mxu0  ;;  %6355 = vmatmul.mubr.msk.f32.gmra.mxu0 %vm637_vm1, %v328_v26  ;;  %v6572_v33 = vpop.f32.mrf.mxu1  ;;  %6715 = vmatmul.mubr.msk.f32.gmra.mxu1 %vm637_vm1, %v568_v27  ;;  %v344_v26 = vld [vmem:[%s6898_s5 + $0x628] sm:$0xff] }
 0x18a   : > { %4633 = vst.msk [vmem:[%s7298_s11 + $0x2a8] sm:$0xff] %vm4547_vm2, %v6212_v32  ;;  %4873 = vst.msk [vmem:[%s7298_s11 + $0xa28] sm:$0xff] %vm4547_vm2, %v6572_v33  ;;  %6357 = vmatprep.mubr.msk.f32.mxu0 %vm637_vm1, %v329_v30  ;;  %6717 = vmatprep.mubr.msk.f32.mxu1 %vm637_vm1, %v569_v31  ;;  %v584_v27 = vld [vmem:[%s6898_s5 + $0xda8] sm:$0xff]  ;;  %v345_v30 = vld [vmem:[%s6898_s5 + $0x630] sm:$0xff] }
 0x18b   : > { %v2568_v36 = vpop.f32.mrf.mxu0  ;;  %v3768_v37 = vpop.f32.mrf.mxu1  ;;  %v585_v31 = vld [vmem:[%s6898_s5 + $0xdb0] sm:$0xff] }
 0x18c   : > { %4632 = vst.msk [vmem:[%s7298_s11 + $0x2a0] sm:$0xff] %vm4547_vm2, %v2568_v36  ;;  %4872 = vst.msk [vmem:[%s7298_s11 + $0xa20] sm:$0xff] %vm4547_vm2, %v3768_v37 }
 0x18d   : > { %v6215_v40 = vpop.f32.mrf.mxu0  ;;  %6358 = vmatmul.mubr.msk.f32.gmra.mxu0 %vm637_vm1, %v330_v34  ;;  %v6575_v41 = vpop.f32.mrf.mxu1  ;;  %6718 = vmatmul.mubr.msk.f32.gmra.mxu1 %vm637_vm1, %v570_v35  ;;  %v346_v34 = vld [vmem:[%s6898_s5 + $0x638] sm:$0xff] }
 0x18e   : > { %4635 = vst.msk [vmem:[%s7298_s11 + $0x2b8] sm:$0xff] %vm4547_vm2, %v6215_v40  ;;  %4875 = vst.msk [vmem:[%s7298_s11 + $0xa38] sm:$0xff] %vm4547_vm2, %v6575_v41  ;;  %6360 = vmatprep.mubr.msk.f32.mxu0 %vm637_vm1, %v331_v38  ;;  %6720 = vmatprep.mubr.msk.f32.mxu1 %vm637_vm1, %v571_v39  ;;  %v586_v35 = vld [vmem:[%s6898_s5 + $0xdb8] sm:$0xff]  ;;  %v347_v38 = vld [vmem:[%s6898_s5 + $0x640] sm:$0xff] }
 0x18f   : > { %v2578_v44 = vpop.f32.mrf.mxu0  ;;  %v3778_v45 = vpop.f32.mrf.mxu1  ;;  %v587_v39 = vld [vmem:[%s6898_s5 + $0xdc0] sm:$0xff] }
 0x190   : > { %4634 = vst.msk [vmem:[%s7298_s11 + $0x2b0] sm:$0xff] %vm4547_vm2, %v2578_v44  ;;  %4874 = vst.msk [vmem:[%s7298_s11 + $0xa30] sm:$0xff] %vm4547_vm2, %v3778_v45 }
 0x191   : > { %v6218_v48 = vpop.f32.mrf.mxu0  ;;  %6361 = vmatmul.mubr.msk.f32.gmra.mxu0 %vm637_vm1, %v332_v42  ;;  %v6578_v49 = vpop.f32.mrf.mxu1  ;;  %6721 = vmatmul.mubr.msk.f32.gmra.mxu1 %vm637_vm1, %v572_v43  ;;  %v348_v42 = vld [vmem:[%s6898_s5 + $0x648] sm:$0xff] }
 0x192   : > { %4637 = vst.msk [vmem:[%s7298_s11 + $0x2c8] sm:$0xff] %vm4547_vm2, %v6218_v48  ;;  %4877 = vst.msk [vmem:[%s7298_s11 + $0xa48] sm:$0xff] %vm4547_vm2, %v6578_v49  ;;  %6363 = vmatprep.mubr.msk.f32.mxu0 %vm637_vm1, %v333_v46  ;;  %6723 = vmatprep.mubr.msk.f32.mxu1 %vm637_vm1, %v573_v47  ;;  %v588_v43 = vld [vmem:[%s6898_s5 + $0xdc8] sm:$0xff]  ;;  %v349_v46 = vld [vmem:[%s6898_s5 + $0x650] sm:$0xff] }
 0x193   : > { %v2588_v52 = vpop.f32.mrf.mxu0  ;;  %v3788_v53 = vpop.f32.mrf.mxu1  ;;  %v589_v47 = vld [vmem:[%s6898_s5 + $0xdd0] sm:$0xff] }
 0x194   : > { %4636 = vst.msk [vmem:[%s7298_s11 + $0x2c0] sm:$0xff] %vm4547_vm2, %v2588_v52  ;;  %4876 = vst.msk [vmem:[%s7298_s11 + $0xa40] sm:$0xff] %vm4547_vm2, %v3788_v53 }
 0x195   : > { %v6221_v56 = vpop.f32.mrf.mxu0  ;;  %6364 = vmatmul.mubr.msk.f32.gmra.mxu0 %vm637_vm1, %v334_v50  ;;  %v6581_v57 = vpop.f32.mrf.mxu1  ;;  %6724 = vmatmul.mubr.msk.f32.gmra.mxu1 %vm637_vm1, %v574_v51  ;;  %v350_v50 = vld [vmem:[%s6898_s5 + $0x658] sm:$0xff] }
 0x196   : > { %4639 = vst.msk [vmem:[%s7298_s11 + $0x2d8] sm:$0xff] %vm4547_vm2, %v6221_v56  ;;  %4879 = vst.msk [vmem:[%s7298_s11 + $0xa58] sm:$0xff] %vm4547_vm2, %v6581_v57  ;;  %6366 = vmatprep.mubr.msk.f32.mxu0 %vm637_vm1, %v335_v54  ;;  %6726 = vmatprep.mubr.msk.f32.mxu1 %vm637_vm1, %v575_v55  ;;  %v590_v51 = vld [vmem:[%s6898_s5 + $0xdd8] sm:$0xff]  ;;  %v351_v54 = vld [vmem:[%s6898_s5 + $0x660] sm:$0xff] }
 0x197   : > { %v2598_v60 = vpop.f32.mrf.mxu0  ;;  %v3798_v61 = vpop.f32.mrf.mxu1  ;;  %v591_v55 = vld [vmem:[%s6898_s5 + $0xde0] sm:$0xff] }
 0x198   : > { %4638 = vst.msk [vmem:[%s7298_s11 + $0x2d0] sm:$0xff] %vm4547_vm2, %v2598_v60  ;;  %4878 = vst.msk [vmem:[%s7298_s11 + $0xa50] sm:$0xff] %vm4547_vm2, %v3798_v61 }
 0x199   : > { %v6224_v0 = vpop.f32.mrf.mxu0  ;;  %6367 = vmatmul.mubr.msk.f32.gmra.mxu0 %vm637_vm1, %v336_v58  ;;  %v6584_v1 = vpop.f32.mrf.mxu1  ;;  %6727 = vmatmul.mubr.msk.f32.gmra.mxu1 %vm637_vm1, %v576_v59  ;;  %v352_v58 = vld [vmem:[%s6898_s5 + $0x668] sm:$0xff] }
 0x19a   : > { %4641 = vst.msk [vmem:[%s7298_s11 + $0x2e8] sm:$0xff] %vm4547_vm2, %v6224_v0  ;;  %4881 = vst.msk [vmem:[%s7298_s11 + $0xa68] sm:$0xff] %vm4547_vm2, %v6584_v1  ;;  %6369 = vmatprep.mubr.msk.f32.mxu0 %vm637_vm1, %v337_v62  ;;  %6729 = vmatprep.mubr.msk.f32.mxu1 %vm637_vm1, %v577_v63  ;;  %v592_v59 = vld [vmem:[%s6898_s5 + $0xde8] sm:$0xff]  ;;  %v353_v62 = vld [vmem:[%s6898_s5 + $0x670] sm:$0xff] }
 0x19b   : > { %v2608_v4 = vpop.f32.mrf.mxu0  ;;  %v3808_v5 = vpop.f32.mrf.mxu1  ;;  %v593_v63 = vld [vmem:[%s6898_s5 + $0xdf0] sm:$0xff] }
 0x19c   : > { %4640 = vst.msk [vmem:[%s7298_s11 + $0x2e0] sm:$0xff] %vm4547_vm2, %v2608_v4  ;;  %4880 = vst.msk [vmem:[%s7298_s11 + $0xa60] sm:$0xff] %vm4547_vm2, %v3808_v5 }
 0x19d   : > { %v6227_v8 = vpop.f32.mrf.mxu0  ;;  %6370 = vmatmul.mubr.msk.f32.gmra.mxu0 %vm637_vm1, %v338_v2  ;;  %v6587_v9 = vpop.f32.mrf.mxu1  ;;  %6730 = vmatmul.mubr.msk.f32.gmra.mxu1 %vm637_vm1, %v578_v3  ;;  %v354_v2 = vld [vmem:[%s6898_s5 + $0x678] sm:$0xff] }
 0x19e   : > { %4643 = vst.msk [vmem:[%s7298_s11 + $0x2f8] sm:$0xff] %vm4547_vm2, %v6227_v8  ;;  %4883 = vst.msk [vmem:[%s7298_s11 + $0xa78] sm:$0xff] %vm4547_vm2, %v6587_v9  ;;  %6372 = vmatprep.mubr.msk.f32.mxu0 %vm637_vm1, %v339_v6  ;;  %6732 = vmatprep.mubr.msk.f32.mxu1 %vm637_vm1, %v579_v7  ;;  %v594_v3 = vld [vmem:[%s6898_s5 + $0xdf8] sm:$0xff]  ;;  %v355_v6 = vld [vmem:[%s6898_s5 + $0x680] sm:$0xff] }
 0x19f   : > { %v2618_v12 = vpop.f32.mrf.mxu0  ;;  %v3818_v13 = vpop.f32.mrf.mxu1  ;;  %v595_v7 = vld [vmem:[%s6898_s5 + $0xe00] sm:$0xff] }
 0x1a0   : > { %4642 = vst.msk [vmem:[%s7298_s11 + $0x2f0] sm:$0xff] %vm4547_vm2, %v2618_v12  ;;  %4882 = vst.msk [vmem:[%s7298_s11 + $0xa70] sm:$0xff] %vm4547_vm2, %v3818_v13 }
 0x1a1   : > { %v6230_v16 = vpop.f32.mrf.mxu0  ;;  %6373 = vmatmul.mubr.msk.f32.gmra.mxu0 %vm637_vm1, %v340_v10  ;;  %v6590_v17 = vpop.f32.mrf.mxu1  ;;  %6733 = vmatmul.mubr.msk.f32.gmra.mxu1 %vm637_vm1, %v580_v11  ;;  %v356_v10 = vld [vmem:[%s6898_s5 + $0x688] sm:$0xff] }
 0x1a2   : > { %4645 = vst.msk [vmem:[%s7298_s11 + $0x308] sm:$0xff] %vm4547_vm2, %v6230_v16  ;;  %4885 = vst.msk [vmem:[%s7298_s11 + $0xa88] sm:$0xff] %vm4547_vm2, %v6590_v17  ;;  %6375 = vmatprep.mubr.msk.f32.mxu0 %vm637_vm1, %v341_v14  ;;  %6735 = vmatprep.mubr.msk.f32.mxu1 %vm637_vm1, %v581_v15  ;;  %v596_v11 = vld [vmem:[%s6898_s5 + $0xe08] sm:$0xff]  ;;  %v357_v14 = vld [vmem:[%s6898_s5 + $0x690] sm:$0xff] }
 0x1a3   : > { %v2628_v20 = vpop.f32.mrf.mxu0  ;;  %v3828_v21 = vpop.f32.mrf.mxu1  ;;  %v597_v15 = vld [vmem:[%s6898_s5 + $0xe10] sm:$0xff] }
 0x1a4   : > { %4644 = vst.msk [vmem:[%s7298_s11 + $0x300] sm:$0xff] %vm4547_vm2, %v2628_v20  ;;  %4884 = vst.msk [vmem:[%s7298_s11 + $0xa80] sm:$0xff] %vm4547_vm2, %v3828_v21 }
 0x1a5   : > { %v6233_v24 = vpop.f32.mrf.mxu0  ;;  %6376 = vmatmul.mubr.msk.f32.gmra.mxu0 %vm637_vm1, %v342_v18  ;;  %v6593_v25 = vpop.f32.mrf.mxu1  ;;  %6736 = vmatmul.mubr.msk.f32.gmra.mxu1 %vm637_vm1, %v582_v19  ;;  %v358_v18 = vld [vmem:[%s6898_s5 + $0x698] sm:$0xff] }
 0x1a6   : > { %4647 = vst.msk [vmem:[%s7298_s11 + $0x318] sm:$0xff] %vm4547_vm2, %v6233_v24  ;;  %4887 = vst.msk [vmem:[%s7298_s11 + $0xa98] sm:$0xff] %vm4547_vm2, %v6593_v25  ;;  %6378 = vmatprep.mubr.msk.f32.mxu0 %vm637_vm1, %v343_v22  ;;  %6738 = vmatprep.mubr.msk.f32.mxu1 %vm637_vm1, %v583_v23  ;;  %v598_v19 = vld [vmem:[%s6898_s5 + $0xe18] sm:$0xff]  ;;  %v359_v22 = vld [vmem:[%s6898_s5 + $0x6a0] sm:$0xff] }
 0x1a7   : > { %v2638_v28 = vpop.f32.mrf.mxu0  ;;  %v3838_v29 = vpop.f32.mrf.mxu1  ;;  %v599_v23 = vld [vmem:[%s6898_s5 + $0xe20] sm:$0xff] }
 0x1a8   : > { %4646 = vst.msk [vmem:[%s7298_s11 + $0x310] sm:$0xff] %vm4547_vm2, %v2638_v28  ;;  %4886 = vst.msk [vmem:[%s7298_s11 + $0xa90] sm:$0xff] %vm4547_vm2, %v3838_v29 }
 0x1a9   : > { %v6236_v32 = vpop.f32.mrf.mxu0  ;;  %6379 = vmatmul.mubr.msk.f32.gmra.mxu0 %vm637_vm1, %v344_v26  ;;  %v6596_v33 = vpop.f32.mrf.mxu1  ;;  %6739 = vmatmul.mubr.msk.f32.gmra.mxu1 %vm637_vm1, %v584_v27  ;;  %v360_v26 = vld [vmem:[%s6898_s5 + $0x6a8] sm:$0xff] }
 0x1aa   : > { %4649 = vst.msk [vmem:[%s7298_s11 + $0x328] sm:$0xff] %vm4547_vm2, %v6236_v32  ;;  %4889 = vst.msk [vmem:[%s7298_s11 + $0xaa8] sm:$0xff] %vm4547_vm2, %v6596_v33  ;;  %6381 = vmatprep.mubr.msk.f32.mxu0 %vm637_vm1, %v345_v30  ;;  %6741 = vmatprep.mubr.msk.f32.mxu1 %vm637_vm1, %v585_v31  ;;  %v600_v27 = vld [vmem:[%s6898_s5 + $0xe28] sm:$0xff]  ;;  %v361_v30 = vld [vmem:[%s6898_s5 + $0x6b0] sm:$0xff] }
 0x1ab   : > { %v2648_v36 = vpop.f32.mrf.mxu0  ;;  %v3848_v37 = vpop.f32.mrf.mxu1  ;;  %v601_v31 = vld [vmem:[%s6898_s5 + $0xe30] sm:$0xff] }
 0x1ac   : > { %4648 = vst.msk [vmem:[%s7298_s11 + $0x320] sm:$0xff] %vm4547_vm2, %v2648_v36  ;;  %4888 = vst.msk [vmem:[%s7298_s11 + $0xaa0] sm:$0xff] %vm4547_vm2, %v3848_v37 }
 0x1ad   : > { %v6239_v40 = vpop.f32.mrf.mxu0  ;;  %6382 = vmatmul.mubr.msk.f32.gmra.mxu0 %vm637_vm1, %v346_v34  ;;  %v6599_v41 = vpop.f32.mrf.mxu1  ;;  %6742 = vmatmul.mubr.msk.f32.gmra.mxu1 %vm637_vm1, %v586_v35  ;;  %v362_v34 = vld [vmem:[%s6898_s5 + $0x6b8] sm:$0xff] }
 0x1ae   : > { %4651 = vst.msk [vmem:[%s7298_s11 + $0x338] sm:$0xff] %vm4547_vm2, %v6239_v40  ;;  %4891 = vst.msk [vmem:[%s7298_s11 + $0xab8] sm:$0xff] %vm4547_vm2, %v6599_v41  ;;  %6384 = vmatprep.mubr.msk.f32.mxu0 %vm637_vm1, %v347_v38  ;;  %6744 = vmatprep.mubr.msk.f32.mxu1 %vm637_vm1, %v587_v39  ;;  %v602_v35 = vld [vmem:[%s6898_s5 + $0xe38] sm:$0xff]  ;;  %v363_v38 = vld [vmem:[%s6898_s5 + $0x6c0] sm:$0xff] }
 0x1af   : > { %v2658_v44 = vpop.f32.mrf.mxu0  ;;  %v3858_v45 = vpop.f32.mrf.mxu1  ;;  %v603_v39 = vld [vmem:[%s6898_s5 + $0xe40] sm:$0xff] }
 0x1b0   : > { %4650 = vst.msk [vmem:[%s7298_s11 + $0x330] sm:$0xff] %vm4547_vm2, %v2658_v44  ;;  %4890 = vst.msk [vmem:[%s7298_s11 + $0xab0] sm:$0xff] %vm4547_vm2, %v3858_v45 }
 0x1b1   : > { %v6242_v48 = vpop.f32.mrf.mxu0  ;;  %6385 = vmatmul.mubr.msk.f32.gmra.mxu0 %vm637_vm1, %v348_v42  ;;  %v6602_v49 = vpop.f32.mrf.mxu1  ;;  %6745 = vmatmul.mubr.msk.f32.gmra.mxu1 %vm637_vm1, %v588_v43  ;;  %v364_v42 = vld [vmem:[%s6898_s5 + $0x6c8] sm:$0xff] }
 0x1b2   : > { %4653 = vst.msk [vmem:[%s7298_s11 + $0x348] sm:$0xff] %vm4547_vm2, %v6242_v48  ;;  %4893 = vst.msk [vmem:[%s7298_s11 + $0xac8] sm:$0xff] %vm4547_vm2, %v6602_v49  ;;  %6387 = vmatprep.mubr.msk.f32.mxu0 %vm637_vm1, %v349_v46  ;;  %6747 = vmatprep.mubr.msk.f32.mxu1 %vm637_vm1, %v589_v47  ;;  %v604_v43 = vld [vmem:[%s6898_s5 + $0xe48] sm:$0xff]  ;;  %v365_v46 = vld [vmem:[%s6898_s5 + $0x6d0] sm:$0xff] }
 0x1b3   : > { %v2668_v52 = vpop.f32.mrf.mxu0  ;;  %v3868_v53 = vpop.f32.mrf.mxu1  ;;  %v605_v47 = vld [vmem:[%s6898_s5 + $0xe50] sm:$0xff] }
 0x1b4   : > { %4652 = vst.msk [vmem:[%s7298_s11 + $0x340] sm:$0xff] %vm4547_vm2, %v2668_v52  ;;  %4892 = vst.msk [vmem:[%s7298_s11 + $0xac0] sm:$0xff] %vm4547_vm2, %v3868_v53 }
 0x1b5   : > { %v6245_v56 = vpop.f32.mrf.mxu0  ;;  %6388 = vmatmul.mubr.msk.f32.gmra.mxu0 %vm637_vm1, %v350_v50  ;;  %v6605_v57 = vpop.f32.mrf.mxu1  ;;  %6748 = vmatmul.mubr.msk.f32.gmra.mxu1 %vm637_vm1, %v590_v51  ;;  %v366_v50 = vld [vmem:[%s6898_s5 + $0x6d8] sm:$0xff] }
 0x1b6   : > { %4655 = vst.msk [vmem:[%s7298_s11 + $0x358] sm:$0xff] %vm4547_vm2, %v6245_v56  ;;  %4895 = vst.msk [vmem:[%s7298_s11 + $0xad8] sm:$0xff] %vm4547_vm2, %v6605_v57  ;;  %6390 = vmatprep.mubr.msk.f32.mxu0 %vm637_vm1, %v351_v54  ;;  %6750 = vmatprep.mubr.msk.f32.mxu1 %vm637_vm1, %v591_v55  ;;  %v606_v51 = vld [vmem:[%s6898_s5 + $0xe58] sm:$0xff]  ;;  %v367_v54 = vld [vmem:[%s6898_s5 + $0x6e0] sm:$0xff] }
 0x1b7   : > { %v2678_v60 = vpop.f32.mrf.mxu0  ;;  %v3878_v61 = vpop.f32.mrf.mxu1  ;;  %v607_v55 = vld [vmem:[%s6898_s5 + $0xe60] sm:$0xff] }
 0x1b8   : > { %4654 = vst.msk [vmem:[%s7298_s11 + $0x350] sm:$0xff] %vm4547_vm2, %v2678_v60  ;;  %4894 = vst.msk [vmem:[%s7298_s11 + $0xad0] sm:$0xff] %vm4547_vm2, %v3878_v61 }
 0x1b9   : > { %v6248_v0 = vpop.f32.mrf.mxu0  ;;  %6391 = vmatmul.mubr.msk.f32.gmra.mxu0 %vm637_vm1, %v352_v58  ;;  %v6608_v1 = vpop.f32.mrf.mxu1  ;;  %6751 = vmatmul.mubr.msk.f32.gmra.mxu1 %vm637_vm1, %v592_v59  ;;  %v368_v58 = vld [vmem:[%s6898_s5 + $0x6e8] sm:$0xff] }
 0x1ba   : > { %4657 = vst.msk [vmem:[%s7298_s11 + $0x368] sm:$0xff] %vm4547_vm2, %v6248_v0  ;;  %4897 = vst.msk [vmem:[%s7298_s11 + $0xae8] sm:$0xff] %vm4547_vm2, %v6608_v1  ;;  %6393 = vmatprep.mubr.msk.f32.mxu0 %vm637_vm1, %v353_v62  ;;  %6753 = vmatprep.mubr.msk.f32.mxu1 %vm637_vm1, %v593_v63  ;;  %v608_v59 = vld [vmem:[%s6898_s5 + $0xe68] sm:$0xff]  ;;  %v369_v62 = vld [vmem:[%s6898_s5 + $0x6f0] sm:$0xff] }
 0x1bb   : > { %v2688_v4 = vpop.f32.mrf.mxu0  ;;  %v3888_v5 = vpop.f32.mrf.mxu1  ;;  %v609_v63 = vld [vmem:[%s6898_s5 + $0xe70] sm:$0xff] }
 0x1bc   : > { %4656 = vst.msk [vmem:[%s7298_s11 + $0x360] sm:$0xff] %vm4547_vm2, %v2688_v4  ;;  %4896 = vst.msk [vmem:[%s7298_s11 + $0xae0] sm:$0xff] %vm4547_vm2, %v3888_v5 }
 0x1bd   : > { %v6251_v8 = vpop.f32.mrf.mxu0  ;;  %6394 = vmatmul.mubr.msk.f32.gmra.mxu0 %vm637_vm1, %v354_v2  ;;  %v6611_v9 = vpop.f32.mrf.mxu1  ;;  %6754 = vmatmul.mubr.msk.f32.gmra.mxu1 %vm637_vm1, %v594_v3  ;;  %v370_v2 = vld [vmem:[%s6898_s5 + $0x6f8] sm:$0xff] }
 0x1be   : > { %4659 = vst.msk [vmem:[%s7298_s11 + $0x378] sm:$0xff] %vm4547_vm2, %v6251_v8  ;;  %4899 = vst.msk [vmem:[%s7298_s11 + $0xaf8] sm:$0xff] %vm4547_vm2, %v6611_v9  ;;  %6396 = vmatprep.mubr.msk.f32.mxu0 %vm637_vm1, %v355_v6  ;;  %6756 = vmatprep.mubr.msk.f32.mxu1 %vm637_vm1, %v595_v7  ;;  %v610_v3 = vld [vmem:[%s6898_s5 + $0xe78] sm:$0xff]  ;;  %v371_v6 = vld [vmem:[%s6898_s5 + $0x700] sm:$0xff] }
 0x1bf   : > { %v2698_v12 = vpop.f32.mrf.mxu0  ;;  %v3898_v13 = vpop.f32.mrf.mxu1  ;;  %v611_v7 = vld [vmem:[%s6898_s5 + $0xe80] sm:$0xff] }
 0x1c0   : > { %4658 = vst.msk [vmem:[%s7298_s11 + $0x370] sm:$0xff] %vm4547_vm2, %v2698_v12  ;;  %4898 = vst.msk [vmem:[%s7298_s11 + $0xaf0] sm:$0xff] %vm4547_vm2, %v3898_v13 }
 0x1c1   : > { %v6254_v16 = vpop.f32.mrf.mxu0  ;;  %6397 = vmatmul.mubr.msk.f32.gmra.mxu0 %vm637_vm1, %v356_v10  ;;  %v6614_v17 = vpop.f32.mrf.mxu1  ;;  %6757 = vmatmul.mubr.msk.f32.gmra.mxu1 %vm637_vm1, %v596_v11  ;;  %v372_v10 = vld [vmem:[%s6898_s5 + $0x708] sm:$0xff] }
 0x1c2   : > { %4661 = vst.msk [vmem:[%s7298_s11 + $0x388] sm:$0xff] %vm4547_vm2, %v6254_v16  ;;  %4901 = vst.msk [vmem:[%s7298_s11 + $0xb08] sm:$0xff] %vm4547_vm2, %v6614_v17  ;;  %6399 = vmatprep.mubr.msk.f32.mxu0 %vm637_vm1, %v357_v14  ;;  %6759 = vmatprep.mubr.msk.f32.mxu1 %vm637_vm1, %v597_v15  ;;  %v612_v11 = vld [vmem:[%s6898_s5 + $0xe88] sm:$0xff]  ;;  %v373_v14 = vld [vmem:[%s6898_s5 + $0x710] sm:$0xff] }
 0x1c3   : > { %v2708_v20 = vpop.f32.mrf.mxu0  ;;  %v3908_v21 = vpop.f32.mrf.mxu1  ;;  %v613_v15 = vld [vmem:[%s6898_s5 + $0xe90] sm:$0xff] }
 0x1c4   : > { %4660 = vst.msk [vmem:[%s7298_s11 + $0x380] sm:$0xff] %vm4547_vm2, %v2708_v20  ;;  %4900 = vst.msk [vmem:[%s7298_s11 + $0xb00] sm:$0xff] %vm4547_vm2, %v3908_v21 }
 0x1c5   : > { %v6257_v24 = vpop.f32.mrf.mxu0  ;;  %6400 = vmatmul.mubr.msk.f32.gmra.mxu0 %vm637_vm1, %v358_v18  ;;  %v6617_v25 = vpop.f32.mrf.mxu1  ;;  %6760 = vmatmul.mubr.msk.f32.gmra.mxu1 %vm637_vm1, %v598_v19  ;;  %v374_v18 = vld [vmem:[%s6898_s5 + $0x718] sm:$0xff] }
 0x1c6   : > { %4663 = vst.msk [vmem:[%s7298_s11 + $0x398] sm:$0xff] %vm4547_vm2, %v6257_v24  ;;  %4903 = vst.msk [vmem:[%s7298_s11 + $0xb18] sm:$0xff] %vm4547_vm2, %v6617_v25  ;;  %6402 = vmatprep.mubr.msk.f32.mxu0 %vm637_vm1, %v359_v22  ;;  %6762 = vmatprep.mubr.msk.f32.mxu1 %vm637_vm1, %v599_v23  ;;  %v614_v19 = vld [vmem:[%s6898_s5 + $0xe98] sm:$0xff]  ;;  %v375_v22 = vld [vmem:[%s6898_s5 + $0x720] sm:$0xff] }
 0x1c7   : > { %v2718_v28 = vpop.f32.mrf.mxu0  ;;  %v3918_v29 = vpop.f32.mrf.mxu1  ;;  %v615_v23 = vld [vmem:[%s6898_s5 + $0xea0] sm:$0xff] }
 0x1c8   : > { %4662 = vst.msk [vmem:[%s7298_s11 + $0x390] sm:$0xff] %vm4547_vm2, %v2718_v28  ;;  %4902 = vst.msk [vmem:[%s7298_s11 + $0xb10] sm:$0xff] %vm4547_vm2, %v3918_v29 }
 0x1c9   : > { %v6260_v32 = vpop.f32.mrf.mxu0  ;;  %6403 = vmatmul.mubr.msk.f32.gmra.mxu0 %vm637_vm1, %v360_v26  ;;  %v6620_v33 = vpop.f32.mrf.mxu1  ;;  %6763 = vmatmul.mubr.msk.f32.gmra.mxu1 %vm637_vm1, %v600_v27  ;;  %v376_v26 = vld [vmem:[%s6898_s5 + $0x728] sm:$0xff] }
 0x1ca   : > { %4665 = vst.msk [vmem:[%s7298_s11 + $0x3a8] sm:$0xff] %vm4547_vm2, %v6260_v32  ;;  %4905 = vst.msk [vmem:[%s7298_s11 + $0xb28] sm:$0xff] %vm4547_vm2, %v6620_v33  ;;  %6405 = vmatprep.mubr.msk.f32.mxu0 %vm637_vm1, %v361_v30  ;;  %6765 = vmatprep.mubr.msk.f32.mxu1 %vm637_vm1, %v601_v31  ;;  %v616_v27 = vld [vmem:[%s6898_s5 + $0xea8] sm:$0xff]  ;;  %v377_v30 = vld [vmem:[%s6898_s5 + $0x730] sm:$0xff] }
 0x1cb   : > { %v2728_v36 = vpop.f32.mrf.mxu0  ;;  %v3928_v37 = vpop.f32.mrf.mxu1  ;;  %v617_v31 = vld [vmem:[%s6898_s5 + $0xeb0] sm:$0xff] }
 0x1cc   : > { %4664 = vst.msk [vmem:[%s7298_s11 + $0x3a0] sm:$0xff] %vm4547_vm2, %v2728_v36  ;;  %4904 = vst.msk [vmem:[%s7298_s11 + $0xb20] sm:$0xff] %vm4547_vm2, %v3928_v37 }
 0x1cd   : > { %v6263_v40 = vpop.f32.mrf.mxu0  ;;  %6406 = vmatmul.mubr.msk.f32.gmra.mxu0 %vm637_vm1, %v362_v34  ;;  %v6623_v41 = vpop.f32.mrf.mxu1  ;;  %6766 = vmatmul.mubr.msk.f32.gmra.mxu1 %vm637_vm1, %v602_v35  ;;  %v378_v34 = vld [vmem:[%s6898_s5 + $0x738] sm:$0xff] }
 0x1ce   : > { %4667 = vst.msk [vmem:[%s7298_s11 + $0x3b8] sm:$0xff] %vm4547_vm2, %v6263_v40  ;;  %4907 = vst.msk [vmem:[%s7298_s11 + $0xb38] sm:$0xff] %vm4547_vm2, %v6623_v41  ;;  %6408 = vmatprep.mubr.msk.f32.mxu0 %vm637_vm1, %v363_v38  ;;  %6768 = vmatprep.mubr.msk.f32.mxu1 %vm637_vm1, %v603_v39  ;;  %v618_v35 = vld [vmem:[%s6898_s5 + $0xeb8] sm:$0xff]  ;;  %v379_v38 = vld [vmem:[%s6898_s5 + $0x740] sm:$0xff] }
 0x1cf   : > { %v2738_v44 = vpop.f32.mrf.mxu0  ;;  %v3938_v45 = vpop.f32.mrf.mxu1  ;;  %v619_v39 = vld [vmem:[%s6898_s5 + $0xec0] sm:$0xff] }
 0x1d0   : > { %4666 = vst.msk [vmem:[%s7298_s11 + $0x3b0] sm:$0xff] %vm4547_vm2, %v2738_v44  ;;  %4906 = vst.msk [vmem:[%s7298_s11 + $0xb30] sm:$0xff] %vm4547_vm2, %v3938_v45 }
 0x1d1   : > { %v6266_v48 = vpop.f32.mrf.mxu0  ;;  %6409 = vmatmul.mubr.msk.f32.gmra.mxu0 %vm637_vm1, %v364_v42  ;;  %v6626_v49 = vpop.f32.mrf.mxu1  ;;  %6769 = vmatmul.mubr.msk.f32.gmra.mxu1 %vm637_vm1, %v604_v43  ;;  %v380_v42 = vld [vmem:[%s6898_s5 + $0x748] sm:$0xff] }
 0x1d2   : > { %4669 = vst.msk [vmem:[%s7298_s11 + $0x3c8] sm:$0xff] %vm4547_vm2, %v6266_v48  ;;  %4909 = vst.msk [vmem:[%s7298_s11 + $0xb48] sm:$0xff] %vm4547_vm2, %v6626_v49  ;;  %6411 = vmatprep.mubr.msk.f32.mxu0 %vm637_vm1, %v365_v46  ;;  %6771 = vmatprep.mubr.msk.f32.mxu1 %vm637_vm1, %v605_v47  ;;  %v620_v43 = vld [vmem:[%s6898_s5 + $0xec8] sm:$0xff]  ;;  %v381_v46 = vld [vmem:[%s6898_s5 + $0x750] sm:$0xff] }
 0x1d3   : > { %v2748_v52 = vpop.f32.mrf.mxu0  ;;  %v3948_v53 = vpop.f32.mrf.mxu1  ;;  %v621_v47 = vld [vmem:[%s6898_s5 + $0xed0] sm:$0xff] }
 0x1d4   : > { %4668 = vst.msk [vmem:[%s7298_s11 + $0x3c0] sm:$0xff] %vm4547_vm2, %v2748_v52  ;;  %4908 = vst.msk [vmem:[%s7298_s11 + $0xb40] sm:$0xff] %vm4547_vm2, %v3948_v53 }
 0x1d5   : > { %v6269_v56 = vpop.f32.mrf.mxu0  ;;  %6412 = vmatmul.mubr.msk.f32.gmra.mxu0 %vm637_vm1, %v366_v50  ;;  %v6629_v57 = vpop.f32.mrf.mxu1  ;;  %6772 = vmatmul.mubr.msk.f32.gmra.mxu1 %vm637_vm1, %v606_v51  ;;  %v382_v50 = vld [vmem:[%s6898_s5 + $0x758] sm:$0xff] }
 0x1d6   : > { %4671 = vst.msk [vmem:[%s7298_s11 + $0x3d8] sm:$0xff] %vm4547_vm2, %v6269_v56  ;;  %4911 = vst.msk [vmem:[%s7298_s11 + $0xb58] sm:$0xff] %vm4547_vm2, %v6629_v57  ;;  %6414 = vmatprep.mubr.msk.f32.mxu0 %vm637_vm1, %v367_v54  ;;  %6774 = vmatprep.mubr.msk.f32.mxu1 %vm637_vm1, %v607_v55  ;;  %v622_v51 = vld [vmem:[%s6898_s5 + $0xed8] sm:$0xff]  ;;  %v383_v54 = vld [vmem:[%s6898_s5 + $0x760] sm:$0xff] }
 0x1d7   : > { %v2758_v60 = vpop.f32.mrf.mxu0  ;;  %v3958_v61 = vpop.f32.mrf.mxu1  ;;  %v623_v55 = vld [vmem:[%s6898_s5 + $0xee0] sm:$0xff] }
 0x1d8   : > { %4670 = vst.msk [vmem:[%s7298_s11 + $0x3d0] sm:$0xff] %vm4547_vm2, %v2758_v60  ;;  %4910 = vst.msk [vmem:[%s7298_s11 + $0xb50] sm:$0xff] %vm4547_vm2, %v3958_v61 }
 0x1d9   : > { %v6272_v0 = vpop.f32.mrf.mxu0  ;;  %6415 = vmatmul.mubr.msk.f32.gmra.mxu0 %vm637_vm1, %v368_v58  ;;  %v6632_v1 = vpop.f32.mrf.mxu1  ;;  %6775 = vmatmul.mubr.msk.f32.gmra.mxu1 %vm637_vm1, %v608_v59  ;;  %v384_v58 = vld [vmem:[%s6898_s5 + $0x768] sm:$0xff] }
 0x1da   : > { %4673 = vst.msk [vmem:[%s7298_s11 + $0x3e8] sm:$0xff] %vm4547_vm2, %v6272_v0  ;;  %4913 = vst.msk [vmem:[%s7298_s11 + $0xb68] sm:$0xff] %vm4547_vm2, %v6632_v1  ;;  %6417 = vmatprep.mubr.msk.f32.mxu0 %vm637_vm1, %v369_v62  ;;  %6777 = vmatprep.mubr.msk.f32.mxu1 %vm637_vm1, %v609_v63  ;;  %v624_v59 = vld [vmem:[%s6898_s5 + $0xee8] sm:$0xff]  ;;  %v385_v62 = vld [vmem:[%s6898_s5 + $0x770] sm:$0xff] }
 0x1db   : > { %v2768_v4 = vpop.f32.mrf.mxu0  ;;  %v3968_v5 = vpop.f32.mrf.mxu1  ;;  %v625_v63 = vld [vmem:[%s6898_s5 + $0xef0] sm:$0xff] }
 0x1dc   : > { %4672 = vst.msk [vmem:[%s7298_s11 + $0x3e0] sm:$0xff] %vm4547_vm2, %v2768_v4  ;;  %4912 = vst.msk [vmem:[%s7298_s11 + $0xb60] sm:$0xff] %vm4547_vm2, %v3968_v5 }
 0x1dd   : > { %v6275_v8 = vpop.f32.mrf.mxu0  ;;  %6418 = vmatmul.mubr.msk.f32.gmra.mxu0 %vm637_vm1, %v370_v2  ;;  %v6635_v9 = vpop.f32.mrf.mxu1  ;;  %6778 = vmatmul.mubr.msk.f32.gmra.mxu1 %vm637_vm1, %v610_v3  ;;  %v386_v2 = vld [vmem:[%s6898_s5 + $0x778] sm:$0xff] }
 0x1de   : > { %4675 = vst.msk [vmem:[%s7298_s11 + $0x3f8] sm:$0xff] %vm4547_vm2, %v6275_v8  ;;  %4915 = vst.msk [vmem:[%s7298_s11 + $0xb78] sm:$0xff] %vm4547_vm2, %v6635_v9  ;;  %6420 = vmatprep.mubr.msk.f32.mxu0 %vm637_vm1, %v371_v6  ;;  %6780 = vmatprep.mubr.msk.f32.mxu1 %vm637_vm1, %v611_v7  ;;  %v626_v3 = vld [vmem:[%s6898_s5 + $0xef8] sm:$0xff] }
 0x1df   : > { %v2778_v12 = vpop.f32.mrf.mxu0  ;;  %v3978_v13 = vpop.f32.mrf.mxu1 }
 0x1e0   : > { %4674 = vst.msk [vmem:[%s7298_s11 + $0x3f0] sm:$0xff] %vm4547_vm2, %v2778_v12  ;;  %4914 = vst.msk [vmem:[%s7298_s11 + $0xb70] sm:$0xff] %vm4547_vm2, %v3978_v13 }
 0x1e1   : > { %v6278_v16 = vpop.f32.mrf.mxu0  ;;  %6421 = vmatmul.mubr.msk.f32.gmra.mxu0 %vm637_vm1, %v372_v10  ;;  %v6638_v17 = vpop.f32.mrf.mxu1  ;;  %6781 = vmatmul.mubr.msk.f32.gmra.mxu1 %vm637_vm1, %v612_v11 }
 0x1e2   : > { %4677 = vst.msk [vmem:[%s7298_s11 + $0x408] sm:$0xff] %vm4547_vm2, %v6278_v16  ;;  %4917 = vst.msk [vmem:[%s7298_s11 + $0xb88] sm:$0xff] %vm4547_vm2, %v6638_v17  ;;  %6423 = vmatprep.mubr.msk.f32.mxu0 %vm637_vm1, %v373_v14  ;;  %6783 = vmatprep.mubr.msk.f32.mxu1 %vm637_vm1, %v613_v15 }
 0x1e3   : > { %v2788_v20 = vpop.f32.mrf.mxu0  ;;  %v3988_v21 = vpop.f32.mrf.mxu1 }
 0x1e4   : > { %4676 = vst.msk [vmem:[%s7298_s11 + $0x400] sm:$0xff] %vm4547_vm2, %v2788_v20  ;;  %4916 = vst.msk [vmem:[%s7298_s11 + $0xb80] sm:$0xff] %vm4547_vm2, %v3988_v21 }
 0x1e5   : > { %v6281_v24 = vpop.f32.mrf.mxu0  ;;  %6424 = vmatmul.mubr.msk.f32.gmra.mxu0 %vm637_vm1, %v374_v18  ;;  %v6641_v25 = vpop.f32.mrf.mxu1  ;;  %6784 = vmatmul.mubr.msk.f32.gmra.mxu1 %vm637_vm1, %v614_v19 }
 0x1e6   : > { %4679 = vst.msk [vmem:[%s7298_s11 + $0x418] sm:$0xff] %vm4547_vm2, %v6281_v24  ;;  %4919 = vst.msk [vmem:[%s7298_s11 + $0xb98] sm:$0xff] %vm4547_vm2, %v6641_v25  ;;  %6426 = vmatprep.mubr.msk.f32.mxu0 %vm637_vm1, %v375_v22  ;;  %6786 = vmatprep.mubr.msk.f32.mxu1 %vm637_vm1, %v615_v23 }
 0x1e7   : > { %v2798_v28 = vpop.f32.mrf.mxu0  ;;  %v3998_v29 = vpop.f32.mrf.mxu1 }
 0x1e8   : > { %4678 = vst.msk [vmem:[%s7298_s11 + $0x410] sm:$0xff] %vm4547_vm2, %v2798_v28  ;;  %4918 = vst.msk [vmem:[%s7298_s11 + $0xb90] sm:$0xff] %vm4547_vm2, %v3998_v29 }
 0x1e9   : > { %v6284_v32 = vpop.f32.mrf.mxu0  ;;  %6427 = vmatmul.mubr.msk.f32.gmra.mxu0 %vm637_vm1, %v376_v26  ;;  %v6644_v33 = vpop.f32.mrf.mxu1  ;;  %6787 = vmatmul.mubr.msk.f32.gmra.mxu1 %vm637_vm1, %v616_v27 }
 0x1ea   : > { %4681 = vst.msk [vmem:[%s7298_s11 + $0x428] sm:$0xff] %vm4547_vm2, %v6284_v32  ;;  %4921 = vst.msk [vmem:[%s7298_s11 + $0xba8] sm:$0xff] %vm4547_vm2, %v6644_v33  ;;  %6429 = vmatprep.mubr.msk.f32.mxu0 %vm637_vm1, %v377_v30  ;;  %6789 = vmatprep.mubr.msk.f32.mxu1 %vm637_vm1, %v617_v31 }
 0x1eb   : > { %v2808_v36 = vpop.f32.mrf.mxu0  ;;  %v4008_v37 = vpop.f32.mrf.mxu1 }
 0x1ec   : > { %4680 = vst.msk [vmem:[%s7298_s11 + $0x420] sm:$0xff] %vm4547_vm2, %v2808_v36  ;;  %4920 = vst.msk [vmem:[%s7298_s11 + $0xba0] sm:$0xff] %vm4547_vm2, %v4008_v37 }
 0x1ed   : > { %v6287_v40 = vpop.f32.mrf.mxu0  ;;  %6430 = vmatmul.mubr.msk.f32.gmra.mxu0 %vm637_vm1, %v378_v34  ;;  %v6647_v41 = vpop.f32.mrf.mxu1  ;;  %6790 = vmatmul.mubr.msk.f32.gmra.mxu1 %vm637_vm1, %v618_v35 }
 0x1ee   : > { %4683 = vst.msk [vmem:[%s7298_s11 + $0x438] sm:$0xff] %vm4547_vm2, %v6287_v40  ;;  %4923 = vst.msk [vmem:[%s7298_s11 + $0xbb8] sm:$0xff] %vm4547_vm2, %v6647_v41  ;;  %6432 = vmatprep.mubr.msk.f32.mxu0 %vm637_vm1, %v379_v38  ;;  %6792 = vmatprep.mubr.msk.f32.mxu1 %vm637_vm1, %v619_v39 }
 0x1ef   : > { %v2818_v44 = vpop.f32.mrf.mxu0  ;;  %v4018_v45 = vpop.f32.mrf.mxu1 }
 0x1f0   : > { %4682 = vst.msk [vmem:[%s7298_s11 + $0x430] sm:$0xff] %vm4547_vm2, %v2818_v44  ;;  %4922 = vst.msk [vmem:[%s7298_s11 + $0xbb0] sm:$0xff] %vm4547_vm2, %v4018_v45 }
 0x1f1   : > { %v6290_v48 = vpop.f32.mrf.mxu0  ;;  %6433 = vmatmul.mubr.msk.f32.gmra.mxu0 %vm637_vm1, %v380_v42  ;;  %v6650_v49 = vpop.f32.mrf.mxu1  ;;  %6793 = vmatmul.mubr.msk.f32.gmra.mxu1 %vm637_vm1, %v620_v43 }
 0x1f2   : > { %4685 = vst.msk [vmem:[%s7298_s11 + $0x448] sm:$0xff] %vm4547_vm2, %v6290_v48  ;;  %4925 = vst.msk [vmem:[%s7298_s11 + $0xbc8] sm:$0xff] %vm4547_vm2, %v6650_v49  ;;  %6435 = vmatprep.mubr.msk.f32.mxu0 %vm637_vm1, %v381_v46  ;;  %6795 = vmatprep.mubr.msk.f32.mxu1 %vm637_vm1, %v621_v47 }
 0x1f3   : > { %v2828_v52 = vpop.f32.mrf.mxu0  ;;  %v4028_v53 = vpop.f32.mrf.mxu1 }
 0x1f4   : > { %4684 = vst.msk [vmem:[%s7298_s11 + $0x440] sm:$0xff] %vm4547_vm2, %v2828_v52  ;;  %4924 = vst.msk [vmem:[%s7298_s11 + $0xbc0] sm:$0xff] %vm4547_vm2, %v4028_v53 }
 0x1f5   : > { %v6293_v56 = vpop.f32.mrf.mxu0  ;;  %6436 = vmatmul.mubr.msk.f32.gmra.mxu0 %vm637_vm1, %v382_v50  ;;  %v6653_v57 = vpop.f32.mrf.mxu1  ;;  %6796 = vmatmul.mubr.msk.f32.gmra.mxu1 %vm637_vm1, %v622_v51 }
 0x1f6   : > { %4687 = vst.msk [vmem:[%s7298_s11 + $0x458] sm:$0xff] %vm4547_vm2, %v6293_v56  ;;  %4927 = vst.msk [vmem:[%s7298_s11 + $0xbd8] sm:$0xff] %vm4547_vm2, %v6653_v57  ;;  %6438 = vmatprep.mubr.msk.f32.mxu0 %vm637_vm1, %v383_v54  ;;  %6798 = vmatprep.mubr.msk.f32.mxu1 %vm637_vm1, %v623_v55 }
 0x1f7   : > { %v2838_v60 = vpop.f32.mrf.mxu0  ;;  %v4038_v61 = vpop.f32.mrf.mxu1 }
 0x1f8   : > { %4686 = vst.msk [vmem:[%s7298_s11 + $0x450] sm:$0xff] %vm4547_vm2, %v2838_v60  ;;  %4926 = vst.msk [vmem:[%s7298_s11 + $0xbd0] sm:$0xff] %vm4547_vm2, %v4038_v61 }
 0x1f9   : > { %v6296_v0 = vpop.f32.mrf.mxu0  ;;  %6439 = vmatmul.mubr.msk.f32.gmra.mxu0 %vm637_vm1, %v384_v58  ;;  %v6656_v1 = vpop.f32.mrf.mxu1  ;;  %6799 = vmatmul.mubr.msk.f32.gmra.mxu1 %vm637_vm1, %v624_v59 }
 0x1fa   : > { %4689 = vst.msk [vmem:[%s7298_s11 + $0x468] sm:$0xff] %vm4547_vm2, %v6296_v0  ;;  %4929 = vst.msk [vmem:[%s7298_s11 + $0xbe8] sm:$0xff] %vm4547_vm2, %v6656_v1  ;;  %6441 = vmatprep.mubr.msk.f32.mxu0 %vm637_vm1, %v385_v62  ;;  %6801 = vmatprep.mubr.msk.f32.mxu1 %vm637_vm1, %v625_v63 }
 0x1fb   : > { %v2848_v4 = vpop.f32.mrf.mxu0  ;;  %v4048_v5 = vpop.f32.mrf.mxu1 }
 0x1fc   : > { %4688 = vst.msk [vmem:[%s7298_s11 + $0x460] sm:$0xff] %vm4547_vm2, %v2848_v4  ;;  %4928 = vst.msk [vmem:[%s7298_s11 + $0xbe0] sm:$0xff] %vm4547_vm2, %v4048_v5 }
 0x1fd   : > { %v6299_v6 = vpop.f32.mrf.mxu0  ;;  %6442 = vmatmul.mubr.msk.f32.gmra.mxu0 %vm637_vm1, %v386_v2  ;;  %v6659_v7 = vpop.f32.mrf.mxu1  ;;  %6802 = vmatmul.mubr.msk.f32.gmra.mxu1 %vm637_vm1, %v626_v3 }
 0x1fe   : > { %4691 = vst.msk [vmem:[%s7298_s11 + $0x478] sm:$0xff] %vm4547_vm2, %v6299_v6  ;;  %4931 = vst.msk [vmem:[%s7298_s11 + $0xbf8] sm:$0xff] %vm4547_vm2, %v6659_v7 }
 0x1ff   : > { %v2858_v8 = vpop.f32.mrf.mxu0  ;;  %v4058_v9 = vpop.f32.mrf.mxu1 }
 0x200   : > { %4690 = vst.msk [vmem:[%s7298_s11 + $0x470] sm:$0xff] %vm4547_vm2, %v2858_v8  ;;  %4930 = vst.msk [vmem:[%s7298_s11 + $0xbf0] sm:$0xff] %vm4547_vm2, %v4058_v9 }
 0x201   : > { %v6302_v10 = vpop.f32.mrf.mxu0  ;;  %v6662_v11 = vpop.f32.mrf.mxu1 }
 0x202   : > { %4693 = vst.msk [vmem:[%s7298_s11 + $0x488] sm:$0xff] %vm4547_vm2, %v6302_v10  ;;  %4933 = vst.msk [vmem:[%s7298_s11 + $0xc08] sm:$0xff] %vm4547_vm2, %v6662_v11 }
 0x203   : > { %v2868_v12 = vpop.f32.mrf.mxu0  ;;  %v4068_v13 = vpop.f32.mrf.mxu1 }
 0x204   : > { %4692 = vst.msk [vmem:[%s7298_s11 + $0x480] sm:$0xff] %vm4547_vm2, %v2868_v12  ;;  %4932 = vst.msk [vmem:[%s7298_s11 + $0xc00] sm:$0xff] %vm4547_vm2, %v4068_v13 }
 0x205   : > { %v6305_v14 = vpop.f32.mrf.mxu0  ;;  %v6665_v15 = vpop.f32.mrf.mxu1 }
 0x206   : > { %4695 = vst.msk [vmem:[%s7298_s11 + $0x498] sm:$0xff] %vm4547_vm2, %v6305_v14  ;;  %4935 = vst.msk [vmem:[%s7298_s11 + $0xc18] sm:$0xff] %vm4547_vm2, %v6665_v15 }
 0x207   : > { %v2878_v16 = vpop.f32.mrf.mxu0  ;;  %v4078_v17 = vpop.f32.mrf.mxu1 }
 0x208   : > { %4694 = vst.msk [vmem:[%s7298_s11 + $0x490] sm:$0xff] %vm4547_vm2, %v2878_v16  ;;  %4934 = vst.msk [vmem:[%s7298_s11 + $0xc10] sm:$0xff] %vm4547_vm2, %v4078_v17 }
 0x209   : > { %v6308_v18 = vpop.f32.mrf.mxu0  ;;  %v6668_v19 = vpop.f32.mrf.mxu1 }
 0x20a   : > { %4697 = vst.msk [vmem:[%s7298_s11 + $0x4a8] sm:$0xff] %vm4547_vm2, %v6308_v18  ;;  %4937 = vst.msk [vmem:[%s7298_s11 + $0xc28] sm:$0xff] %vm4547_vm2, %v6668_v19 }
 0x20b   : > { %v2888_v20 = vpop.f32.mrf.mxu0  ;;  %v4088_v21 = vpop.f32.mrf.mxu1 }
 0x20c   : > { %4696 = vst.msk [vmem:[%s7298_s11 + $0x4a0] sm:$0xff] %vm4547_vm2, %v2888_v20  ;;  %4936 = vst.msk [vmem:[%s7298_s11 + $0xc20] sm:$0xff] %vm4547_vm2, %v4088_v21 }
 0x20d   : > { %v6311_v22 = vpop.f32.mrf.mxu0  ;;  %v6671_v23 = vpop.f32.mrf.mxu1 }
 0x20e   : > { %4699 = vst.msk [vmem:[%s7298_s11 + $0x4b8] sm:$0xff] %vm4547_vm2, %v6311_v22  ;;  %4939 = vst.msk [vmem:[%s7298_s11 + $0xc38] sm:$0xff] %vm4547_vm2, %v6671_v23 }
 0x20f   : > { %v2898_v24 = vpop.f32.mrf.mxu0  ;;  %v4098_v25 = vpop.f32.mrf.mxu1 }
 0x210   : > { %4698 = vst.msk [vmem:[%s7298_s11 + $0x4b0] sm:$0xff] %vm4547_vm2, %v2898_v24  ;;  %4938 = vst.msk [vmem:[%s7298_s11 + $0xc30] sm:$0xff] %vm4547_vm2, %v4098_v25 }
 0x211   : > { %v6314_v26 = vpop.f32.mrf.mxu0  ;;  %v6674_v27 = vpop.f32.mrf.mxu1 }
 0x212   : > { %4701 = vst.msk [vmem:[%s7298_s11 + $0x4c8] sm:$0xff] %vm4547_vm2, %v6314_v26  ;;  %4941 = vst.msk [vmem:[%s7298_s11 + $0xc48] sm:$0xff] %vm4547_vm2, %v6674_v27 }
 0x213   : > { %v2908_v28 = vpop.f32.mrf.mxu0  ;;  %v4108_v29 = vpop.f32.mrf.mxu1 }
 0x214   : > { %4700 = vst.msk [vmem:[%s7298_s11 + $0x4c0] sm:$0xff] %vm4547_vm2, %v2908_v28  ;;  %4940 = vst.msk [vmem:[%s7298_s11 + $0xc40] sm:$0xff] %vm4547_vm2, %v4108_v29 }
 0x215   : > { %v6317_v30 = vpop.f32.mrf.mxu0  ;;  %v6677_v31 = vpop.f32.mrf.mxu1 }
 0x216   : > { %4703 = vst.msk [vmem:[%s7298_s11 + $0x4d8] sm:$0xff] %vm4547_vm2, %v6317_v30  ;;  %4943 = vst.msk [vmem:[%s7298_s11 + $0xc58] sm:$0xff] %vm4547_vm2, %v6677_v31 }
 0x217   : > { %v2918_v32 = vpop.f32.mrf.mxu0  ;;  %v4118_v33 = vpop.f32.mrf.mxu1 }
 0x218   : > { %4702 = vst.msk [vmem:[%s7298_s11 + $0x4d0] sm:$0xff] %vm4547_vm2, %v2918_v32  ;;  %4942 = vst.msk [vmem:[%s7298_s11 + $0xc50] sm:$0xff] %vm4547_vm2, %v4118_v33 }
 0x219   : > { %v6320_v34 = vpop.f32.mrf.mxu0  ;;  %v6680_v35 = vpop.f32.mrf.mxu1 }
 0x21a   : > { %4705 = vst.msk [vmem:[%s7298_s11 + $0x4e8] sm:$0xff] %vm4547_vm2, %v6320_v34  ;;  %4945 = vst.msk [vmem:[%s7298_s11 + $0xc68] sm:$0xff] %vm4547_vm2, %v6680_v35 }
 0x21b   : > { %v2928_v36 = vpop.f32.mrf.mxu0  ;;  %v4128_v37 = vpop.f32.mrf.mxu1 }
 0x21c   : > { %4704 = vst.msk [vmem:[%s7298_s11 + $0x4e0] sm:$0xff] %vm4547_vm2, %v2928_v36  ;;  %4944 = vst.msk [vmem:[%s7298_s11 + $0xc60] sm:$0xff] %vm4547_vm2, %v4128_v37 }
 0x21d   : > { %v6323_v38 = vpop.f32.mrf.mxu0  ;;  %v6683_v39 = vpop.f32.mrf.mxu1 }
 0x21e   : > { %4707 = vst.msk [vmem:[%s7298_s11 + $0x4f8] sm:$0xff] %vm4547_vm2, %v6323_v38  ;;  %4947 = vst.msk [vmem:[%s7298_s11 + $0xc78] sm:$0xff] %vm4547_vm2, %v6683_v39 }
 0x21f   : > { %v2938_v40 = vpop.f32.mrf.mxu0  ;;  %v4138_v41 = vpop.f32.mrf.mxu1 }
 0x220   : > { %4706 = vst.msk [vmem:[%s7298_s11 + $0x4f0] sm:$0xff] %vm4547_vm2, %v2938_v40  ;;  %4946 = vst.msk [vmem:[%s7298_s11 + $0xc70] sm:$0xff] %vm4547_vm2, %v4138_v41 }
 0x221   : > { %v6326_v42 = vpop.f32.mrf.mxu0  ;;  %v6686_v43 = vpop.f32.mrf.mxu1 }
 0x222   : > { %4709 = vst.msk [vmem:[%s7298_s11 + $0x508] sm:$0xff] %vm4547_vm2, %v6326_v42  ;;  %4949 = vst.msk [vmem:[%s7298_s11 + $0xc88] sm:$0xff] %vm4547_vm2, %v6686_v43 }
 0x223   : > { %v2948_v44 = vpop.f32.mrf.mxu0  ;;  %v4148_v45 = vpop.f32.mrf.mxu1 }
 0x224   : > { %4708 = vst.msk [vmem:[%s7298_s11 + $0x500] sm:$0xff] %vm4547_vm2, %v2948_v44  ;;  %4948 = vst.msk [vmem:[%s7298_s11 + $0xc80] sm:$0xff] %vm4547_vm2, %v4148_v45 }
 0x225   : > { %v6329_v46 = vpop.f32.mrf.mxu0  ;;  %v6689_v47 = vpop.f32.mrf.mxu1 }
 0x226   : > { %4711 = vst.msk [vmem:[%s7298_s11 + $0x518] sm:$0xff] %vm4547_vm2, %v6329_v46  ;;  %4951 = vst.msk [vmem:[%s7298_s11 + $0xc98] sm:$0xff] %vm4547_vm2, %v6689_v47 }
 0x227   : > { %v2958_v48 = vpop.f32.mrf.mxu0  ;;  %v4158_v49 = vpop.f32.mrf.mxu1 }
 0x228   : > { %4710 = vst.msk [vmem:[%s7298_s11 + $0x510] sm:$0xff] %vm4547_vm2, %v2958_v48  ;;  %4950 = vst.msk [vmem:[%s7298_s11 + $0xc90] sm:$0xff] %vm4547_vm2, %v4158_v49 }
 0x229   : > { %v6332_v50 = vpop.f32.mrf.mxu0  ;;  %v6692_v51 = vpop.f32.mrf.mxu1 }
 0x22a   : > { %4713 = vst.msk [vmem:[%s7298_s11 + $0x528] sm:$0xff] %vm4547_vm2, %v6332_v50  ;;  %4953 = vst.msk [vmem:[%s7298_s11 + $0xca8] sm:$0xff] %vm4547_vm2, %v6692_v51 }
 0x22b   : > { %v2968_v52 = vpop.f32.mrf.mxu0  ;;  %v4168_v53 = vpop.f32.mrf.mxu1 }
 0x22c   : > { %4712 = vst.msk [vmem:[%s7298_s11 + $0x520] sm:$0xff] %vm4547_vm2, %v2968_v52  ;;  %4952 = vst.msk [vmem:[%s7298_s11 + $0xca0] sm:$0xff] %vm4547_vm2, %v4168_v53 }
 0x22d   : > { %v6335_v54 = vpop.f32.mrf.mxu0  ;;  %v6695_v55 = vpop.f32.mrf.mxu1 }
 0x22e   : > { %4715 = vst.msk [vmem:[%s7298_s11 + $0x538] sm:$0xff] %vm4547_vm2, %v6335_v54  ;;  %4955 = vst.msk [vmem:[%s7298_s11 + $0xcb8] sm:$0xff] %vm4547_vm2, %v6695_v55 }
 0x22f   : > { %v2978_v56 = vpop.f32.mrf.mxu0  ;;  %v4178_v57 = vpop.f32.mrf.mxu1 }
 0x230   : > { %4714 = vst.msk [vmem:[%s7298_s11 + $0x530] sm:$0xff] %vm4547_vm2, %v2978_v56  ;;  %4954 = vst.msk [vmem:[%s7298_s11 + $0xcb0] sm:$0xff] %vm4547_vm2, %v4178_v57 }
 0x231   : > { %v6338_v58 = vpop.f32.mrf.mxu0  ;;  %v6698_v59 = vpop.f32.mrf.mxu1 }
 0x232   : > { %4717 = vst.msk [vmem:[%s7298_s11 + $0x548] sm:$0xff] %vm4547_vm2, %v6338_v58  ;;  %4957 = vst.msk [vmem:[%s7298_s11 + $0xcc8] sm:$0xff] %vm4547_vm2, %v6698_v59 }
 0x233   : > { %v2988_v60 = vpop.f32.mrf.mxu0  ;;  %v4188_v61 = vpop.f32.mrf.mxu1 }
 0x234   : > { %4716 = vst.msk [vmem:[%s7298_s11 + $0x540] sm:$0xff] %vm4547_vm2, %v2988_v60  ;;  %4956 = vst.msk [vmem:[%s7298_s11 + $0xcc0] sm:$0xff] %vm4547_vm2, %v4188_v61 }
 0x235   : > { %v6341_v62 = vpop.f32.mrf.mxu0  ;;  %v6701_v63 = vpop.f32.mrf.mxu1 }
 0x236   : > { %4719 = vst.msk [vmem:[%s7298_s11 + $0x558] sm:$0xff] %vm4547_vm2, %v6341_v62  ;;  %4959 = vst.msk [vmem:[%s7298_s11 + $0xcd8] sm:$0xff] %vm4547_vm2, %v6701_v63 }
 0x237   : > { %v2998_v0 = vpop.f32.mrf.mxu0  ;;  %v4198_v1 = vpop.f32.mrf.mxu1 }
 0x238   : > { %4718 = vst.msk [vmem:[%s7298_s11 + $0x550] sm:$0xff] %vm4547_vm2, %v2998_v0  ;;  %4958 = vst.msk [vmem:[%s7298_s11 + $0xcd0] sm:$0xff] %vm4547_vm2, %v4198_v1 }
 0x239   : > { %v6344_v2 = vpop.f32.mrf.mxu0  ;;  %v6704_v3 = vpop.f32.mrf.mxu1 }
 0x23a   : > { %4721 = vst.msk [vmem:[%s7298_s11 + $0x568] sm:$0xff] %vm4547_vm2, %v6344_v2  ;;  %4961 = vst.msk [vmem:[%s7298_s11 + $0xce8] sm:$0xff] %vm4547_vm2, %v6704_v3 }
 0x23b   : > { %v3008_v4 = vpop.f32.mrf.mxu0  ;;  %v4208_v5 = vpop.f32.mrf.mxu1 }
 0x23c   : > { %4720 = vst.msk [vmem:[%s7298_s11 + $0x560] sm:$0xff] %vm4547_vm2, %v3008_v4  ;;  %4960 = vst.msk [vmem:[%s7298_s11 + $0xce0] sm:$0xff] %vm4547_vm2, %v4208_v5 }
 0x23d   : > { %v6347_v6 = vpop.f32.mrf.mxu0  ;;  %v6707_v7 = vpop.f32.mrf.mxu1 }
 0x23e   : > { %4723 = vst.msk [vmem:[%s7298_s11 + $0x578] sm:$0xff] %vm4547_vm2, %v6347_v6  ;;  %4963 = vst.msk [vmem:[%s7298_s11 + $0xcf8] sm:$0xff] %vm4547_vm2, %v6707_v7 }
 0x23f   : > { %v3018_v8 = vpop.f32.mrf.mxu0  ;;  %v4218_v9 = vpop.f32.mrf.mxu1 }
 0x240   : > { %4722 = vst.msk [vmem:[%s7298_s11 + $0x570] sm:$0xff] %vm4547_vm2, %v3018_v8  ;;  %4962 = vst.msk [vmem:[%s7298_s11 + $0xcf0] sm:$0xff] %vm4547_vm2, %v4218_v9 }
 0x241   : > { %v6350_v10 = vpop.f32.mrf.mxu0  ;;  %v6710_v11 = vpop.f32.mrf.mxu1 }
 0x242   : > { %4725 = vst.msk [vmem:[%s7298_s11 + $0x588] sm:$0xff] %vm4547_vm2, %v6350_v10  ;;  %4965 = vst.msk [vmem:[%s7298_s11 + $0xd08] sm:$0xff] %vm4547_vm2, %v6710_v11 }
 0x243   : > { %v3028_v12 = vpop.f32.mrf.mxu0  ;;  %v4228_v13 = vpop.f32.mrf.mxu1 }
 0x244   : > { %4724 = vst.msk [vmem:[%s7298_s11 + $0x580] sm:$0xff] %vm4547_vm2, %v3028_v12  ;;  %4964 = vst.msk [vmem:[%s7298_s11 + $0xd00] sm:$0xff] %vm4547_vm2, %v4228_v13 }
 0x245   : > { %v6353_v14 = vpop.f32.mrf.mxu0  ;;  %v6713_v15 = vpop.f32.mrf.mxu1 }
 0x246   : > { %4727 = vst.msk [vmem:[%s7298_s11 + $0x598] sm:$0xff] %vm4547_vm2, %v6353_v14  ;;  %4967 = vst.msk [vmem:[%s7298_s11 + $0xd18] sm:$0xff] %vm4547_vm2, %v6713_v15 }
 0x247   : > { %v3038_v16 = vpop.f32.mrf.mxu0  ;;  %v4238_v17 = vpop.f32.mrf.mxu1 }
 0x248   : > { %4726 = vst.msk [vmem:[%s7298_s11 + $0x590] sm:$0xff] %vm4547_vm2, %v3038_v16  ;;  %4966 = vst.msk [vmem:[%s7298_s11 + $0xd10] sm:$0xff] %vm4547_vm2, %v4238_v17 }
 0x249   : > { %v6356_v18 = vpop.f32.mrf.mxu0  ;;  %v6716_v19 = vpop.f32.mrf.mxu1 }
 0x24a   : > { %4729 = vst.msk [vmem:[%s7298_s11 + $0x5a8] sm:$0xff] %vm4547_vm2, %v6356_v18  ;;  %4969 = vst.msk [vmem:[%s7298_s11 + $0xd28] sm:$0xff] %vm4547_vm2, %v6716_v19 }
 0x24b   : > { %v3048_v20 = vpop.f32.mrf.mxu0  ;;  %v4248_v21 = vpop.f32.mrf.mxu1 }
 0x24c   : > { %4728 = vst.msk [vmem:[%s7298_s11 + $0x5a0] sm:$0xff] %vm4547_vm2, %v3048_v20  ;;  %4968 = vst.msk [vmem:[%s7298_s11 + $0xd20] sm:$0xff] %vm4547_vm2, %v4248_v21 }
 0x24d   : > { %v6359_v22 = vpop.f32.mrf.mxu0  ;;  %v6719_v23 = vpop.f32.mrf.mxu1 }
 0x24e   : > { %4731 = vst.msk [vmem:[%s7298_s11 + $0x5b8] sm:$0xff] %vm4547_vm2, %v6359_v22  ;;  %4971 = vst.msk [vmem:[%s7298_s11 + $0xd38] sm:$0xff] %vm4547_vm2, %v6719_v23 }
 0x24f   : > { %v3058_v24 = vpop.f32.mrf.mxu0  ;;  %v4258_v25 = vpop.f32.mrf.mxu1 }
 0x250   : > { %4730 = vst.msk [vmem:[%s7298_s11 + $0x5b0] sm:$0xff] %vm4547_vm2, %v3058_v24  ;;  %4970 = vst.msk [vmem:[%s7298_s11 + $0xd30] sm:$0xff] %vm4547_vm2, %v4258_v25 }
 0x251   : > { %v6362_v26 = vpop.f32.mrf.mxu0  ;;  %v6722_v27 = vpop.f32.mrf.mxu1 }
 0x252   : > { %4733 = vst.msk [vmem:[%s7298_s11 + $0x5c8] sm:$0xff] %vm4547_vm2, %v6362_v26  ;;  %4973 = vst.msk [vmem:[%s7298_s11 + $0xd48] sm:$0xff] %vm4547_vm2, %v6722_v27 }
 0x253   : > { %v3068_v28 = vpop.f32.mrf.mxu0  ;;  %v4268_v29 = vpop.f32.mrf.mxu1 }
 0x254   : > { %4732 = vst.msk [vmem:[%s7298_s11 + $0x5c0] sm:$0xff] %vm4547_vm2, %v3068_v28  ;;  %4972 = vst.msk [vmem:[%s7298_s11 + $0xd40] sm:$0xff] %vm4547_vm2, %v4268_v29 }
 0x255   : > { %v6365_v30 = vpop.f32.mrf.mxu0  ;;  %v6725_v31 = vpop.f32.mrf.mxu1 }
 0x256   : > { %4735 = vst.msk [vmem:[%s7298_s11 + $0x5d8] sm:$0xff] %vm4547_vm2, %v6365_v30  ;;  %4975 = vst.msk [vmem:[%s7298_s11 + $0xd58] sm:$0xff] %vm4547_vm2, %v6725_v31 }
 0x257   : > { %v3078_v32 = vpop.f32.mrf.mxu0  ;;  %v4278_v33 = vpop.f32.mrf.mxu1 }
 0x258   : > { %4734 = vst.msk [vmem:[%s7298_s11 + $0x5d0] sm:$0xff] %vm4547_vm2, %v3078_v32  ;;  %4974 = vst.msk [vmem:[%s7298_s11 + $0xd50] sm:$0xff] %vm4547_vm2, %v4278_v33 }
 0x259   : > { %v6368_v34 = vpop.f32.mrf.mxu0  ;;  %v6728_v35 = vpop.f32.mrf.mxu1 }
 0x25a   : > { %4737 = vst.msk [vmem:[%s7298_s11 + $0x5e8] sm:$0xff] %vm4547_vm2, %v6368_v34  ;;  %4977 = vst.msk [vmem:[%s7298_s11 + $0xd68] sm:$0xff] %vm4547_vm2, %v6728_v35 }
 0x25b   : > { %v3088_v36 = vpop.f32.mrf.mxu0  ;;  %v4288_v37 = vpop.f32.mrf.mxu1 }
 0x25c   : > { %4736 = vst.msk [vmem:[%s7298_s11 + $0x5e0] sm:$0xff] %vm4547_vm2, %v3088_v36  ;;  %4976 = vst.msk [vmem:[%s7298_s11 + $0xd60] sm:$0xff] %vm4547_vm2, %v4288_v37 }
 0x25d   : > { %v6371_v38 = vpop.f32.mrf.mxu0  ;;  %v6731_v39 = vpop.f32.mrf.mxu1 }
 0x25e   : > { %4739 = vst.msk [vmem:[%s7298_s11 + $0x5f8] sm:$0xff] %vm4547_vm2, %v6371_v38  ;;  %4979 = vst.msk [vmem:[%s7298_s11 + $0xd78] sm:$0xff] %vm4547_vm2, %v6731_v39 }
 0x25f   : > { %v3098_v40 = vpop.f32.mrf.mxu0  ;;  %v4298_v41 = vpop.f32.mrf.mxu1 }
 0x260   : > { %4738 = vst.msk [vmem:[%s7298_s11 + $0x5f0] sm:$0xff] %vm4547_vm2, %v3098_v40  ;;  %4978 = vst.msk [vmem:[%s7298_s11 + $0xd70] sm:$0xff] %vm4547_vm2, %v4298_v41 }
 0x261   : > { %v6374_v42 = vpop.f32.mrf.mxu0  ;;  %v6734_v43 = vpop.f32.mrf.mxu1 }
 0x262   : > { %4741 = vst.msk [vmem:[%s7298_s11 + $0x608] sm:$0xff] %vm4547_vm2, %v6374_v42  ;;  %4981 = vst.msk [vmem:[%s7298_s11 + $0xd88] sm:$0xff] %vm4547_vm2, %v6734_v43 }
 0x263   : > { %v3108_v44 = vpop.f32.mrf.mxu0  ;;  %v4308_v45 = vpop.f32.mrf.mxu1 }
 0x264   : > { %4740 = vst.msk [vmem:[%s7298_s11 + $0x600] sm:$0xff] %vm4547_vm2, %v3108_v44  ;;  %4980 = vst.msk [vmem:[%s7298_s11 + $0xd80] sm:$0xff] %vm4547_vm2, %v4308_v45 }
 0x265   : > { %v6377_v46 = vpop.f32.mrf.mxu0  ;;  %v6737_v47 = vpop.f32.mrf.mxu1 }
 0x266   : > { %4743 = vst.msk [vmem:[%s7298_s11 + $0x618] sm:$0xff] %vm4547_vm2, %v6377_v46  ;;  %4983 = vst.msk [vmem:[%s7298_s11 + $0xd98] sm:$0xff] %vm4547_vm2, %v6737_v47 }
 0x267   : > { %v3118_v48 = vpop.f32.mrf.mxu0  ;;  %v4318_v49 = vpop.f32.mrf.mxu1 }
 0x268   : > { %4742 = vst.msk [vmem:[%s7298_s11 + $0x610] sm:$0xff] %vm4547_vm2, %v3118_v48  ;;  %4982 = vst.msk [vmem:[%s7298_s11 + $0xd90] sm:$0xff] %vm4547_vm2, %v4318_v49 }
 0x269   : > { %v6380_v50 = vpop.f32.mrf.mxu0  ;;  %v6740_v51 = vpop.f32.mrf.mxu1 }
 0x26a   : > { %4745 = vst.msk [vmem:[%s7298_s11 + $0x628] sm:$0xff] %vm4547_vm2, %v6380_v50  ;;  %4985 = vst.msk [vmem:[%s7298_s11 + $0xda8] sm:$0xff] %vm4547_vm2, %v6740_v51 }
 0x26b   : > { %v3128_v52 = vpop.f32.mrf.mxu0  ;;  %v4328_v53 = vpop.f32.mrf.mxu1 }
 0x26c   : > { %4744 = vst.msk [vmem:[%s7298_s11 + $0x620] sm:$0xff] %vm4547_vm2, %v3128_v52  ;;  %4984 = vst.msk [vmem:[%s7298_s11 + $0xda0] sm:$0xff] %vm4547_vm2, %v4328_v53 }
 0x26d   : > { %v6383_v54 = vpop.f32.mrf.mxu0  ;;  %v6743_v55 = vpop.f32.mrf.mxu1 }
 0x26e   : > { %4747 = vst.msk [vmem:[%s7298_s11 + $0x638] sm:$0xff] %vm4547_vm2, %v6383_v54  ;;  %4987 = vst.msk [vmem:[%s7298_s11 + $0xdb8] sm:$0xff] %vm4547_vm2, %v6743_v55 }
 0x26f   : > { %v3138_v56 = vpop.f32.mrf.mxu0  ;;  %v4338_v57 = vpop.f32.mrf.mxu1 }
 0x270   : > { %4746 = vst.msk [vmem:[%s7298_s11 + $0x630] sm:$0xff] %vm4547_vm2, %v3138_v56  ;;  %4986 = vst.msk [vmem:[%s7298_s11 + $0xdb0] sm:$0xff] %vm4547_vm2, %v4338_v57 }
 0x271   : > { %v6386_v58 = vpop.f32.mrf.mxu0  ;;  %v6746_v59 = vpop.f32.mrf.mxu1 }
 0x272   : > { %4749 = vst.msk [vmem:[%s7298_s11 + $0x648] sm:$0xff] %vm4547_vm2, %v6386_v58  ;;  %4989 = vst.msk [vmem:[%s7298_s11 + $0xdc8] sm:$0xff] %vm4547_vm2, %v6746_v59 }
 0x273   : > { %v3148_v60 = vpop.f32.mrf.mxu0  ;;  %v4348_v61 = vpop.f32.mrf.mxu1 }
 0x274   : > { %4748 = vst.msk [vmem:[%s7298_s11 + $0x640] sm:$0xff] %vm4547_vm2, %v3148_v60  ;;  %4988 = vst.msk [vmem:[%s7298_s11 + $0xdc0] sm:$0xff] %vm4547_vm2, %v4348_v61 }
 0x275   : > { %v6389_v62 = vpop.f32.mrf.mxu0  ;;  %v6749_v63 = vpop.f32.mrf.mxu1 }
 0x276   : > { %4751 = vst.msk [vmem:[%s7298_s11 + $0x658] sm:$0xff] %vm4547_vm2, %v6389_v62  ;;  %4991 = vst.msk [vmem:[%s7298_s11 + $0xdd8] sm:$0xff] %vm4547_vm2, %v6749_v63 }
 0x277   : > { %v3158_v0 = vpop.f32.mrf.mxu0  ;;  %v4358_v1 = vpop.f32.mrf.mxu1 }
 0x278   : > { %4750 = vst.msk [vmem:[%s7298_s11 + $0x650] sm:$0xff] %vm4547_vm2, %v3158_v0  ;;  %4990 = vst.msk [vmem:[%s7298_s11 + $0xdd0] sm:$0xff] %vm4547_vm2, %v4358_v1 }
 0x279   : > { %v6392_v2 = vpop.f32.mrf.mxu0  ;;  %v6752_v3 = vpop.f32.mrf.mxu1 }
 0x27a   : > { %4753 = vst.msk [vmem:[%s7298_s11 + $0x668] sm:$0xff] %vm4547_vm2, %v6392_v2  ;;  %4993 = vst.msk [vmem:[%s7298_s11 + $0xde8] sm:$0xff] %vm4547_vm2, %v6752_v3 }
 0x27b   : > { %v3168_v4 = vpop.f32.mrf.mxu0  ;;  %v4368_v5 = vpop.f32.mrf.mxu1 }
 0x27c   : > { %4752 = vst.msk [vmem:[%s7298_s11 + $0x660] sm:$0xff] %vm4547_vm2, %v3168_v4  ;;  %4992 = vst.msk [vmem:[%s7298_s11 + $0xde0] sm:$0xff] %vm4547_vm2, %v4368_v5 }
 0x27d   : > { %v6395_v6 = vpop.f32.mrf.mxu0  ;;  %v6755_v7 = vpop.f32.mrf.mxu1 }
 0x27e   : > { %4755 = vst.msk [vmem:[%s7298_s11 + $0x678] sm:$0xff] %vm4547_vm2, %v6395_v6  ;;  %4995 = vst.msk [vmem:[%s7298_s11 + $0xdf8] sm:$0xff] %vm4547_vm2, %v6755_v7 }
 0x27f   : > { %v3178_v8 = vpop.f32.mrf.mxu0  ;;  %v4378_v9 = vpop.f32.mrf.mxu1 }
 0x280   : > { %4754 = vst.msk [vmem:[%s7298_s11 + $0x670] sm:$0xff] %vm4547_vm2, %v3178_v8  ;;  %4994 = vst.msk [vmem:[%s7298_s11 + $0xdf0] sm:$0xff] %vm4547_vm2, %v4378_v9 }
 0x281   : > { %v6398_v10 = vpop.f32.mrf.mxu0  ;;  %v6758_v11 = vpop.f32.mrf.mxu1 }
 0x282   : > { %4757 = vst.msk [vmem:[%s7298_s11 + $0x688] sm:$0xff] %vm4547_vm2, %v6398_v10  ;;  %4997 = vst.msk [vmem:[%s7298_s11 + $0xe08] sm:$0xff] %vm4547_vm2, %v6758_v11 }
 0x283   : > { %v3188_v12 = vpop.f32.mrf.mxu0  ;;  %v4388_v13 = vpop.f32.mrf.mxu1 }
 0x284   : > { %4756 = vst.msk [vmem:[%s7298_s11 + $0x680] sm:$0xff] %vm4547_vm2, %v3188_v12  ;;  %4996 = vst.msk [vmem:[%s7298_s11 + $0xe00] sm:$0xff] %vm4547_vm2, %v4388_v13 }
 0x285   : > { %v6401_v14 = vpop.f32.mrf.mxu0  ;;  %v6761_v15 = vpop.f32.mrf.mxu1 }
 0x286   : > { %4759 = vst.msk [vmem:[%s7298_s11 + $0x698] sm:$0xff] %vm4547_vm2, %v6401_v14  ;;  %4999 = vst.msk [vmem:[%s7298_s11 + $0xe18] sm:$0xff] %vm4547_vm2, %v6761_v15 }
 0x287   : > { %v3198_v16 = vpop.f32.mrf.mxu0  ;;  %v4398_v17 = vpop.f32.mrf.mxu1 }
 0x288   : > { %4758 = vst.msk [vmem:[%s7298_s11 + $0x690] sm:$0xff] %vm4547_vm2, %v3198_v16  ;;  %4998 = vst.msk [vmem:[%s7298_s11 + $0xe10] sm:$0xff] %vm4547_vm2, %v4398_v17 }
 0x289   : > { %v6404_v18 = vpop.f32.mrf.mxu0  ;;  %v6764_v19 = vpop.f32.mrf.mxu1 }
 0x28a   : > { %4761 = vst.msk [vmem:[%s7298_s11 + $0x6a8] sm:$0xff] %vm4547_vm2, %v6404_v18  ;;  %5001 = vst.msk [vmem:[%s7298_s11 + $0xe28] sm:$0xff] %vm4547_vm2, %v6764_v19 }
 0x28b   : > { %v3208_v20 = vpop.f32.mrf.mxu0  ;;  %v4408_v21 = vpop.f32.mrf.mxu1 }
 0x28c   : > { %4760 = vst.msk [vmem:[%s7298_s11 + $0x6a0] sm:$0xff] %vm4547_vm2, %v3208_v20  ;;  %5000 = vst.msk [vmem:[%s7298_s11 + $0xe20] sm:$0xff] %vm4547_vm2, %v4408_v21 }
 0x28d   : > { %v6407_v22 = vpop.f32.mrf.mxu0  ;;  %v6767_v23 = vpop.f32.mrf.mxu1 }
 0x28e   : > { %4763 = vst.msk [vmem:[%s7298_s11 + $0x6b8] sm:$0xff] %vm4547_vm2, %v6407_v22  ;;  %5003 = vst.msk [vmem:[%s7298_s11 + $0xe38] sm:$0xff] %vm4547_vm2, %v6767_v23 }
 0x28f   : > { %v3218_v24 = vpop.f32.mrf.mxu0  ;;  %v4418_v25 = vpop.f32.mrf.mxu1 }
 0x290   : > { %4762 = vst.msk [vmem:[%s7298_s11 + $0x6b0] sm:$0xff] %vm4547_vm2, %v3218_v24  ;;  %5002 = vst.msk [vmem:[%s7298_s11 + $0xe30] sm:$0xff] %vm4547_vm2, %v4418_v25 }
 0x291   : > { %v6410_v26 = vpop.f32.mrf.mxu0  ;;  %v6770_v27 = vpop.f32.mrf.mxu1 }
 0x292   : > { %4765 = vst.msk [vmem:[%s7298_s11 + $0x6c8] sm:$0xff] %vm4547_vm2, %v6410_v26  ;;  %5005 = vst.msk [vmem:[%s7298_s11 + $0xe48] sm:$0xff] %vm4547_vm2, %v6770_v27 }
 0x293   : > { %v3228_v28 = vpop.f32.mrf.mxu0  ;;  %v4428_v29 = vpop.f32.mrf.mxu1 }
 0x294   : > { %4764 = vst.msk [vmem:[%s7298_s11 + $0x6c0] sm:$0xff] %vm4547_vm2, %v3228_v28  ;;  %5004 = vst.msk [vmem:[%s7298_s11 + $0xe40] sm:$0xff] %vm4547_vm2, %v4428_v29 }
 0x295   : > { %v6413_v30 = vpop.f32.mrf.mxu0  ;;  %v6773_v31 = vpop.f32.mrf.mxu1 }
 0x296   : > { %4767 = vst.msk [vmem:[%s7298_s11 + $0x6d8] sm:$0xff] %vm4547_vm2, %v6413_v30  ;;  %5007 = vst.msk [vmem:[%s7298_s11 + $0xe58] sm:$0xff] %vm4547_vm2, %v6773_v31 }
 0x297   : > { %v3238_v32 = vpop.f32.mrf.mxu0  ;;  %v4438_v33 = vpop.f32.mrf.mxu1 }
 0x298   : > { %4766 = vst.msk [vmem:[%s7298_s11 + $0x6d0] sm:$0xff] %vm4547_vm2, %v3238_v32  ;;  %5006 = vst.msk [vmem:[%s7298_s11 + $0xe50] sm:$0xff] %vm4547_vm2, %v4438_v33 }
 0x299   : > { %v6416_v34 = vpop.f32.mrf.mxu0  ;;  %v6776_v35 = vpop.f32.mrf.mxu1 }
 0x29a   : > { %4769 = vst.msk [vmem:[%s7298_s11 + $0x6e8] sm:$0xff] %vm4547_vm2, %v6416_v34  ;;  %5009 = vst.msk [vmem:[%s7298_s11 + $0xe68] sm:$0xff] %vm4547_vm2, %v6776_v35 }
 0x29b   : > { %v3248_v36 = vpop.f32.mrf.mxu0  ;;  %v4448_v37 = vpop.f32.mrf.mxu1 }
 0x29c   : > { %4768 = vst.msk [vmem:[%s7298_s11 + $0x6e0] sm:$0xff] %vm4547_vm2, %v3248_v36  ;;  %5008 = vst.msk [vmem:[%s7298_s11 + $0xe60] sm:$0xff] %vm4547_vm2, %v4448_v37 }
 0x29d   : > { %v6419_v38 = vpop.f32.mrf.mxu0  ;;  %v6779_v39 = vpop.f32.mrf.mxu1 }
 0x29e   : > { %4771 = vst.msk [vmem:[%s7298_s11 + $0x6f8] sm:$0xff] %vm4547_vm2, %v6419_v38  ;;  %5011 = vst.msk [vmem:[%s7298_s11 + $0xe78] sm:$0xff] %vm4547_vm2, %v6779_v39 }
 0x29f   : > { %v3258_v40 = vpop.f32.mrf.mxu0  ;;  %v4458_v41 = vpop.f32.mrf.mxu1 }
 0x2a0   : > { %4770 = vst.msk [vmem:[%s7298_s11 + $0x6f0] sm:$0xff] %vm4547_vm2, %v3258_v40  ;;  %5010 = vst.msk [vmem:[%s7298_s11 + $0xe70] sm:$0xff] %vm4547_vm2, %v4458_v41 }
 0x2a1   : > { %v6422_v42 = vpop.f32.mrf.mxu0  ;;  %v6782_v43 = vpop.f32.mrf.mxu1 }
 0x2a2   : > { %4773 = vst.msk [vmem:[%s7298_s11 + $0x708] sm:$0xff] %vm4547_vm2, %v6422_v42  ;;  %5013 = vst.msk [vmem:[%s7298_s11 + $0xe88] sm:$0xff] %vm4547_vm2, %v6782_v43 }
 0x2a3   : > { %v3268_v44 = vpop.f32.mrf.mxu0  ;;  %v4468_v45 = vpop.f32.mrf.mxu1 }
 0x2a4   : > { %4772 = vst.msk [vmem:[%s7298_s11 + $0x700] sm:$0xff] %vm4547_vm2, %v3268_v44  ;;  %5012 = vst.msk [vmem:[%s7298_s11 + $0xe80] sm:$0xff] %vm4547_vm2, %v4468_v45 }
 0x2a5   : > { %v6425_v46 = vpop.f32.mrf.mxu0  ;;  %v6785_v47 = vpop.f32.mrf.mxu1 }
 0x2a6   : > { %4775 = vst.msk [vmem:[%s7298_s11 + $0x718] sm:$0xff] %vm4547_vm2, %v6425_v46  ;;  %5015 = vst.msk [vmem:[%s7298_s11 + $0xe98] sm:$0xff] %vm4547_vm2, %v6785_v47 }
 0x2a7   : > { %v3278_v48 = vpop.f32.mrf.mxu0  ;;  %v4478_v49 = vpop.f32.mrf.mxu1 }
 0x2a8   : > { %4774 = vst.msk [vmem:[%s7298_s11 + $0x710] sm:$0xff] %vm4547_vm2, %v3278_v48  ;;  %5014 = vst.msk [vmem:[%s7298_s11 + $0xe90] sm:$0xff] %vm4547_vm2, %v4478_v49 }
 0x2a9   : > { %v6428_v50 = vpop.f32.mrf.mxu0  ;;  %v6788_v51 = vpop.f32.mrf.mxu1 }
 0x2aa   : > { %4777 = vst.msk [vmem:[%s7298_s11 + $0x728] sm:$0xff] %vm4547_vm2, %v6428_v50  ;;  %5017 = vst.msk [vmem:[%s7298_s11 + $0xea8] sm:$0xff] %vm4547_vm2, %v6788_v51 }
 0x2ab   : > { %v3288_v52 = vpop.f32.mrf.mxu0  ;;  %v4488_v53 = vpop.f32.mrf.mxu1 }
 0x2ac   : > { %4776 = vst.msk [vmem:[%s7298_s11 + $0x720] sm:$0xff] %vm4547_vm2, %v3288_v52  ;;  %5016 = vst.msk [vmem:[%s7298_s11 + $0xea0] sm:$0xff] %vm4547_vm2, %v4488_v53 }
 0x2ad   : > { %v6431_v54 = vpop.f32.mrf.mxu0  ;;  %v6791_v55 = vpop.f32.mrf.mxu1 }
 0x2ae   : > { %4779 = vst.msk [vmem:[%s7298_s11 + $0x738] sm:$0xff] %vm4547_vm2, %v6431_v54  ;;  %5019 = vst.msk [vmem:[%s7298_s11 + $0xeb8] sm:$0xff] %vm4547_vm2, %v6791_v55 }
 0x2af   : > { %v3298_v56 = vpop.f32.mrf.mxu0  ;;  %v4498_v57 = vpop.f32.mrf.mxu1 }
 0x2b0   : > { %4778 = vst.msk [vmem:[%s7298_s11 + $0x730] sm:$0xff] %vm4547_vm2, %v3298_v56  ;;  %5018 = vst.msk [vmem:[%s7298_s11 + $0xeb0] sm:$0xff] %vm4547_vm2, %v4498_v57 }
 0x2b1   : > { %v6434_v58 = vpop.f32.mrf.mxu0  ;;  %v6794_v59 = vpop.f32.mrf.mxu1 }
 0x2b2   : > { %4781 = vst.msk [vmem:[%s7298_s11 + $0x748] sm:$0xff] %vm4547_vm2, %v6434_v58  ;;  %5021 = vst.msk [vmem:[%s7298_s11 + $0xec8] sm:$0xff] %vm4547_vm2, %v6794_v59 }
 0x2b3   : > { %v3308_v60 = vpop.f32.mrf.mxu0  ;;  %v4508_v61 = vpop.f32.mrf.mxu1 }
 0x2b4   : > { %4780 = vst.msk [vmem:[%s7298_s11 + $0x740] sm:$0xff] %vm4547_vm2, %v3308_v60  ;;  %5020 = vst.msk [vmem:[%s7298_s11 + $0xec0] sm:$0xff] %vm4547_vm2, %v4508_v61 }
 0x2b5   : > { %v6437_v62 = vpop.f32.mrf.mxu0  ;;  %v6797_v63 = vpop.f32.mrf.mxu1 }
 0x2b6   : > { %4783 = vst.msk [vmem:[%s7298_s11 + $0x758] sm:$0xff] %vm4547_vm2, %v6437_v62  ;;  %5023 = vst.msk [vmem:[%s7298_s11 + $0xed8] sm:$0xff] %vm4547_vm2, %v6797_v63 }
 0x2b7   : > { %v3318_v0 = vpop.f32.mrf.mxu0  ;;  %v4518_v1 = vpop.f32.mrf.mxu1 }
 0x2b8   : > { %4782 = vst.msk [vmem:[%s7298_s11 + $0x750] sm:$0xff] %vm4547_vm2, %v3318_v0  ;;  %5022 = vst.msk [vmem:[%s7298_s11 + $0xed0] sm:$0xff] %vm4547_vm2, %v4518_v1 }
 0x2b9   : > { %v6440_v2 = vpop.f32.mrf.mxu0  ;;  %v6800_v3 = vpop.f32.mrf.mxu1 }
 0x2ba   : > { %4785 = vst.msk [vmem:[%s7298_s11 + $0x768] sm:$0xff] %vm4547_vm2, %v6440_v2  ;;  %5025 = vst.msk [vmem:[%s7298_s11 + $0xee8] sm:$0xff] %vm4547_vm2, %v6800_v3 }
 0x2bb   : > { %v3328_v4 = vpop.f32.mrf.mxu0  ;;  %v4528_v5 = vpop.f32.mrf.mxu1 }
 0x2bc   : > { %4784 = vst.msk [vmem:[%s7298_s11 + $0x760] sm:$0xff] %vm4547_vm2, %v3328_v4  ;;  %5024 = vst.msk [vmem:[%s7298_s11 + $0xee0] sm:$0xff] %vm4547_vm2, %v4528_v5 }
 0x2bd   : > { %v6443_v6 = vpop.f32.mrf.mxu0  ;;  %v6803_v7 = vpop.f32.mrf.mxu1 }
 0x2be   : > { %4787 = vst.msk [vmem:[%s7298_s11 + $0x778] sm:$0xff] %vm4547_vm2, %v6443_v6  ;;  %5027 = vst.msk [vmem:[%s7298_s11 + $0xef8] sm:$0xff] %vm4547_vm2, %v6803_v7 }
 0x2bf   : > { %v3338_v8 = vpop.f32.mrf.mxu0  ;;  %v4538_v9 = vpop.f32.mrf.mxu1 }
 0x2c0   : > { %4786 = vst.msk [vmem:[%s7298_s11 + $0x770] sm:$0xff] %vm4547_vm2, %v3338_v8  ;;  %5026 = vst.msk [vmem:[%s7298_s11 + $0xef0] sm:$0xff] %vm4547_vm2, %v4538_v9 }
 0x2c1 PF: > { %s12_s9 = sadd.s32 1, %s6838_s9  }
 0x2c2   : > { %p9_p4 = scmp.ge.s32.totalorder %s12_s9, 4  }
 0x2c4   :  { %11 = sbr.rel (!%p9_p4) target bundleno = 1 (0x1), region = 58 }

// kernel: dronet_forward.10
= control target key start
LH: loop header
LB: loop body
LE: loop exit
PB: predicated region body
PF: predicated region fallthrough
CT: control target
= control target key end

     0   :  { %s792_s15 = smov 0   ;;  %s1092_s0 = inlined_call_operand.vmem [shape: f32[48,2560], index: 0, kind: input, shape index: {}]   ;;  %s1093_s1 = inlined_call_operand.vmem [shape: f32[48,2560], index: 1, kind: input, shape index: {}]   ;;  %s1094_s2 = inlined_call_operand.vmem [shape: f32[1,1280], index: 2, kind: input, shape index: {}]   ;;  %s1095_s3 = inlined_call_operand.vmem [shape: f32[1,1280], index: 3, kind: input, shape index: {}]   ;;  %s1096_s4 = inlined_call_operand.vmem [shape: f32[48,1280], index: 4, kind: output, shape index: {}]  }
   0x1 LB: > { %s739_s16 = sadd.s32 4294967295, %s765_s15   ;;  %p743_p0 = scmp.ge.s32.totalorder %s765_s15, 1  ;;  %s765_s15 = sphi %s792_s15, %s14_s15  }
   0x2   : > { %p176_p1 = scmp.lt.s32.totalorder %s765_s15, 3 }
   0x4   : > { %p177_p2 = pnand %p743_p0, %p176_p1 }
   0x5   : > { %s210_s17 = smul.u32 (!%p177_p2), 3, %s739_s16 }
   0x6   : > { %180 = sbr.rel (%p177_p2) target bundleno = 73 (0x49), region = 36 }
   0x7   : > { %p211_p3 = scmp.lt.s32.totalorder (!%p177_p2), %s210_s17, 5 }
   0xb   : > { %v445_v0 = vlaneseq  ;;  %s1098_s17 = smov (!%p211_p3, %s210_s17), 5  ;;  %v441_v4 = vld [vmem:[%s1094_s2] sm:$0xff]  ;;  %v442_v22 = vld [vmem:[%s1094_s2 + $0x8] sm:$0x3] }
   0xc   : > { %v525_v5 = vld [vmem:[%s1095_s3] sm:$0xff]  ;;  %s749_s22 = smul.u32 160, %s1098_s17  ;;  %v526_v23 = vld [vmem:[%s1095_s3 + $0x8] sm:$0x3] }
   0xd   : > { %v446_v1 = vshrl.u32 %v445_v0, 7  ;;  %s750_s7 = smul.u32 80, %s1098_s17 }
   0xe   : > { %s814_s25 = scalar_lea.vmem %s1092_s0, %s749_s22  ;;  %s819_s28 = scalar_lea.vmem %s1093_s1, %s749_s22 }
   0xf   : > { %v447_v2 = vsub.s32 0, %v446_v1  ;;  %v802_v3 = vsub.s32 1, %v446_v1  ;;  %v455_v6 = vsub.s32 2, %v446_v1  ;;  %v459_v7 = vsub.s32 3, %v446_v1  ;;  %v231_v15 = vld [vmem:[%s814_s25] sm:$0xff]  ;;  %v241_v16 = vld [vmem:[%s814_s25 + $0x50] sm:$0xff]  ;;  %s908_s10 = scalar_lea.vmem %s1096_s4, %s750_s7 }
  0x10   : > { %v463_v8 = vsub.s32 4, %v446_v1  ;;  %v467_v9 = vsub.s32 5, %v446_v1  ;;  %v471_v10 = vsub.s32 6, %v446_v1  ;;  %v475_v14 = vsub.s32 7, %v446_v1  ;;  %v291_v17 = vld [vmem:[%s819_s28] sm:$0xff]  ;;  %v301_v24 = vld [vmem:[%s819_s28 + $0x50] sm:$0xff] }
  0x11   : > { %v821_v11 = vrot.slane %v441_v4, %v447_v2  ;;  %v823_v12 = vrot.slane %v525_v5, %v447_v2  ;;  %v826_v13 = vrot.slane %v441_v4, %v802_v3  ;;  %v832_v18 = vrot.slane %v525_v5, %v802_v3  ;;  %v232_v26 = vld [vmem:[%s814_s25 + $0x8] sm:$0xff]  ;;  %v242_v27 = vld [vmem:[%s814_s25 + $0x58] sm:$0xff]  ;;  %v233_v34 = vld [vmem:[%s814_s25 + $0x10] sm:$0xff] }
  0x12   : > { %v834_v19 = vrot.slane %v441_v4, %v455_v6  ;;  %v836_v20 = vrot.slane %v525_v5, %v455_v6  ;;  %v838_v21 = vrot.slane %v441_v4, %v459_v7  ;;  %v351_v25 = vmax.f32 %v231_v15, %v291_v17  ;;  %v292_v32 = vld [vmem:[%s819_s28 + $0x8] sm:$0xff]  ;;  %v302_v33 = vld [vmem:[%s819_s28 + $0x58] sm:$0xff]  ;;  %v243_v40 = vld [vmem:[%s814_s25 + $0x60] sm:$0xff] }
  0x13   : > { %v849_v28 = vrot.slane %v525_v5, %v459_v7  ;;  %v851_v29 = vrot.slane %v441_v4, %v463_v8  ;;  %v853_v30 = vrot.slane %v525_v5, %v463_v8  ;;  %v361_v31 = vmax.f32 %v241_v16, %v301_v24  ;;  %v293_v41 = vld [vmem:[%s819_s28 + $0x10] sm:$0xff]  ;;  %v303_v42 = vld [vmem:[%s819_s28 + $0x60] sm:$0xff]  ;;  %v234_v48 = vld [vmem:[%s814_s25 + $0x18] sm:$0xff] }
  0x14   : > { %v858_v35 = vrot.slane %v441_v4, %v467_v9  ;;  %v860_v36 = vrot.slane %v525_v5, %v467_v9  ;;  %v862_v37 = vrot.slane %v441_v4, %v471_v10  ;;  %v352_v38 = vmax.f32 %v232_v26, %v292_v32  ;;  %v244_v49 = vld [vmem:[%s814_s25 + $0x68] sm:$0xff]  ;;  %v294_v50 = vld [vmem:[%s819_s28 + $0x18] sm:$0xff]  ;;  %v235_v55 = vld [vmem:[%s814_s25 + $0x20] sm:$0xff] }
  0x15   : > { %v362_v39 = vmax.f32 %v242_v27, %v302_v33  ;;  %v867_v43 = vrot.slane %v525_v5, %v471_v10  ;;  %v869_v44 = vrot.slane %v441_v4, %v475_v14  ;;  %v411_v45 = vmax.f32 %v351_v25, %v361_v31  ;;  %v304_v53 = vld [vmem:[%s819_s28 + $0x68] sm:$0xff]  ;;  %v245_v56 = vld [vmem:[%s814_s25 + $0x70] sm:$0xff]  ;;  %v295_v62 = vld [vmem:[%s819_s28 + $0x20] sm:$0xff] }
  0x16   : > { %v353_v46 = vmax.f32 %v233_v34, %v293_v41  ;;  %v363_v47 = vmax.f32 %v243_v40, %v303_v42  ;;  %v874_v51 = vrot.slane %v525_v5, %v475_v14  ;;  %v354_v54 = vmax.f32 %v234_v48, %v294_v50  ;;  %v305_v63 = vld [vmem:[%s819_s28 + $0x70] sm:$0xff]  ;;  %v236_v0 = vld [vmem:[%s814_s25 + $0x28] sm:$0xff]  ;;  %v306_v8 = vld [vmem:[%s819_s28 + $0x78] sm:$0xff] }
  0x17   : > { %v412_v52 = vmax.f32 %v352_v38, %v362_v39  ;;  %v880_v57 = vrot.slane %v442_v22, %v447_v2  ;;  %v882_v58 = vrot.slane %v526_v23, %v447_v2  ;;  %v495_v59 = vmul.f32 %v821_v11, %v411_v45  ;;  %v246_v2 = vld [vmem:[%s814_s25 + $0x78] sm:$0xff]  ;;  %v296_v7 = vld [vmem:[%s819_s28 + $0x28] sm:$0xff]  ;;  %v237_v17 = vld [vmem:[%s814_s25 + $0x30] sm:$0xff] }
  0x18   : > { %v413_v60 = vmax.f32 %v353_v46, %v363_v47  ;;  %v364_v61 = vmax.f32 %v244_v49, %v304_v53  ;;  %v889_v1 = vrot.slane %v442_v22, %v802_v3  ;;  %v355_v5 = vmax.f32 %v235_v55, %v295_v62  ;;  %v247_v22 = vld [vmem:[%s814_s25 + $0x80] sm:$0xff]  ;;  %v297_v24 = vld [vmem:[%s819_s28 + $0x30] sm:$0xff]  ;;  %v238_v31 = vld [vmem:[%s814_s25 + $0x38] sm:$0xff] }
  0x19   : > { %v496_v4 = vmul.f32 %v826_v13, %v412_v52  ;;  %v365_v6 = vmax.f32 %v245_v56, %v305_v63  ;;  %v896_v9 = vrot.slane %v526_v23, %v802_v3  ;;  %v579_v10 = vadd.f32 %v823_v12, %v495_v59  ;;  %v307_v26 = vld [vmem:[%s819_s28 + $0x80] sm:$0xff]  ;;  %v248_v32 = vld [vmem:[%s814_s25 + $0x88] sm:$0xff]  ;;  %v298_v40 = vld [vmem:[%s819_s28 + $0x38] sm:$0xff] }
  0x1a   : > { %v497_v14 = vmul.f32 %v834_v19, %v413_v60  ;;  %v414_v15 = vmax.f32 %v354_v54, %v364_v61  ;;  %v356_v16 = vmax.f32 %v236_v0, %v296_v7  ;;  %v366_v25 = vmax.f32 %v246_v2, %v306_v8  ;;  %v308_v41 = vld [vmem:[%s819_s28 + $0x88] sm:$0xff]  ;;  %v239_v42 = vld [vmem:[%s814_s25 + $0x40] sm:$0xff]  ;;  %v249_v49 = vld [vmem:[%s814_s25 + $0x90] sm:$0xff] }
  0x1b   : > { %v580_v3 = vadd.f32 %v832_v18, %v496_v4  ;;  %v415_v23 = vmax.f32 %v355_v5, %v365_v6  ;;  %v357_v27 = vmax.f32 %v237_v17, %v297_v24  ;;  %v609_v33 = vmax.f32 %v579_v10, 0.0  ;;  %v299_v50 = vld [vmem:[%s819_s28 + $0x40] sm:$0xff]  ;;  %v309_v52 = vld [vmem:[%s819_s28 + $0x90] sm:$0xff]  ;;  %v240_v59 = vld [vmem:[%s814_s25 + $0x48] sm:$0xff] }
  0x1c   : > { %v581_v34 = vadd.f32 %v836_v20, %v497_v14  ;;  %v498_v38 = vmul.f32 %v838_v21, %v414_v15  ;;  %v367_v39 = vmax.f32 %v247_v22, %v307_v26  ;;  %v416_v47 = vmax.f32 %v356_v16, %v366_v25  ;;  %v250_v60 = vld [vmem:[%s814_s25 + $0x98] sm:$0xff]  ;;  %v300_v61 = vld [vmem:[%s819_s28 + $0x48] sm:$0xff]  ;;  %v251_v6 = vld [vmem:[%s814_s25 + $0xa0] sm:$0xff] }
  0x1d   : > { %v610_v45 = vmax.f32 %v580_v3, 0.0  ;;  %v499_v46 = vmul.f32 %v851_v29, %v415_v23  ;;  %v358_v48 = vmax.f32 %v238_v31, %v298_v40  ;;  %639 = vst [vmem:[%s908_s10] sm:$0xff] %v609_v33  ;;  %v368_v56 = vmax.f32 %v248_v32, %v308_v41  ;;  %v310_v5 = vld [vmem:[%s819_s28 + $0x98] sm:$0xff]  ;;  %v261_v2 = vld [vmem:[%s814_s25 + $0xf0] sm:$0xff]  ;;  %v311_v15 = vld [vmem:[%s819_s28 + $0xa0] sm:$0xff] }
  0x1e   : > { %v611_v53 = vmax.f32 %v581_v34, 0.0  ;;  %v582_v54 = vadd.f32 %v849_v28, %v498_v38  ;;  %v417_v55 = vmax.f32 %v357_v27, %v367_v39  ;;  %v500_v63 = vmul.f32 %v858_v35, %v416_v47  ;;  %v321_v16 = vld [vmem:[%s819_s28 + $0xf0] sm:$0xff]  ;;  %v252_v17 = vld [vmem:[%s814_s25 + $0xa8] sm:$0xff]  ;;  %v262_v25 = vld [vmem:[%s814_s25 + $0xf8] sm:$0xff] }
  0x1f   : > { %640 = vst [vmem:[%s908_s10 + $0x8] sm:$0xff] %v610_v45  ;;  %v583_v62 = vadd.f32 %v853_v30, %v499_v46  ;;  %v359_v0 = vmax.f32 %v239_v42, %v299_v50  ;;  %v369_v4 = vmax.f32 %v249_v49, %v309_v52  ;;  %v418_v10 = vmax.f32 %v358_v48, %v368_v56  ;;  %v312_v26 = vld [vmem:[%s819_s28 + $0xa8] sm:$0xff]  ;;  %v322_v27 = vld [vmem:[%s819_s28 + $0xf8] sm:$0xff]  ;;  %v253_v38 = vld [vmem:[%s814_s25 + $0xb0] sm:$0xff] }
  0x20   : > { %641 = vst [vmem:[%s908_s10 + $0x10] sm:$0xff] %v611_v53  ;;  %v612_v7 = vmax.f32 %v582_v54, 0.0  ;;  %v501_v8 = vmul.f32 %v862_v37, %v417_v55  ;;  %v360_v14 = vmax.f32 %v240_v59, %v300_v61  ;;  %v584_v24 = vadd.f32 %v860_v36, %v500_v63  ;;  %v263_v39 = vld [vmem:[%s814_s25 + $0x100] sm:$0xff]  ;;  %v313_v40 = vld [vmem:[%s819_s28 + $0xb0] sm:$0xff]  ;;  %v254_v48 = vld [vmem:[%s814_s25 + $0xb8] sm:$0xff] }
  0x21   : > { %v613_v22 = vmax.f32 %v583_v62, 0.0  ;;  %v419_v3 = vmax.f32 %v359_v0, %v369_v4  ;;  %v370_v23 = vmax.f32 %v250_v60, %v310_v5  ;;  %v502_v32 = vmul.f32 %v869_v44, %v418_v10  ;;  %v323_v47 = vld [vmem:[%s819_s28 + $0x100] sm:$0xff]  ;;  %v264_v49 = vld [vmem:[%s814_s25 + $0x108] sm:$0xff]  ;;  %v314_v55 = vld [vmem:[%s819_s28 + $0xb8] sm:$0xff] }
  0x22   : > { %642 = vst [vmem:[%s908_s10 + $0x18] sm:$0xff] %v612_v7  ;;  %v585_v31 = vadd.f32 %v867_v43, %v501_v8  ;;  %v371_v33 = vmax.f32 %v251_v6, %v311_v15  ;;  %v381_v34 = vmax.f32 %v261_v2, %v321_v16  ;;  %v614_v41 = vmax.f32 %v584_v24, 0.0  ;;  %v324_v56 = vld [vmem:[%s819_s28 + $0x108] sm:$0xff]  ;;  %v255_v59 = vld [vmem:[%s814_s25 + $0xc0] sm:$0xff]  ;;  %v265_v0 = vld [vmem:[%s814_s25 + $0x110] sm:$0xff] }
  0x23   : > { %643 = vst [vmem:[%s908_s10 + $0x20] sm:$0xff] %v613_v22  ;;  %v503_v42 = vmul.f32 %v880_v57, %v419_v3  ;;  %v420_v45 = vmax.f32 %v360_v14, %v370_v23  ;;  %v372_v46 = vmax.f32 %v252_v17, %v312_v26  ;;  %v586_v52 = vadd.f32 %v874_v51, %v502_v32  ;;  %v315_v4 = vld [vmem:[%s819_s28 + $0xc0] sm:$0xff]  ;;  %v325_v5 = vld [vmem:[%s819_s28 + $0x110] sm:$0xff]  ;;  %v256_v10 = vld [vmem:[%s814_s25 + $0xc8] sm:$0xff] }
  0x24   : > { %v615_v50 = vmax.f32 %v585_v31, 0.0  ;;  %v421_v53 = vmax.f32 %v371_v33, %v381_v34  ;;  %v382_v54 = vmax.f32 %v262_v25, %v322_v27  ;;  %644 = vst [vmem:[%s908_s10 + $0x28] sm:$0xff] %v614_v41  ;;  %v373_v62 = vmax.f32 %v253_v38, %v313_v40  ;;  %v316_v14 = vld [vmem:[%s819_s28 + $0xc8] sm:$0xff]  ;;  %v266_v24 = vld [vmem:[%s814_s25 + $0x118] sm:$0xff]  ;;  %v257_v23 = vld [vmem:[%s814_s25 + $0xd0] sm:$0xff] }
  0x25   : > { %v587_v60 = vadd.f32 %v882_v58, %v503_v42  ;;  %v504_v61 = vmul.f32 %v889_v1, %v420_v45  ;;  %v383_v63 = vmax.f32 %v263_v39, %v323_v47  ;;  %v616_v6 = vmax.f32 %v586_v52, 0.0  ;;  %v326_v3 = vld [vmem:[%s819_s28 + $0x118] sm:$0xff]  ;;  %v267_v32 = vld [vmem:[%s814_s25 + $0x120] sm:$0xff]  ;;  %v317_v33 = vld [vmem:[%s819_s28 + $0xd0] sm:$0xff] }
  0x26   : > { %645 = vst [vmem:[%s908_s10 + $0x30] sm:$0xff] %v615_v50  ;;  %v505_v2 = vmul.f32 %v821_v11, %v421_v53  ;;  %v422_v7 = vmax.f32 %v372_v46, %v382_v54  ;;  %v374_v8 = vmax.f32 %v254_v48, %v314_v55  ;;  %v384_v22 = vmax.f32 %v264_v49, %v324_v56  ;;  %v327_v34 = vld [vmem:[%s819_s28 + $0x120] sm:$0xff]  ;;  %v258_v42 = vld [vmem:[%s814_s25 + $0xd8] sm:$0xff]  ;;  %v268_v50 = vld [vmem:[%s814_s25 + $0x128] sm:$0xff] }
  0x27   : > { %v617_v15 = vmax.f32 %v587_v60, 0.0  ;;  %v588_v16 = vadd.f32 %v896_v9, %v504_v61  ;;  %v423_v17 = vmax.f32 %v373_v62, %v383_v63  ;;  %646 = vst [vmem:[%s908_s10 + $0x38] sm:$0xff] %v616_v6  ;;  %v375_v27 = vmax.f32 %v255_v59, %v315_v4  ;;  %v318_v45 = vld [vmem:[%s819_s28 + $0xd8] sm:$0xff]  ;;  %v328_v52 = vld [vmem:[%s819_s28 + $0x128] sm:$0xff]  ;;  %v259_v53 = vld [vmem:[%s814_s25 + $0xe0] sm:$0xff] }
  0x28   : > { %v589_v25 = vadd.f32 %v823_v12, %v505_v2  ;;  %v506_v26 = vmul.f32 %v826_v13, %v422_v7  ;;  %v385_v31 = vmax.f32 %v265_v0, %v325_v5  ;;  %v424_v40 = vmax.f32 %v374_v8, %v384_v22  ;;  %v269_v60 = vld [vmem:[%s814_s25 + $0x130] sm:$0xff]  ;;  %v319_v61 = vld [vmem:[%s819_s28 + $0xe0] sm:$0xff]  ;;  %v260_v6 = vld [vmem:[%s814_s25 + $0xe8] sm:$0xff] }
  0x29   : > { %647 = vst [vmem:[%s908_s10 + $0x40] sm:$0xff] %v617_v15  ;;  %v618_v38 = vmax.f32 %v588_v16, 0.0  ;;  %v507_v39 = vmul.f32 %v834_v19, %v423_v17  ;;  %v376_v41 = vmax.f32 %v256_v10, %v316_v14  ;;  %v386_v49 = vmax.f32 %v266_v24, %v326_v3  ;;  %v329_v62 = vld [vmem:[%s819_s28 + $0x130] sm:$0xff]  ;;  %v320_v2 = vld [vmem:[%s819_s28 + $0xe8] sm:$0xff]  ;;  %v270_v15 = vld [vmem:[%s814_s25 + $0x138] sm:$0xff] }
  0x2a   : > { %v619_v46 = vmax.f32 %v589_v25, 0.0  ;;  %v590_v47 = vadd.f32 %v832_v18, %v506_v26  ;;  %v425_v48 = vmax.f32 %v375_v27, %v385_v31  ;;  %v508_v55 = vmul.f32 %v838_v21, %v424_v40  ;;  %v330_v16 = vld [vmem:[%s819_s28 + $0x138] sm:$0xff]  ;;  %v271_v17 = vld [vmem:[%s814_s25 + $0x140] sm:$0xff]  ;;  %v281_v25 = vld [vmem:[%s814_s25 + $0x190] sm:$0xff] }
  0x2b   : > { %648 = vst [vmem:[%s908_s10 + $0x48] sm:$0xff] %v618_v38  ;;  %v591_v54 = vadd.f32 %v836_v20, %v507_v39  ;;  %v377_v56 = vmax.f32 %v257_v23, %v317_v33  ;;  %v387_v59 = vmax.f32 %v267_v32, %v327_v34  ;;  %v426_v4 = vmax.f32 %v376_v41, %v386_v49  ;;  %v331_v26 = vld [vmem:[%s819_s28 + $0x140] sm:$0xff]  ;;  %v341_v27 = vld [vmem:[%s819_s28 + $0x190] sm:$0xff]  ;;  %v272_v38 = vld [vmem:[%s814_s25 + $0x148] sm:$0xff] }
  0x2c   : > { %649 = vst [vmem:[%s908_s10 + $0x50] sm:$0xff] %v619_v46  ;;  %v620_v63 = vmax.f32 %v590_v47, 0.0  ;;  %v509_v0 = vmul.f32 %v851_v29, %v425_v48  ;;  %v378_v5 = vmax.f32 %v258_v42, %v318_v45  ;;  %v592_v8 = vadd.f32 %v849_v28, %v508_v55  ;;  %v332_v39 = vld [vmem:[%s819_s28 + $0x148] sm:$0xff]  ;;  %v282_v46 = vld [vmem:[%s814_s25 + $0x198] sm:$0xff]  ;;  %v273_v48 = vld [vmem:[%s814_s25 + $0x150] sm:$0xff] }
  0x2d   : > { %v621_v7 = vmax.f32 %v591_v54, 0.0  ;;  %v427_v10 = vmax.f32 %v377_v56, %v387_v59  ;;  %v388_v14 = vmax.f32 %v268_v50, %v328_v52  ;;  %v510_v24 = vmul.f32 %v858_v35, %v426_v4  ;;  %v342_v47 = vld [vmem:[%s819_s28 + $0x198] sm:$0xff]  ;;  %v283_v54 = vld [vmem:[%s814_s25 + $0x1a0] sm:$0xff]  ;;  %v333_v55 = vld [vmem:[%s819_s28 + $0x150] sm:$0xff] }
  0x2e   : > { %650 = vst [vmem:[%s908_s10 + $0x58] sm:$0xff] %v620_v63  ;;  %v593_v22 = vadd.f32 %v853_v30, %v509_v0  ;;  %v379_v3 = vmax.f32 %v259_v53, %v319_v61  ;;  %v389_v23 = vmax.f32 %v269_v60, %v329_v62  ;;  %v622_v31 = vmax.f32 %v592_v8, 0.0  ;;  %v343_v56 = vld [vmem:[%s819_s28 + $0x1a0] sm:$0xff]  ;;  %v274_v63 = vld [vmem:[%s814_s25 + $0x158] sm:$0xff]  ;;  %v344_v8 = vld [vmem:[%s819_s28 + $0x1a8] sm:$0xff] }
  0x2f   : > { %651 = vst [vmem:[%s908_s10 + $0x60] sm:$0xff] %v621_v7  ;;  %v511_v32 = vmul.f32 %v862_v37, %v427_v10  ;;  %v428_v33 = vmax.f32 %v378_v5, %v388_v14  ;;  %v380_v34 = vmax.f32 %v260_v6, %v320_v2  ;;  %v594_v41 = vadd.f32 %v860_v36, %v510_v24  ;;  %v334_v0 = vld [vmem:[%s819_s28 + $0x158] sm:$0xff]  ;;  %v284_v7 = vld [vmem:[%s814_s25 + $0x1a8] sm:$0xff]  ;;  %v275_v10 = vld [vmem:[%s814_s25 + $0x160] sm:$0xff] }
  0x30   : > { %v623_v40 = vmax.f32 %v593_v22, 0.0  ;;  %v429_v42 = vmax.f32 %v379_v3, %v389_v23  ;;  %v390_v45 = vmax.f32 %v270_v15, %v330_v16  ;;  %652 = vst [vmem:[%s908_s10 + $0x68] sm:$0xff] %v622_v31  ;;  %v391_v52 = vmax.f32 %v271_v17, %v331_v26  ;;  %v285_v22 = vld [vmem:[%s814_s25 + $0x1b0] sm:$0xff]  ;;  %v335_v24 = vld [vmem:[%s819_s28 + $0x160] sm:$0xff]  ;;  %v276_v31 = vld [vmem:[%s814_s25 + $0x168] sm:$0xff] }
  0x31   : > { %v595_v49 = vadd.f32 %v867_v43, %v511_v32  ;;  %v512_v50 = vmul.f32 %v869_v44, %v428_v33  ;;  %v401_v53 = vmax.f32 %v281_v25, %v341_v27  ;;  %v624_v59 = vmax.f32 %v594_v41, 0.0  ;;  %v345_v3 = vld [vmem:[%s819_s28 + $0x1b0] sm:$0xff]  ;;  %v336_v32 = vld [vmem:[%s819_s28 + $0x168] sm:$0xff]  ;;  %v346_v41 = vld [vmem:[%s819_s28 + $0x1b8] sm:$0xff] }
  0x32   : > { %653 = vst [vmem:[%s908_s10 + $0x70] sm:$0xff] %v623_v40  ;;  %v513_v60 = vmul.f32 %v880_v57, %v429_v42  ;;  %v430_v61 = vmax.f32 %v380_v34, %v390_v45  ;;  %v392_v62 = vmax.f32 %v272_v38, %v332_v39  ;;  %v402_v2 = vmax.f32 %v282_v46, %v342_v47  ;;  %v286_v40 = vld [vmem:[%s814_s25 + $0x1b8] sm:$0xff]  ;;  %v277_v42 = vld [vmem:[%s814_s25 + $0x170] sm:$0xff] }
  0x33   : > { %v625_v4 = vmax.f32 %v595_v49, 0.0  ;;  %v596_v5 = vadd.f32 %v874_v51, %v512_v50  ;;  %v431_v6 = vmax.f32 %v391_v52, %v401_v53  ;;  %654 = vst [vmem:[%s908_s10 + $0x78] sm:$0xff] %v624_v59  ;;  %v393_v16 = vmax.f32 %v273_v48, %v333_v55  ;;  %v287_v48 = vld [vmem:[%s814_s25 + $0x1c0] sm:$0xff]  ;;  %v337_v49 = vld [vmem:[%s819_s28 + $0x170] sm:$0xff] }
  0x34   : > { %v597_v14 = vadd.f32 %v882_v58, %v513_v60  ;;  %v514_v15 = vmul.f32 %v889_v1, %v430_v61  ;;  %v403_v17 = vmax.f32 %v283_v54, %v343_v56  ;;  %v432_v26 = vmax.f32 %v392_v62, %v402_v2  ;;  %v347_v50 = vld [vmem:[%s819_s28 + $0x1c0] sm:$0xff]  ;;  %v288_v62 = vld [vmem:[%s814_s25 + $0x1c8] sm:$0xff]  ;;  %v289_v2 = vld [vmem:[%s814_s25 + $0x1d0] sm:$0xff] }
  0x35   : > { %655 = vst [vmem:[%s908_s10 + $0x80] sm:$0xff] %v625_v4  ;;  %v626_v23 = vmax.f32 %v596_v5, 0.0  ;;  %v515_v25 = vmul.f32 %v821_v11, %v431_v6  ;;  %v394_v27 = vmax.f32 %v274_v63, %v334_v0  ;;  %v404_v39 = vmax.f32 %v284_v7, %v344_v8  ;;  %v348_v63 = vld [vmem:[%s819_s28 + $0x1c8] sm:$0xff]  ;;  %v279_v0 = vld [vmem:[%s814_s25 + $0x180] sm:$0xff] }
  0x36   : > { %v627_v33 = vmax.f32 %v597_v14, 0.0  ;;  %v598_v34 = vadd.f32 %v896_v9, %v514_v15  ;;  %v433_v38 = vmax.f32 %v393_v16, %v403_v17  ;;  %v516_v45 = vmul.f32 %v826_v13, %v432_v26  ;;  %v338_v13 = vld [vmem:[%s819_s28 + $0x178] sm:$0xff]  ;;  %v339_v7 = vld [vmem:[%s819_s28 + $0x180] sm:$0xff]  ;;  %v280_v16 = vld [vmem:[%s814_s25 + $0x188] sm:$0xff] }
  0x37   : > { %656 = vst [vmem:[%s908_s10 + $0x88] sm:$0xff] %v626_v23  ;;  %v599_v11 = vadd.f32 %v823_v12, %v515_v25  ;;  %v395_v46 = vmax.f32 %v275_v10, %v335_v24  ;;  %v405_v47 = vmax.f32 %v285_v22, %v345_v3  ;;  %v434_v54 = vmax.f32 %v394_v27, %v404_v39  ;;  %v278_v12 = vld [vmem:[%s814_s25 + $0x178] sm:$0xff]  ;;  %v340_v17 = vld [vmem:[%s819_s28 + $0x188] sm:$0xff] }
  0x38   : > { %657 = vst [vmem:[%s908_s10 + $0x90] sm:$0xff] %v627_v33  ;;  %v628_v52 = vmax.f32 %v598_v34, 0.0  ;;  %v517_v53 = vmul.f32 %v834_v19, %v433_v38  ;;  %v396_v55 = vmax.f32 %v276_v31, %v336_v32  ;;  %v600_v59 = vadd.f32 %v832_v18, %v516_v45  ;;  %v349_v18 = vld [vmem:[%s819_s28 + $0x1d0] sm:$0xff]  ;;  %v290_v3 = vld [vmem:[%s814_s25 + $0x1d8] sm:$0xff] }
  0x39   : > { %v629_v56 = vmax.f32 %v599_v11, 0.0  ;;  %v435_v60 = vmax.f32 %v395_v46, %v405_v47  ;;  %v406_v61 = vmax.f32 %v286_v40, %v346_v41  ;;  %v518_v4 = vmul.f32 %v838_v21, %v434_v54  ;;  %v350_v23 = vld [vmem:[%s819_s28 + $0x1d8] sm:$0xff] }
  0x3a   : > { %658 = vst [vmem:[%s908_s10 + $0x98] sm:$0xff] %v628_v52  ;;  %v601_v19 = vadd.f32 %v836_v20, %v517_v53  ;;  %v397_v5 = vmax.f32 %v277_v42, %v337_v49  ;;  %v407_v6 = vmax.f32 %v287_v48, %v347_v50  ;;  %v630_v8 = vmax.f32 %v600_v59, 0.0 }
  0x3b   : > { %659 = vst [vmem:[%s908_s10 + $0xa0] sm:$0xff] %v629_v56  ;;  %v519_v10 = vmul.f32 %v851_v29, %v435_v60  ;;  %v436_v14 = vmax.f32 %v396_v55, %v406_v61  ;;  %v398_v15 = vmax.f32 %v278_v12, %v338_v13  ;;  %v602_v21 = vadd.f32 %v849_v28, %v518_v4 }
  0x3c   : > { %v631_v20 = vmax.f32 %v601_v19, 0.0  ;;  %v437_v22 = vmax.f32 %v397_v5, %v407_v6  ;;  %v408_v24 = vmax.f32 %v288_v62, %v348_v63  ;;  %660 = vst [vmem:[%s908_s10 + $0xa8] sm:$0xff] %v630_v8  ;;  %v399_v29 = vmax.f32 %v279_v0, %v339_v7 }
  0x3d   : > { %v603_v25 = vadd.f32 %v853_v30, %v519_v10  ;;  %v520_v26 = vmul.f32 %v858_v35, %v436_v14  ;;  %v409_v27 = vmax.f32 %v289_v2, %v349_v18  ;;  %v632_v31 = vmax.f32 %v602_v21, 0.0 }
  0x3e   : > { %661 = vst [vmem:[%s908_s10 + $0xb0] sm:$0xff] %v631_v20  ;;  %v521_v32 = vmul.f32 %v862_v37, %v437_v22  ;;  %v438_v33 = vmax.f32 %v398_v15, %v408_v24  ;;  %v400_v28 = vmax.f32 %v280_v16, %v340_v17  ;;  %v410_v40 = vmax.f32 %v290_v3, %v350_v23 }
  0x3f   : > { %v633_v34 = vmax.f32 %v603_v25, 0.0  ;;  %v604_v38 = vadd.f32 %v860_v36, %v520_v26  ;;  %v439_v39 = vmax.f32 %v399_v29, %v409_v27  ;;  %662 = vst [vmem:[%s908_s10 + $0xb8] sm:$0xff] %v632_v31 }
  0x40   : > { %v605_v30 = vadd.f32 %v867_v43, %v521_v32  ;;  %v522_v35 = vmul.f32 %v869_v44, %v438_v33  ;;  %v440_v42 = vmax.f32 %v400_v28, %v410_v40 }
  0x41   : > { %663 = vst [vmem:[%s908_s10 + $0xc0] sm:$0xff] %v633_v34  ;;  %v634_v41 = vmax.f32 %v604_v38, 0.0  ;;  %v523_v37 = vmul.f32 %v880_v57, %v439_v39 }
  0x42   : > { %v635_v11 = vmax.f32 %v605_v30, 0.0  ;;  %v606_v45 = vadd.f32 %v874_v51, %v522_v35  ;;  %v524_v46 = vmul.f32 %v889_v1, %v440_v42 }
  0x43   : > { %664 = vst [vmem:[%s908_s10 + $0xc8] sm:$0xff] %v634_v41  ;;  %v607_v36 = vadd.f32 %v882_v58, %v523_v37 }
  0x44   : > { %665 = vst [vmem:[%s908_s10 + $0xd0] sm:$0xff] %v635_v11  ;;  %v636_v47 = vmax.f32 %v606_v45, 0.0  ;;  %v608_v48 = vadd.f32 %v896_v9, %v524_v46 }
  0x45   : > { %v637_v43 = vmax.f32 %v607_v36, 0.0 }
  0x46   : > { %666 = vst [vmem:[%s908_s10 + $0xd8] sm:$0xff] %v636_v47  ;;  %v638_v44 = vmax.f32 %v608_v48, 0.0 }
  0x47   : > { %667 = vst [vmem:[%s908_s10 + $0xe0] sm:$0xff] %v637_v43 }
  0x48   : > { %668 = vst [vmem:[%s908_s10 + $0xe8] sm:$0xff] %v638_v44 }
  0x49 PF: > { %s14_s15 = sadd.s32 1, %s765_s15  }
  0x4a   : > { %p11_p4 = scmp.ge.s32.totalorder %s14_s15, 4  }
  0x4c   :  { %13 = sbr.rel (!%p11_p4) target bundleno = 1 (0x1), region = 69 }

// kernel: dronet_forward.11
= control target key start
LH: loop header
LB: loop body
LE: loop exit
PB: predicated region body
PF: predicated region fallthrough
CT: control target
= control target key end

     0   :  { %s1782_s21 = smov 0   ;;  %s2383_s0 = inlined_call_operand.vmem [shape: f32[480,288], index: 0, kind: input, shape index: {}]   ;;  %s2384_s1 = inlined_call_operand.vmem [shape: f32[288,32], index: 1, kind: input, shape index: {}]   ;;  %s2385_s2 = inlined_call_operand.vmem [shape: f32[32,32], index: 2, kind: input, shape index: {}]   ;;  %s2386_s3 = inlined_call_operand.vmem [shape: f32[1,32], index: 3, kind: input, shape index: {}]   ;;  %s2387_s4 = inlined_call_operand.vmem [shape: f32[1,32], index: 4, kind: input, shape index: {}]   ;;  %s2388_s5 = inlined_call_operand.vmem [shape: f32[480,32], index: 5, kind: output, shape index: {0}]   ;;  %s2389_s6 = inlined_call_operand.vmem [shape: f32[480,32], index: 6, kind: output, shape index: {1}]  }
   0x1 LB: > { %s1482_s22 = sadd.s32 4294967295, %s1744_s21   ;;  %p1486_p0 = scmp.ge.s32.totalorder %s1744_s21, 1  ;;  %s1744_s21 = sphi %s1782_s21, %s17_s21  }
   0x2   : > { %p217_p1 = scmp.lt.s32.totalorder %s1744_s21, 3 }
   0x4   : > { %p218_p2 = pnand %p1486_p0, %p217_p1 }
   0x5   : > { %s253_s25 = smul.u32 (!%p218_p2), 30, %s1482_s22 }
   0x6   : > { %221 = sbr.rel (%p218_p2) target bundleno = 394 (0x18a), region = 40 }
   0x7   : > { %p254_p3 = scmp.lt.s32.totalorder (!%p218_p2), %s253_s25, 59 }
   0xb   : > { %v377_v0 = vld [vmem:[%s2384_s1 + $0x78] sm:$0xff]  ;;  %v1746_v1 = vmov 0.0   ;;  %v376_v2 = vld [vmem:[%s2384_s1 + $0x70] sm:$0xff]  ;;  %v375_v3 = vld [vmem:[%s2384_s1 + $0x68] sm:$0xff]  ;;  %s2391_s25 = smov (!%p254_p3, %s253_s25), 59  ;;  %vm398_vm0 = vcmask 261120  }
   0xc   : > { %489 = vmatprep.subr.mxu0 %v1746_v1  ;;  %v374_v4 = vld [vmem:[%s2384_s1 + $0x60] sm:$0xff]  ;;  %v373_v5 = vld [vmem:[%s2384_s1 + $0x58] sm:$0xff]  ;;  %s1728_s10 = smul.u32 24, %s2391_s25  ;;  %v372_v6 = vld [vmem:[%s2384_s1 + $0x50] sm:$0xff]  ;;  %s1488_s26 = sshll.u32 %s2391_s25, 3 }
   0xd   : > { %490 = vmatpush1.msra.mxu0 %v377_v0  ;;  %v397_v7 = vld [vmem:[%s2384_s1 + $0x118] sm:$0xff]  ;;  %v396_v8 = vld [vmem:[%s2384_s1 + $0x110] sm:$0xff]  ;;  %v371_v9 = vld [vmem:[%s2384_s1 + $0x48] sm:$0xff]  ;;  %s2162_s29 = scalar_lea.vmem %s2388_s5, %s1488_s26  ;;  %s2180_s7 = scalar_lea.vmem %s2389_s6, %s1488_s26 }
   0xe   : > { %491 = vmatprep.subr.mxu0 %v1746_v1  ;;  %1622 = vmatprep.subr.mxu1 %v397_v7  ;;  %v395_v10 = vld [vmem:[%s2384_s1 + $0x108] sm:$0xff]  ;;  %s1832_s24 = scalar_lea.vmem %s2383_s0, %s1728_s10  ;;  %v370_v11 = vld [vmem:[%s2384_s1 + $0x40] sm:$0xff]  ;;  %v369_v13 = vld [vmem:[%s2384_s1 + $0x38] sm:$0xff] }
   0xf   : > { %492 = vmatpush1.msra.mxu0 %v376_v2  ;;  %1623 = vmatpush3.msra.mxu1 %v397_v7  ;;  %v394_v12 = vld [vmem:[%s2384_s1 + $0x100] sm:$0xff]  ;;  %v274_v14 = vld [vmem:[%s1832_s24 + $0x10] sm:$0xff]  ;;  %v277_v15 = vld [vmem:[%s1832_s24 + $0x28] sm:$0xff] }
  0x10   : > { %493 = vmatprep.subr.mxu0 %v1746_v1  ;;  %1624 = vmatprep.subr.mxu1 %v396_v8  ;;  %v368_v16 = vld [vmem:[%s2384_s1 + $0x30] sm:$0xff]  ;;  %v1852_v17 = vld [vmem:[%s1832_s24 + $0x8] sm:$0xff]  ;;  %v280_v18 = vld [vmem:[%s1832_s24 + $0x40] sm:$0xff] }
  0x11   : > { %494 = vmatpush1.msra.mxu0 %v375_v3  ;;  %1625 = vmatpush3.msra.mxu1 %v396_v8  ;;  %v367_v19 = vld [vmem:[%s2384_s1 + $0x28] sm:$0xff]  ;;  %v1056_v20 = vld [vmem:[%s2385_s2 + $0x18] sm:$0xff]  ;;  %v366_v22 = vld [vmem:[%s2384_s1 + $0x20] sm:$0xff] }
  0x12   : > { %495 = vmatprep.subr.mxu0 %v1746_v1  ;;  %1626 = vmatprep.subr.mxu1 %v395_v10  ;;  %v283_v21 = vld [vmem:[%s1832_s24 + $0x58] sm:$0xff]  ;;  %v286_v23 = vld [vmem:[%s1832_s24 + $0x70] sm:$0xff]  ;;  %v289_v26 = vld [vmem:[%s1832_s24 + $0x88] sm:$0xff] }
  0x13   : > { %496 = vmatpush1.msra.mxu0 %v374_v4  ;;  %1627 = vmatpush3.msra.mxu1 %v395_v10  ;;  %v365_v24 = vld [vmem:[%s2384_s1 + $0x18] sm:$0xff]  ;;  %v1055_v25 = vld [vmem:[%s2385_s2 + $0x10] sm:$0xff]  ;;  %v292_v28 = vld [vmem:[%s1832_s24 + $0xa0] sm:$0xff] }
  0x14   : > { %497 = vmatprep.subr.mxu0 %v1746_v1  ;;  %1628 = vmatprep.subr.mxu1 %v394_v12  ;;  %v364_v27 = vld [vmem:[%s2384_s1 + $0x10] sm:$0xff]  ;;  %v363_v29 = vld [vmem:[%s2384_s1 + $0x8] sm:$0xff]  ;;  %v295_v31 = vld [vmem:[%s1832_s24 + $0xb8] sm:$0xff] }
  0x15   : > { %498 = vmatpush1.msra.mxu0 %v373_v5  ;;  %1629 = vmatpush3.msra.mxu1 %v394_v12  ;;  %v1054_v30 = vld [vmem:[%s2385_s2 + $0x8] sm:$0xff]  ;;  %v362_v32 = vld [vmem:[%s2384_s1] sm:$0xff]  ;;  %v298_v33 = vld [vmem:[%s1832_s24 + $0xd0] sm:$0xff] }
  0x16   : > { %499 = vmatprep.subr.mxu0 %v1746_v1  ;;  %1630 = vmatprep.mubr.msk.f32.mxu1 %vm398_vm0, %v274_v14  ;;  %v393_v34 = vld [vmem:[%s2384_s1 + $0xf8] sm:$0xff]  ;;  %v1053_v35 = vld [vmem:[%s2385_s2] sm:$0xff]  ;;  %v301_v36 = vld [vmem:[%s1832_s24 + $0xe8] sm:$0xff] }
  0x17   : > { %500 = vmatpush1.msra.mxu0 %v372_v6  ;;  %1631 = vmatmul.mubr.msk.f32.vlgmr.msra.gmra.mxu1 %vm398_vm0, %v277_v15  ;;  %v392_v37 = vld [vmem:[%s2384_s1 + $0xf0] sm:$0xff]  ;;  %v304_v38 = vld [vmem:[%s1832_s24 + $0x100] sm:$0xff]  ;;  %v391_v39 = vld [vmem:[%s2384_s1 + $0xe8] sm:$0xff] }
  0x18   : > { %501 = vmatprep.subr.mxu0 %v1746_v1  ;;  %553 = vmatprep.mubr.f32.mxu0 %v1852_v17  ;;  %v307_v40 = vld [vmem:[%s1832_s24 + $0x118] sm:$0xff]  ;;  %v390_v41 = vld [vmem:[%s2384_s1 + $0xe0] sm:$0xff]  ;;  %v310_v42 = vld [vmem:[%s1832_s24 + $0x130] sm:$0xff] }
  0x19   : > { %502 = vmatpush1.msra.mxu0 %v371_v9  ;;  %1633 = vmatprep.mubr.msk.f32.mxu1 %vm398_vm0, %v280_v18  ;;  %v389_v43 = vld [vmem:[%s2384_s1 + $0xd8] sm:$0xff]  ;;  %v313_v44 = vld [vmem:[%s1832_s24 + $0x148] sm:$0xff]  ;;  %v388_v45 = vld [vmem:[%s2384_s1 + $0xd0] sm:$0xff] }
  0x1a   : > { %503 = vmatprep.subr.mxu0 %v1746_v1  ;;  %1675 = vmatprep.subr.mxu1 %v1056_v20  ;;  %v316_v46 = vld [vmem:[%s1832_s24 + $0x160] sm:$0xff]  ;;  %v387_v47 = vld [vmem:[%s2384_s1 + $0xc8] sm:$0xff]  ;;  %v319_v48 = vld [vmem:[%s1832_s24 + $0x178] sm:$0xff] }
  0x1b   : > { %504 = vmatpush1.msra.mxu0 %v370_v11  ;;  %1634 = vmatmul.mubr.msk.f32.gmra.mxu1 %vm398_vm0, %v283_v21  ;;  %v386_v49 = vld [vmem:[%s2384_s1 + $0xc0] sm:$0xff]  ;;  %v322_v50 = vld [vmem:[%s1832_s24 + $0x190] sm:$0xff]  ;;  %v385_v51 = vld [vmem:[%s2384_s1 + $0xb8] sm:$0xff] }
  0x1c   : > { %505 = vmatprep.subr.mxu0 %v1746_v1  ;;  %1676 = vmatpush3.msra.mxu1 %v1056_v20  ;;  %v325_v52 = vld [vmem:[%s1832_s24 + $0x1a8] sm:$0xff]  ;;  %v384_v53 = vld [vmem:[%s2384_s1 + $0xb0] sm:$0xff]  ;;  %v328_v54 = vld [vmem:[%s1832_s24 + $0x1c0] sm:$0xff] }
  0x1d   : > { %506 = vmatpush1.msra.mxu0 %v369_v13  ;;  %1636 = vmatprep.mubr.msk.f32.mxu1 %vm398_vm0, %v286_v23  ;;  %v383_v55 = vld [vmem:[%s2384_s1 + $0xa8] sm:$0xff]  ;;  %v331_v56 = vld [vmem:[%s1832_s24 + $0x1d8] sm:$0xff]  ;;  %v382_v57 = vld [vmem:[%s2384_s1 + $0xa0] sm:$0xff] }
  0x1e   : > { %507 = vmatprep.subr.mxu0 %v1746_v1  ;;  %1677 = vmatprep.subr.mxu1 %v1055_v25  ;;  %v334_v58 = vld [vmem:[%s1832_s24 + $0x1f0] sm:$0xff]  ;;  %v381_v59 = vld [vmem:[%s2384_s1 + $0x98] sm:$0xff]  ;;  %v337_v60 = vld [vmem:[%s1832_s24 + $0x208] sm:$0xff] }
  0x1f   : > { %508 = vmatpush1.msra.mxu0 %v368_v16  ;;  %1637 = vmatmul.mubr.msk.f32.gmra.mxu1 %vm398_vm0, %v289_v26  ;;  %v380_v61 = vld [vmem:[%s2384_s1 + $0x90] sm:$0xff]  ;;  %v340_v62 = vld [vmem:[%s1832_s24 + $0x220] sm:$0xff]  ;;  %v379_v63 = vld [vmem:[%s2384_s1 + $0x88] sm:$0xff] }
  0x20   : > { %509 = vmatprep.subr.mxu0 %v1746_v1  ;;  %1639 = vmatprep.mubr.msk.f32.mxu1 %vm398_vm0, %v292_v28  ;;  %v343_v0 = vld [vmem:[%s1832_s24 + $0x238] sm:$0xff]  ;;  %v378_v2 = vld [vmem:[%s2384_s1 + $0x80] sm:$0xff]  ;;  %v346_v3 = vld [vmem:[%s1832_s24 + $0x250] sm:$0xff] }
  0x21   : > { %510 = vmatpush1.msra.mxu0 %v367_v19  ;;  %1678 = vmatpush3.msra.mxu1 %v1055_v25  ;;  %v272_v4 = vld [vmem:[%s1832_s24] sm:$0xff]  ;;  %v349_v6 = vld [vmem:[%s1832_s24 + $0x268] sm:$0xff]  ;;  %v275_v8 = vld [vmem:[%s1832_s24 + $0x18] sm:$0xff] }
  0x22   : > { %511 = vmatprep.subr.mxu0 %v1746_v1  ;;  %1679 = vmatprep.subr.mxu1 %v1054_v30  ;;  %v276_v5 = vld [vmem:[%s1832_s24 + $0x20] sm:$0xff]  ;;  %v279_v9 = vld [vmem:[%s1832_s24 + $0x38] sm:$0xff]  ;;  %v358_v10 = vld [vmem:[%s1832_s24 + $0x2b0] sm:$0xff] }
  0x23   : > { %512 = vmatpush1.msra.mxu0 %v366_v22  ;;  %1640 = vmatmul.mubr.msk.f32.gmra.mxu1 %vm398_vm0, %v295_v31  ;;  %v352_v7 = vld [vmem:[%s1832_s24 + $0x280] sm:$0xff]  ;;  %v278_v11 = vld [vmem:[%s1832_s24 + $0x30] sm:$0xff]  ;;  %v361_v13 = vld [vmem:[%s1832_s24 + $0x2c8] sm:$0xff] }
  0x24   : > { %513 = vmatprep.subr.mxu0 %v1746_v1  ;;  %1642 = vmatprep.mubr.msk.f32.mxu1 %vm398_vm0, %v298_v33  ;;  %v282_v12 = vld [vmem:[%s1832_s24 + $0x50] sm:$0xff]  ;;  %v281_v14 = vld [vmem:[%s1832_s24 + $0x48] sm:$0xff]  ;;  %v284_v16 = vld [vmem:[%s1832_s24 + $0x60] sm:$0xff] }
  0x25   : > { %514 = vmatpush1.msra.mxu0 %v365_v24  ;;  %1680 = vmatpush3.msra.mxu1 %v1054_v30  ;;  %v285_v15 = vld [vmem:[%s1832_s24 + $0x68] sm:$0xff]  ;;  %v288_v18 = vld [vmem:[%s1832_s24 + $0x80] sm:$0xff]  ;;  %v287_v19 = vld [vmem:[%s1832_s24 + $0x78] sm:$0xff] }
  0x26   : > { %515 = vmatprep.subr.mxu0 %v1746_v1  ;;  %1681 = vmatprep.subr.mxu1 %v1053_v35  ;;  %v291_v20 = vld [vmem:[%s1832_s24 + $0x98] sm:$0xff]  ;;  %v294_v21 = vld [vmem:[%s1832_s24 + $0xb0] sm:$0xff]  ;;  %v293_v22 = vld [vmem:[%s1832_s24 + $0xa8] sm:$0xff] }
  0x27   : > { %516 = vmatpush1.msra.mxu0 %v364_v27  ;;  %1643 = vmatmul.mubr.msk.f32.gmra.mxu1 %vm398_vm0, %v301_v36  ;;  %v297_v23 = vld [vmem:[%s1832_s24 + $0xc8] sm:$0xff]  ;;  %v296_v24 = vld [vmem:[%s1832_s24 + $0xc0] sm:$0xff]  ;;  %v303_v26 = vld [vmem:[%s1832_s24 + $0xf8] sm:$0xff] }
  0x28   : > { %517 = vmatprep.subr.mxu0 %v1746_v1  ;;  %1645 = vmatprep.mubr.msk.f32.mxu1 %vm398_vm0, %v304_v38  ;;  %v300_v25 = vld [vmem:[%s1832_s24 + $0xe0] sm:$0xff]  ;;  %v299_v27 = vld [vmem:[%s1832_s24 + $0xd8] sm:$0xff]  ;;  %v306_v28 = vld [vmem:[%s1832_s24 + $0x110] sm:$0xff] }
  0x29   : > { %518 = vmatpush1.msra.mxu0 %v363_v29  ;;  %1682 = vmatpush3.msra.mxu1 %v1053_v35  ;;  %v309_v29 = vld [vmem:[%s1832_s24 + $0x128] sm:$0xff]  ;;  %v302_v30 = vld [vmem:[%s1832_s24 + $0xf0] sm:$0xff]  ;;  %v312_v31 = vld [vmem:[%s1832_s24 + $0x140] sm:$0xff] }
  0x2a   : > { %519 = vmatprep.subr.mxu0 %v1746_v1  ;;  %v305_v33 = vld [vmem:[%s1832_s24 + $0x108] sm:$0xff]  ;;  %v308_v36 = vld [vmem:[%s1832_s24 + $0x120] sm:$0xff]  ;;  %v327_v38 = vld [vmem:[%s1832_s24 + $0x1b8] sm:$0xff] }
  0x2b   : > { %520 = vmatpush1.msra.mxu0 %v362_v32  ;;  %1646 = vmatmul.mubr.msk.f32.gmra.mxu1 %vm398_vm0, %v307_v40  ;;  %v315_v32 = vld [vmem:[%s1832_s24 + $0x158] sm:$0xff]  ;;  %v321_v35 = vld [vmem:[%s1832_s24 + $0x188] sm:$0xff]  ;;  %v330_v40 = vld [vmem:[%s1832_s24 + $0x1d0] sm:$0xff] }
  0x2c   : > { %521 = vmatprep.subr.mxu0 %v1746_v1  ;;  %1648 = vmatprep.mubr.msk.f32.mxu1 %vm398_vm0, %v310_v42  ;;  %v314_v42 = vld [vmem:[%s1832_s24 + $0x150] sm:$0xff] }
  0x2d   : > { %522 = vmatpush2.msra.mxu0 %v393_v34  ;;  %v318_v34 = vld [vmem:[%s1832_s24 + $0x170] sm:$0xff] }
  0x2e   : > { %523 = vmatprep.subr.mxu0 %v1746_v1 }
  0x2f   : > { %524 = vmatpush2.msra.mxu0 %v392_v37  ;;  %1649 = vmatmul.mubr.msk.f32.gmra.mxu1 %vm398_vm0, %v313_v44  ;;  %v324_v37 = vld [vmem:[%s1832_s24 + $0x1a0] sm:$0xff]  ;;  %v339_v44 = vld [vmem:[%s1832_s24 + $0x218] sm:$0xff] }
  0x30   : > { %525 = vmatprep.subr.mxu0 %v1746_v1  ;;  %1651 = vmatprep.mubr.msk.f32.mxu1 %vm398_vm0, %v316_v46  ;;  %v342_v46 = vld [vmem:[%s1832_s24 + $0x230] sm:$0xff] }
  0x31   : > { %526 = vmatpush2.msra.mxu0 %v391_v39  ;;  %v311_v39 = vld [vmem:[%s1832_s24 + $0x138] sm:$0xff] }
  0x32   : > { %527 = vmatprep.subr.mxu0 %v1746_v1 }
  0x33   : > { %528 = vmatpush2.msra.mxu0 %v390_v41  ;;  %1652 = vmatmul.mubr.msk.f32.gmra.mxu1 %vm398_vm0, %v319_v48  ;;  %v333_v41 = vld [vmem:[%s1832_s24 + $0x1e8] sm:$0xff]  ;;  %v320_v48 = vld [vmem:[%s1832_s24 + $0x180] sm:$0xff] }
  0x34   : > { %529 = vmatprep.subr.mxu0 %v1746_v1  ;;  %1654 = vmatprep.mubr.msk.f32.mxu1 %vm398_vm0, %v322_v50  ;;  %v351_v50 = vld [vmem:[%s1832_s24 + $0x278] sm:$0xff] }
  0x35   : > { %530 = vmatpush2.msra.mxu0 %v389_v43  ;;  %v336_v43 = vld [vmem:[%s1832_s24 + $0x200] sm:$0xff] }
  0x36   : > { %531 = vmatprep.subr.mxu0 %v1746_v1 }
  0x37   : > { %532 = vmatpush2.msra.mxu0 %v388_v45  ;;  %1655 = vmatmul.mubr.msk.f32.gmra.mxu1 %vm398_vm0, %v325_v52  ;;  %v317_v45 = vld [vmem:[%s1832_s24 + $0x168] sm:$0xff]  ;;  %v354_v52 = vld [vmem:[%s1832_s24 + $0x290] sm:$0xff] }
  0x38   : > { %533 = vmatprep.subr.mxu0 %v1746_v1  ;;  %1657 = vmatprep.mubr.msk.f32.mxu1 %vm398_vm0, %v328_v54  ;;  %v326_v54 = vld [vmem:[%s1832_s24 + $0x1b0] sm:$0xff] }
  0x39   : > { %534 = vmatpush2.msra.mxu0 %v387_v47  ;;  %v345_v47 = vld [vmem:[%s1832_s24 + $0x248] sm:$0xff] }
  0x3a   : > { %535 = vmatprep.subr.mxu0 %v1746_v1 }
  0x3b   : > { %536 = vmatpush2.msra.mxu0 %v386_v49  ;;  %1658 = vmatmul.mubr.msk.f32.gmra.mxu1 %vm398_vm0, %v331_v56  ;;  %v348_v49 = vld [vmem:[%s1832_s24 + $0x260] sm:$0xff]  ;;  %v329_v56 = vld [vmem:[%s1832_s24 + $0x1c8] sm:$0xff] }
  0x3c   : > { %537 = vmatprep.subr.mxu0 %v1746_v1  ;;  %1660 = vmatprep.mubr.msk.f32.mxu1 %vm398_vm0, %v334_v58  ;;  %v335_v58 = vld [vmem:[%s1832_s24 + $0x1f8] sm:$0xff] }
  0x3d   : > { %538 = vmatpush2.msra.mxu0 %v385_v51  ;;  %v323_v51 = vld [vmem:[%s1832_s24 + $0x198] sm:$0xff] }
  0x3e   : > { %539 = vmatprep.subr.mxu0 %v1746_v1 }
  0x3f   : > { %540 = vmatpush2.msra.mxu0 %v384_v53  ;;  %1661 = vmatmul.mubr.msk.f32.gmra.mxu1 %vm398_vm0, %v337_v60  ;;  %v357_v53 = vld [vmem:[%s1832_s24 + $0x2a8] sm:$0xff] }
  0x40   : > { %541 = vmatprep.subr.mxu0 %v1746_v1  ;;  %1663 = vmatprep.mubr.msk.f32.mxu1 %vm398_vm0, %v340_v62  ;;  %v341_v60 = vld [vmem:[%s1832_s24 + $0x228] sm:$0xff]  ;;  %v347_v62 = vld [vmem:[%s1832_s24 + $0x258] sm:$0xff] }
  0x41   : > { %542 = vmatpush2.msra.mxu0 %v383_v55  ;;  %v360_v55 = vld [vmem:[%s1832_s24 + $0x2c0] sm:$0xff] }
  0x42   : > { %543 = vmatprep.subr.mxu0 %v1746_v1 }
  0x43   : > { %544 = vmatpush2.msra.mxu0 %v382_v57  ;;  %1664 = vmatmul.mubr.msk.f32.gmra.mxu1 %vm398_vm0, %v343_v0  ;;  %v332_v57 = vld [vmem:[%s1832_s24 + $0x1e0] sm:$0xff]  ;;  %v353_v0 = vld [vmem:[%s1832_s24 + $0x288] sm:$0xff] }
  0x44   : > { %545 = vmatprep.subr.mxu0 %v1746_v1  ;;  %1666 = vmatprep.mubr.msk.f32.mxu1 %vm398_vm0, %v346_v3  ;;  %v359_v3 = vld [vmem:[%s1832_s24 + $0x2b8] sm:$0xff] }
  0x45   : > { %546 = vmatpush2.msra.mxu0 %v381_v59  ;;  %v338_v59 = vld [vmem:[%s1832_s24 + $0x210] sm:$0xff] }
  0x46   : > { %547 = vmatprep.subr.mxu0 %v1746_v1 }
  0x47   : > { %548 = vmatpush2.msra.mxu0 %v380_v61  ;;  %1667 = vmatmul.mubr.msk.f32.gmra.mxu1 %vm398_vm0, %v349_v6  ;;  %v344_v61 = vld [vmem:[%s1832_s24 + $0x240] sm:$0xff] }
  0x48   : > { %549 = vmatprep.subr.mxu0 %v1746_v1  ;;  %1669 = vmatprep.mubr.msk.f32.mxu1 %vm398_vm0, %v352_v7 }
  0x49   : > { %550 = vmatpush2.msra.mxu0 %v379_v63  ;;  %v350_v63 = vld [vmem:[%s1832_s24 + $0x270] sm:$0xff] }
  0x4a   : > { %551 = vmatprep.subr.mxu0 %v1746_v1  ;;  %v355_v1 = vld [vmem:[%s1832_s24 + $0x298] sm:$0xff] }
  0x4b   : > { %552 = vmatpush2.msra.mxu0 %v378_v2  ;;  %1670 = vmatmul.mubr.msk.f32.gmra.mxu1 %vm398_vm0, %v355_v1  ;;  %v356_v2 = vld [vmem:[%s1832_s24 + $0x2a0] sm:$0xff] }
  0x4c   : > { %554 = vmatmul.mubr.f32.vlgmr.msra.gmra.mxu0 %v272_v4  ;;  %1672 = vmatprep.mubr.msk.f32.mxu1 %vm398_vm0, %v358_v10 }
  0x4d   : > { %558 = vmatprep.mubr.f32.mxu0 %v276_v5 }
  0x4f   : > { %1673 = vmatmul.mubr.msk.f32.gmra.mxu1 %vm398_vm0, %v361_v13 }
  0x50   : > { %559 = vmatmul.mubr.f32.gmra.mxu0 %v275_v8  ;;  %1683 = vmatprep.mubr.msk.f32.mxu1 %vm398_vm0, %v1852_v17  ;;  %v290_v17 = vld [vmem:[%s1832_s24 + $0x90] sm:$0xff] }
  0x51   : > { %563 = vmatprep.mubr.f32.mxu0 %v279_v9 }
  0x53   : > { %1684 = vmatmul.mubr.msk.f32.vlgmr.msra.gmra.mxu1 %vm398_vm0, %v276_v5 }
  0x54   : > { %564 = vmatmul.mubr.f32.gmra.mxu0 %v278_v11  ;;  %1686 = vmatprep.mubr.msk.f32.mxu1 %vm398_vm0, %v279_v9 }
  0x55   : > { %568 = vmatprep.mubr.f32.mxu0 %v282_v12 }
  0x57   : > { %1687 = vmatmul.mubr.msk.f32.gmra.mxu1 %vm398_vm0, %v282_v12 }
  0x58   : > { %569 = vmatmul.mubr.f32.gmra.mxu0 %v281_v14  ;;  %1689 = vmatprep.mubr.msk.f32.mxu1 %vm398_vm0, %v285_v15 }
  0x59   : > { %573 = vmatprep.mubr.f32.mxu0 %v285_v15 }
  0x5b   : > { %1690 = vmatmul.mubr.msk.f32.gmra.mxu1 %vm398_vm0, %v288_v18 }
  0x5c   : > { %574 = vmatmul.mubr.f32.gmra.mxu0 %v284_v16  ;;  %1692 = vmatprep.mubr.msk.f32.mxu1 %vm398_vm0, %v291_v20 }
  0x5d   : > { %578 = vmatprep.mubr.f32.mxu0 %v288_v18 }
  0x5f   : > { %1693 = vmatmul.mubr.msk.f32.gmra.mxu1 %vm398_vm0, %v294_v21 }
  0x60   : > { %579 = vmatmul.mubr.f32.gmra.mxu0 %v287_v19  ;;  %1695 = vmatprep.mubr.msk.f32.mxu1 %vm398_vm0, %v297_v23 }
  0x61   : > { %583 = vmatprep.mubr.f32.mxu0 %v291_v20 }
  0x63   : > { %1696 = vmatmul.mubr.msk.f32.gmra.mxu1 %vm398_vm0, %v300_v25 }
  0x64   : > { %584 = vmatmul.mubr.f32.gmra.mxu0 %v290_v17  ;;  %1698 = vmatprep.mubr.msk.f32.mxu1 %vm398_vm0, %v303_v26 }
  0x65   : > { %588 = vmatprep.mubr.f32.mxu0 %v294_v21 }
  0x67   : > { %1699 = vmatmul.mubr.msk.f32.gmra.mxu1 %vm398_vm0, %v306_v28 }
  0x68   : > { %589 = vmatmul.mubr.f32.gmra.mxu0 %v293_v22  ;;  %1701 = vmatprep.mubr.msk.f32.mxu1 %vm398_vm0, %v309_v29 }
  0x69   : > { %593 = vmatprep.mubr.f32.mxu0 %v297_v23 }
  0x6b   : > { %1702 = vmatmul.mubr.msk.f32.gmra.mxu1 %vm398_vm0, %v312_v31 }
  0x6c   : > { %594 = vmatmul.mubr.f32.gmra.mxu0 %v296_v24  ;;  %1704 = vmatprep.mubr.msk.f32.mxu1 %vm398_vm0, %v315_v32 }
  0x6d   : > { %598 = vmatprep.mubr.f32.mxu0 %v300_v25 }
  0x6f   : > { %1705 = vmatmul.mubr.msk.f32.gmra.mxu1 %vm398_vm0, %v318_v34 }
  0x70   : > { %599 = vmatmul.mubr.f32.gmra.mxu0 %v299_v27  ;;  %1707 = vmatprep.mubr.msk.f32.mxu1 %vm398_vm0, %v321_v35  ;;  %v2143_v27 = vld [vmem:[%s2386_s3] ss:$0 sm:$0xff] }
  0x71   : > { %603 = vmatprep.mubr.f32.mxu0 %v303_v26 }
  0x73   : > { %1708 = vmatmul.mubr.msk.f32.gmra.mxu1 %vm398_vm0, %v324_v37 }
  0x74   : > { %604 = vmatmul.mubr.f32.gmra.mxu0 %v302_v30  ;;  %1710 = vmatprep.mubr.msk.f32.mxu1 %vm398_vm0, %v327_v38  ;;  %v2150_v30 = vld [vmem:[%s2387_s4] ss:$0 sm:$0xff] }
  0x75   : > { %608 = vmatprep.mubr.f32.mxu0 %v306_v28 }
  0x77   : > { %1711 = vmatmul.mubr.msk.f32.gmra.mxu1 %vm398_vm0, %v330_v40 }
  0x78   : > { %609 = vmatmul.mubr.f32.gmra.mxu0 %v305_v33  ;;  %1713 = vmatprep.mubr.msk.f32.mxu1 %vm398_vm0, %v333_v41 }
  0x79   : > { %613 = vmatprep.mubr.f32.mxu0 %v309_v29 }
  0x7b   : > { %1714 = vmatmul.mubr.msk.f32.gmra.mxu1 %vm398_vm0, %v336_v43 }
  0x7c   : > { %614 = vmatmul.mubr.f32.gmra.mxu0 %v308_v36  ;;  %1716 = vmatprep.mubr.msk.f32.mxu1 %vm398_vm0, %v339_v44 }
  0x7d   : > { %618 = vmatprep.mubr.f32.mxu0 %v312_v31 }
  0x7f   : > { %1717 = vmatmul.mubr.msk.f32.gmra.mxu1 %vm398_vm0, %v342_v46 }
  0x80   : > { %619 = vmatmul.mubr.f32.gmra.mxu0 %v311_v39  ;;  %1719 = vmatprep.mubr.msk.f32.mxu1 %vm398_vm0, %v345_v47 }
  0x81   : > { %623 = vmatprep.mubr.f32.mxu0 %v315_v32 }
  0x83   : > { %1720 = vmatmul.mubr.msk.f32.gmra.mxu1 %vm398_vm0, %v348_v49 }
  0x84   : > { %624 = vmatmul.mubr.f32.gmra.mxu0 %v314_v42  ;;  %1722 = vmatprep.mubr.msk.f32.mxu1 %vm398_vm0, %v351_v50 }
  0x85   : > { %628 = vmatprep.mubr.f32.mxu0 %v318_v34 }
  0x87   : > { %1723 = vmatmul.mubr.msk.f32.gmra.mxu1 %vm398_vm0, %v354_v52 }
  0x88   : > { %629 = vmatmul.mubr.f32.gmra.mxu0 %v317_v45  ;;  %1725 = vmatprep.mubr.msk.f32.mxu1 %vm398_vm0, %v357_v53 }
  0x89   : > { %633 = vmatprep.mubr.f32.mxu0 %v321_v35 }
  0x8b   : > { %1726 = vmatmul.mubr.msk.f32.gmra.mxu1 %vm398_vm0, %v360_v55 }
  0x8c   : > { %634 = vmatmul.mubr.f32.gmra.mxu0 %v320_v48 }
  0x8d   : > { %638 = vmatprep.mubr.f32.mxu0 %v324_v37 }
  0x90   : > { %639 = vmatmul.mubr.f32.gmra.mxu0 %v323_v51 }
  0x91   : > { %643 = vmatprep.mubr.f32.mxu0 %v327_v38 }
  0x94   : > { %644 = vmatmul.mubr.f32.gmra.mxu0 %v326_v54 }
  0x95   : > { %648 = vmatprep.mubr.f32.mxu0 %v330_v40 }
  0x98   : > { %649 = vmatmul.mubr.f32.gmra.mxu0 %v329_v56 }
  0x99   : > { %653 = vmatprep.mubr.f32.mxu0 %v333_v41 }
  0x9c   : > { %654 = vmatmul.mubr.f32.gmra.mxu0 %v332_v57 }
  0x9d   : > { %658 = vmatprep.mubr.f32.mxu0 %v336_v43 }
  0xa0   : > { %659 = vmatmul.mubr.f32.gmra.mxu0 %v335_v58 }
  0xa1   : > { %663 = vmatprep.mubr.f32.mxu0 %v339_v44 }
  0xa4   : > { %664 = vmatmul.mubr.f32.gmra.mxu0 %v338_v59 }
  0xa5   : > { %668 = vmatprep.mubr.f32.mxu0 %v342_v46 }
  0xa8   : > { %669 = vmatmul.mubr.f32.gmra.mxu0 %v341_v60 }
  0xa9   : > { %673 = vmatprep.mubr.f32.mxu0 %v345_v47 }
  0xac   : > { %674 = vmatmul.mubr.f32.gmra.mxu0 %v344_v61 }
  0xad   : > { %678 = vmatprep.mubr.f32.mxu0 %v348_v49 }
  0xb0   : > { %679 = vmatmul.mubr.f32.gmra.mxu0 %v347_v62 }
  0xb1   : > { %683 = vmatprep.mubr.f32.mxu0 %v351_v50 }
  0xb4   : > { %684 = vmatmul.mubr.f32.gmra.mxu0 %v350_v63 }
  0xb5   : > { %688 = vmatprep.mubr.f32.mxu0 %v354_v52 }
  0xb8   : > { %689 = vmatmul.mubr.f32.gmra.mxu0 %v353_v0 }
  0xb9   : > { %693 = vmatprep.mubr.f32.mxu0 %v357_v53 }
  0xbc   : > { %694 = vmatmul.mubr.f32.gmra.mxu0 %v356_v2 }
  0xbd   : > { %698 = vmatprep.mubr.f32.mxu0 %v360_v55 }
  0xc0   : > { %699 = vmatmul.mubr.f32.gmra.mxu0 %v359_v3 }
  0xd7   : > { %v1632_v4 = vpop.f32.mrf.mxu1 }
  0xd9   : > { %v770_v5 = vpop.f32.mrf.mxu1 }
  0xdb   : > { %v1635_v6 = vpop.f32.mrf.mxu1 }
  0xdd   : > { %v780_v7 = vpop.f32.mrf.mxu1 }
  0xdf   : > { %v2104_v8 = vpop.f32.mrf.mxu1 }
  0xe1   : > { %v790_v9 = vpop.f32.mrf.mxu1 }
  0xe3   : > { %v2106_v1 = vpop.f32.mrf.mxu1 }
  0xe5   : > { %v2108_v10 = vpop.f32.mrf.mxu1 }
  0xe7   : > { %v2110_v11 = vpop.f32.mrf.mxu1 }
  0xe9   : > { %v2112_v12 = vpop.f32.mrf.mxu1 }
  0xeb   : > { %v2114_v13 = vpop.f32.mrf.mxu1 }
  0xed   : > { %v2116_v14 = vpop.f32.mrf.mxu1 }
  0xef   : > { %v2118_v15 = vpop.f32.mrf.mxu1 }
  0xf1   : > { %v2120_v16 = vpop.f32.mrf.mxu1 }
  0xf3   : > { %v2122_v18 = vpop.f32.mrf.mxu1 }
  0xf5   : > { %v2124_v19 = vpop.f32.mrf.mxu1 }
  0xf7   : > { %v2126_v20 = vpop.f32.mrf.mxu1 }
  0xf9   : > { %v2128_v17 = vpop.f32.mrf.mxu1 }
  0xfb   : > { %v2130_v21 = vpop.f32.mrf.mxu1 }
  0xfd   : > { %v2132_v22 = vpop.f32.mrf.mxu1 }
  0xff   : > { %v2134_v23 = vpop.f32.mrf.mxu1 }
 0x101   : > { %v2136_v24 = vpop.f32.mrf.mxu1 }
 0x103   : > { %v2138_v25 = vpop.f32.mrf.mxu1 }
 0x105   : > { %v2145_v28 = vpop.f32.mrf.mxu1 }
 0x107   : > { %v2152_v32 = vpop.f32.mrf.mxu1 }
 0x109   : > { %v2156_v35 = vpop.f32.mrf.mxu1 }
 0x10b   : > { %v2164_v39 = vpop.f32.mrf.mxu1 }
 0x10c   : > { %v555_v26 = vpop.f32.mrf.mxu0 }
 0x10d   : > { %v771_v29 = vadd.f32 %v770_v5, %v555_v26  ;;  %v2167_v43 = vpop.f32.mrf.mxu1 }
 0x10e   : > { %v557_v31 = vpop.f32.mrf.mxu0 }
 0x10f   : > { %v926_v33 = vmul.f32 %v2143_v27, %v771_v29  ;;  %v2172_v47 = vpop.f32.mrf.mxu1 }
 0x110   : > { %v560_v34 = vpop.f32.mrf.mxu0 }
 0x111   : > { %v963_v36 = vadd.f32 %v2150_v30, %v926_v33  ;;  %v776_v37 = vadd.f32 %v1632_v4, %v560_v34  ;;  %v2175_v51 = vpop.f32.mrf.mxu1 }
 0x112   : > { %v562_v38 = vpop.f32.mrf.mxu0 }
 0x113   : > { %v993_v40 = vmax.f32 %v963_v36, 0.0  ;;  %v927_v41 = vmul.f32 %v2143_v27, %v776_v37  ;;  %v1685_v55 = vpop.f32.mrf.mxu1 }
 0x114   : > { %v565_v42 = vpop.f32.mrf.mxu0  ;;  %1363 = vst.msk [vmem:[%s2180_s7 + $0x8] sm:$0xff] %vm398_vm0, %v1685_v55 }
 0x115   : > { %1023 = vst.msk [vmem:[%s2162_s29] sm:$0xff] %vm398_vm0, %v993_v40  ;;  %v964_v44 = vadd.f32 %v2150_v30, %v927_v41  ;;  %v781_v45 = vadd.f32 %v780_v7, %v565_v42  ;;  %v1213_v59 = vpop.f32.mrf.mxu1 }
 0x116   : > { %v567_v46 = vpop.f32.mrf.mxu0  ;;  %1362 = vst.msk [vmem:[%s2180_s7] sm:$0xff] %vm398_vm0, %v1213_v59 }
 0x117   : > { %v994_v48 = vmax.f32 %v964_v44, 0.0  ;;  %v928_v49 = vmul.f32 %v2143_v27, %v781_v45  ;;  %v1688_v63 = vpop.f32.mrf.mxu1 }
 0x118   : > { %v570_v50 = vpop.f32.mrf.mxu0  ;;  %1365 = vst.msk [vmem:[%s2180_s7 + $0x18] sm:$0xff] %vm398_vm0, %v1688_v63 }
 0x119   : > { %1024 = vst.msk [vmem:[%s2162_s29 + $0x8] sm:$0xff] %vm398_vm0, %v994_v48  ;;  %v965_v52 = vadd.f32 %v2150_v30, %v928_v49  ;;  %v786_v53 = vadd.f32 %v1635_v6, %v570_v50  ;;  %v1223_v4 = vpop.f32.mrf.mxu1 }
 0x11a   : > { %v572_v54 = vpop.f32.mrf.mxu0  ;;  %1364 = vst.msk [vmem:[%s2180_s7 + $0x10] sm:$0xff] %vm398_vm0, %v1223_v4 }
 0x11b   : > { %v995_v56 = vmax.f32 %v965_v52, 0.0  ;;  %v929_v57 = vmul.f32 %v2143_v27, %v786_v53 }
 0x11c   : > { %v575_v58 = vpop.f32.mrf.mxu0 }
 0x11d   : > { %1025 = vst.msk [vmem:[%s2162_s29 + $0x10] sm:$0xff] %vm398_vm0, %v995_v56  ;;  %v966_v60 = vadd.f32 %v2150_v30, %v929_v57  ;;  %v791_v61 = vadd.f32 %v790_v9, %v575_v58  ;;  %v1691_v9 = vpop.f32.mrf.mxu1 }
 0x11e   : > { %v577_v62 = vpop.f32.mrf.mxu0  ;;  %1367 = vst.msk [vmem:[%s2180_s7 + $0x28] sm:$0xff] %vm398_vm0, %v1691_v9 }
 0x11f   : > { %v996_v0 = vmax.f32 %v966_v60, 0.0  ;;  %v930_v2 = vmul.f32 %v2143_v27, %v791_v61  ;;  %v1233_v33 = vpop.f32.mrf.mxu1 }
 0x120   : > { %v580_v3 = vpop.f32.mrf.mxu0  ;;  %1366 = vst.msk [vmem:[%s2180_s7 + $0x20] sm:$0xff] %vm398_vm0, %v1233_v33 }
 0x121   : > { %1026 = vst.msk [vmem:[%s2162_s29 + $0x18] sm:$0xff] %vm398_vm0, %v996_v0  ;;  %v967_v5 = vadd.f32 %v2150_v30, %v930_v2  ;;  %v796_v6 = vadd.f32 %v2104_v8, %v580_v3  ;;  %v1694_v37 = vpop.f32.mrf.mxu1 }
 0x122   : > { %v582_v7 = vpop.f32.mrf.mxu0  ;;  %1369 = vst.msk [vmem:[%s2180_s7 + $0x38] sm:$0xff] %vm398_vm0, %v1694_v37 }
 0x123   : > { %v997_v26 = vmax.f32 %v967_v5, 0.0  ;;  %v931_v29 = vmul.f32 %v2143_v27, %v796_v6  ;;  %v1243_v42 = vpop.f32.mrf.mxu1 }
 0x124   : > { %v585_v31 = vpop.f32.mrf.mxu0  ;;  %1368 = vst.msk [vmem:[%s2180_s7 + $0x30] sm:$0xff] %vm398_vm0, %v1243_v42 }
 0x125   : > { %1027 = vst.msk [vmem:[%s2162_s29 + $0x20] sm:$0xff] %vm398_vm0, %v997_v26  ;;  %v968_v34 = vadd.f32 %v2150_v30, %v931_v29  ;;  %v801_v8 = vadd.f32 %v2108_v10, %v585_v31  ;;  %v1697_v46 = vpop.f32.mrf.mxu1 }
 0x126   : > { %v587_v36 = vpop.f32.mrf.mxu0  ;;  %1371 = vst.msk [vmem:[%s2180_s7 + $0x48] sm:$0xff] %vm398_vm0, %v1697_v46 }
 0x127   : > { %v998_v38 = vmax.f32 %v968_v34, 0.0  ;;  %v932_v40 = vmul.f32 %v2143_v27, %v801_v8  ;;  %v1253_v52 = vpop.f32.mrf.mxu1 }
 0x128   : > { %v590_v41 = vpop.f32.mrf.mxu0  ;;  %1370 = vst.msk [vmem:[%s2180_s7 + $0x40] sm:$0xff] %vm398_vm0, %v1253_v52 }
 0x129   : > { %1028 = vst.msk [vmem:[%s2162_s29 + $0x28] sm:$0xff] %vm398_vm0, %v998_v38  ;;  %v969_v44 = vadd.f32 %v2150_v30, %v932_v40  ;;  %v806_v10 = vadd.f32 %v2106_v1, %v590_v41  ;;  %v1700_v55 = vpop.f32.mrf.mxu1 }
 0x12a   : > { %v592_v45 = vpop.f32.mrf.mxu0  ;;  %1373 = vst.msk [vmem:[%s2180_s7 + $0x58] sm:$0xff] %vm398_vm0, %v1700_v55 }
 0x12b   : > { %v999_v48 = vmax.f32 %v969_v44, 0.0  ;;  %v933_v49 = vmul.f32 %v2143_v27, %v806_v10  ;;  %v1263_v59 = vpop.f32.mrf.mxu1 }
 0x12c   : > { %v595_v50 = vpop.f32.mrf.mxu0  ;;  %1372 = vst.msk [vmem:[%s2180_s7 + $0x50] sm:$0xff] %vm398_vm0, %v1263_v59 }
 0x12d   : > { %1029 = vst.msk [vmem:[%s2162_s29 + $0x30] sm:$0xff] %vm398_vm0, %v999_v48  ;;  %v970_v53 = vadd.f32 %v2150_v30, %v933_v49  ;;  %v811_v1 = vadd.f32 %v2112_v12, %v595_v50  ;;  %v1703_v62 = vpop.f32.mrf.mxu1 }
 0x12e   : > { %v597_v54 = vpop.f32.mrf.mxu0  ;;  %1375 = vst.msk [vmem:[%s2180_s7 + $0x68] sm:$0xff] %vm398_vm0, %v1703_v62 }
 0x12f   : > { %v1000_v56 = vmax.f32 %v970_v53, 0.0  ;;  %v934_v57 = vmul.f32 %v2143_v27, %v811_v1  ;;  %v1273_v3 = vpop.f32.mrf.mxu1 }
 0x130   : > { %v600_v58 = vpop.f32.mrf.mxu0  ;;  %1374 = vst.msk [vmem:[%s2180_s7 + $0x60] sm:$0xff] %vm398_vm0, %v1273_v3 }
 0x131   : > { %1030 = vst.msk [vmem:[%s2162_s29 + $0x38] sm:$0xff] %vm398_vm0, %v1000_v56  ;;  %v971_v60 = vadd.f32 %v2150_v30, %v934_v57  ;;  %v816_v12 = vadd.f32 %v2110_v11, %v600_v58  ;;  %v1706_v6 = vpop.f32.mrf.mxu1 }
 0x132   : > { %v602_v61 = vpop.f32.mrf.mxu0  ;;  %1377 = vst.msk [vmem:[%s2180_s7 + $0x78] sm:$0xff] %vm398_vm0, %v1706_v6 }
 0x133   : > { %v1001_v63 = vmax.f32 %v971_v60, 0.0  ;;  %v935_v0 = vmul.f32 %v2143_v27, %v816_v12  ;;  %v1283_v29 = vpop.f32.mrf.mxu1 }
 0x134   : > { %v605_v2 = vpop.f32.mrf.mxu0  ;;  %1376 = vst.msk [vmem:[%s2180_s7 + $0x70] sm:$0xff] %vm398_vm0, %v1283_v29 }
 0x135   : > { %1031 = vst.msk [vmem:[%s2162_s29 + $0x40] sm:$0xff] %vm398_vm0, %v1001_v63  ;;  %v972_v4 = vadd.f32 %v2150_v30, %v935_v0  ;;  %v821_v11 = vadd.f32 %v2116_v14, %v605_v2  ;;  %v1709_v34 = vpop.f32.mrf.mxu1 }
 0x136   : > { %v607_v5 = vpop.f32.mrf.mxu0  ;;  %1379 = vst.msk [vmem:[%s2180_s7 + $0x88] sm:$0xff] %vm398_vm0, %v1709_v34 }
 0x137   : > { %v1002_v7 = vmax.f32 %v972_v4, 0.0  ;;  %v936_v9 = vmul.f32 %v2143_v27, %v821_v11  ;;  %v1293_v38 = vpop.f32.mrf.mxu1 }
 0x138   : > { %v610_v26 = vpop.f32.mrf.mxu0  ;;  %1378 = vst.msk [vmem:[%s2180_s7 + $0x80] sm:$0xff] %vm398_vm0, %v1293_v38 }
 0x139   : > { %1032 = vst.msk [vmem:[%s2162_s29 + $0x48] sm:$0xff] %vm398_vm0, %v1002_v7  ;;  %v973_v31 = vadd.f32 %v2150_v30, %v936_v9  ;;  %v826_v14 = vadd.f32 %v2114_v13, %v610_v26  ;;  %v1712_v42 = vpop.f32.mrf.mxu1 }
 0x13a   : > { %v612_v33 = vpop.f32.mrf.mxu0  ;;  %1381 = vst.msk [vmem:[%s2180_s7 + $0x98] sm:$0xff] %vm398_vm0, %v1712_v42 }
 0x13b   : > { %v1003_v8 = vmax.f32 %v973_v31, 0.0  ;;  %v937_v36 = vmul.f32 %v2143_v27, %v826_v14  ;;  %v1303_v46 = vpop.f32.mrf.mxu1 }
 0x13c   : > { %v615_v37 = vpop.f32.mrf.mxu0  ;;  %1380 = vst.msk [vmem:[%s2180_s7 + $0x90] sm:$0xff] %vm398_vm0, %v1303_v46 }
 0x13d   : > { %1033 = vst.msk [vmem:[%s2162_s29 + $0x50] sm:$0xff] %vm398_vm0, %v1003_v8  ;;  %v974_v40 = vadd.f32 %v2150_v30, %v937_v36  ;;  %v831_v13 = vadd.f32 %v2120_v16, %v615_v37  ;;  %v1715_v50 = vpop.f32.mrf.mxu1 }
 0x13e   : > { %v617_v41 = vpop.f32.mrf.mxu0  ;;  %1383 = vst.msk [vmem:[%s2180_s7 + $0xa8] sm:$0xff] %vm398_vm0, %v1715_v50 }
 0x13f   : > { %v1004_v44 = vmax.f32 %v974_v40, 0.0  ;;  %v938_v10 = vmul.f32 %v2143_v27, %v831_v13  ;;  %v1313_v54 = vpop.f32.mrf.mxu1 }
 0x140   : > { %v620_v45 = vpop.f32.mrf.mxu0  ;;  %1382 = vst.msk [vmem:[%s2180_s7 + $0xa0] sm:$0xff] %vm398_vm0, %v1313_v54 }
 0x141   : > { %1034 = vst.msk [vmem:[%s2162_s29 + $0x58] sm:$0xff] %vm398_vm0, %v1004_v44  ;;  %v975_v48 = vadd.f32 %v2150_v30, %v938_v10  ;;  %v836_v16 = vadd.f32 %v2118_v15, %v620_v45  ;;  %v1718_v57 = vpop.f32.mrf.mxu1 }
 0x142   : > { %v622_v49 = vpop.f32.mrf.mxu0  ;;  %1385 = vst.msk [vmem:[%s2180_s7 + $0xb8] sm:$0xff] %vm398_vm0, %v1718_v57 }
 0x143   : > { %v1005_v52 = vmax.f32 %v975_v48, 0.0  ;;  %v939_v53 = vmul.f32 %v2143_v27, %v836_v16  ;;  %v1323_v12 = vpop.f32.mrf.mxu1 }
 0x144   : > { %v625_v1 = vpop.f32.mrf.mxu0  ;;  %1384 = vst.msk [vmem:[%s2180_s7 + $0xb0] sm:$0xff] %vm398_vm0, %v1323_v12 }
 0x145   : > { %1035 = vst.msk [vmem:[%s2162_s29 + $0x60] sm:$0xff] %vm398_vm0, %v1005_v52  ;;  %v976_v55 = vadd.f32 %v2150_v30, %v939_v53  ;;  %v841_v15 = vadd.f32 %v2124_v19, %v625_v1  ;;  %v1721_v63 = vpop.f32.mrf.mxu1 }
 0x146   : > { %v627_v56 = vpop.f32.mrf.mxu0  ;;  %1387 = vst.msk [vmem:[%s2180_s7 + $0xc8] sm:$0xff] %vm398_vm0, %v1721_v63 }
 0x147   : > { %v1006_v58 = vmax.f32 %v976_v55, 0.0  ;;  %v940_v59 = vmul.f32 %v2143_v27, %v841_v15  ;;  %v1333_v4 = vpop.f32.mrf.mxu1 }
 0x148   : > { %v630_v60 = vpop.f32.mrf.mxu0  ;;  %1386 = vst.msk [vmem:[%s2180_s7 + $0xc0] sm:$0xff] %vm398_vm0, %v1333_v4 }
 0x149   : > { %1036 = vst.msk [vmem:[%s2162_s29 + $0x68] sm:$0xff] %vm398_vm0, %v1006_v58  ;;  %v977_v61 = vadd.f32 %v2150_v30, %v940_v59  ;;  %v846_v19 = vadd.f32 %v2122_v18, %v630_v60  ;;  %v1724_v6 = vpop.f32.mrf.mxu1 }
 0x14a   : > { %v632_v62 = vpop.f32.mrf.mxu0  ;;  %1389 = vst.msk [vmem:[%s2180_s7 + $0xd8] sm:$0xff] %vm398_vm0, %v1724_v6 }
 0x14b   : > { %v1007_v0 = vmax.f32 %v977_v61, 0.0  ;;  %v941_v2 = vmul.f32 %v2143_v27, %v846_v19  ;;  %v1343_v29 = vpop.f32.mrf.mxu1 }
 0x14c   : > { %v635_v3 = vpop.f32.mrf.mxu0  ;;  %1388 = vst.msk [vmem:[%s2180_s7 + $0xd0] sm:$0xff] %vm398_vm0, %v1343_v29 }
 0x14d   : > { %1037 = vst.msk [vmem:[%s2162_s29 + $0x70] sm:$0xff] %vm398_vm0, %v1007_v0  ;;  %v978_v11 = vadd.f32 %v2150_v30, %v941_v2  ;;  %v851_v18 = vadd.f32 %v2128_v17, %v635_v3  ;;  %v1727_v33 = vpop.f32.mrf.mxu1 }
 0x14e   : > { %v637_v5 = vpop.f32.mrf.mxu0  ;;  %1391 = vst.msk [vmem:[%s2180_s7 + $0xe8] sm:$0xff] %vm398_vm0, %v1727_v33 }
 0x14f   : > { %v1008_v7 = vmax.f32 %v978_v11, 0.0  ;;  %v942_v9 = vmul.f32 %v2143_v27, %v851_v18  ;;  %v1353_v37 = vpop.f32.mrf.mxu1 }
 0x150   : > { %v640_v26 = vpop.f32.mrf.mxu0  ;;  %1390 = vst.msk [vmem:[%s2180_s7 + $0xe0] sm:$0xff] %vm398_vm0, %v1353_v37 }
 0x151   : > { %1038 = vst.msk [vmem:[%s2162_s29 + $0x78] sm:$0xff] %vm398_vm0, %v1008_v7  ;;  %v979_v31 = vadd.f32 %v2150_v30, %v942_v9  ;;  %v856_v17 = vadd.f32 %v2126_v20, %v640_v26 }
 0x152   : > { %v642_v14 = vpop.f32.mrf.mxu0 }
 0x153   : > { %v1009_v34 = vmax.f32 %v979_v31, 0.0  ;;  %v943_v8 = vmul.f32 %v2143_v27, %v856_v17 }
 0x154   : > { %v645_v36 = vpop.f32.mrf.mxu0 }
 0x155   : > { %1039 = vst.msk [vmem:[%s2162_s29 + $0x80] sm:$0xff] %vm398_vm0, %v1009_v34  ;;  %v980_v38 = vadd.f32 %v2150_v30, %v943_v8  ;;  %v861_v40 = vadd.f32 %v2132_v22, %v645_v36 }
 0x156   : > { %v647_v20 = vpop.f32.mrf.mxu0 }
 0x157   : > { %v1010_v13 = vmax.f32 %v980_v38, 0.0  ;;  %v944_v41 = vmul.f32 %v2143_v27, %v861_v40 }
 0x158   : > { %v650_v42 = vpop.f32.mrf.mxu0 }
 0x159   : > { %1040 = vst.msk [vmem:[%s2162_s29 + $0x88] sm:$0xff] %vm398_vm0, %v1010_v13  ;;  %v981_v44 = vadd.f32 %v2150_v30, %v944_v41  ;;  %v866_v10 = vadd.f32 %v2130_v21, %v650_v42 }
 0x15a   : > { %v652_v45 = vpop.f32.mrf.mxu0 }
 0x15b   : > { %v1011_v46 = vmax.f32 %v981_v44, 0.0  ;;  %v945_v48 = vmul.f32 %v2143_v27, %v866_v10 }
 0x15c   : > { %v655_v22 = vpop.f32.mrf.mxu0 }
 0x15d   : > { %1041 = vst.msk [vmem:[%s2162_s29 + $0x90] sm:$0xff] %vm398_vm0, %v1011_v46  ;;  %v982_v16 = vadd.f32 %v2150_v30, %v945_v48  ;;  %v871_v49 = vadd.f32 %v2136_v24, %v655_v22 }
 0x15e   : > { %v657_v50 = vpop.f32.mrf.mxu0 }
 0x15f   : > { %v1012_v52 = vmax.f32 %v982_v16, 0.0  ;;  %v946_v53 = vmul.f32 %v2143_v27, %v871_v49 }
 0x160   : > { %v660_v1 = vpop.f32.mrf.mxu0 }
 0x161   : > { %1042 = vst.msk [vmem:[%s2162_s29 + $0x98] sm:$0xff] %vm398_vm0, %v1012_v52  ;;  %v983_v21 = vadd.f32 %v2150_v30, %v946_v53  ;;  %v876_v54 = vadd.f32 %v2134_v23, %v660_v1 }
 0x162   : > { %v662_v55 = vpop.f32.mrf.mxu0 }
 0x163   : > { %v1013_v15 = vmax.f32 %v983_v21, 0.0  ;;  %v947_v56 = vmul.f32 %v2143_v27, %v876_v54 }
 0x164   : > { %v665_v57 = vpop.f32.mrf.mxu0 }
 0x165   : > { %1043 = vst.msk [vmem:[%s2162_s29 + $0xa0] sm:$0xff] %vm398_vm0, %v1013_v15  ;;  %v984_v24 = vadd.f32 %v2150_v30, %v947_v56  ;;  %v881_v58 = vadd.f32 %v2145_v28, %v665_v57 }
 0x166   : > { %v667_v59 = vpop.f32.mrf.mxu0 }
 0x167   : > { %v1014_v60 = vmax.f32 %v984_v24, 0.0  ;;  %v948_v12 = vmul.f32 %v2143_v27, %v881_v58 }
 0x168   : > { %v670_v61 = vpop.f32.mrf.mxu0 }
 0x169   : > { %1044 = vst.msk [vmem:[%s2162_s29 + $0xa8] sm:$0xff] %vm398_vm0, %v1014_v60  ;;  %v985_v23 = vadd.f32 %v2150_v30, %v948_v12  ;;  %v886_v19 = vadd.f32 %v2138_v25, %v670_v61 }
 0x16a   : > { %v672_v62 = vpop.f32.mrf.mxu0 }
 0x16b   : > { %v1015_v63 = vmax.f32 %v985_v23, 0.0  ;;  %v949_v0 = vmul.f32 %v2143_v27, %v886_v19 }
 0x16c   : > { %v675_v2 = vpop.f32.mrf.mxu0 }
 0x16d   : > { %1045 = vst.msk [vmem:[%s2162_s29 + $0xb0] sm:$0xff] %vm398_vm0, %v1015_v63  ;;  %v986_v28 = vadd.f32 %v2150_v30, %v949_v0  ;;  %v891_v3 = vadd.f32 %v2156_v35, %v675_v2 }
 0x16e   : > { %v677_v4 = vpop.f32.mrf.mxu0 }
 0x16f   : > { %v1016_v11 = vmax.f32 %v986_v28, 0.0  ;;  %v950_v18 = vmul.f32 %v2143_v27, %v891_v3 }
 0x170   : > { %v680_v5 = vpop.f32.mrf.mxu0 }
 0x171   : > { %1046 = vst.msk [vmem:[%s2162_s29 + $0xb8] sm:$0xff] %vm398_vm0, %v1016_v11  ;;  %v987_v25 = vadd.f32 %v2150_v30, %v950_v18  ;;  %v896_v6 = vadd.f32 %v2152_v32, %v680_v5 }
 0x172   : > { %v682_v7 = vpop.f32.mrf.mxu0 }
 0x173   : > { %v1017_v9 = vmax.f32 %v987_v25, 0.0  ;;  %v951_v26 = vmul.f32 %v2143_v27, %v896_v6 }
 0x174   : > { %v685_v29 = vpop.f32.mrf.mxu0 }
 0x175   : > { %1047 = vst.msk [vmem:[%s2162_s29 + $0xc0] sm:$0xff] %vm398_vm0, %v1017_v9  ;;  %v988_v35 = vadd.f32 %v2150_v30, %v951_v26  ;;  %v901_v31 = vadd.f32 %v2167_v43, %v685_v29 }
 0x176   : > { %v687_v17 = vpop.f32.mrf.mxu0 }
 0x177   : > { %v1018_v14 = vmax.f32 %v988_v35, 0.0  ;;  %v952_v33 = vmul.f32 %v2143_v27, %v901_v31 }
 0x178   : > { %v690_v34 = vpop.f32.mrf.mxu0 }
 0x179   : > { %1048 = vst.msk [vmem:[%s2162_s29 + $0xc8] sm:$0xff] %vm398_vm0, %v1018_v14  ;;  %v989_v32 = vadd.f32 %v2150_v30, %v952_v33  ;;  %v906_v8 = vadd.f32 %v2164_v39, %v690_v34 }
 0x17a   : > { %v692_v36 = vpop.f32.mrf.mxu0 }
 0x17b   : > { %v1019_v37 = vmax.f32 %v989_v32, 0.0  ;;  %v953_v38 = vmul.f32 %v2143_v27, %v906_v8 }
 0x17c   : > { %v695_v40 = vpop.f32.mrf.mxu0 }
 0x17d   : > { %1049 = vst.msk [vmem:[%s2162_s29 + $0xd0] sm:$0xff] %vm398_vm0, %v1019_v37  ;;  %v990_v43 = vadd.f32 %v2150_v30, %v953_v38  ;;  %v911_v20 = vadd.f32 %v2175_v51, %v695_v40 }
 0x17e   : > { %v697_v13 = vpop.f32.mrf.mxu0 }
 0x17f   : > { %v1020_v41 = vmax.f32 %v990_v43, 0.0  ;;  %v954_v42 = vmul.f32 %v2143_v27, %v911_v20 }
 0x180   : > { %v700_v44 = vpop.f32.mrf.mxu0 }
 0x181   : > { %1050 = vst.msk [vmem:[%s2162_s29 + $0xd8] sm:$0xff] %vm398_vm0, %v1020_v41  ;;  %v991_v39 = vadd.f32 %v2150_v30, %v954_v42  ;;  %v916_v10 = vadd.f32 %v2172_v47, %v700_v44 }
 0x182   : > { %v702_v45 = vpop.f32.mrf.mxu0 }
 0x183   : > { %v1021_v46 = vmax.f32 %v991_v39, 0.0  ;;  %v955_v48 = vmul.f32 %v2143_v27, %v916_v10 }
 0x185   : > { %1051 = vst.msk [vmem:[%s2162_s29 + $0xe0] sm:$0xff] %vm398_vm0, %v1021_v46  ;;  %v992_v22 = vadd.f32 %v2150_v30, %v955_v48 }
 0x187   : > { %v1022_v51 = vmax.f32 %v992_v22, 0.0 }
 0x189   : > { %1052 = vst.msk [vmem:[%s2162_s29 + $0xe8] sm:$0xff] %vm398_vm0, %v1022_v51 }
 0x18a PF: > { %s17_s21 = sadd.s32 1, %s1744_s21  }
 0x18b   : > { %p14_p4 = scmp.ge.s32.totalorder %s17_s21, 4  }
 0x18d   :  { %16 = sbr.rel (!%p14_p4) target bundleno = 1 (0x1), region = 82 }

// kernel: dronet_forward.12
= control target key start
LH: loop header
LB: loop body
LE: loop exit
PB: predicated region body
PF: predicated region fallthrough
CT: control target
= control target key end

     0   :  { %s1374_s18 = smov 0   ;;  %s1889_s0 = inlined_call_operand.vmem [shape: f32[480,288], index: 0, kind: input, shape index: {}]   ;;  %s1890_s1 = inlined_call_operand.vmem [shape: f32[288,32], index: 1, kind: input, shape index: {}]   ;;  %s1891_s2 = inlined_call_operand.vmem [shape: f32[480,32], index: 2, kind: input, shape index: {}]   ;;  %s1892_s3 = inlined_call_operand.vmem [shape: f32[1,32], index: 3, kind: input, shape index: {}]   ;;  %s1893_s4 = inlined_call_operand.vmem [shape: f32[1,32], index: 4, kind: input, shape index: {}]   ;;  %s1894_s5 = inlined_call_operand.vmem [shape: f32[480,32], index: 5, kind: output, shape index: {}]  }
   0x1 LB: > { %s1132_s19 = sadd.s32 4294967295, %s1341_s18   ;;  %p1136_p0 = scmp.ge.s32.totalorder %s1341_s18, 1  ;;  %s1341_s18 = sphi %s1374_s18, %s15_s18  }
   0x2   : > { %p200_p1 = scmp.lt.s32.totalorder %s1341_s18, 3 }
   0x4   : > { %p201_p2 = pnand %p1136_p0, %p200_p1 }
   0x5   : > { %s234_s20 = smul.u32 (!%p201_p2), 30, %s1132_s19 }
   0x6   : > { %204 = sbr.rel (%p201_p2) target bundleno = 369 (0x171), region = 40 }
   0x7   : > { %p235_p3 = scmp.lt.s32.totalorder (!%p201_p2), %s234_s20, 59 }
   0xb   : > { %v358_v0 = vld [vmem:[%s1890_s1 + $0x78] sm:$0xff]  ;;  %v1343_v1 = vmov 0.0   ;;  %v357_v2 = vld [vmem:[%s1890_s1 + $0x70] sm:$0xff]  ;;  %v356_v3 = vld [vmem:[%s1890_s1 + $0x68] sm:$0xff]  ;;  %s1896_s20 = smov (!%p235_p3, %s234_s20), 59  ;;  %vm409_vm0 = vcmask 261120  }
   0xc   : > { %500 = vmatprep.subr.mxu0 %v1343_v1  ;;  %1261 = vmatprep.subr.mxu1 %v1343_v1  ;;  %v355_v4 = vld [vmem:[%s1890_s1 + $0x60] sm:$0xff]  ;;  %v354_v5 = vld [vmem:[%s1890_s1 + $0x58] sm:$0xff]  ;;  %v353_v6 = vld [vmem:[%s1890_s1 + $0x50] sm:$0xff]  ;;  %s1325_s7 = smul.u32 24, %s1896_s20  ;;  %s1138_s27 = sshll.u32 %s1896_s20, 3 }
   0xd   : > { %501 = vmatpush1.msra.mxu0 %v358_v0  ;;  %1293 = vmatpush1.msra.mxu1 %v358_v0  ;;  %v352_v7 = vld [vmem:[%s1890_s1 + $0x48] sm:$0xff]  ;;  %v351_v8 = vld [vmem:[%s1890_s1 + $0x40] sm:$0xff]  ;;  %v350_v9 = vld [vmem:[%s1890_s1 + $0x38] sm:$0xff]  ;;  %s1690_s30 = scalar_lea.vmem %s1891_s2, %s1138_s27  ;;  %s1735_s12 = scalar_lea.vmem %s1894_s5, %s1138_s27 }
   0xe   : > { %502 = vmatprep.subr.mxu0 %v1343_v1  ;;  %1262 = vmatprep.subr.mxu1 %v1343_v1  ;;  %v349_v10 = vld [vmem:[%s1890_s1 + $0x30] sm:$0xff]  ;;  %v348_v11 = vld [vmem:[%s1890_s1 + $0x28] sm:$0xff]  ;;  %v347_v12 = vld [vmem:[%s1890_s1 + $0x20] sm:$0xff]  ;;  %s1543_s14 = scalar_lea.vmem %s1889_s0, %s1325_s7 }
   0xf   : > { %503 = vmatpush1.msra.mxu0 %v357_v2  ;;  %1294 = vmatpush1.msra.mxu1 %v357_v2  ;;  %v346_v13 = vld [vmem:[%s1890_s1 + $0x18] sm:$0xff]  ;;  %v345_v14 = vld [vmem:[%s1890_s1 + $0x10] sm:$0xff]  ;;  %v344_v15 = vld [vmem:[%s1890_s1 + $0x8] sm:$0xff] }
  0x10   : > { %504 = vmatprep.subr.mxu0 %v1343_v1  ;;  %1263 = vmatprep.subr.mxu1 %v1343_v1  ;;  %v343_v16 = vld [vmem:[%s1890_s1] sm:$0xff]  ;;  %v374_v17 = vld [vmem:[%s1890_s1 + $0xf8] sm:$0xff]  ;;  %v373_v18 = vld [vmem:[%s1890_s1 + $0xf0] sm:$0xff] }
  0x11   : > { %505 = vmatpush1.msra.mxu0 %v356_v3  ;;  %1295 = vmatpush1.msra.mxu1 %v356_v3  ;;  %v372_v19 = vld [vmem:[%s1890_s1 + $0xe8] sm:$0xff]  ;;  %v371_v20 = vld [vmem:[%s1890_s1 + $0xe0] sm:$0xff]  ;;  %v370_v21 = vld [vmem:[%s1890_s1 + $0xd8] sm:$0xff] }
  0x12   : > { %506 = vmatprep.subr.mxu0 %v1343_v1  ;;  %1264 = vmatprep.subr.mxu1 %v1343_v1  ;;  %v369_v22 = vld [vmem:[%s1890_s1 + $0xd0] sm:$0xff]  ;;  %v368_v23 = vld [vmem:[%s1890_s1 + $0xc8] sm:$0xff]  ;;  %v367_v24 = vld [vmem:[%s1890_s1 + $0xc0] sm:$0xff] }
  0x13   : > { %507 = vmatpush1.msra.mxu0 %v355_v4  ;;  %1296 = vmatpush1.msra.mxu1 %v355_v4  ;;  %v366_v25 = vld [vmem:[%s1890_s1 + $0xb8] sm:$0xff]  ;;  %v365_v26 = vld [vmem:[%s1890_s1 + $0xb0] sm:$0xff]  ;;  %v364_v27 = vld [vmem:[%s1890_s1 + $0xa8] sm:$0xff] }
  0x14   : > { %508 = vmatprep.subr.mxu0 %v1343_v1  ;;  %1265 = vmatprep.subr.mxu1 %v1343_v1  ;;  %v363_v28 = vld [vmem:[%s1890_s1 + $0xa0] sm:$0xff]  ;;  %v362_v29 = vld [vmem:[%s1890_s1 + $0x98] sm:$0xff]  ;;  %v361_v30 = vld [vmem:[%s1890_s1 + $0x90] sm:$0xff] }
  0x15   : > { %509 = vmatpush1.msra.mxu0 %v354_v5  ;;  %1297 = vmatpush1.msra.mxu1 %v354_v5  ;;  %v360_v31 = vld [vmem:[%s1890_s1 + $0x88] sm:$0xff]  ;;  %v359_v32 = vld [vmem:[%s1890_s1 + $0x80] sm:$0xff]  ;;  %v323_v34 = vld [vmem:[%s1543_s14 + $0x230] sm:$0xff] }
  0x16   : > { %510 = vmatprep.subr.mxu0 %v1343_v1  ;;  %1266 = vmatprep.subr.mxu1 %v1343_v1  ;;  %v254_v33 = vld [vmem:[%s1543_s14 + $0x8] sm:$0xff]  ;;  %v253_v35 = vld [vmem:[%s1543_s14] sm:$0xff]  ;;  %v378_v39 = vld [vmem:[%s1890_s1 + $0x118] sm:$0xff] }
  0x17   : > { %511 = vmatpush1.msra.mxu0 %v353_v6  ;;  %1298 = vmatpush1.msra.mxu1 %v353_v6  ;;  %v322_v36 = vld [vmem:[%s1543_s14 + $0x228] sm:$0xff]  ;;  %v257_v37 = vld [vmem:[%s1543_s14 + $0x20] sm:$0xff]  ;;  %v256_v40 = vld [vmem:[%s1543_s14 + $0x18] sm:$0xff] }
  0x18   : > { %512 = vmatprep.subr.mxu0 %v1343_v1  ;;  %1267 = vmatprep.subr.mxu1 %v1343_v1  ;;  %v326_v38 = vld [vmem:[%s1543_s14 + $0x248] sm:$0xff]  ;;  %v325_v41 = vld [vmem:[%s1543_s14 + $0x240] sm:$0xff]  ;;  %v260_v42 = vld [vmem:[%s1543_s14 + $0x38] sm:$0xff] }
  0x19   : > { %513 = vmatpush1.msra.mxu0 %v352_v7  ;;  %1299 = vmatpush1.msra.mxu1 %v352_v7  ;;  %v329_v43 = vld [vmem:[%s1543_s14 + $0x260] sm:$0xff]  ;;  %v377_v44 = vld [vmem:[%s1890_s1 + $0x110] sm:$0xff]  ;;  %v328_v46 = vld [vmem:[%s1543_s14 + $0x258] sm:$0xff] }
  0x1a   : > { %514 = vmatprep.subr.mxu0 %v1343_v1  ;;  %1268 = vmatprep.subr.mxu1 %v1343_v1  ;;  %v259_v45 = vld [vmem:[%s1543_s14 + $0x30] sm:$0xff]  ;;  %v332_v48 = vld [vmem:[%s1543_s14 + $0x278] sm:$0xff]  ;;  %v376_v49 = vld [vmem:[%s1890_s1 + $0x108] sm:$0xff] }
  0x1b   : > { %515 = vmatpush1.msra.mxu0 %v351_v8  ;;  %1300 = vmatpush1.msra.mxu1 %v351_v8  ;;  %v263_v47 = vld [vmem:[%s1543_s14 + $0x50] sm:$0xff]  ;;  %v262_v50 = vld [vmem:[%s1543_s14 + $0x48] sm:$0xff]  ;;  %v375_v54 = vld [vmem:[%s1890_s1 + $0x100] sm:$0xff] }
  0x1c   : > { %516 = vmatprep.subr.mxu0 %v1343_v1  ;;  %1269 = vmatprep.subr.mxu1 %v1343_v1  ;;  %v331_v51 = vld [vmem:[%s1543_s14 + $0x270] sm:$0xff]  ;;  %v266_v52 = vld [vmem:[%s1543_s14 + $0x68] sm:$0xff]  ;;  %v265_v55 = vld [vmem:[%s1543_s14 + $0x60] sm:$0xff] }
  0x1d   : > { %517 = vmatpush1.msra.mxu0 %v350_v9  ;;  %1301 = vmatpush1.msra.mxu1 %v350_v9  ;;  %v335_v53 = vld [vmem:[%s1543_s14 + $0x290] sm:$0xff]  ;;  %v334_v56 = vld [vmem:[%s1543_s14 + $0x288] sm:$0xff]  ;;  %v269_v57 = vld [vmem:[%s1543_s14 + $0x80] sm:$0xff] }
  0x1e   : > { %518 = vmatprep.subr.mxu0 %v1343_v1  ;;  %1270 = vmatprep.subr.mxu1 %v1343_v1  ;;  %v338_v58 = vld [vmem:[%s1543_s14 + $0x2a8] sm:$0xff]  ;;  %v268_v59 = vld [vmem:[%s1543_s14 + $0x78] sm:$0xff]  ;;  %v337_v60 = vld [vmem:[%s1543_s14 + $0x2a0] sm:$0xff] }
  0x1f   : > { %519 = vmatpush1.msra.mxu0 %v349_v10  ;;  %1302 = vmatpush1.msra.mxu1 %v349_v10  ;;  %v272_v61 = vld [vmem:[%s1543_s14 + $0x98] sm:$0xff]  ;;  %v341_v62 = vld [vmem:[%s1543_s14 + $0x2c0] sm:$0xff]  ;;  %v271_v63 = vld [vmem:[%s1543_s14 + $0x90] sm:$0xff] }
  0x20   : > { %520 = vmatprep.subr.mxu0 %v1343_v1  ;;  %1271 = vmatprep.subr.mxu1 %v1343_v1  ;;  %v340_v0 = vld [vmem:[%s1543_s14 + $0x2b8] sm:$0xff]  ;;  %v255_v2 = vld [vmem:[%s1543_s14 + $0x10] sm:$0xff]  ;;  %v274_v3 = vld [vmem:[%s1543_s14 + $0xa8] sm:$0xff] }
  0x21   : > { %521 = vmatpush1.msra.mxu0 %v348_v11  ;;  %1303 = vmatpush1.msra.mxu1 %v348_v11  ;;  %v258_v4 = vld [vmem:[%s1543_s14 + $0x28] sm:$0xff]  ;;  %v261_v6 = vld [vmem:[%s1543_s14 + $0x40] sm:$0xff]  ;;  %v264_v8 = vld [vmem:[%s1543_s14 + $0x58] sm:$0xff] }
  0x22   : > { %522 = vmatprep.subr.mxu0 %v1343_v1  ;;  %1272 = vmatprep.subr.mxu1 %v1343_v1  ;;  %v278_v5 = vld [vmem:[%s1543_s14 + $0xc8] sm:$0xff]  ;;  %v277_v7 = vld [vmem:[%s1543_s14 + $0xc0] sm:$0xff]  ;;  %v267_v10 = vld [vmem:[%s1543_s14 + $0x70] sm:$0xff] }
  0x23   : > { %523 = vmatpush1.msra.mxu0 %v347_v12  ;;  %1304 = vmatpush1.msra.mxu1 %v347_v12  ;;  %v281_v9 = vld [vmem:[%s1543_s14 + $0xe0] sm:$0xff]  ;;  %v280_v11 = vld [vmem:[%s1543_s14 + $0xd8] sm:$0xff]  ;;  %v270_v12 = vld [vmem:[%s1543_s14 + $0x88] sm:$0xff] }
  0x24   : > { %524 = vmatprep.subr.mxu0 %v1343_v1  ;;  %1273 = vmatprep.subr.mxu1 %v1343_v1 }
  0x25   : > { %525 = vmatpush1.msra.mxu0 %v346_v13  ;;  %1305 = vmatpush1.msra.mxu1 %v346_v13  ;;  %v284_v13 = vld [vmem:[%s1543_s14 + $0xf8] sm:$0xff] }
  0x26   : > { %526 = vmatprep.subr.mxu0 %v1343_v1  ;;  %1274 = vmatprep.subr.mxu1 %v1343_v1 }
  0x27   : > { %527 = vmatpush1.msra.mxu0 %v345_v14  ;;  %1306 = vmatpush1.msra.mxu1 %v345_v14  ;;  %v273_v14 = vld [vmem:[%s1543_s14 + $0xa0] sm:$0xff] }
  0x28   : > { %528 = vmatprep.subr.mxu0 %v1343_v1  ;;  %1275 = vmatprep.subr.mxu1 %v1343_v1 }
  0x29   : > { %529 = vmatpush1.msra.mxu0 %v344_v15  ;;  %1307 = vmatpush1.msra.mxu1 %v344_v15  ;;  %v283_v15 = vld [vmem:[%s1543_s14 + $0xf0] sm:$0xff] }
  0x2a   : > { %530 = vmatprep.subr.mxu0 %v1343_v1  ;;  %1276 = vmatprep.subr.mxu1 %v1343_v1 }
  0x2b   : > { %531 = vmatpush1.msra.mxu0 %v343_v16  ;;  %1308 = vmatpush1.msra.mxu1 %v343_v16  ;;  %v276_v16 = vld [vmem:[%s1543_s14 + $0xb8] sm:$0xff] }
  0x2c   : > { %532 = vmatprep.subr.mxu0 %v1343_v1  ;;  %1277 = vmatprep.subr.mxu1 %v1343_v1 }
  0x2d   : > { %533 = vmatpush2.msra.mxu0 %v374_v17  ;;  %1309 = vmatpush2.msra.mxu1 %v374_v17  ;;  %v287_v17 = vld [vmem:[%s1543_s14 + $0x110] sm:$0xff] }
  0x2e   : > { %534 = vmatprep.subr.mxu0 %v1343_v1  ;;  %1278 = vmatprep.subr.mxu1 %v1343_v1 }
  0x2f   : > { %535 = vmatpush2.msra.mxu0 %v373_v18  ;;  %1310 = vmatpush2.msra.mxu1 %v373_v18  ;;  %v279_v18 = vld [vmem:[%s1543_s14 + $0xd0] sm:$0xff] }
  0x30   : > { %536 = vmatprep.subr.mxu0 %v1343_v1  ;;  %1279 = vmatprep.subr.mxu1 %v1343_v1 }
  0x31   : > { %537 = vmatpush2.msra.mxu0 %v372_v19  ;;  %1311 = vmatpush2.msra.mxu1 %v372_v19  ;;  %v286_v19 = vld [vmem:[%s1543_s14 + $0x108] sm:$0xff] }
  0x32   : > { %538 = vmatprep.subr.mxu0 %v1343_v1  ;;  %1280 = vmatprep.subr.mxu1 %v1343_v1 }
  0x33   : > { %539 = vmatpush2.msra.mxu0 %v371_v20  ;;  %1312 = vmatpush2.msra.mxu1 %v371_v20  ;;  %v282_v20 = vld [vmem:[%s1543_s14 + $0xe8] sm:$0xff] }
  0x34   : > { %540 = vmatprep.subr.mxu0 %v1343_v1  ;;  %1281 = vmatprep.subr.mxu1 %v1343_v1 }
  0x35   : > { %541 = vmatpush2.msra.mxu0 %v370_v21  ;;  %1313 = vmatpush2.msra.mxu1 %v370_v21  ;;  %v290_v21 = vld [vmem:[%s1543_s14 + $0x128] sm:$0xff] }
  0x36   : > { %542 = vmatprep.subr.mxu0 %v1343_v1  ;;  %1282 = vmatprep.subr.mxu1 %v1343_v1 }
  0x37   : > { %543 = vmatpush2.msra.mxu0 %v369_v22  ;;  %1314 = vmatpush2.msra.mxu1 %v369_v22  ;;  %v285_v22 = vld [vmem:[%s1543_s14 + $0x100] sm:$0xff] }
  0x38   : > { %544 = vmatprep.subr.mxu0 %v1343_v1  ;;  %1283 = vmatprep.subr.mxu1 %v1343_v1 }
  0x39   : > { %545 = vmatpush2.msra.mxu0 %v368_v23  ;;  %1315 = vmatpush2.msra.mxu1 %v368_v23  ;;  %v289_v23 = vld [vmem:[%s1543_s14 + $0x120] sm:$0xff] }
  0x3a   : > { %546 = vmatprep.subr.mxu0 %v1343_v1  ;;  %1284 = vmatprep.subr.mxu1 %v1343_v1 }
  0x3b   : > { %547 = vmatpush2.msra.mxu0 %v367_v24  ;;  %1316 = vmatpush2.msra.mxu1 %v367_v24  ;;  %v288_v24 = vld [vmem:[%s1543_s14 + $0x118] sm:$0xff] }
  0x3c   : > { %548 = vmatprep.subr.mxu0 %v1343_v1  ;;  %1285 = vmatprep.subr.mxu1 %v1343_v1 }
  0x3d   : > { %549 = vmatpush2.msra.mxu0 %v366_v25  ;;  %1317 = vmatpush2.msra.mxu1 %v366_v25  ;;  %v293_v25 = vld [vmem:[%s1543_s14 + $0x140] sm:$0xff] }
  0x3e   : > { %550 = vmatprep.subr.mxu0 %v1343_v1  ;;  %1286 = vmatprep.subr.mxu1 %v1343_v1 }
  0x3f   : > { %551 = vmatpush2.msra.mxu0 %v365_v26  ;;  %1318 = vmatpush2.msra.mxu1 %v365_v26  ;;  %v291_v26 = vld [vmem:[%s1543_s14 + $0x130] sm:$0xff] }
  0x40   : > { %552 = vmatprep.subr.mxu0 %v1343_v1  ;;  %1287 = vmatprep.subr.mxu1 %v1343_v1 }
  0x41   : > { %553 = vmatpush2.msra.mxu0 %v364_v27  ;;  %1319 = vmatpush2.msra.mxu1 %v364_v27  ;;  %v292_v27 = vld [vmem:[%s1543_s14 + $0x138] sm:$0xff] }
  0x42   : > { %554 = vmatprep.subr.mxu0 %v1343_v1  ;;  %1288 = vmatprep.subr.mxu1 %v1343_v1 }
  0x43   : > { %555 = vmatpush2.msra.mxu0 %v363_v28  ;;  %1320 = vmatpush2.msra.mxu1 %v363_v28  ;;  %v294_v28 = vld [vmem:[%s1543_s14 + $0x148] sm:$0xff] }
  0x44   : > { %556 = vmatprep.subr.mxu0 %v1343_v1  ;;  %1289 = vmatprep.subr.mxu1 %v1343_v1 }
  0x45   : > { %557 = vmatpush2.msra.mxu0 %v362_v29  ;;  %1321 = vmatpush2.msra.mxu1 %v362_v29  ;;  %v296_v29 = vld [vmem:[%s1543_s14 + $0x158] sm:$0xff] }
  0x46   : > { %558 = vmatprep.subr.mxu0 %v1343_v1  ;;  %1290 = vmatprep.subr.mxu1 %v1343_v1 }
  0x47   : > { %559 = vmatpush2.msra.mxu0 %v361_v30  ;;  %1322 = vmatpush2.msra.mxu1 %v361_v30  ;;  %v297_v30 = vld [vmem:[%s1543_s14 + $0x160] sm:$0xff] }
  0x48   : > { %560 = vmatprep.subr.mxu0 %v1343_v1  ;;  %1291 = vmatprep.subr.mxu1 %v1343_v1 }
  0x49   : > { %561 = vmatpush2.msra.mxu0 %v360_v31  ;;  %1323 = vmatpush2.msra.mxu1 %v360_v31  ;;  %v295_v31 = vld [vmem:[%s1543_s14 + $0x150] sm:$0xff] }
  0x4a   : > { %562 = vmatprep.subr.mxu0 %v1343_v1  ;;  %1292 = vmatprep.subr.mxu1 %v1343_v1  ;;  %v275_v1 = vld [vmem:[%s1543_s14 + $0xb0] sm:$0xff] }
  0x4b   : > { %563 = vmatpush2.msra.mxu0 %v359_v32  ;;  %1324 = vmatpush2.msra.mxu1 %v359_v32  ;;  %v300_v32 = vld [vmem:[%s1543_s14 + $0x178] sm:$0xff] }
  0x4c   : > { %564 = vmatprep.mubr.f32.mxu0 %v254_v33  ;;  %679 = vmatprep.mubr.f32.mxu1 %v323_v34  ;;  %v299_v33 = vld [vmem:[%s1543_s14 + $0x170] sm:$0xff] }
  0x4d   : > { %565 = vmatmul.mubr.f32.vlgmr.msra.gmra.mxu0 %v253_v35  ;;  %680 = vmatmul.mubr.f32.vlgmr.msra.gmra.mxu1 %v322_v36  ;;  %v303_v34 = vld [vmem:[%s1543_s14 + $0x190] sm:$0xff]  ;;  %v298_v35 = vld [vmem:[%s1543_s14 + $0x168] sm:$0xff] }
  0x4e   : > { %569 = vmatprep.mubr.f32.mxu0 %v257_v37  ;;  %684 = vmatprep.mubr.f32.mxu1 %v326_v38  ;;  %v306_v36 = vld [vmem:[%s1543_s14 + $0x1a8] sm:$0xff]  ;;  %v309_v38 = vld [vmem:[%s1543_s14 + $0x1c0] sm:$0xff] }
  0x4f   : > { %1208 = vmatprep.subr.mxu1 %v378_v39  ;;  %v302_v37 = vld [vmem:[%s1543_s14 + $0x188] sm:$0xff] }
  0x50   : > { %1209 = vmatpush3.msra.mxu1 %v378_v39  ;;  %v301_v39 = vld [vmem:[%s1543_s14 + $0x180] sm:$0xff] }
  0x51   : > { %570 = vmatmul.mubr.f32.gmra.mxu0 %v256_v40  ;;  %685 = vmatmul.mubr.f32.gmra.mxu1 %v325_v41  ;;  %v312_v40 = vld [vmem:[%s1543_s14 + $0x1d8] sm:$0xff]  ;;  %v305_v41 = vld [vmem:[%s1543_s14 + $0x1a0] sm:$0xff] }
  0x52   : > { %574 = vmatprep.mubr.f32.mxu0 %v260_v42  ;;  %689 = vmatprep.mubr.f32.mxu1 %v329_v43  ;;  %v315_v42 = vld [vmem:[%s1543_s14 + $0x1f0] sm:$0xff]  ;;  %v304_v43 = vld [vmem:[%s1543_s14 + $0x198] sm:$0xff] }
  0x53   : > { %1210 = vmatprep.subr.mxu1 %v377_v44 }
  0x54   : > { %1211 = vmatpush3.msra.mxu1 %v377_v44  ;;  %v318_v44 = vld [vmem:[%s1543_s14 + $0x208] sm:$0xff] }
  0x55   : > { %575 = vmatmul.mubr.f32.gmra.mxu0 %v259_v45  ;;  %690 = vmatmul.mubr.f32.gmra.mxu1 %v328_v46  ;;  %v308_v45 = vld [vmem:[%s1543_s14 + $0x1b8] sm:$0xff]  ;;  %v321_v46 = vld [vmem:[%s1543_s14 + $0x220] sm:$0xff] }
  0x56   : > { %579 = vmatprep.mubr.f32.mxu0 %v263_v47  ;;  %694 = vmatprep.mubr.f32.mxu1 %v332_v48  ;;  %v307_v47 = vld [vmem:[%s1543_s14 + $0x1b0] sm:$0xff]  ;;  %v324_v48 = vld [vmem:[%s1543_s14 + $0x238] sm:$0xff] }
  0x57   : > { %1212 = vmatprep.subr.mxu1 %v376_v49 }
  0x58   : > { %1213 = vmatpush3.msra.mxu1 %v376_v49  ;;  %v311_v49 = vld [vmem:[%s1543_s14 + $0x1d0] sm:$0xff] }
  0x59   : > { %580 = vmatmul.mubr.f32.gmra.mxu0 %v262_v50  ;;  %695 = vmatmul.mubr.f32.gmra.mxu1 %v331_v51  ;;  %v327_v50 = vld [vmem:[%s1543_s14 + $0x250] sm:$0xff]  ;;  %v310_v51 = vld [vmem:[%s1543_s14 + $0x1c8] sm:$0xff] }
  0x5a   : > { %584 = vmatprep.mubr.f32.mxu0 %v266_v52  ;;  %699 = vmatprep.mubr.f32.mxu1 %v335_v53  ;;  %v330_v52 = vld [vmem:[%s1543_s14 + $0x268] sm:$0xff] }
  0x5b   : > { %1214 = vmatprep.subr.mxu1 %v375_v54  ;;  %v314_v53 = vld [vmem:[%s1543_s14 + $0x1e8] sm:$0xff] }
  0x5c   : > { %1215 = vmatpush3.msra.mxu1 %v375_v54  ;;  %v333_v54 = vld [vmem:[%s1543_s14 + $0x280] sm:$0xff] }
  0x5d   : > { %585 = vmatmul.mubr.f32.gmra.mxu0 %v265_v55  ;;  %700 = vmatmul.mubr.f32.gmra.mxu1 %v334_v56  ;;  %v313_v55 = vld [vmem:[%s1543_s14 + $0x1e0] sm:$0xff]  ;;  %v336_v56 = vld [vmem:[%s1543_s14 + $0x298] sm:$0xff] }
  0x5e   : > { %589 = vmatprep.mubr.f32.mxu0 %v269_v57  ;;  %704 = vmatprep.mubr.f32.mxu1 %v338_v58  ;;  %v317_v57 = vld [vmem:[%s1543_s14 + $0x200] sm:$0xff]  ;;  %v339_v58 = vld [vmem:[%s1543_s14 + $0x2b0] sm:$0xff] }
  0x61   : > { %590 = vmatmul.mubr.f32.gmra.mxu0 %v268_v59  ;;  %705 = vmatmul.mubr.f32.gmra.mxu1 %v337_v60  ;;  %v316_v59 = vld [vmem:[%s1543_s14 + $0x1f8] sm:$0xff]  ;;  %v342_v60 = vld [vmem:[%s1543_s14 + $0x2c8] sm:$0xff] }
  0x62   : > { %594 = vmatprep.mubr.f32.mxu0 %v272_v61  ;;  %709 = vmatprep.mubr.f32.mxu1 %v341_v62  ;;  %v320_v61 = vld [vmem:[%s1543_s14 + $0x218] sm:$0xff]  ;;  %v319_v62 = vld [vmem:[%s1543_s14 + $0x210] sm:$0xff] }
  0x65   : > { %595 = vmatmul.mubr.f32.gmra.mxu0 %v271_v63  ;;  %710 = vmatmul.mubr.f32.gmra.mxu1 %v340_v0  ;;  %v402_v63 = vld [vmem:[%s1690_s30 + $0xb8] sm:$0xff] }
  0x66   : > { %599 = vmatprep.mubr.f32.mxu0 %v275_v1  ;;  %1216 = vmatprep.mubr.msk.f32.mxu1 %vm409_vm0, %v255_v2 }
  0x69   : > { %600 = vmatmul.mubr.f32.gmra.mxu0 %v274_v3  ;;  %1217 = vmatmul.mubr.msk.f32.vlgmr.msra.gmra.mxu1 %vm409_vm0, %v258_v4 }
  0x6a   : > { %604 = vmatprep.mubr.f32.mxu0 %v278_v5  ;;  %1219 = vmatprep.mubr.msk.f32.mxu1 %vm409_vm0, %v261_v6  ;;  %v403_v5 = vld [vmem:[%s1690_s30 + $0xc0] sm:$0xff] }
  0x6d   : > { %605 = vmatmul.mubr.f32.gmra.mxu0 %v277_v7  ;;  %1220 = vmatmul.mubr.msk.f32.gmra.mxu1 %vm409_vm0, %v264_v8 }
  0x6e   : > { %609 = vmatprep.mubr.f32.mxu0 %v281_v9  ;;  %1222 = vmatprep.mubr.msk.f32.mxu1 %vm409_vm0, %v267_v10 }
  0x71   : > { %610 = vmatmul.mubr.f32.gmra.mxu0 %v280_v11  ;;  %1223 = vmatmul.mubr.msk.f32.gmra.mxu1 %vm409_vm0, %v270_v12  ;;  %v404_v11 = vld [vmem:[%s1690_s30 + $0xc8] sm:$0xff] }
  0x72   : > { %614 = vmatprep.mubr.f32.mxu0 %v284_v13  ;;  %1225 = vmatprep.mubr.msk.f32.mxu1 %vm409_vm0, %v273_v14 }
  0x75   : > { %615 = vmatmul.mubr.f32.gmra.mxu0 %v283_v15  ;;  %1226 = vmatmul.mubr.msk.f32.gmra.mxu1 %vm409_vm0, %v276_v16 }
  0x76   : > { %619 = vmatprep.mubr.f32.mxu0 %v287_v17  ;;  %1228 = vmatprep.mubr.msk.f32.mxu1 %vm409_vm0, %v279_v18  ;;  %v405_v17 = vld [vmem:[%s1690_s30 + $0xd0] sm:$0xff] }
  0x79   : > { %620 = vmatmul.mubr.f32.gmra.mxu0 %v286_v19  ;;  %1229 = vmatmul.mubr.msk.f32.gmra.mxu1 %vm409_vm0, %v282_v20 }
  0x7a   : > { %624 = vmatprep.mubr.f32.mxu0 %v290_v21  ;;  %1231 = vmatprep.mubr.msk.f32.mxu1 %vm409_vm0, %v285_v22 }
  0x7d   : > { %625 = vmatmul.mubr.f32.gmra.mxu0 %v289_v23  ;;  %1232 = vmatmul.mubr.msk.f32.gmra.mxu1 %vm409_vm0, %v288_v24 }
  0x7e   : > { %629 = vmatprep.mubr.f32.mxu0 %v293_v25  ;;  %1234 = vmatprep.mubr.msk.f32.mxu1 %vm409_vm0, %v291_v26 }
  0x81   : > { %630 = vmatmul.mubr.f32.gmra.mxu0 %v292_v27  ;;  %1235 = vmatmul.mubr.msk.f32.gmra.mxu1 %vm409_vm0, %v294_v28  ;;  %v407_v27 = vld [vmem:[%s1690_s30 + $0xe0] sm:$0xff] }
  0x82   : > { %634 = vmatprep.mubr.f32.mxu0 %v296_v29  ;;  %1237 = vmatprep.mubr.msk.f32.mxu1 %vm409_vm0, %v297_v30 }
  0x85   : > { %635 = vmatmul.mubr.f32.gmra.mxu0 %v295_v31  ;;  %1238 = vmatmul.mubr.msk.f32.gmra.mxu1 %vm409_vm0, %v300_v32 }
  0x86   : > { %639 = vmatprep.mubr.f32.mxu0 %v299_v33  ;;  %1240 = vmatprep.mubr.msk.f32.mxu1 %vm409_vm0, %v303_v34  ;;  %v380_v33 = vld [vmem:[%s1690_s30 + $0x8] sm:$0xff] }
  0x89   : > { %640 = vmatmul.mubr.f32.gmra.mxu0 %v298_v35  ;;  %1241 = vmatmul.mubr.msk.f32.gmra.mxu1 %vm409_vm0, %v306_v36  ;;  %v379_v36 = vld [vmem:[%s1690_s30] sm:$0xff] }
  0x8a   : > { %644 = vmatprep.mubr.f32.mxu0 %v302_v37  ;;  %1243 = vmatprep.mubr.msk.f32.mxu1 %vm409_vm0, %v309_v38 }
  0x8d   : > { %645 = vmatmul.mubr.f32.gmra.mxu0 %v301_v39  ;;  %1244 = vmatmul.mubr.msk.f32.gmra.mxu1 %vm409_vm0, %v312_v40  ;;  %v382_v40 = vld [vmem:[%s1690_s30 + $0x18] sm:$0xff] }
  0x8e   : > { %649 = vmatprep.mubr.f32.mxu0 %v305_v41  ;;  %1246 = vmatprep.mubr.msk.f32.mxu1 %vm409_vm0, %v315_v42 }
  0x91   : > { %650 = vmatmul.mubr.f32.gmra.mxu0 %v304_v43  ;;  %1247 = vmatmul.mubr.msk.f32.gmra.mxu1 %vm409_vm0, %v318_v44  ;;  %v1717_v43 = vld [vmem:[%s1892_s3] ss:$0 sm:$0xff] }
  0x92   : > { %654 = vmatprep.mubr.f32.mxu0 %v308_v45  ;;  %1249 = vmatprep.mubr.msk.f32.mxu1 %vm409_vm0, %v321_v46  ;;  %v381_v46 = vld [vmem:[%s1690_s30 + $0x10] sm:$0xff] }
  0x95   : > { %655 = vmatmul.mubr.f32.gmra.mxu0 %v307_v47  ;;  %1250 = vmatmul.mubr.msk.f32.gmra.mxu1 %vm409_vm0, %v324_v48  ;;  %v1723_v47 = vld [vmem:[%s1893_s4] ss:$0 sm:$0xff] }
  0x96   : > { %659 = vmatprep.mubr.f32.mxu0 %v311_v49  ;;  %1252 = vmatprep.mubr.msk.f32.mxu1 %vm409_vm0, %v327_v50 }
  0x99   : > { %660 = vmatmul.mubr.f32.gmra.mxu0 %v310_v51  ;;  %1253 = vmatmul.mubr.msk.f32.gmra.mxu1 %vm409_vm0, %v330_v52 }
  0x9a   : > { %664 = vmatprep.mubr.f32.mxu0 %v314_v53  ;;  %1255 = vmatprep.mubr.msk.f32.mxu1 %vm409_vm0, %v333_v54 }
  0x9d   : > { %665 = vmatmul.mubr.f32.gmra.mxu0 %v313_v55  ;;  %1256 = vmatmul.mubr.msk.f32.gmra.mxu1 %vm409_vm0, %v336_v56  ;;  %v384_v56 = vld [vmem:[%s1690_s30 + $0x28] sm:$0xff] }
  0x9e   : > { %669 = vmatprep.mubr.f32.mxu0 %v317_v57  ;;  %1258 = vmatprep.mubr.msk.f32.mxu1 %vm409_vm0, %v339_v58 }
  0xa1   : > { %670 = vmatmul.mubr.f32.gmra.mxu0 %v316_v59  ;;  %1259 = vmatmul.mubr.msk.f32.gmra.mxu1 %vm409_vm0, %v342_v60  ;;  %v383_v60 = vld [vmem:[%s1690_s30 + $0x20] sm:$0xff] }
  0xa2   : > { %674 = vmatprep.mubr.f32.mxu0 %v320_v61 }
  0xa5   : > { %675 = vmatmul.mubr.f32.gmra.mxu0 %v319_v62 }
 0x10d   : > { %v566_v0 = vpop.f32.mrf.mxu0  ;;  %v681_v1 = vpop.f32.mrf.mxu1 }
 0x10e   : > { %v1693_v2 = vadd.f32 %v681_v1, %v402_v63  ;;  %v567_v44 = vadd.f32 %v566_v0, %v379_v36 }
 0x10f   : > { %v568_v3 = vpop.f32.mrf.mxu0  ;;  %v683_v4 = vpop.f32.mrf.mxu1 }
 0x111   : > { %v571_v6 = vpop.f32.mrf.mxu0  ;;  %v686_v7 = vpop.f32.mrf.mxu1 }
 0x112   : > { %v1696_v8 = vadd.f32 %v686_v7, %v403_v5  ;;  %v572_v39 = vadd.f32 %v571_v6, %v380_v33  ;;  %v386_v5 = vld [vmem:[%s1690_s30 + $0x38] sm:$0xff]  ;;  %v387_v33 = vld [vmem:[%s1690_s30 + $0x40] sm:$0xff] }
 0x113   : > { %v573_v9 = vpop.f32.mrf.mxu0  ;;  %v688_v10 = vpop.f32.mrf.mxu1 }
 0x115   : > { %v576_v12 = vpop.f32.mrf.mxu0  ;;  %v691_v13 = vpop.f32.mrf.mxu1 }
 0x116   : > { %v1699_v14 = vadd.f32 %v691_v13, %v404_v11  ;;  %v577_v55 = vadd.f32 %v576_v12, %v381_v46  ;;  %v385_v13 = vld [vmem:[%s1690_s30 + $0x30] sm:$0xff] }
 0x117   : > { %v578_v15 = vpop.f32.mrf.mxu0  ;;  %v693_v16 = vpop.f32.mrf.mxu1 }
 0x119   : > { %v581_v18 = vpop.f32.mrf.mxu0  ;;  %v696_v19 = vpop.f32.mrf.mxu1 }
 0x11a   : > { %v1702_v20 = vadd.f32 %v696_v19, %v405_v17  ;;  %v582_v50 = vadd.f32 %v581_v18, %v382_v40 }
 0x11b   : > { %v583_v21 = vpop.f32.mrf.mxu0  ;;  %v698_v22 = vpop.f32.mrf.mxu1 }
 0x11d   : > { %v586_v23 = vpop.f32.mrf.mxu0  ;;  %v1704_v24 = vpop.f32.mrf.mxu1 }
 0x11e   : > { %v587_v9 = vadd.f32 %v586_v23, %v383_v60 }
 0x11f   : > { %v588_v25 = vpop.f32.mrf.mxu0  ;;  %v703_v26 = vpop.f32.mrf.mxu1 }
 0x121   : > { %v591_v28 = vpop.f32.mrf.mxu0  ;;  %v706_v29 = vpop.f32.mrf.mxu1 }
 0x122   : > { %v1707_v30 = vadd.f32 %v706_v29, %v407_v27  ;;  %v592_v4 = vadd.f32 %v591_v28, %v384_v56  ;;  %v388_v29 = vld [vmem:[%s1690_s30 + $0x48] sm:$0xff] }
 0x123   : > { %v593_v31 = vpop.f32.mrf.mxu0  ;;  %v708_v32 = vpop.f32.mrf.mxu1 }
 0x125   : > { %v596_v34 = vpop.f32.mrf.mxu0  ;;  %v1710_v35 = vpop.f32.mrf.mxu1 }
 0x126   : > { %v597_v27 = vadd.f32 %v596_v34, %v385_v13 }
 0x127   : > { %v598_v37 = vpop.f32.mrf.mxu0  ;;  %v713_v38 = vpop.f32.mrf.mxu1 }
 0x129   : > { %v601_v41 = vpop.f32.mrf.mxu0  ;;  %v1218_v42 = vpop.f32.mrf.mxu1 }
 0x12a   : > { %v787_v45 = vadd.f32 %v1218_v42, %v572_v39  ;;  %v602_v18 = vadd.f32 %v601_v41, %v386_v5 }
 0x12b   : > { %v603_v48 = vpop.f32.mrf.mxu0  ;;  %v781_v49 = vpop.f32.mrf.mxu1 }
 0x12c   : > { %v938_v51 = vmul.f32 %v1717_v43, %v787_v45  ;;  %v782_v52 = vadd.f32 %v781_v49, %v567_v44  ;;  %v390_v44 = vld [vmem:[%s1690_s30 + $0x58] sm:$0xff] }
 0x12d   : > { %v606_v53 = vpop.f32.mrf.mxu0  ;;  %v1221_v54 = vpop.f32.mrf.mxu1 }
 0x12e   : > { %v975_v57 = vadd.f32 %v1723_v47, %v938_v51  ;;  %v937_v58 = vmul.f32 %v1717_v43, %v782_v52  ;;  %v797_v59 = vadd.f32 %v1221_v54, %v582_v50  ;;  %v607_v48 = vadd.f32 %v606_v53, %v387_v33  ;;  %v389_v52 = vld [vmem:[%s1690_s30 + $0x50] sm:$0xff] }
 0x12f   : > { %v608_v61 = vpop.f32.mrf.mxu0  ;;  %v791_v62 = vpop.f32.mrf.mxu1 }
 0x130   : > { %v1005_v63 = vmax.f32 %v975_v57, 0.0  ;;  %v974_v0 = vadd.f32 %v1723_v47, %v937_v58  ;;  %v940_v1 = vmul.f32 %v1717_v43, %v797_v59  ;;  %v792_v3 = vadd.f32 %v791_v62, %v577_v55 }
 0x131   : > { %v611_v6 = vpop.f32.mrf.mxu0  ;;  %v1224_v7 = vpop.f32.mrf.mxu1 }
 0x132   : > { %1035 = vst.msk [vmem:[%s1735_s12 + $0x8] sm:$0xff] %vm409_vm0, %v1005_v63  ;;  %v1004_v10 = vmax.f32 %v974_v0, 0.0  ;;  %v977_v11 = vadd.f32 %v1723_v47, %v940_v1  ;;  %v939_v12 = vmul.f32 %v1717_v43, %v792_v3  ;;  %v807_v15 = vadd.f32 %v1224_v7, %v592_v4  ;;  %v391_v3 = vld [vmem:[%s1690_s30 + $0x60] sm:$0xff] }
 0x133   : > { %v613_v16 = vpop.f32.mrf.mxu0  ;;  %v801_v17 = vpop.f32.mrf.mxu1  ;;  %v612_v41 = vadd.f32 %v611_v6, %v388_v29 }
 0x134   : > { %1034 = vst.msk [vmem:[%s1735_s12] sm:$0xff] %vm409_vm0, %v1004_v10  ;;  %v1007_v19 = vmax.f32 %v977_v11, 0.0  ;;  %v976_v21 = vadd.f32 %v1723_v47, %v939_v12  ;;  %v802_v22 = vadd.f32 %v801_v17, %v587_v9  ;;  %v942_v23 = vmul.f32 %v1717_v43, %v807_v15  ;;  %v392_v9 = vld [vmem:[%s1690_s30 + $0x68] sm:$0xff] }
 0x135   : > { %v616_v25 = vpop.f32.mrf.mxu0  ;;  %v1227_v26 = vpop.f32.mrf.mxu1 }
 0x136   : > { %1037 = vst.msk [vmem:[%s1735_s12 + $0x18] sm:$0xff] %vm409_vm0, %v1007_v19  ;;  %v1006_v28 = vmax.f32 %v976_v21, 0.0  ;;  %v941_v31 = vmul.f32 %v1717_v43, %v802_v22  ;;  %v817_v32 = vadd.f32 %v1227_v26, %v602_v18  ;;  %v979_v36 = vadd.f32 %v1723_v47, %v942_v23  ;;  %v393_v26 = vld [vmem:[%s1690_s30 + $0x70] sm:$0xff] }
 0x137   : > { %v618_v37 = vpop.f32.mrf.mxu0  ;;  %v811_v38 = vpop.f32.mrf.mxu1  ;;  %v617_v63 = vadd.f32 %v616_v25, %v389_v52 }
 0x138   : > { %1036 = vst.msk [vmem:[%s1735_s12 + $0x10] sm:$0xff] %vm409_vm0, %v1006_v28  ;;  %v978_v39 = vadd.f32 %v1723_v47, %v941_v31  ;;  %v944_v34 = vmul.f32 %v1717_v43, %v817_v32  ;;  %v812_v40 = vadd.f32 %v811_v38, %v597_v27  ;;  %v1009_v42 = vmax.f32 %v979_v36, 0.0 }
 0x139   : > { %v621_v45 = vpop.f32.mrf.mxu0  ;;  %v1230_v46 = vpop.f32.mrf.mxu1 }
 0x13a   : > { %v1008_v49 = vmax.f32 %v978_v39, 0.0  ;;  %v981_v50 = vadd.f32 %v1723_v47, %v944_v34  ;;  %v943_v51 = vmul.f32 %v1717_v43, %v812_v40  ;;  %1039 = vst.msk [vmem:[%s1735_s12 + $0x28] sm:$0xff] %vm409_vm0, %v1009_v42  ;;  %v827_v54 = vadd.f32 %v1230_v46, %v612_v41  ;;  %v394_v41 = vld [vmem:[%s1690_s30 + $0x78] sm:$0xff] }
 0x13b   : > { %v623_v55 = vpop.f32.mrf.mxu0  ;;  %v821_v56 = vpop.f32.mrf.mxu1  ;;  %v622_v53 = vadd.f32 %v621_v45, %v390_v44 }
 0x13c   : > { %1038 = vst.msk [vmem:[%s1735_s12 + $0x20] sm:$0xff] %vm409_vm0, %v1008_v49  ;;  %v1011_v57 = vmax.f32 %v981_v50, 0.0  ;;  %v980_v58 = vadd.f32 %v1723_v47, %v943_v51  ;;  %v822_v59 = vadd.f32 %v821_v56, %v607_v48  ;;  %v946_v60 = vmul.f32 %v1717_v43, %v827_v54  ;;  %v395_v56 = vld [vmem:[%s1690_s30 + $0x80] sm:$0xff] }
 0x13d   : > { %v626_v61 = vpop.f32.mrf.mxu0  ;;  %v1233_v62 = vpop.f32.mrf.mxu1 }
 0x13e   : > { %1041 = vst.msk [vmem:[%s1735_s12 + $0x38] sm:$0xff] %vm409_vm0, %v1011_v57  ;;  %v1010_v0 = vmax.f32 %v980_v58, 0.0  ;;  %v945_v1 = vmul.f32 %v1717_v43, %v822_v59  ;;  %v837_v4 = vadd.f32 %v1233_v62, %v622_v53  ;;  %v983_v5 = vadd.f32 %v1723_v47, %v946_v60 }
 0x13f   : > { %v628_v6 = vpop.f32.mrf.mxu0  ;;  %v831_v7 = vpop.f32.mrf.mxu1  ;;  %v627_v15 = vadd.f32 %v626_v61, %v391_v3 }
 0x140   : > { %1040 = vst.msk [vmem:[%s1735_s12 + $0x30] sm:$0xff] %vm409_vm0, %v1010_v0  ;;  %v982_v10 = vadd.f32 %v1723_v47, %v945_v1  ;;  %v948_v11 = vmul.f32 %v1717_v43, %v837_v4  ;;  %v832_v12 = vadd.f32 %v831_v7, %v617_v63  ;;  %v1013_v13 = vmax.f32 %v983_v5, 0.0  ;;  %v396_v1 = vld [vmem:[%s1690_s30 + $0x88] sm:$0xff] }
 0x141   : > { %v631_v16 = vpop.f32.mrf.mxu0  ;;  %v1236_v17 = vpop.f32.mrf.mxu1 }
 0x142   : > { %v1012_v18 = vmax.f32 %v982_v10, 0.0  ;;  %v985_v19 = vadd.f32 %v1723_v47, %v948_v11  ;;  %v947_v21 = vmul.f32 %v1717_v43, %v832_v12  ;;  %v632_v22 = vadd.f32 %v631_v16, %v392_v9  ;;  %1043 = vst.msk [vmem:[%s1735_s12 + $0x48] sm:$0xff] %vm409_vm0, %v1013_v13  ;;  %v397_v13 = vld [vmem:[%s1690_s30 + $0x90] sm:$0xff] }
 0x143   : > { %v633_v23 = vpop.f32.mrf.mxu0  ;;  %v841_v25 = vpop.f32.mrf.mxu1 }
 0x144   : > { %1042 = vst.msk [vmem:[%s1735_s12 + $0x40] sm:$0xff] %vm409_vm0, %v1012_v18  ;;  %v1015_v27 = vmax.f32 %v985_v19, 0.0  ;;  %v984_v28 = vadd.f32 %v1723_v47, %v947_v21  ;;  %v847_v29 = vadd.f32 %v1236_v17, %v632_v22  ;;  %v842_v31 = vadd.f32 %v841_v25, %v627_v15 }
 0x145   : > { %v636_v32 = vpop.f32.mrf.mxu0  ;;  %v1239_v33 = vpop.f32.mrf.mxu1 }
 0x146   : > { %1045 = vst.msk [vmem:[%s1735_s12 + $0x58] sm:$0xff] %vm409_vm0, %v1015_v27  ;;  %v1014_v36 = vmax.f32 %v984_v28, 0.0  ;;  %v950_v37 = vmul.f32 %v1717_v43, %v847_v29  ;;  %v949_v38 = vmul.f32 %v1717_v43, %v842_v31  ;;  %v637_v39 = vadd.f32 %v636_v32, %v393_v26  ;;  %v398_v27 = vld [vmem:[%s1690_s30 + $0x98] sm:$0xff] }
 0x147   : > { %v638_v34 = vpop.f32.mrf.mxu0  ;;  %v851_v40 = vpop.f32.mrf.mxu1 }
 0x148   : > { %1044 = vst.msk [vmem:[%s1735_s12 + $0x50] sm:$0xff] %vm409_vm0, %v1014_v36  ;;  %v987_v42 = vadd.f32 %v1723_v47, %v950_v37  ;;  %v986_v44 = vadd.f32 %v1723_v47, %v949_v38  ;;  %v852_v45 = vadd.f32 %v851_v40, %v637_v39  ;;  %v406_v36 = vld [vmem:[%s1690_s30 + $0xd8] sm:$0xff] }
 0x149   : > { %v641_v46 = vpop.f32.mrf.mxu0  ;;  %v1242_v48 = vpop.f32.mrf.mxu1 }
 0x14a   : > { %v1017_v49 = vmax.f32 %v987_v42, 0.0  ;;  %v1016_v50 = vmax.f32 %v986_v44, 0.0  ;;  %v951_v51 = vmul.f32 %v1717_v43, %v852_v45  ;;  %v642_v52 = vadd.f32 %v641_v46, %v394_v41  ;;  %v399_v42 = vld [vmem:[%s1690_s30 + $0xa0] sm:$0xff] }
 0x14b   : > { %v643_v54 = vpop.f32.mrf.mxu0  ;;  %v861_v55 = vpop.f32.mrf.mxu1 }
 0x14c   : > { %1047 = vst.msk [vmem:[%s1735_s12 + $0x68] sm:$0xff] %vm409_vm0, %v1017_v49  ;;  %1046 = vst.msk [vmem:[%s1735_s12 + $0x60] sm:$0xff] %vm409_vm0, %v1016_v50  ;;  %v988_v57 = vadd.f32 %v1723_v47, %v951_v51  ;;  %v857_v58 = vadd.f32 %v1239_v33, %v642_v52  ;;  %v702_v49 = vadd.f32 %v1704_v24, %v406_v36 }
 0x14d   : > { %v646_v53 = vpop.f32.mrf.mxu0  ;;  %v1245_v59 = vpop.f32.mrf.mxu1 }
 0x14e   : > { %v1018_v60 = vmax.f32 %v988_v57, 0.0  ;;  %v952_v61 = vmul.f32 %v1717_v43, %v857_v58  ;;  %v647_v62 = vadd.f32 %v646_v53, %v395_v56 }
 0x14f   : > { %v648_v63 = vpop.f32.mrf.mxu0  ;;  %v871_v0 = vpop.f32.mrf.mxu1 }
 0x150   : > { %1048 = vst.msk [vmem:[%s1735_s12 + $0x70] sm:$0xff] %vm409_vm0, %v1018_v60  ;;  %v989_v3 = vadd.f32 %v1723_v47, %v952_v61  ;;  %v862_v4 = vadd.f32 %v861_v55, %v647_v62  ;;  %v400_v63 = vld [vmem:[%s1690_s30 + $0xa8] sm:$0xff] }
 0x151   : > { %v651_v5 = vpop.f32.mrf.mxu0  ;;  %v1808_v6 = vpop.f32.mrf.mxu1 }
 0x152   : > { %v1019_v7 = vmax.f32 %v989_v3, 0.0  ;;  %v953_v9 = vmul.f32 %v1717_v43, %v862_v4  ;;  %v652_v10 = vadd.f32 %v651_v5, %v396_v1 }
 0x153   : > { %v653_v11 = vpop.f32.mrf.mxu0  ;;  %v881_v12 = vpop.f32.mrf.mxu1 }
 0x154   : > { %1049 = vst.msk [vmem:[%s1735_s12 + $0x78] sm:$0xff] %vm409_vm0, %v1019_v7  ;;  %v990_v15 = vadd.f32 %v1723_v47, %v953_v9  ;;  %v867_v16 = vadd.f32 %v1242_v48, %v652_v10 }
 0x155   : > { %v656_v17 = vpop.f32.mrf.mxu0  ;;  %v1251_v18 = vpop.f32.mrf.mxu1 }
 0x156   : > { %v1020_v19 = vmax.f32 %v990_v15, 0.0  ;;  %v954_v21 = vmul.f32 %v1717_v43, %v867_v16  ;;  %v657_v22 = vadd.f32 %v656_v17, %v397_v13  ;;  %v897_v23 = vadd.f32 %v1251_v18, %v1693_v2  ;;  %v401_v16 = vld [vmem:[%s1690_s30 + $0xb0] sm:$0xff] }
 0x157   : > { %v658_v25 = vpop.f32.mrf.mxu0  ;;  %v1817_v26 = vpop.f32.mrf.mxu1 }
 0x158   : > { %1050 = vst.msk [vmem:[%s1735_s12 + $0x80] sm:$0xff] %vm409_vm0, %v1020_v19  ;;  %v991_v28 = vadd.f32 %v1723_v47, %v954_v21  ;;  %v872_v29 = vadd.f32 %v871_v0, %v657_v22  ;;  %v960_v31 = vmul.f32 %v1717_v43, %v897_v23 }
 0x159   : > { %v661_v32 = vpop.f32.mrf.mxu0  ;;  %v1254_v33 = vpop.f32.mrf.mxu1 }
 0x15a   : > { %v1021_v37 = vmax.f32 %v991_v28, 0.0  ;;  %v955_v38 = vmul.f32 %v1717_v43, %v872_v29  ;;  %v997_v2 = vadd.f32 %v1723_v47, %v960_v31  ;;  %v662_v39 = vadd.f32 %v661_v32, %v398_v27 }
 0x15b   : > { %v907_v34 = vadd.f32 %v1254_v33, %v1699_v14  ;;  %v663_v40 = vpop.f32.mrf.mxu0  ;;  %v901_v41 = vpop.f32.mrf.mxu1  ;;  %v408_v14 = vld [vmem:[%s1690_s30 + $0xe8] sm:$0xff] }
 0x15c   : > { %1051 = vst.msk [vmem:[%s1735_s12 + $0x88] sm:$0xff] %vm409_vm0, %v1021_v37  ;;  %v992_v44 = vadd.f32 %v1723_v47, %v955_v38  ;;  %v1027_v45 = vmax.f32 %v997_v2, 0.0  ;;  %v877_v46 = vadd.f32 %v1245_v59, %v662_v39  ;;  %v902_v48 = vadd.f32 %v901_v41, %v1696_v8 }
 0x15d   : > { %v962_v50 = vmul.f32 %v1717_v43, %v907_v34  ;;  %v666_v51 = vpop.f32.mrf.mxu0  ;;  %v1257_v52 = vpop.f32.mrf.mxu1  ;;  %v712_v0 = vadd.f32 %v1710_v35, %v408_v14 }
 0x15e   : > { %v1022_v54 = vmax.f32 %v992_v44, 0.0  ;;  %1057 = vst.msk [vmem:[%s1735_s12 + $0xb8] sm:$0xff] %vm409_vm0, %v1027_v45  ;;  %v956_v55 = vmul.f32 %v1717_v43, %v877_v46  ;;  %v961_v56 = vmul.f32 %v1717_v43, %v902_v48  ;;  %v667_v57 = vadd.f32 %v666_v51, %v399_v42 }
 0x15f   : > { %v999_v58 = vadd.f32 %v1723_v47, %v962_v50  ;;  %v917_v53 = vadd.f32 %v1257_v52, %v702_v49  ;;  %v668_v8 = vpop.f32.mrf.mxu0  ;;  %v911_v59 = vpop.f32.mrf.mxu1 }
 0x160   : > { %1052 = vst.msk [vmem:[%s1735_s12 + $0x90] sm:$0xff] %vm409_vm0, %v1022_v54  ;;  %v993_v24 = vadd.f32 %v1723_v47, %v956_v55  ;;  %v998_v60 = vadd.f32 %v1723_v47, %v961_v56  ;;  %v882_v61 = vadd.f32 %v881_v12, %v667_v57  ;;  %v912_v62 = vadd.f32 %v911_v59, %v1702_v20 }
 0x161   : > { %v1029_v1 = vmax.f32 %v999_v58, 0.0  ;;  %v964_v3 = vmul.f32 %v1717_v43, %v917_v53  ;;  %v671_v4 = vpop.f32.mrf.mxu0  ;;  %v1260_v5 = vpop.f32.mrf.mxu1 }
 0x162   : > { %v1023_v7 = vmax.f32 %v993_v24, 0.0  ;;  %v1028_v9 = vmax.f32 %v998_v60, 0.0  ;;  %v957_v10 = vmul.f32 %v1717_v43, %v882_v61  ;;  %v963_v11 = vmul.f32 %v1717_v43, %v912_v62 }
 0x163   : > { %1059 = vst.msk [vmem:[%s1735_s12 + $0xc8] sm:$0xff] %vm409_vm0, %v1029_v1  ;;  %v1001_v20 = vadd.f32 %v1723_v47, %v964_v3  ;;  %v672_v12 = vadd.f32 %v671_v4, %v400_v63  ;;  %v927_v13 = vadd.f32 %v1260_v5, %v712_v0  ;;  %v673_v35 = vpop.f32.mrf.mxu0  ;;  %v921_v15 = vpop.f32.mrf.mxu1 }
 0x164   : > { %1053 = vst.msk [vmem:[%s1735_s12 + $0x98] sm:$0xff] %vm409_vm0, %v1023_v7  ;;  %1058 = vst.msk [vmem:[%s1735_s12 + $0xc0] sm:$0xff] %vm409_vm0, %v1028_v9  ;;  %v994_v17 = vadd.f32 %v1723_v47, %v957_v10  ;;  %v1000_v18 = vadd.f32 %v1723_v47, %v963_v11  ;;  %v922_v19 = vadd.f32 %v921_v15, %v1707_v30 }
 0x165   : > { %v1031_v21 = vmax.f32 %v1001_v20, 0.0  ;;  %v887_v22 = vadd.f32 %v1808_v6, %v672_v12  ;;  %v966_v23 = vmul.f32 %v1717_v43, %v927_v13  ;;  %v676_v25 = vpop.f32.mrf.mxu0 }
 0x166   : > { %v1024_v27 = vmax.f32 %v994_v17, 0.0  ;;  %v1030_v28 = vmax.f32 %v1000_v18, 0.0  ;;  %v965_v29 = vmul.f32 %v1717_v43, %v922_v19  ;;  %v677_v31 = vadd.f32 %v676_v25, %v401_v16 }
 0x167   : > { %1061 = vst.msk [vmem:[%s1735_s12 + $0xd8] sm:$0xff] %vm409_vm0, %v1031_v21  ;;  %v958_v32 = vmul.f32 %v1717_v43, %v887_v22  ;;  %v1003_v30 = vadd.f32 %v1723_v47, %v966_v23  ;;  %v678_v33 = vpop.f32.mrf.mxu0 }
 0x168   : > { %1054 = vst.msk [vmem:[%s1735_s12 + $0xa0] sm:$0xff] %vm409_vm0, %v1024_v27  ;;  %1060 = vst.msk [vmem:[%s1735_s12 + $0xd0] sm:$0xff] %vm409_vm0, %v1030_v28  ;;  %v1002_v6 = vadd.f32 %v1723_v47, %v965_v29  ;;  %v892_v36 = vadd.f32 %v1817_v26, %v677_v31 }
 0x169   : > { %v995_v37 = vadd.f32 %v1723_v47, %v958_v32  ;;  %v1033_v38 = vmax.f32 %v1003_v30, 0.0 }
 0x16a   : > { %v1032_v2 = vmax.f32 %v1002_v6, 0.0  ;;  %v959_v39 = vmul.f32 %v1717_v43, %v892_v36 }
 0x16b   : > { %v1025_v34 = vmax.f32 %v995_v37, 0.0  ;;  %1063 = vst.msk [vmem:[%s1735_s12 + $0xe8] sm:$0xff] %vm409_vm0, %v1033_v38 }
 0x16c   : > { %1062 = vst.msk [vmem:[%s1735_s12 + $0xe0] sm:$0xff] %vm409_vm0, %v1032_v2  ;;  %v996_v40 = vadd.f32 %v1723_v47, %v959_v39 }
 0x16d   : > { %1055 = vst.msk [vmem:[%s1735_s12 + $0xa8] sm:$0xff] %vm409_vm0, %v1025_v34 }
 0x16e   : > { %v1026_v41 = vmax.f32 %v996_v40, 0.0 }
 0x170   : > { %1056 = vst.msk [vmem:[%s1735_s12 + $0xb0] sm:$0xff] %vm409_vm0, %v1026_v41 }
 0x171 PF: > { %s15_s18 = sadd.s32 1, %s1341_s18  }
 0x172   : > { %p12_p4 = scmp.ge.s32.totalorder %s15_s18, 4  }
 0x174   :  { %14 = sbr.rel (!%p12_p4) target bundleno = 1 (0x1), region = 73 }

// kernel: dronet_forward.13
= control target key start
LH: loop header
LB: loop body
LE: loop exit
PB: predicated region body
PF: predicated region fallthrough
CT: control target
= control target key end

     0   :  { %v979_v3 = vmov 0.0   ;;  %vm980_vm0 = vmmov 0   ;;  %vm103_vm1 = vcmask 261120   ;;  %vm488_vm2 = vcmask 523264   ;;  %s1601_s1 = inlined_call_operand.vmem [shape: f32[288,64], index: 1, kind: input, shape index: {}]   ;;  %s1602_s0 = inlined_call_operand.vmem [shape: f32[120,288], index: 0, kind: input, shape index: {}]   ;;  %s1603_s2 = inlined_call_operand.vmem [shape: f32[32,64], index: 2, kind: input, shape index: {}]   ;;  %s1604_s3 = inlined_call_operand.vmem [shape: f32[1,64], index: 3, kind: input, shape index: {}]   ;;  %s1605_s4 = inlined_call_operand.vmem [shape: f32[1,64], index: 4, kind: input, shape index: {}]   ;;  %s1606_s6 = inlined_call_operand.vmem [shape: f32[120,64], index: 6, kind: output, shape index: {1}]   ;;  %s1607_s5 = inlined_call_operand.vmem [shape: f32[120,64], index: 5, kind: output, shape index: {0}]  }
   0x1   :  { %v98_v0 = vld [vmem:[%s1601_s1 + $0xf8] sm:$0xff]  ;;  %v97_v2 = vld [vmem:[%s1601_s1 + $0xf0] sm:$0xff]  ;;  %969 = vmatprep.subr.mxu1 %v979_v3  ;;  %883 = vmatprep.mubr.msk.f32.mxu1 %vm980_vm0, %v979_v3  ;;  %v96_v6 = vld [vmem:[%s1601_s1 + $0xe8] sm:$0xff] }
   0x2   :  { %v82_v1 = vld [vmem:[%s1601_s1 + $0x78] sm:$0xff]  ;;  %748 = vmatprep.subr.mxu0 %v98_v0  ;;  %v81_v4 = vld [vmem:[%s1601_s1 + $0x70] sm:$0xff]  ;;  %v80_v8 = vld [vmem:[%s1601_s1 + $0x68] sm:$0xff] }
   0x3   :  { %v1034_v5 = vld [vmem:[%s1601_s1 + $0x118] sm:$0xff]  ;;  %749 = vmatpush3.msra.mxu0 %v82_v1  ;;  %v1043_v7 = vld [vmem:[%s1601_s1 + $0x110] sm:$0xff]  ;;  %v1052_v9 = vld [vmem:[%s1601_s1 + $0x108] sm:$0xff] }
   0x4   :  { %973 = vmatpush3.msra.mxu1 %v1034_v5  ;;  %750 = vmatprep.subr.mxu0 %v97_v2  ;;  %v95_v10 = vld [vmem:[%s1601_s1 + $0xe0] sm:$0xff]  ;;  %v94_v13 = vld [vmem:[%s1601_s1 + $0xd8] sm:$0xff]  ;;  %v36_v14 = vld [vmem:[%s1602_s0 + $0x70] sm:$0xff] }
   0x5   :  { %970 = vmatprep.subr.mxu1 %v979_v3  ;;  %751 = vmatpush3.msra.mxu0 %v81_v4  ;;  %v79_v11 = vld [vmem:[%s1601_s1 + $0x60] sm:$0xff]  ;;  %v78_v15 = vld [vmem:[%s1601_s1 + $0x58] sm:$0xff]  ;;  %v93_v16 = vld [vmem:[%s1601_s1 + $0xd0] sm:$0xff] }
   0x6   :  { %974 = vmatpush3.msra.mxu1 %v1043_v7  ;;  %752 = vmatprep.subr.mxu0 %v96_v6  ;;  %v1065_v12 = vld [vmem:[%s1601_s1 + $0x100] sm:$0xff]  ;;  %v507_v17 = vld [vmem:[%s1603_s2 + $0x18] sm:$0xff]  ;;  %v77_v18 = vld [vmem:[%s1601_s1 + $0x50] sm:$0xff] }
   0x7   :  { %971 = vmatprep.subr.mxu1 %v979_v3  ;;  %753 = vmatpush3.msra.mxu0 %v80_v8  ;;  %v92_v19 = vld [vmem:[%s1601_s1 + $0xc8] sm:$0xff]  ;;  %v91_v22 = vld [vmem:[%s1601_s1 + $0xc0] sm:$0xff]  ;;  %v506_v24 = vld [vmem:[%s1603_s2 + $0x10] sm:$0xff] }
   0x8   :  { %975 = vmatpush3.msra.mxu1 %v1052_v9  ;;  %754 = vmatprep.subr.mxu0 %v95_v10  ;;  %v39_v20 = vld [vmem:[%s1602_s0 + $0x88] sm:$0xff]  ;;  %v75_v23 = vld [vmem:[%s1601_s1 + $0x40] sm:$0xff]  ;;  %v90_v25 = vld [vmem:[%s1601_s1 + $0xb8] sm:$0xff] }
   0x9   :  { %972 = vmatprep.subr.mxu1 %v979_v3  ;;  %755 = vmatpush3.msra.mxu0 %v79_v11  ;;  %v76_v21 = vld [vmem:[%s1601_s1 + $0x48] sm:$0xff]  ;;  %v42_v26 = vld [vmem:[%s1602_s0 + $0xa0] sm:$0xff]  ;;  %v74_v27 = vld [vmem:[%s1601_s1 + $0x38] sm:$0xff] }
   0xa   :  { %976 = vmatpush3.msra.mxu1 %v1065_v12  ;;  %756 = vmatprep.subr.mxu0 %v94_v13  ;;  %v89_v28 = vld [vmem:[%s1601_s1 + $0xb0] sm:$0xff]  ;;  %v1129_v29 = vld [vmem:[%s1602_s0 + $0x8] sm:$0xff]  ;;  %v45_v32 = vld [vmem:[%s1602_s0 + $0xb8] sm:$0xff] }
   0xb   :  { %884 = vmatmul.mubr.msk.f32.vlgmr.msra.gmra.mxu1 %vm103_vm1, %v36_v14  ;;  %757 = vmatpush3.msra.mxu0 %v78_v15  ;;  %v73_v30 = vld [vmem:[%s1601_s1 + $0x30] sm:$0xff]  ;;  %v88_v31 = vld [vmem:[%s1601_s1 + $0xa8] sm:$0xff]  ;;  %v87_v34 = vld [vmem:[%s1601_s1 + $0xa0] sm:$0xff] }
   0xc   :  { %916 = vmatprep.subr.mxu1 %v979_v3  ;;  %758 = vmatprep.subr.mxu0 %v93_v16  ;;  %v72_v33 = vld [vmem:[%s1601_s1 + $0x28] sm:$0xff]  ;;  %v71_v36 = vld [vmem:[%s1601_s1 + $0x20] sm:$0xff]  ;;  %v86_v37 = vld [vmem:[%s1601_s1 + $0x98] sm:$0xff] }
   0xd   :  { %917 = vmatpush3.msra.mxu1 %v507_v17  ;;  %759 = vmatpush3.msra.mxu0 %v77_v18  ;;  %v505_v35 = vld [vmem:[%s1603_s2 + $0x8] sm:$0xff]  ;;  %v48_v38 = vld [vmem:[%s1602_s0 + $0xd0] sm:$0xff]  ;;  %v70_v39 = vld [vmem:[%s1601_s1 + $0x18] sm:$0xff] }
   0xe   :  { %886 = vmatprep.mubr.msk.f32.mxu1 %vm980_vm0, %v979_v3  ;;  %760 = vmatprep.subr.mxu0 %v92_v19  ;;  %v85_v40 = vld [vmem:[%s1601_s1 + $0x90] sm:$0xff]  ;;  %v504_v41 = vld [vmem:[%s1603_s2] sm:$0xff]  ;;  %v84_v43 = vld [vmem:[%s1601_s1 + $0x88] sm:$0xff] }
   0xf   :  { %887 = vmatmul.mubr.msk.f32.gmra.mxu1 %vm103_vm1, %v39_v20  ;;  %761 = vmatpush3.msra.mxu0 %v76_v21  ;;  %v69_v42 = vld [vmem:[%s1601_s1 + $0x10] sm:$0xff]  ;;  %v51_v44 = vld [vmem:[%s1602_s0 + $0xe8] sm:$0xff]  ;;  %v83_v46 = vld [vmem:[%s1601_s1 + $0x80] sm:$0xff] }
  0x10   :  { %889 = vmatprep.mubr.msk.f32.mxu1 %vm980_vm0, %v979_v3  ;;  %762 = vmatprep.subr.mxu0 %v91_v22  ;;  %v68_v45 = vld [vmem:[%s1601_s1 + $0x8] sm:$0xff]  ;;  %v67_v47 = vld [vmem:[%s1601_s1] sm:$0xff]  ;;  %v25_v51 = vld [vmem:[%s1602_s0 + $0x18] sm:$0xff] }
  0x11   :  { %918 = vmatprep.subr.mxu1 %v979_v3  ;;  %763 = vmatpush3.msra.mxu0 %v75_v23  ;;  %v22_v48 = vld [vmem:[%s1602_s0] sm:$0xff]  ;;  %v57_v52 = vld [vmem:[%s1602_s0 + $0x118] sm:$0xff]  ;;  %v28_v54 = vld [vmem:[%s1602_s0 + $0x30] sm:$0xff] }
  0x12   :  { %919 = vmatpush3.msra.mxu1 %v506_v24  ;;  %764 = vmatprep.subr.mxu0 %v90_v25  ;;  %v54_v49 = vld [vmem:[%s1602_s0 + $0x100] sm:$0xff]  ;;  %v29_v53 = vld [vmem:[%s1602_s0 + $0x38] sm:$0xff]  ;;  %v60_v55 = vld [vmem:[%s1602_s0 + $0x130] sm:$0xff] }
  0x13   :  { %890 = vmatmul.mubr.msk.f32.gmra.mxu1 %vm103_vm1, %v42_v26  ;;  %765 = vmatpush3.msra.mxu0 %v74_v27  ;;  %v26_v50 = vld [vmem:[%s1602_s0 + $0x20] sm:$0xff]  ;;  %v32_v56 = vld [vmem:[%s1602_s0 + $0x50] sm:$0xff]  ;;  %v31_v57 = vld [vmem:[%s1602_s0 + $0x48] sm:$0xff] }
  0x14   :  { %892 = vmatprep.mubr.msk.f32.mxu1 %vm980_vm0, %v979_v3  ;;  %766 = vmatprep.subr.mxu0 %v89_v28  ;;  %v63_v58 = vld [vmem:[%s1602_s0 + $0x148] sm:$0xff]  ;;  %v34_v60 = vld [vmem:[%s1602_s0 + $0x60] sm:$0xff]  ;;  %v37_v63 = vld [vmem:[%s1602_s0 + $0x78] sm:$0xff] }
  0x15   :  { %213 = vmatprep.mubr.f32.mxu0 %v1129_v29  ;;  %767 = vmatpush3.msra.mxu0 %v73_v30  ;;  %v35_v59 = vld [vmem:[%s1602_s0 + $0x68] sm:$0xff]  ;;  %v66_v61 = vld [vmem:[%s1602_s0 + $0x160] sm:$0xff]  ;;  %v41_v0 = vld [vmem:[%s1602_s0 + $0x98] sm:$0xff] }
  0x16   :  { %920 = vmatprep.subr.mxu1 %v979_v3  ;;  %768 = vmatprep.subr.mxu0 %v88_v31  ;;  %v38_v62 = vld [vmem:[%s1602_s0 + $0x80] sm:$0xff]  ;;  %v40_v1 = vld [vmem:[%s1602_s0 + $0x90] sm:$0xff]  ;;  %v43_v4 = vld [vmem:[%s1602_s0 + $0xa8] sm:$0xff] }
  0x17   :  { %893 = vmatmul.mubr.msk.f32.gmra.mxu1 %vm103_vm1, %v45_v32  ;;  %769 = vmatpush3.msra.mxu0 %v72_v33  ;;  %v44_v2 = vld [vmem:[%s1602_s0 + $0xb0] sm:$0xff]  ;;  %v46_v6 = vld [vmem:[%s1602_s0 + $0xc0] sm:$0xff]  ;;  %v49_v8 = vld [vmem:[%s1602_s0 + $0xd8] sm:$0xff] }
  0x18   :  { %895 = vmatprep.mubr.msk.f32.mxu1 %vm980_vm0, %v979_v3  ;;  %770 = vmatprep.subr.mxu0 %v87_v34  ;;  %v52_v10 = vld [vmem:[%s1602_s0 + $0xf0] sm:$0xff]  ;;  %v59_v13 = vld [vmem:[%s1602_s0 + $0x128] sm:$0xff]  ;;  %v58_v14 = vld [vmem:[%s1602_s0 + $0x120] sm:$0xff] }
  0x19   :  { %921 = vmatpush3.msra.mxu1 %v505_v35  ;;  %771 = vmatpush3.msra.mxu0 %v71_v36  ;;  %v56_v11 = vld [vmem:[%s1602_s0 + $0x110] sm:$0xff]  ;;  %v62_v15 = vld [vmem:[%s1602_s0 + $0x140] sm:$0xff]  ;;  %v61_v16 = vld [vmem:[%s1602_s0 + $0x138] sm:$0xff] }
  0x1a   :  { %922 = vmatprep.subr.mxu1 %v979_v3  ;;  %772 = vmatprep.subr.mxu0 %v86_v37  ;;  %v65_v17 = vld [vmem:[%s1602_s0 + $0x158] sm:$0xff]  ;;  %v64_v18 = vld [vmem:[%s1602_s0 + $0x150] sm:$0xff]  ;;  %v27_v20 = vld [vmem:[%s1602_s0 + $0x28] sm:$0xff] }
  0x1b   :  { %896 = vmatmul.mubr.msk.f32.gmra.mxu1 %vm103_vm1, %v48_v38  ;;  %773 = vmatpush3.msra.mxu0 %v70_v39  ;;  %v24_v19 = vld [vmem:[%s1602_s0 + $0x10] sm:$0xff]  ;;  %v30_v21 = vld [vmem:[%s1602_s0 + $0x40] sm:$0xff]  ;;  %v33_v22 = vld [vmem:[%s1602_s0 + $0x58] sm:$0xff] }
  0x1c   :  { %898 = vmatprep.mubr.msk.f32.mxu1 %vm980_vm0, %v979_v3  ;;  %774 = vmatprep.subr.mxu0 %v85_v40 }
  0x1d   :  { %923 = vmatpush3.msra.mxu1 %v504_v41  ;;  %775 = vmatpush3.msra.mxu0 %v69_v42 }
  0x1e   :  { %776 = vmatprep.subr.mxu0 %v84_v43 }
  0x1f   :  { %899 = vmatmul.mubr.msk.f32.gmra.mxu1 %vm103_vm1, %v51_v44  ;;  %777 = vmatpush3.msra.mxu0 %v68_v45 }
  0x20   :  { %901 = vmatprep.mubr.msk.f32.mxu1 %vm980_vm0, %v979_v3  ;;  %778 = vmatprep.subr.mxu0 %v83_v46 }
  0x21   :  { %779 = vmatpush3.msra.mxu0 %v67_v47 }
  0x22   :  { %214 = vmatmul.mubr.f32.vlgmr.msra.gmra.mxu0 %v22_v48  ;;  %863 = vmatprep.subr.mxu0 %v979_v3 }
  0x23   :  { %864 = vmatpush3.msra.mxu0 %v1034_v5  ;;  %902 = vmatmul.mubr.msk.f32.gmra.mxu1 %vm103_vm1, %v54_v49  ;;  %v47_v5 = vld [vmem:[%s1602_s0 + $0xc8] sm:$0xff] }
  0x24   :  { %218 = vmatprep.mubr.f32.mxu0 %v26_v50  ;;  %904 = vmatprep.mubr.msk.f32.mxu1 %vm980_vm0, %v979_v3 }
  0x25   :  { %865 = vmatprep.subr.mxu0 %v979_v3 }
  0x26   :  { %219 = vmatmul.mubr.f32.gmra.mxu0 %v25_v51 }
  0x27   :  { %905 = vmatmul.mubr.msk.f32.gmra.mxu1 %vm103_vm1, %v57_v52  ;;  %223 = vmatprep.mubr.f32.mxu0 %v29_v53 }
  0x28   :  { %907 = vmatprep.mubr.msk.f32.mxu1 %vm980_vm0, %v979_v3  ;;  %866 = vmatpush3.msra.mxu0 %v1043_v7  ;;  %v50_v7 = vld [vmem:[%s1602_s0 + $0xe0] sm:$0xff] }
  0x29   :  { %867 = vmatprep.subr.mxu0 %v979_v3 }
  0x2a   :  { %224 = vmatmul.mubr.f32.gmra.mxu0 %v28_v54 }
  0x2b   :  { %908 = vmatmul.mubr.msk.f32.gmra.mxu1 %vm103_vm1, %v60_v55  ;;  %228 = vmatprep.mubr.f32.mxu0 %v32_v56  ;;  %v1428_v55 = vld [vmem:[%s1604_s3] ss:$0 sm:$0xff] }
  0x2c   :  { %910 = vmatprep.mubr.msk.f32.mxu1 %vm980_vm0, %v979_v3  ;;  %868 = vmatpush3.msra.mxu0 %v1052_v9  ;;  %v53_v9 = vld [vmem:[%s1602_s0 + $0xf8] sm:$0xff] }
  0x2d   :  { %869 = vmatprep.subr.mxu0 %v979_v3 }
  0x2e   :  { %229 = vmatmul.mubr.f32.gmra.mxu0 %v31_v57 }
  0x2f   :  { %911 = vmatmul.mubr.msk.f32.gmra.mxu1 %vm103_vm1, %v63_v58  ;;  %233 = vmatprep.mubr.f32.mxu0 %v35_v59 }
  0x30   :  { %913 = vmatprep.mubr.msk.f32.mxu1 %vm980_vm0, %v979_v3  ;;  %870 = vmatpush3.msra.mxu0 %v1065_v12  ;;  %v55_v12 = vld [vmem:[%s1602_s0 + $0x108] sm:$0xff] }
  0x32   :  { %234 = vmatmul.mubr.f32.gmra.mxu0 %v34_v60 }
  0x33   :  { %914 = vmatmul.mubr.msk.f32.gmra.mxu1 %vm103_vm1, %v66_v61  ;;  %238 = vmatprep.mubr.f32.mxu0 %v38_v62 }
  0x34   :  { %924 = vmatprep.mubr.msk.f32.mxu1 %vm980_vm0, %v979_v3 }
  0x36   :  { %239 = vmatmul.mubr.f32.gmra.mxu0 %v37_v63 }
  0x37   :  { %925 = vmatmul.mubr.msk.f32.vlgmr.msra.gmra.mxu1 %vm103_vm1, %v1129_v29  ;;  %243 = vmatprep.mubr.f32.mxu0 %v41_v0 }
  0x38   :  { %927 = vmatprep.mubr.msk.f32.mxu1 %vm980_vm0, %v979_v3 }
  0x3a   :  { %244 = vmatmul.mubr.f32.gmra.mxu0 %v40_v1 }
  0x3b   :  { %928 = vmatmul.mubr.msk.f32.gmra.mxu1 %vm103_vm1, %v26_v50  ;;  %248 = vmatprep.mubr.f32.mxu0 %v44_v2 }
  0x3c   :  { %930 = vmatprep.mubr.msk.f32.mxu1 %vm980_vm0, %v979_v3 }
  0x3e   :  { %249 = vmatmul.mubr.f32.gmra.mxu0 %v43_v4 }
  0x3f   :  { %931 = vmatmul.mubr.msk.f32.gmra.mxu1 %vm103_vm1, %v29_v53  ;;  %253 = vmatprep.mubr.f32.mxu0 %v47_v5 }
  0x40   :  { %933 = vmatprep.mubr.msk.f32.mxu1 %vm980_vm0, %v979_v3 }
  0x42   :  { %254 = vmatmul.mubr.f32.gmra.mxu0 %v46_v6 }
  0x43   :  { %934 = vmatmul.mubr.msk.f32.gmra.mxu1 %vm103_vm1, %v32_v56  ;;  %258 = vmatprep.mubr.f32.mxu0 %v50_v7 }
  0x44   :  { %936 = vmatprep.mubr.msk.f32.mxu1 %vm980_vm0, %v979_v3 }
  0x46   :  { %259 = vmatmul.mubr.f32.gmra.mxu0 %v49_v8 }
  0x47   :  { %937 = vmatmul.mubr.msk.f32.gmra.mxu1 %vm103_vm1, %v35_v59  ;;  %263 = vmatprep.mubr.f32.mxu0 %v53_v9  ;;  %v1433_v59 = vld [vmem:[%s1605_s4] ss:$0 sm:$0xff] }
  0x48   :  { %939 = vmatprep.mubr.msk.f32.mxu1 %vm980_vm0, %v979_v3 }
  0x4a   :  { %264 = vmatmul.mubr.f32.gmra.mxu0 %v52_v10 }
  0x4b   :  { %940 = vmatmul.mubr.msk.f32.gmra.mxu1 %vm103_vm1, %v38_v62  ;;  %268 = vmatprep.mubr.f32.mxu0 %v56_v11 }
  0x4c   :  { %942 = vmatprep.mubr.msk.f32.mxu1 %vm980_vm0, %v979_v3 }
  0x4e   :  { %269 = vmatmul.mubr.f32.gmra.mxu0 %v55_v12 }
  0x4f   :  { %943 = vmatmul.mubr.msk.f32.gmra.mxu1 %vm103_vm1, %v41_v0  ;;  %273 = vmatprep.mubr.f32.mxu0 %v59_v13 }
  0x50   :  { %945 = vmatprep.mubr.msk.f32.mxu1 %vm980_vm0, %v979_v3 }
  0x52   :  { %274 = vmatmul.mubr.f32.gmra.mxu0 %v58_v14 }
  0x53   :  { %946 = vmatmul.mubr.msk.f32.gmra.mxu1 %vm103_vm1, %v44_v2  ;;  %278 = vmatprep.mubr.f32.mxu0 %v62_v15 }
  0x54   :  { %948 = vmatprep.mubr.msk.f32.mxu1 %vm980_vm0, %v979_v3 }
  0x56   :  { %279 = vmatmul.mubr.f32.gmra.mxu0 %v61_v16 }
  0x57   :  { %949 = vmatmul.mubr.msk.f32.gmra.mxu1 %vm103_vm1, %v47_v5  ;;  %283 = vmatprep.mubr.f32.mxu0 %v65_v17 }
  0x58   :  { %951 = vmatprep.mubr.msk.f32.mxu1 %vm980_vm0, %v979_v3 }
  0x5a   :  { %284 = vmatmul.mubr.f32.gmra.mxu0 %v64_v18 }
  0x5b   :  { %952 = vmatmul.mubr.msk.f32.gmra.mxu1 %vm103_vm1, %v50_v7  ;;  %871 = vmatprep.mubr.msk.f32.mxu0 %vm980_vm0, %v979_v3 }
  0x5c   :  { %954 = vmatprep.mubr.msk.f32.mxu1 %vm980_vm0, %v979_v3 }
  0x5e   :  { %872 = vmatmul.mubr.msk.f32.vlgmr.msra.gmra.mxu0 %vm103_vm1, %v24_v19 }
  0x5f   :  { %955 = vmatmul.mubr.msk.f32.gmra.mxu1 %vm103_vm1, %v53_v9  ;;  %874 = vmatprep.mubr.msk.f32.mxu0 %vm980_vm0, %v979_v3 }
  0x60   :  { %957 = vmatprep.mubr.msk.f32.mxu1 %vm980_vm0, %v979_v3 }
  0x62   :  { %875 = vmatmul.mubr.msk.f32.gmra.mxu0 %vm103_vm1, %v27_v20 }
  0x63   :  { %958 = vmatmul.mubr.msk.f32.gmra.mxu1 %vm103_vm1, %v56_v11  ;;  %877 = vmatprep.mubr.msk.f32.mxu0 %vm980_vm0, %v979_v3 }
  0x64   :  { %960 = vmatprep.mubr.msk.f32.mxu1 %vm980_vm0, %v979_v3 }
  0x66   :  { %878 = vmatmul.mubr.msk.f32.gmra.mxu0 %vm103_vm1, %v30_v21 }
  0x67   :  { %961 = vmatmul.mubr.msk.f32.gmra.mxu1 %vm103_vm1, %v59_v13  ;;  %880 = vmatprep.mubr.msk.f32.mxu0 %vm980_vm0, %v979_v3 }
  0x68   :  { %963 = vmatprep.mubr.msk.f32.mxu1 %vm980_vm0, %v979_v3 }
  0x6a   :  { %881 = vmatmul.mubr.msk.f32.gmra.mxu0 %vm103_vm1, %v33_v22 }
  0x6b   :  { %964 = vmatmul.mubr.msk.f32.gmra.mxu1 %vm103_vm1, %v62_v15 }
  0x6c   :  { %966 = vmatprep.mubr.msk.f32.mxu1 %vm980_vm0, %v979_v3 }
  0x6f   :  { %967 = vmatmul.mubr.msk.f32.gmra.mxu1 %vm103_vm1, %v65_v17 }
  0xcb   :  { %v375_v23 = vpop.f32.mrf.mxu1 }
  0xcd   :  { %v885_v24 = vpop.f32.mrf.mxu1 }
  0xcf   :  { %v380_v25 = vpop.f32.mrf.mxu1 }
  0xd1   :  { %v888_v26 = vpop.f32.mrf.mxu1 }
  0xd3   :  { %v385_v27 = vpop.f32.mrf.mxu1 }
  0xd5   :  { %v891_v28 = vpop.f32.mrf.mxu1 }
  0xd7   :  { %v1393_v29 = vpop.f32.mrf.mxu1 }
  0xd9   :  { %v894_v30 = vpop.f32.mrf.mxu1 }
  0xdb   :  { %v1395_v31 = vpop.f32.mrf.mxu1 }
  0xdd   :  { %v897_v32 = vpop.f32.mrf.mxu1 }
  0xdf   :  { %v1397_v33 = vpop.f32.mrf.mxu1 }
  0xe1   :  { %v900_v34 = vpop.f32.mrf.mxu1 }
  0xe2   :  { %v1399_v35 = vpop.f32.mrf.mxu0 }
  0xe3   :  { %v1401_v3 = vpop.f32.mrf.mxu1 }
  0xe4   :  { %v1403_v36 = vpop.f32.mrf.mxu0 }
  0xe5   :  { %v903_v37 = vpop.f32.mrf.mxu1 }
  0xe6   :  { %v1405_v38 = vpop.f32.mrf.mxu0 }
  0xe7   :  { %v1407_v39 = vpop.f32.mrf.mxu1 }
  0xe8   :  { %v1409_v40 = vpop.f32.mrf.mxu0 }
  0xe9   :  { %v906_v41 = vpop.f32.mrf.mxu1 }
  0xea   :  { %v1411_v42 = vpop.f32.mrf.mxu0 }
  0xeb   :  { %v1413_v43 = vpop.f32.mrf.mxu1 }
  0xec   :  { %v1415_v44 = vpop.f32.mrf.mxu0 }
  0xed   :  { %v909_v45 = vpop.f32.mrf.mxu1 }
  0xee   :  { %v1417_v46 = vpop.f32.mrf.mxu0 }
  0xef   :  { %v1419_v47 = vpop.f32.mrf.mxu1 }
  0xf0   :  { %v1421_v48 = vpop.f32.mrf.mxu0 }
  0xf1   :  { %v912_v49 = vpop.f32.mrf.mxu1 }
  0xf2   :  { %v792_v50 = vpop.f32.mrf.mxu0 }
  0xf3   :  { %v1423_v51 = vpop.f32.mrf.mxu1 }
  0xf4   :  { %v793_v52 = vpop.f32.mrf.mxu0 }
  0xf5   :  { %v794_v53 = vadd.f32 %v793_v52, %v792_v50  ;;  %v915_v54 = vpop.f32.mrf.mxu1 }
  0xf6   :  { %v795_v56 = vpop.f32.mrf.mxu0 }
  0xf7   :  { %v376_v57 = vadd.f32 %v794_v53, %v375_v23  ;;  %v619_v58 = vpop.f32.mrf.mxu1 }
  0xf8   :  { %v796_v60 = vpop.f32.mrf.mxu0  ;;  %693 = vst.msk [vmem:[%s1606_s6] sm:$0xff] %vm488_vm2, %v619_v58 }
  0xf9   :  { %v440_v61 = vmul.f32 %v1428_v55, %v376_v57  ;;  %v797_v62 = vadd.f32 %v796_v60, %v795_v56  ;;  %v926_v63 = vpop.f32.mrf.mxu1 }
  0xfa   :  { %v798_v0 = vpop.f32.mrf.mxu0 }
  0xfb   :  { %v462_v1 = vadd.f32 %v1433_v59, %v440_v61  ;;  %v381_v2 = vadd.f32 %v797_v62, %v380_v25  ;;  %v624_v4 = vpop.f32.mrf.mxu1 }
  0xfc   :  { %v799_v5 = vpop.f32.mrf.mxu0  ;;  %694 = vst.msk [vmem:[%s1606_s6 + $0x8] sm:$0xff] %vm488_vm2, %v624_v4 }
  0xfd   :  { %v477_v6 = vmax.f32 %v462_v1, 0.0  ;;  %v441_v7 = vmul.f32 %v1428_v55, %v381_v2  ;;  %v800_v8 = vadd.f32 %v799_v5, %v798_v0  ;;  %v929_v9 = vpop.f32.mrf.mxu1 }
  0xfe   :  { %v801_v10 = vpop.f32.mrf.mxu0 }
  0xff   :  { %493 = vst.msk [vmem:[%s1607_s5 + $0x20] sm:$0xff] %vm488_vm2, %v477_v6  ;;  %v463_v11 = vadd.f32 %v1433_v59, %v441_v7  ;;  %v386_v12 = vadd.f32 %v800_v8, %v385_v27  ;;  %v629_v13 = vpop.f32.mrf.mxu1 }
 0x100   :  { %v802_v14 = vpop.f32.mrf.mxu0  ;;  %695 = vst.msk [vmem:[%s1606_s6 + $0x10] sm:$0xff] %vm488_vm2, %v629_v13 }
 0x101   :  { %v478_v15 = vmax.f32 %v463_v11, 0.0  ;;  %v442_v16 = vmul.f32 %v1428_v55, %v386_v12  ;;  %v803_v17 = vadd.f32 %v802_v14, %v801_v10  ;;  %v932_v18 = vpop.f32.mrf.mxu1 }
 0x102   :  { %v804_v19 = vpop.f32.mrf.mxu0 }
 0x103   :  { %494 = vst.msk [vmem:[%s1607_s5 + $0x28] sm:$0xff] %vm488_vm2, %v478_v15  ;;  %v464_v20 = vadd.f32 %v1433_v59, %v442_v16  ;;  %v391_v21 = vadd.f32 %v803_v17, %v1393_v29  ;;  %v634_v22 = vpop.f32.mrf.mxu1 }
 0x104   :  { %v805_v23 = vpop.f32.mrf.mxu0  ;;  %696 = vst.msk [vmem:[%s1606_s6 + $0x18] sm:$0xff] %vm488_vm2, %v634_v22 }
 0x105   :  { %v479_v24 = vmax.f32 %v464_v20, 0.0  ;;  %v443_v25 = vmul.f32 %v1428_v55, %v391_v21  ;;  %v806_v26 = vadd.f32 %v805_v23, %v804_v19  ;;  %v935_v27 = vpop.f32.mrf.mxu1 }
 0x106   :  { %v807_v28 = vpop.f32.mrf.mxu0 }
 0x107   :  { %495 = vst.msk [vmem:[%s1607_s5 + $0x30] sm:$0xff] %vm488_vm2, %v479_v24  ;;  %v465_v29 = vadd.f32 %v1433_v59, %v443_v25  ;;  %v396_v30 = vadd.f32 %v806_v26, %v1395_v31  ;;  %v639_v32 = vpop.f32.mrf.mxu1  ;;  %v782_v26 = vadd.f32 %v1403_v36, %v1399_v35  ;;  %v785_v35 = vadd.f32 %v1409_v40, %v1405_v38 }
 0x108   :  { %v808_v34 = vpop.f32.mrf.mxu0  ;;  %697 = vst.msk [vmem:[%s1606_s6 + $0x20] sm:$0xff] %vm488_vm2, %v639_v32  ;;  %v788_v38 = vadd.f32 %v1415_v44, %v1411_v42 }
 0x109   :  { %v480_v37 = vmax.f32 %v465_v29, 0.0  ;;  %v444_v41 = vmul.f32 %v1428_v55, %v396_v30  ;;  %v809_v45 = vadd.f32 %v808_v34, %v807_v28  ;;  %v938_v49 = vpop.f32.mrf.mxu1 }
 0x10a   :  { %v810_v50 = vpop.f32.mrf.mxu0 }
 0x10b   :  { %496 = vst.msk [vmem:[%s1607_s5 + $0x38] sm:$0xff] %vm488_vm2, %v480_v37  ;;  %v466_v31 = vadd.f32 %v1433_v59, %v444_v41  ;;  %v401_v52 = vadd.f32 %v809_v45, %v1397_v33  ;;  %v644_v53 = vpop.f32.mrf.mxu1 }
 0x10c   :  { %v811_v54 = vpop.f32.mrf.mxu0  ;;  %698 = vst.msk [vmem:[%s1606_s6 + $0x28] sm:$0xff] %vm488_vm2, %v644_v53 }
 0x10d   :  { %v481_v56 = vmax.f32 %v466_v31, 0.0  ;;  %v445_v57 = vmul.f32 %v1428_v55, %v401_v52  ;;  %v812_v58 = vadd.f32 %v811_v54, %v810_v50  ;;  %v941_v60 = vpop.f32.mrf.mxu1 }
 0x10e   :  { %v813_v61 = vpop.f32.mrf.mxu0 }
 0x10f   :  { %497 = vst.msk [vmem:[%s1607_s5 + $0x40] sm:$0xff] %vm488_vm2, %v481_v56  ;;  %v467_v33 = vadd.f32 %v1433_v59, %v445_v57  ;;  %v406_v62 = vadd.f32 %v812_v58, %v1401_v3  ;;  %v649_v63 = vpop.f32.mrf.mxu1 }
 0x110   :  { %v814_v0 = vpop.f32.mrf.mxu0  ;;  %699 = vst.msk [vmem:[%s1606_s6 + $0x30] sm:$0xff] %vm488_vm2, %v649_v63 }
 0x111   :  { %v482_v1 = vmax.f32 %v467_v33, 0.0  ;;  %v446_v2 = vmul.f32 %v1428_v55, %v406_v62  ;;  %v815_v4 = vadd.f32 %v814_v0, %v813_v61  ;;  %v944_v5 = vpop.f32.mrf.mxu1  ;;  %v791_v0 = vadd.f32 %v1421_v48, %v1417_v46 }
 0x112   :  { %v816_v6 = vpop.f32.mrf.mxu0 }
 0x113   :  { %498 = vst.msk [vmem:[%s1607_s5 + $0x48] sm:$0xff] %vm488_vm2, %v482_v1  ;;  %v468_v3 = vadd.f32 %v1433_v59, %v446_v2  ;;  %v411_v7 = vadd.f32 %v815_v4, %v1407_v39  ;;  %v654_v8 = vpop.f32.mrf.mxu1 }
 0x114   :  { %v817_v9 = vpop.f32.mrf.mxu0  ;;  %700 = vst.msk [vmem:[%s1606_s6 + $0x38] sm:$0xff] %vm488_vm2, %v654_v8 }
 0x115   :  { %v483_v10 = vmax.f32 %v468_v3, 0.0  ;;  %v447_v11 = vmul.f32 %v1428_v55, %v411_v7  ;;  %v818_v12 = vadd.f32 %v817_v9, %v816_v6  ;;  %v947_v13 = vpop.f32.mrf.mxu1 }
 0x116   :  { %v819_v14 = vpop.f32.mrf.mxu0 }
 0x117   :  { %499 = vst.msk [vmem:[%s1607_s5 + $0x50] sm:$0xff] %vm488_vm2, %v483_v10  ;;  %v469_v39 = vadd.f32 %v1433_v59, %v447_v11  ;;  %v416_v15 = vadd.f32 %v818_v12, %v1413_v43  ;;  %v659_v16 = vpop.f32.mrf.mxu1 }
 0x118   :  { %v820_v17 = vpop.f32.mrf.mxu0  ;;  %701 = vst.msk [vmem:[%s1606_s6 + $0x40] sm:$0xff] %vm488_vm2, %v659_v16 }
 0x119   :  { %v484_v18 = vmax.f32 %v469_v39, 0.0  ;;  %v448_v19 = vmul.f32 %v1428_v55, %v416_v15  ;;  %v821_v20 = vadd.f32 %v820_v17, %v819_v14  ;;  %v950_v21 = vpop.f32.mrf.mxu1 }
 0x11a   :  { %v822_v22 = vpop.f32.mrf.mxu0 }
 0x11b   :  { %500 = vst.msk [vmem:[%s1607_s5 + $0x58] sm:$0xff] %vm488_vm2, %v484_v18  ;;  %v470_v43 = vadd.f32 %v1433_v59, %v448_v19  ;;  %v421_v23 = vadd.f32 %v821_v20, %v1419_v47  ;;  %v664_v24 = vpop.f32.mrf.mxu1 }
 0x11c   :  { %v823_v25 = vpop.f32.mrf.mxu0  ;;  %702 = vst.msk [vmem:[%s1606_s6 + $0x48] sm:$0xff] %vm488_vm2, %v664_v24 }
 0x11d   :  { %v485_v27 = vmax.f32 %v470_v43, 0.0  ;;  %v449_v28 = vmul.f32 %v1428_v55, %v421_v23  ;;  %v824_v29 = vadd.f32 %v823_v25, %v822_v22  ;;  %v953_v30 = vpop.f32.mrf.mxu1 }
 0x11e   :  { %v355_v32 = vpop.f32.mrf.mxu0 }
 0x11f   :  { %501 = vst.msk [vmem:[%s1607_s5 + $0x60] sm:$0xff] %vm488_vm2, %v485_v27  ;;  %v471_v47 = vadd.f32 %v1433_v59, %v449_v28  ;;  %v426_v34 = vadd.f32 %v824_v29, %v1423_v51  ;;  %v356_v37 = vadd.f32 %v782_v26, %v355_v32  ;;  %v669_v41 = vpop.f32.mrf.mxu1 }
 0x120   :  { %v873_v45 = vpop.f32.mrf.mxu0  ;;  %703 = vst.msk [vmem:[%s1606_s6 + $0x50] sm:$0xff] %vm488_vm2, %v669_v41 }
 0x121   :  { %v486_v36 = vmax.f32 %v471_v47, 0.0  ;;  %v450_v49 = vmul.f32 %v1428_v55, %v426_v34  ;;  %v436_v50 = vmul.f32 %v1428_v55, %v356_v37  ;;  %v956_v31 = vpop.f32.mrf.mxu1 }
 0x122   :  { %v360_v52 = vpop.f32.mrf.mxu0 }
 0x123   :  { %502 = vst.msk [vmem:[%s1607_s5 + $0x68] sm:$0xff] %vm488_vm2, %v486_v36  ;;  %v472_v51 = vadd.f32 %v1433_v59, %v450_v49  ;;  %v458_v53 = vadd.f32 %v1433_v59, %v436_v50  ;;  %v361_v54 = vadd.f32 %v785_v35, %v360_v52  ;;  %v674_v56 = vpop.f32.mrf.mxu1 }
 0x124   :  { %v876_v57 = vpop.f32.mrf.mxu0  ;;  %704 = vst.msk [vmem:[%s1606_s6 + $0x58] sm:$0xff] %vm488_vm2, %v674_v56 }
 0x125   :  { %v487_v40 = vmax.f32 %v472_v51, 0.0  ;;  %v473_v58 = vmax.f32 %v458_v53, 0.0  ;;  %v437_v60 = vmul.f32 %v1428_v55, %v361_v54  ;;  %v959_v61 = vpop.f32.mrf.mxu1 }
 0x126   :  { %v365_v33 = vpop.f32.mrf.mxu0 }
 0x127   :  { %503 = vst.msk [vmem:[%s1607_s5 + $0x70] sm:$0xff] %vm488_vm2, %v487_v40  ;;  %489 = vst.msk [vmem:[%s1607_s5] sm:$0xff] %vm488_vm2, %v473_v58  ;;  %v459_v62 = vadd.f32 %v1433_v59, %v437_v60  ;;  %v366_v63 = vadd.f32 %v788_v38, %v365_v33  ;;  %v679_v42 = vpop.f32.mrf.mxu1 }
 0x128   :  { %v879_v44 = vpop.f32.mrf.mxu0  ;;  %705 = vst.msk [vmem:[%s1606_s6 + $0x60] sm:$0xff] %vm488_vm2, %v679_v42 }
 0x129   :  { %v474_v1 = vmax.f32 %v459_v62, 0.0  ;;  %v438_v2 = vmul.f32 %v1428_v55, %v366_v63  ;;  %v962_v4 = vpop.f32.mrf.mxu1 }
 0x12a   :  { %v370_v5 = vpop.f32.mrf.mxu0 }
 0x12b   :  { %490 = vst.msk [vmem:[%s1607_s5 + $0x8] sm:$0xff] %vm488_vm2, %v474_v1  ;;  %v460_v6 = vadd.f32 %v1433_v59, %v438_v2  ;;  %v371_v3 = vadd.f32 %v791_v0, %v370_v5  ;;  %v684_v7 = vpop.f32.mrf.mxu1 }
 0x12c   :  { %v882_v8 = vpop.f32.mrf.mxu0  ;;  %706 = vst.msk [vmem:[%s1606_s6 + $0x68] sm:$0xff] %vm488_vm2, %v684_v7 }
 0x12d   :  { %v475_v46 = vmax.f32 %v460_v6, 0.0  ;;  %v439_v48 = vmul.f32 %v1428_v55, %v371_v3  ;;  %v965_v9 = vpop.f32.mrf.mxu1 }
 0x12f   :  { %491 = vst.msk [vmem:[%s1607_s5 + $0x10] sm:$0xff] %vm488_vm2, %v475_v46  ;;  %v461_v10 = vadd.f32 %v1433_v59, %v439_v48  ;;  %v689_v11 = vpop.f32.mrf.mxu1 }
 0x130   :  { %707 = vst.msk [vmem:[%s1606_s6 + $0x70] sm:$0xff] %vm488_vm2, %v689_v11 }
 0x131   :  { %v476_v12 = vmax.f32 %v461_v10, 0.0  ;;  %v968_v13 = vpop.f32.mrf.mxu1 }
 0x133   :  { %492 = vst.msk [vmem:[%s1607_s5 + $0x18] sm:$0xff] %vm488_vm2, %v476_v12 }

// kernel: dronet_forward.14
= control target key start
LH: loop header
LB: loop body
LE: loop exit
PB: predicated region body
PF: predicated region fallthrough
CT: control target
= control target key end

     0   :  { %vm1000_vm0 = vmmov 0   ;;  %vm182_vm1 = vcmask 523264   ;;  %s1792_s1 = inlined_call_operand.vmem [shape: f32[576,64], index: 1, kind: input, shape index: {}]   ;;  %s1793_s0 = inlined_call_operand.vmem [shape: f32[120,576], index: 0, kind: input, shape index: {}]   ;;  %s1794_s2 = inlined_call_operand.vmem [shape: f32[120,64], index: 2, kind: input, shape index: {}]   ;;  %s1795_s3 = inlined_call_operand.vmem [shape: f32[1,64], index: 3, kind: input, shape index: {}]   ;;  %s1796_s4 = inlined_call_operand.vmem [shape: f32[1,64], index: 4, kind: input, shape index: {}]   ;;  %s1797_s5 = inlined_call_operand.vmem [shape: f32[120,64], index: 5, kind: output, shape index: {}]  }
   0x1   :  { %v126_v0 = vld [vmem:[%s1792_s1 + $0xf8] sm:$0xff]  ;;  %v125_v4 = vld [vmem:[%s1792_s1 + $0xf0] sm:$0xff]  ;;  %v124_v8 = vld [vmem:[%s1792_s1 + $0xe8] sm:$0xff] }
   0x2   :  { %v158_v1 = vld [vmem:[%s1792_s1 + $0x1f8] sm:$0xff]  ;;  %743 = vmatprep.subr.mxu0 %v126_v0  ;;  %v157_v5 = vld [vmem:[%s1792_s1 + $0x1f0] sm:$0xff]  ;;  %v156_v9 = vld [vmem:[%s1792_s1 + $0x1e8] sm:$0xff] }
   0x3   :  { %v110_v2 = vld [vmem:[%s1792_s1 + $0x78] sm:$0xff]  ;;  %820 = vmatprep.subr.mxu1 %v158_v1  ;;  %v109_v6 = vld [vmem:[%s1792_s1 + $0x70] sm:$0xff]  ;;  %v108_v10 = vld [vmem:[%s1792_s1 + $0x68] sm:$0xff] }
   0x4   :  { %v142_v3 = vld [vmem:[%s1792_s1 + $0x178] sm:$0xff]  ;;  %744 = vmatpush3.msra.mxu0 %v110_v2  ;;  %v141_v7 = vld [vmem:[%s1792_s1 + $0x170] sm:$0xff]  ;;  %v140_v11 = vld [vmem:[%s1792_s1 + $0x168] sm:$0xff] }
   0x5   :  { %821 = vmatpush3.msra.mxu1 %v142_v3  ;;  %745 = vmatprep.subr.mxu0 %v125_v4  ;;  %v123_v12 = vld [vmem:[%s1792_s1 + $0xe0] sm:$0xff]  ;;  %v122_v16 = vld [vmem:[%s1792_s1 + $0xd8] sm:$0xff]  ;;  %v121_v20 = vld [vmem:[%s1792_s1 + $0xd0] sm:$0xff] }
   0x6   :  { %822 = vmatprep.subr.mxu1 %v157_v5  ;;  %746 = vmatpush3.msra.mxu0 %v109_v6  ;;  %v155_v13 = vld [vmem:[%s1792_s1 + $0x1e0] sm:$0xff]  ;;  %v154_v17 = vld [vmem:[%s1792_s1 + $0x1d8] sm:$0xff]  ;;  %v153_v21 = vld [vmem:[%s1792_s1 + $0x1d0] sm:$0xff] }
   0x7   :  { %823 = vmatpush3.msra.mxu1 %v141_v7  ;;  %747 = vmatprep.subr.mxu0 %v124_v8  ;;  %v107_v14 = vld [vmem:[%s1792_s1 + $0x60] sm:$0xff]  ;;  %v106_v18 = vld [vmem:[%s1792_s1 + $0x58] sm:$0xff]  ;;  %v105_v22 = vld [vmem:[%s1792_s1 + $0x50] sm:$0xff]  ;;  %v999_v7 = vmov 0.0  }
   0x8   :  { %824 = vmatprep.subr.mxu1 %v156_v9  ;;  %v139_v15 = vld [vmem:[%s1792_s1 + $0x160] sm:$0xff]  ;;  %748 = vmatpush3.msra.mxu0 %v108_v10  ;;  %v138_v19 = vld [vmem:[%s1792_s1 + $0x158] sm:$0xff]  ;;  %v137_v23 = vld [vmem:[%s1792_s1 + $0x150] sm:$0xff] }
   0x9   :  { %825 = vmatpush3.msra.mxu1 %v140_v11  ;;  %749 = vmatprep.subr.mxu0 %v123_v12  ;;  %v120_v24 = vld [vmem:[%s1792_s1 + $0xc8] sm:$0xff]  ;;  %v119_v28 = vld [vmem:[%s1792_s1 + $0xc0] sm:$0xff]  ;;  %v118_v32 = vld [vmem:[%s1792_s1 + $0xb8] sm:$0xff] }
   0xa   :  { %826 = vmatprep.subr.mxu1 %v155_v13  ;;  %750 = vmatpush3.msra.mxu0 %v107_v14  ;;  %v152_v25 = vld [vmem:[%s1792_s1 + $0x1c8] sm:$0xff]  ;;  %v151_v29 = vld [vmem:[%s1792_s1 + $0x1c0] sm:$0xff]  ;;  %v150_v33 = vld [vmem:[%s1792_s1 + $0x1b8] sm:$0xff] }
   0xb   :  { %827 = vmatpush3.msra.mxu1 %v139_v15  ;;  %751 = vmatprep.subr.mxu0 %v122_v16  ;;  %v104_v26 = vld [vmem:[%s1792_s1 + $0x48] sm:$0xff]  ;;  %v103_v30 = vld [vmem:[%s1792_s1 + $0x40] sm:$0xff]  ;;  %v102_v34 = vld [vmem:[%s1792_s1 + $0x38] sm:$0xff] }
   0xc   :  { %828 = vmatprep.subr.mxu1 %v154_v17  ;;  %752 = vmatpush3.msra.mxu0 %v106_v18  ;;  %v136_v27 = vld [vmem:[%s1792_s1 + $0x148] sm:$0xff]  ;;  %v135_v31 = vld [vmem:[%s1792_s1 + $0x140] sm:$0xff]  ;;  %v134_v35 = vld [vmem:[%s1792_s1 + $0x138] sm:$0xff] }
   0xd   :  { %829 = vmatpush3.msra.mxu1 %v138_v19  ;;  %753 = vmatprep.subr.mxu0 %v121_v20  ;;  %v117_v36 = vld [vmem:[%s1792_s1 + $0xb0] sm:$0xff]  ;;  %v116_v40 = vld [vmem:[%s1792_s1 + $0xa8] sm:$0xff]  ;;  %v115_v44 = vld [vmem:[%s1792_s1 + $0xa0] sm:$0xff] }
   0xe   :  { %830 = vmatprep.subr.mxu1 %v153_v21  ;;  %754 = vmatpush3.msra.mxu0 %v105_v22  ;;  %v149_v37 = vld [vmem:[%s1792_s1 + $0x1b0] sm:$0xff]  ;;  %v148_v41 = vld [vmem:[%s1792_s1 + $0x1a8] sm:$0xff]  ;;  %v147_v45 = vld [vmem:[%s1792_s1 + $0x1a0] sm:$0xff] }
   0xf   :  { %831 = vmatpush3.msra.mxu1 %v137_v23  ;;  %755 = vmatprep.subr.mxu0 %v120_v24  ;;  %v101_v38 = vld [vmem:[%s1792_s1 + $0x30] sm:$0xff]  ;;  %v100_v42 = vld [vmem:[%s1792_s1 + $0x28] sm:$0xff]  ;;  %v99_v46 = vld [vmem:[%s1792_s1 + $0x20] sm:$0xff] }
  0x10   :  { %832 = vmatprep.subr.mxu1 %v152_v25  ;;  %756 = vmatpush3.msra.mxu0 %v104_v26  ;;  %v133_v39 = vld [vmem:[%s1792_s1 + $0x130] sm:$0xff]  ;;  %v132_v43 = vld [vmem:[%s1792_s1 + $0x128] sm:$0xff]  ;;  %v131_v47 = vld [vmem:[%s1792_s1 + $0x120] sm:$0xff] }
  0x11   :  { %833 = vmatpush3.msra.mxu1 %v136_v27  ;;  %757 = vmatprep.subr.mxu0 %v119_v28  ;;  %v114_v48 = vld [vmem:[%s1792_s1 + $0x98] sm:$0xff]  ;;  %v113_v52 = vld [vmem:[%s1792_s1 + $0x90] sm:$0xff]  ;;  %v112_v56 = vld [vmem:[%s1792_s1 + $0x88] sm:$0xff] }
  0x12   :  { %834 = vmatprep.subr.mxu1 %v151_v29  ;;  %758 = vmatpush3.msra.mxu0 %v103_v30  ;;  %v146_v49 = vld [vmem:[%s1792_s1 + $0x198] sm:$0xff]  ;;  %v145_v53 = vld [vmem:[%s1792_s1 + $0x190] sm:$0xff]  ;;  %v144_v57 = vld [vmem:[%s1792_s1 + $0x188] sm:$0xff] }
  0x13   :  { %835 = vmatpush3.msra.mxu1 %v135_v31  ;;  %759 = vmatprep.subr.mxu0 %v118_v32  ;;  %v98_v50 = vld [vmem:[%s1792_s1 + $0x18] sm:$0xff]  ;;  %v97_v54 = vld [vmem:[%s1792_s1 + $0x10] sm:$0xff]  ;;  %v96_v58 = vld [vmem:[%s1792_s1 + $0x8] sm:$0xff] }
  0x14   :  { %836 = vmatprep.subr.mxu1 %v150_v33  ;;  %760 = vmatpush3.msra.mxu0 %v102_v34  ;;  %v130_v51 = vld [vmem:[%s1792_s1 + $0x118] sm:$0xff]  ;;  %v129_v55 = vld [vmem:[%s1792_s1 + $0x110] sm:$0xff]  ;;  %v128_v59 = vld [vmem:[%s1792_s1 + $0x108] sm:$0xff] }
  0x15   :  { %837 = vmatpush3.msra.mxu1 %v134_v35  ;;  %761 = vmatprep.subr.mxu0 %v117_v36  ;;  %v111_v60 = vld [vmem:[%s1792_s1 + $0x80] sm:$0xff]  ;;  %v21_v63 = vld [vmem:[%s1793_s0 + $0x8] sm:$0xff]  ;;  %v23_v1 = vld [vmem:[%s1793_s0 + $0x18] sm:$0xff] }
  0x16   :  { %838 = vmatprep.subr.mxu1 %v149_v37  ;;  %762 = vmatpush3.msra.mxu0 %v101_v38  ;;  %v143_v61 = vld [vmem:[%s1792_s1 + $0x180] sm:$0xff]  ;;  %v22_v3 = vld [vmem:[%s1793_s0 + $0x10] sm:$0xff]  ;;  %v166_v5 = vld [vmem:[%s1792_s1 + $0x238] sm:$0xff] }
  0x17   :  { %839 = vmatpush3.msra.mxu1 %v133_v39  ;;  %763 = vmatprep.subr.mxu0 %v116_v40  ;;  %v95_v62 = vld [vmem:[%s1792_s1] sm:$0xff]  ;;  %v26_v4 = vld [vmem:[%s1793_s0 + $0x30] sm:$0xff]  ;;  %v25_v8 = vld [vmem:[%s1793_s0 + $0x28] sm:$0xff] }
  0x18   :  { %840 = vmatprep.subr.mxu1 %v148_v41  ;;  %764 = vmatpush3.msra.mxu0 %v100_v42  ;;  %v127_v0 = vld [vmem:[%s1792_s1 + $0x100] sm:$0xff]  ;;  %v27_v9 = vld [vmem:[%s1793_s0 + $0x38] sm:$0xff]  ;;  %v33_v11 = vld [vmem:[%s1793_s0 + $0x68] sm:$0xff] }
  0x19   :  { %841 = vmatpush3.msra.mxu1 %v132_v43  ;;  %765 = vmatprep.subr.mxu0 %v115_v44  ;;  %v20_v2 = vld [vmem:[%s1793_s0] sm:$0xff]  ;;  %v31_v10 = vld [vmem:[%s1793_s0 + $0x58] sm:$0xff]  ;;  %v165_v12 = vld [vmem:[%s1792_s1 + $0x230] sm:$0xff] }
  0x1a   :  { %842 = vmatprep.subr.mxu1 %v147_v45  ;;  %766 = vmatpush3.msra.mxu0 %v99_v46  ;;  %v28_v6 = vld [vmem:[%s1793_s0 + $0x40] sm:$0xff]  ;;  %v30_v13 = vld [vmem:[%s1793_s0 + $0x50] sm:$0xff]  ;;  %v164_v17 = vld [vmem:[%s1792_s1 + $0x228] sm:$0xff] }
  0x1b   :  { %843 = vmatpush3.msra.mxu1 %v131_v47  ;;  %767 = vmatprep.subr.mxu0 %v114_v48  ;;  %v32_v14 = vld [vmem:[%s1793_s0 + $0x60] sm:$0xff]  ;;  %v38_v16 = vld [vmem:[%s1793_s0 + $0x90] sm:$0xff]  ;;  %v35_v18 = vld [vmem:[%s1793_s0 + $0x78] sm:$0xff] }
  0x1c   :  { %844 = vmatprep.subr.mxu1 %v146_v49  ;;  %768 = vmatpush3.msra.mxu0 %v98_v50  ;;  %v36_v15 = vld [vmem:[%s1793_s0 + $0x80] sm:$0xff]  ;;  %v37_v19 = vld [vmem:[%s1793_s0 + $0x88] sm:$0xff]  ;;  %v43_v21 = vld [vmem:[%s1793_s0 + $0xb8] sm:$0xff] }
  0x1d   :  { %845 = vmatpush3.msra.mxu1 %v130_v51  ;;  %769 = vmatprep.subr.mxu0 %v113_v52  ;;  %v41_v20 = vld [vmem:[%s1793_s0 + $0xa8] sm:$0xff]  ;;  %v163_v22 = vld [vmem:[%s1792_s1 + $0x220] sm:$0xff]  ;;  %v42_v24 = vld [vmem:[%s1793_s0 + $0xb0] sm:$0xff] }
  0x1e   :  { %846 = vmatprep.subr.mxu1 %v145_v53  ;;  %770 = vmatpush3.msra.mxu0 %v97_v54  ;;  %v40_v23 = vld [vmem:[%s1793_s0 + $0xa0] sm:$0xff]  ;;  %v46_v25 = vld [vmem:[%s1793_s0 + $0xd0] sm:$0xff]  ;;  %v162_v27 = vld [vmem:[%s1792_s1 + $0x218] sm:$0xff] }
  0x1f   :  { %847 = vmatpush3.msra.mxu1 %v129_v55  ;;  %771 = vmatprep.subr.mxu0 %v112_v56  ;;  %v48_v26 = vld [vmem:[%s1793_s0 + $0xe0] sm:$0xff]  ;;  %v45_v28 = vld [vmem:[%s1793_s0 + $0xc8] sm:$0xff]  ;;  %v47_v29 = vld [vmem:[%s1793_s0 + $0xd8] sm:$0xff] }
  0x20   :  { %848 = vmatprep.subr.mxu1 %v144_v57  ;;  %772 = vmatpush3.msra.mxu0 %v96_v58  ;;  %v51_v30 = vld [vmem:[%s1793_s0 + $0xf8] sm:$0xff]  ;;  %v53_v31 = vld [vmem:[%s1793_s0 + $0x108] sm:$0xff]  ;;  %v161_v32 = vld [vmem:[%s1792_s1 + $0x210] sm:$0xff] }
  0x21   :  { %849 = vmatpush3.msra.mxu1 %v128_v59  ;;  %773 = vmatprep.subr.mxu0 %v111_v60  ;;  %v50_v33 = vld [vmem:[%s1793_s0 + $0xf0] sm:$0xff]  ;;  %v52_v34 = vld [vmem:[%s1793_s0 + $0x100] sm:$0xff]  ;;  %v160_v37 = vld [vmem:[%s1792_s1 + $0x208] sm:$0xff] }
  0x22   :  { %850 = vmatprep.subr.mxu1 %v143_v61  ;;  %774 = vmatpush3.msra.mxu0 %v95_v62  ;;  %v56_v35 = vld [vmem:[%s1793_s0 + $0x120] sm:$0xff]  ;;  %v58_v36 = vld [vmem:[%s1793_s0 + $0x130] sm:$0xff]  ;;  %v55_v38 = vld [vmem:[%s1793_s0 + $0x118] sm:$0xff] }
  0x23   :  { %292 = vmatprep.mubr.f32.mxu0 %v21_v63  ;;  %851 = vmatpush3.msra.mxu1 %v127_v0  ;;  %v57_v39 = vld [vmem:[%s1793_s0 + $0x128] sm:$0xff]  ;;  %v63_v41 = vld [vmem:[%s1793_s0 + $0x158] sm:$0xff]  ;;  %v159_v42 = vld [vmem:[%s1792_s1 + $0x200] sm:$0xff] }
  0x24   :  { %432 = vmatprep.mubr.f32.mxu1 %v23_v1  ;;  %293 = vmatmul.mubr.f32.vlgmr.msra.gmra.mxu0 %v20_v2  ;;  %v61_v40 = vld [vmem:[%s1793_s0 + $0x148] sm:$0xff]  ;;  %v60_v43 = vld [vmem:[%s1793_s0 + $0x140] sm:$0xff]  ;;  %v62_v44 = vld [vmem:[%s1793_s0 + $0x150] sm:$0xff] }
  0x25   :  { %433 = vmatmul.mubr.f32.vlgmr.msra.gmra.mxu1 %v22_v3  ;;  %920 = vmatprep.subr.mxu0 %v999_v7  ;;  %v66_v45 = vld [vmem:[%s1793_s0 + $0x170] sm:$0xff]  ;;  %v68_v46 = vld [vmem:[%s1793_s0 + $0x180] sm:$0xff]  ;;  %v65_v47 = vld [vmem:[%s1793_s0 + $0x168] sm:$0xff] }
  0x26   :  { %297 = vmatprep.mubr.f32.mxu0 %v26_v4  ;;  %921 = vmatpush3.msra.mxu0 %v166_v5  ;;  %v67_v48 = vld [vmem:[%s1793_s0 + $0x178] sm:$0xff]  ;;  %v73_v50 = vld [vmem:[%s1793_s0 + $0x1a8] sm:$0xff]  ;;  %v70_v51 = vld [vmem:[%s1793_s0 + $0x190] sm:$0xff] }
  0x27   :  { %437 = vmatprep.mubr.f32.mxu1 %v28_v6  ;;  %981 = vmatprep.subr.mxu1 %v999_v7  ;;  %v71_v49 = vld [vmem:[%s1793_s0 + $0x198] sm:$0xff]  ;;  %v72_v52 = vld [vmem:[%s1793_s0 + $0x1a0] sm:$0xff]  ;;  %v78_v54 = vld [vmem:[%s1793_s0 + $0x1d0] sm:$0xff] }
  0x28   :  { %922 = vmatprep.subr.mxu0 %v999_v7  ;;  %298 = vmatmul.mubr.f32.gmra.mxu0 %v25_v8  ;;  %v76_v53 = vld [vmem:[%s1793_s0 + $0x1c0] sm:$0xff]  ;;  %v75_v55 = vld [vmem:[%s1793_s0 + $0x1b8] sm:$0xff]  ;;  %v77_v56 = vld [vmem:[%s1793_s0 + $0x1c8] sm:$0xff] }
  0x29   :  { %438 = vmatmul.mubr.f32.gmra.mxu1 %v27_v9  ;;  %302 = vmatprep.mubr.f32.mxu0 %v31_v10  ;;  %v81_v57 = vld [vmem:[%s1793_s0 + $0x1e8] sm:$0xff]  ;;  %v83_v58 = vld [vmem:[%s1793_s0 + $0x1f8] sm:$0xff]  ;;  %v80_v59 = vld [vmem:[%s1793_s0 + $0x1e0] sm:$0xff] }
  0x2a   :  { %989 = vmatpush3.msra.mxu1 %v166_v5  ;;  %442 = vmatprep.mubr.f32.mxu1 %v33_v11  ;;  %v82_v60 = vld [vmem:[%s1793_s0 + $0x1f0] sm:$0xff]  ;;  %v88_v62 = vld [vmem:[%s1793_s0 + $0x220] sm:$0xff]  ;;  %v85_v63 = vld [vmem:[%s1793_s0 + $0x208] sm:$0xff] }
  0x2b   :  { %923 = vmatpush3.msra.mxu0 %v165_v12  ;;  %982 = vmatprep.subr.mxu1 %v999_v7  ;;  %v86_v61 = vld [vmem:[%s1793_s0 + $0x210] sm:$0xff]  ;;  %v87_v0 = vld [vmem:[%s1793_s0 + $0x218] sm:$0xff]  ;;  %v93_v2 = vld [vmem:[%s1793_s0 + $0x248] sm:$0xff] }
  0x2c   :  { %924 = vmatprep.subr.mxu0 %v999_v7  ;;  %303 = vmatmul.mubr.f32.gmra.mxu0 %v30_v13  ;;  %v91_v1 = vld [vmem:[%s1793_s0 + $0x238] sm:$0xff]  ;;  %v90_v3 = vld [vmem:[%s1793_s0 + $0x230] sm:$0xff]  ;;  %v92_v4 = vld [vmem:[%s1793_s0 + $0x240] sm:$0xff] }
  0x2d   :  { %443 = vmatmul.mubr.f32.gmra.mxu1 %v32_v14  ;;  %307 = vmatprep.mubr.f32.mxu0 %v36_v15  ;;  %v24_v5 = vld [vmem:[%s1793_s0 + $0x20] sm:$0xff]  ;;  %v29_v8 = vld [vmem:[%s1793_s0 + $0x48] sm:$0xff]  ;;  %v34_v10 = vld [vmem:[%s1793_s0 + $0x70] sm:$0xff] }
  0x2e   :  { %447 = vmatprep.mubr.f32.mxu1 %v38_v16  ;;  %990 = vmatpush3.msra.mxu1 %v165_v12  ;;  %v64_v6 = vld [vmem:[%s1793_s0 + $0x160] sm:$0xff]  ;;  %v69_v9 = vld [vmem:[%s1793_s0 + $0x188] sm:$0xff]  ;;  %v74_v11 = vld [vmem:[%s1793_s0 + $0x1b0] sm:$0xff] }
  0x2f   :  { %925 = vmatpush3.msra.mxu0 %v164_v17  ;;  %983 = vmatprep.subr.mxu1 %v999_v7  ;;  %v39_v12 = vld [vmem:[%s1793_s0 + $0x98] sm:$0xff]  ;;  %v44_v14 = vld [vmem:[%s1793_s0 + $0xc0] sm:$0xff]  ;;  %v49_v16 = vld [vmem:[%s1793_s0 + $0xe8] sm:$0xff] }
  0x30   :  { %926 = vmatprep.subr.mxu0 %v999_v7  ;;  %308 = vmatmul.mubr.f32.gmra.mxu0 %v35_v18  ;;  %v79_v13 = vld [vmem:[%s1793_s0 + $0x1d8] sm:$0xff]  ;;  %v84_v15 = vld [vmem:[%s1793_s0 + $0x200] sm:$0xff]  ;;  %v54_v18 = vld [vmem:[%s1793_s0 + $0x110] sm:$0xff] }
  0x31   :  { %448 = vmatmul.mubr.f32.gmra.mxu1 %v37_v19  ;;  %312 = vmatprep.mubr.f32.mxu0 %v41_v20  ;;  %v94_v19 = vld [vmem:[%s1793_s0 + $0x250] sm:$0xff]  ;;  %v59_v20 = vld [vmem:[%s1793_s0 + $0x138] sm:$0xff] }
  0x32   :  { %452 = vmatprep.mubr.f32.mxu1 %v43_v21  ;;  %991 = vmatpush3.msra.mxu1 %v164_v17  ;;  %v89_v17 = vld [vmem:[%s1793_s0 + $0x228] sm:$0xff] }
  0x33   :  { %927 = vmatpush3.msra.mxu0 %v163_v22  ;;  %984 = vmatprep.subr.mxu1 %v999_v7 }
  0x34   :  { %928 = vmatprep.subr.mxu0 %v999_v7  ;;  %313 = vmatmul.mubr.f32.gmra.mxu0 %v40_v23 }
  0x35   :  { %453 = vmatmul.mubr.f32.gmra.mxu1 %v42_v24  ;;  %317 = vmatprep.mubr.f32.mxu0 %v46_v25 }
  0x36   :  { %457 = vmatprep.mubr.f32.mxu1 %v48_v26  ;;  %992 = vmatpush3.msra.mxu1 %v163_v22 }
  0x37   :  { %929 = vmatpush3.msra.mxu0 %v162_v27  ;;  %985 = vmatprep.subr.mxu1 %v999_v7 }
  0x38   :  { %930 = vmatprep.subr.mxu0 %v999_v7  ;;  %318 = vmatmul.mubr.f32.gmra.mxu0 %v45_v28 }
  0x39   :  { %458 = vmatmul.mubr.f32.gmra.mxu1 %v47_v29  ;;  %322 = vmatprep.mubr.f32.mxu0 %v51_v30 }
  0x3a   :  { %462 = vmatprep.mubr.f32.mxu1 %v53_v31  ;;  %993 = vmatpush3.msra.mxu1 %v162_v27 }
  0x3b   :  { %931 = vmatpush3.msra.mxu0 %v161_v32  ;;  %986 = vmatprep.subr.mxu1 %v999_v7 }
  0x3c   :  { %932 = vmatprep.subr.mxu0 %v999_v7  ;;  %323 = vmatmul.mubr.f32.gmra.mxu0 %v50_v33 }
  0x3d   :  { %463 = vmatmul.mubr.f32.gmra.mxu1 %v52_v34  ;;  %327 = vmatprep.mubr.f32.mxu0 %v56_v35 }
  0x3e   :  { %467 = vmatprep.mubr.f32.mxu1 %v58_v36  ;;  %994 = vmatpush3.msra.mxu1 %v161_v32 }
  0x3f   :  { %933 = vmatpush3.msra.mxu0 %v160_v37  ;;  %987 = vmatprep.subr.mxu1 %v999_v7 }
  0x40   :  { %934 = vmatprep.subr.mxu0 %v999_v7  ;;  %328 = vmatmul.mubr.f32.gmra.mxu0 %v55_v38 }
  0x41   :  { %468 = vmatmul.mubr.f32.gmra.mxu1 %v57_v39  ;;  %332 = vmatprep.mubr.f32.mxu0 %v61_v40 }
  0x42   :  { %472 = vmatprep.mubr.f32.mxu1 %v63_v41  ;;  %995 = vmatpush3.msra.mxu1 %v160_v37 }
  0x43   :  { %935 = vmatpush3.msra.mxu0 %v159_v42  ;;  %988 = vmatprep.subr.mxu1 %v999_v7 }
  0x44   :  { %333 = vmatmul.mubr.f32.gmra.mxu0 %v60_v43  ;;  %996 = vmatpush3.msra.mxu1 %v159_v42 }
  0x45   :  { %473 = vmatmul.mubr.f32.gmra.mxu1 %v62_v44  ;;  %337 = vmatprep.mubr.f32.mxu0 %v66_v45 }
  0x46   :  { %477 = vmatprep.mubr.f32.mxu1 %v68_v46 }
  0x48   :  { %338 = vmatmul.mubr.f32.gmra.mxu0 %v65_v47 }
  0x49   :  { %478 = vmatmul.mubr.f32.gmra.mxu1 %v67_v48  ;;  %342 = vmatprep.mubr.f32.mxu0 %v71_v49 }
  0x4a   :  { %482 = vmatprep.mubr.f32.mxu1 %v73_v50 }
  0x4c   :  { %343 = vmatmul.mubr.f32.gmra.mxu0 %v70_v51 }
  0x4d   :  { %483 = vmatmul.mubr.f32.gmra.mxu1 %v72_v52  ;;  %347 = vmatprep.mubr.f32.mxu0 %v76_v53 }
  0x4e   :  { %487 = vmatprep.mubr.f32.mxu1 %v78_v54 }
  0x50   :  { %348 = vmatmul.mubr.f32.gmra.mxu0 %v75_v55 }
  0x51   :  { %488 = vmatmul.mubr.f32.gmra.mxu1 %v77_v56  ;;  %352 = vmatprep.mubr.f32.mxu0 %v81_v57 }
  0x52   :  { %492 = vmatprep.mubr.f32.mxu1 %v83_v58 }
  0x54   :  { %353 = vmatmul.mubr.f32.gmra.mxu0 %v80_v59 }
  0x55   :  { %493 = vmatmul.mubr.f32.gmra.mxu1 %v82_v60  ;;  %357 = vmatprep.mubr.f32.mxu0 %v86_v61 }
  0x56   :  { %497 = vmatprep.mubr.f32.mxu1 %v88_v62 }
  0x58   :  { %358 = vmatmul.mubr.f32.gmra.mxu0 %v85_v63 }
  0x59   :  { %498 = vmatmul.mubr.f32.gmra.mxu1 %v87_v0  ;;  %362 = vmatprep.mubr.f32.mxu0 %v91_v1 }
  0x5a   :  { %502 = vmatprep.mubr.f32.mxu1 %v93_v2 }
  0x5c   :  { %363 = vmatmul.mubr.f32.gmra.mxu0 %v90_v3 }
  0x5d   :  { %503 = vmatmul.mubr.f32.gmra.mxu1 %v92_v4  ;;  %936 = vmatprep.mubr.msk.f32.mxu0 %vm1000_vm0, %v999_v7 }
  0x5e   :  { %960 = vmatprep.mubr.msk.f32.mxu1 %vm1000_vm0, %v999_v7 }
  0x60   :  { %937 = vmatmul.mubr.msk.f32.vlgmr.msra.gmra.mxu0 %vm182_vm1, %v24_v5 }
  0x61   :  { %961 = vmatmul.mubr.msk.f32.vlgmr.msra.gmra.mxu1 %vm182_vm1, %v64_v6  ;;  %939 = vmatprep.mubr.msk.f32.mxu0 %vm1000_vm0, %v999_v7 }
  0x62   :  { %963 = vmatprep.mubr.msk.f32.mxu1 %vm1000_vm0, %v999_v7 }
  0x64   :  { %940 = vmatmul.mubr.msk.f32.gmra.mxu0 %vm182_vm1, %v29_v8 }
  0x65   :  { %964 = vmatmul.mubr.msk.f32.gmra.mxu1 %vm182_vm1, %v69_v9  ;;  %942 = vmatprep.mubr.msk.f32.mxu0 %vm1000_vm0, %v999_v7 }
  0x66   :  { %966 = vmatprep.mubr.msk.f32.mxu1 %vm1000_vm0, %v999_v7 }
  0x68   :  { %943 = vmatmul.mubr.msk.f32.gmra.mxu0 %vm182_vm1, %v34_v10  ;;  %v167_v10 = vld [vmem:[%s1794_s2] sm:$0xff] }
  0x69   :  { %967 = vmatmul.mubr.msk.f32.gmra.mxu1 %vm182_vm1, %v74_v11  ;;  %945 = vmatprep.mubr.msk.f32.mxu0 %vm1000_vm0, %v999_v7 }
  0x6a   :  { %969 = vmatprep.mubr.msk.f32.mxu1 %vm1000_vm0, %v999_v7 }
  0x6c   :  { %946 = vmatmul.mubr.msk.f32.gmra.mxu0 %vm182_vm1, %v39_v12  ;;  %v175_v12 = vld [vmem:[%s1794_s2 + $0x40] sm:$0xff] }
  0x6d   :  { %970 = vmatmul.mubr.msk.f32.gmra.mxu1 %vm182_vm1, %v79_v13  ;;  %948 = vmatprep.mubr.msk.f32.mxu0 %vm1000_vm0, %v999_v7 }
  0x6e   :  { %972 = vmatprep.mubr.msk.f32.mxu1 %vm1000_vm0, %v999_v7 }
  0x70   :  { %949 = vmatmul.mubr.msk.f32.gmra.mxu0 %vm182_vm1, %v44_v14 }
  0x71   :  { %973 = vmatmul.mubr.msk.f32.gmra.mxu1 %vm182_vm1, %v84_v15  ;;  %951 = vmatprep.mubr.msk.f32.mxu0 %vm1000_vm0, %v999_v7 }
  0x72   :  { %975 = vmatprep.mubr.msk.f32.mxu1 %vm1000_vm0, %v999_v7 }
  0x74   :  { %952 = vmatmul.mubr.msk.f32.gmra.mxu0 %vm182_vm1, %v49_v16 }
  0x75   :  { %976 = vmatmul.mubr.msk.f32.gmra.mxu1 %vm182_vm1, %v89_v17  ;;  %954 = vmatprep.mubr.msk.f32.mxu0 %vm1000_vm0, %v999_v7 }
  0x76   :  { %978 = vmatprep.mubr.msk.f32.mxu1 %vm1000_vm0, %v999_v7 }
  0x78   :  { %955 = vmatmul.mubr.msk.f32.gmra.mxu0 %vm182_vm1, %v54_v18 }
  0x79   :  { %979 = vmatmul.mubr.msk.f32.gmra.mxu1 %vm182_vm1, %v94_v19  ;;  %957 = vmatprep.mubr.msk.f32.mxu0 %vm1000_vm0, %v999_v7 }
  0x7c   :  { %958 = vmatmul.mubr.msk.f32.gmra.mxu0 %vm182_vm1, %v59_v20 }
  0xe4   :  { %v775_v21 = vpop.f32.mrf.mxu0 }
  0xe5   :  { %v852_v22 = vpop.f32.mrf.mxu1 }
  0xe6   :  { %v776_v23 = vpop.f32.mrf.mxu0 }
  0xe7   :  { %v853_v24 = vpop.f32.mrf.mxu1  ;;  %v777_v6 = vadd.f32 %v776_v23, %v775_v21 }
  0xe8   :  { %v778_v25 = vpop.f32.mrf.mxu0  ;;  %v854_v16 = vadd.f32 %v853_v24, %v852_v22  ;;  %v169_v24 = vld [vmem:[%s1794_s2 + $0x10] sm:$0xff] }
  0xe9   :  { %v1533_v26 = vpop.f32.mrf.mxu1  ;;  %v295_v15 = vadd.f32 %v777_v6, %v167_v10  ;;  %v177_v6 = vld [vmem:[%s1794_s2 + $0x50] sm:$0xff] }
  0xea   :  { %v779_v27 = vpop.f32.mrf.mxu0 }
  0xeb   :  { %v1535_v28 = vpop.f32.mrf.mxu1  ;;  %v780_v19 = vadd.f32 %v779_v27, %v778_v25 }
  0xec   :  { %v781_v29 = vpop.f32.mrf.mxu0  ;;  %v857_v25 = vadd.f32 %v1535_v28, %v1533_v26 }
  0xed   :  { %v1537_v30 = vpop.f32.mrf.mxu1 }
  0xee   :  { %v782_v7 = vpop.f32.mrf.mxu0 }
  0xef   :  { %v1539_v31 = vpop.f32.mrf.mxu1 }
  0xf0   :  { %v1541_v32 = vpop.f32.mrf.mxu0 }
  0xf1   :  { %v1543_v33 = vpop.f32.mrf.mxu1 }
  0xf2   :  { %v1545_v34 = vpop.f32.mrf.mxu0 }
  0xf3   :  { %v1547_v35 = vpop.f32.mrf.mxu1  ;;  %v786_v26 = vadd.f32 %v1545_v34, %v1541_v32  ;;  %v178_v34 = vld [vmem:[%s1794_s2 + $0x58] sm:$0xff] }
  0xf4   :  { %v1549_v36 = vpop.f32.mrf.mxu0 }
  0xf5   :  { %v1551_v37 = vpop.f32.mrf.mxu1 }
  0xf6   :  { %v1553_v38 = vpop.f32.mrf.mxu0 }
  0xf7   :  { %v1555_v39 = vpop.f32.mrf.mxu1 }
  0xf8   :  { %v1557_v40 = vpop.f32.mrf.mxu0 }
  0xf9   :  { %v1559_v41 = vpop.f32.mrf.mxu1 }
  0xfa   :  { %v1561_v42 = vpop.f32.mrf.mxu0 }
  0xfb   :  { %v1563_v43 = vpop.f32.mrf.mxu1 }
  0xfc   :  { %v1565_v44 = vpop.f32.mrf.mxu0 }
  0xfd   :  { %v1567_v45 = vpop.f32.mrf.mxu1 }
  0xfe   :  { %v1569_v46 = vpop.f32.mrf.mxu0 }
  0xff   :  { %v1571_v47 = vpop.f32.mrf.mxu1 }
 0x100   :  { %v1573_v48 = vpop.f32.mrf.mxu0 }
 0x101   :  { %v1575_v49 = vpop.f32.mrf.mxu1 }
 0x102   :  { %1798 = vst [vmem:[#allocation2_spill] sm:$0xff] %v1575_v49  ;;  %v1577_v50 = vpop.f32.mrf.mxu0 }
 0x103   :  { %v1579_v51 = vpop.f32.mrf.mxu1 }
 0x104   :  { %1799 = vst [vmem:[#allocation3_spill] sm:$0xff] %v1579_v51  ;;  %v799_v52 = vpop.f32.mrf.mxu0  ;;  %v176_v51 = vld [vmem:[%s1794_s2 + $0x48] sm:$0xff] }
 0x105   :  { %v876_v53 = vpop.f32.mrf.mxu1 }
 0x106   :  { %v800_v54 = vpop.f32.mrf.mxu0 }
 0x107   :  { %v877_v55 = vpop.f32.mrf.mxu1  ;;  %v801_v11 = vadd.f32 %v800_v54, %v799_v52  ;;  %v168_v52 = vld [vmem:[%s1794_s2 + $0x8] sm:$0xff]  ;;  %v783_v54 = vadd.f32 %v782_v7, %v781_v29  ;;  %v435_v29 = vadd.f32 %v854_v16, %v295_v15 }
 0x108   :  { %v802_v56 = vpop.f32.mrf.mxu0  ;;  %v878_v21 = vadd.f32 %v877_v55, %v876_v53  ;;  %v300_v7 = vadd.f32 %v780_v19, %v168_v52 }
 0x109   :  { %v879_v57 = vpop.f32.mrf.mxu1  ;;  %v335_v20 = vadd.f32 %v801_v11, %v175_v12  ;;  %v305_v11 = vadd.f32 %v783_v54, %v169_v24  ;;  %v860_v12 = vadd.f32 %v1539_v31, %v1537_v30  ;;  %v1644_v30 = vld [vmem:[%s1796_s4] ss:$0 sm:$0xff] }
 0x10a   :  { %v803_v58 = vpop.f32.mrf.mxu0 }
 0x10b   :  { %v880_v59 = vpop.f32.mrf.mxu1  ;;  %v804_v23 = vadd.f32 %v803_v58, %v802_v56  ;;  %v475_v10 = vadd.f32 %v878_v21, %v335_v20  ;;  %v445_v24 = vadd.f32 %v860_v12, %v305_v11 }
 0x10c   :  { %v805_v60 = vpop.f32.mrf.mxu0  ;;  %v881_v58 = vadd.f32 %v880_v59, %v879_v57  ;;  %v170_v57 = vld [vmem:[%s1794_s2 + $0x18] sm:$0xff] }
 0x10d   :  { %v882_v61 = vpop.f32.mrf.mxu1  ;;  %v340_v56 = vadd.f32 %v804_v23, %v176_v51  ;;  %v440_v23 = vadd.f32 %v857_v25, %v300_v7  ;;  %v310_v54 = vadd.f32 %v786_v26, %v170_v57 }
 0x10e   :  { %v806_v62 = vpop.f32.mrf.mxu0 }
 0x10f   :  { %v883_v63 = vpop.f32.mrf.mxu1  ;;  %v807_v27 = vadd.f32 %v806_v62, %v805_v60  ;;  %v1636_v60 = vld [vmem:[%s1795_s3] ss:$0 sm:$0xff]  ;;  %v480_v52 = vadd.f32 %v881_v58, %v340_v56 }
 0x110   :  { %v808_v0 = vpop.f32.mrf.mxu0  ;;  %v884_v16 = vadd.f32 %v883_v63, %v882_v61  ;;  %v863_v61 = vadd.f32 %v1547_v35, %v1543_v33  ;;  %v789_v63 = vadd.f32 %v1553_v38, %v1549_v36 }
 0x111   :  { %v1581_v1 = vpop.f32.mrf.mxu1  ;;  %v345_v15 = vadd.f32 %v807_v27, %v177_v6  ;;  %v171_v27 = vld [vmem:[%s1794_s2 + $0x20] sm:$0xff] }
 0x112   :  { %v809_v2 = vpop.f32.mrf.mxu0  ;;  %v450_v57 = vadd.f32 %v863_v61, %v310_v54 }
 0x113   :  { %v1583_v3 = vpop.f32.mrf.mxu1  ;;  %v810_v19 = vadd.f32 %v809_v2, %v808_v0  ;;  %v485_v58 = vadd.f32 %v884_v16, %v345_v15 }
 0x114   :  { %v1585_v4 = vpop.f32.mrf.mxu0  ;;  %v887_v33 = vadd.f32 %v1583_v3, %v1581_v1  ;;  %v866_v1 = vadd.f32 %v1555_v39, %v1551_v37  ;;  %v792_v3 = vadd.f32 %v1561_v42, %v1557_v40 }
 0x115   :  { %v1587_v5 = vpop.f32.mrf.mxu1  ;;  %v350_v56 = vadd.f32 %v810_v19, %v178_v34  ;;  %v180_v34 = vld [vmem:[%s1794_s2 + $0x68] sm:$0xff] }
 0x116   :  { %v1589_v8 = vpop.f32.mrf.mxu0 }
 0x117   :  { %v1591_v9 = vpop.f32.mrf.mxu1  ;;  %v813_v35 = vadd.f32 %v1589_v8, %v1585_v4 }
 0x118   :  { %v1599_v13 = vpop.f32.mrf.mxu0  ;;  %v890_v15 = vadd.f32 %v1591_v9, %v1587_v5  ;;  %v869_v5 = vadd.f32 %v1563_v43, %v1559_v41  ;;  %v795_v9 = vadd.f32 %v1569_v46, %v1565_v44 }
 0x119   :  { %v1601_v14 = vpop.f32.mrf.mxu1 }
 0x11a   :  { %v1603_v17 = vpop.f32.mrf.mxu0 }
 0x11b   :  { %v1605_v18 = vpop.f32.mrf.mxu1  ;;  %v816_v16 = vadd.f32 %v1603_v17, %v1599_v13 }
 0x11c   :  { %v1613_v49 = vpop.f32.mrf.mxu0 }
 0x11d   :  { %v1615_v22 = vpop.f32.mrf.mxu1 }
 0x11e   :  { %v1622_v53 = vpop.f32.mrf.mxu0 }
 0x11f   :  { %v1624_v55 = vpop.f32.mrf.mxu1 }
 0x120   :  { %v574_v28 = vpop.f32.mrf.mxu0 }
 0x121   :  { %v614_v51 = vpop.f32.mrf.mxu1  ;;  %v575_v59 = vadd.f32 %v574_v28, %v435_v29 }
 0x122   :  { %v615_v62 = vadd.f32 %v614_v51, %v475_v10  ;;  %v938_v31 = vpop.f32.mrf.mxu0  ;;  %v179_v10 = vld [vmem:[%s1794_s2 + $0x60] sm:$0xff]  ;;  %v315_v51 = vadd.f32 %v789_v63, %v171_v27  ;;  %v173_v63 = vld [vmem:[%s1794_s2 + $0x30] sm:$0xff] }
 0x123   :  { %v962_v32 = vpop.f32.mrf.mxu1  ;;  %v655_v20 = vmul.f32 %v1636_v60, %v575_v59  ;;  %v172_v59 = vld [vmem:[%s1794_s2 + $0x28] sm:$0xff] }
 0x124   :  { %v663_v21 = vmul.f32 %v1636_v60, %v615_v62  ;;  %v579_v0 = vpop.f32.mrf.mxu0  ;;  %v355_v62 = vadd.f32 %v813_v35, %v179_v10  ;;  %v490_v32 = vadd.f32 %v887_v33, %v350_v56  ;;  %v320_v54 = vadd.f32 %v792_v3, %v172_v59 }
 0x125   :  { %v619_v2 = vpop.f32.mrf.mxu1  ;;  %v677_v29 = vadd.f32 %v1644_v30, %v655_v20  ;;  %v580_v25 = vadd.f32 %v579_v0, %v440_v23  ;;  %v455_v61 = vadd.f32 %v866_v1, %v315_v51  ;;  %v360_v0 = vadd.f32 %v816_v16, %v180_v34  ;;  %v174_v1 = vld [vmem:[%s1794_s2 + $0x38] sm:$0xff] }
 0x126   :  { %v685_v6 = vadd.f32 %v1644_v30, %v663_v21  ;;  %v620_v7 = vadd.f32 %v619_v2, %v480_v52  ;;  %v941_v36 = vpop.f32.mrf.mxu0  ;;  %v893_v2 = vadd.f32 %v1605_v18, %v1601_v14  ;;  %v872_v14 = vadd.f32 %v1571_v47, %v1567_v45 }
 0x127   :  { %v965_v38 = vpop.f32.mrf.mxu1  ;;  %v692_v11 = vmax.f32 %v677_v29, 0.0  ;;  %v656_v26 = vmul.f32 %v1636_v60, %v580_v25  ;;  %v181_v25 = vld [vmem:[%s1794_s2 + $0x70] sm:$0xff]  ;;  %v325_v36 = vadd.f32 %v795_v9, %v173_v63  ;;  %v798_v45 = vadd.f32 %v1577_v50, %v1573_v48 }
 0x128   :  { %v700_v12 = vmax.f32 %v685_v6, 0.0  ;;  %v664_v28 = vmul.f32 %v1636_v60, %v620_v7  ;;  %v584_v4 = vpop.f32.mrf.mxu0  ;;  %v495_v6 = vadd.f32 %v890_v15, %v355_v62  ;;  %v500_v51 = vadd.f32 %v893_v2, %v360_v0 }
 0x129   :  { %v624_v8 = vpop.f32.mrf.mxu1  ;;  %707 = vst.msk [vmem:[%s1797_s5] sm:$0xff] %vm182_vm1, %v692_v11  ;;  %v678_v37 = vadd.f32 %v1644_v30, %v656_v26  ;;  %v585_v40 = vadd.f32 %v584_v4, %v445_v24  ;;  %v819_v24 = vadd.f32 %v1622_v53, %v1613_v49  ;;  %v460_v49 = vadd.f32 %v869_v5, %v320_v54 }
 0x12a   :  { %715 = vst.msk [vmem:[%s1797_s5 + $0x40] sm:$0xff] %vm182_vm1, %v700_v12  ;;  %v686_v39 = vadd.f32 %v1644_v30, %v664_v28  ;;  %v625_v42 = vadd.f32 %v624_v8, %v485_v58  ;;  %v944_v19 = vpop.f32.mrf.mxu0  ;;  %v896_v12 = vadd.f32 %v1624_v55, %v1615_v22 }
 0x12b   :  { %v968_v31 = vpop.f32.mrf.mxu1  ;;  %v693_v20 = vmax.f32 %v678_v37, 0.0  ;;  %v657_v23 = vmul.f32 %v1636_v60, %v585_v40  ;;  %v365_v47 = vadd.f32 %v819_v24, %v181_v25  ;;  %v1800_v40 = vld [vmem:[#allocation2_spill] sm:$0xff]  ;;  %v465_v19 = vadd.f32 %v872_v14, %v325_v36 }
 0x12c   :  { %v701_v21 = vmax.f32 %v686_v39, 0.0  ;;  %v665_v52 = vmul.f32 %v1636_v60, %v625_v42  ;;  %v589_v13 = vpop.f32.mrf.mxu0  ;;  %v330_v39 = vadd.f32 %v798_v45, %v174_v1  ;;  %v1801_v42 = vld [vmem:[#allocation3_spill] sm:$0xff] }
 0x12d   :  { %v629_v17 = vpop.f32.mrf.mxu1  ;;  %708 = vst.msk [vmem:[%s1797_s5 + $0x8] sm:$0xff] %vm182_vm1, %v693_v20  ;;  %v679_v41 = vadd.f32 %v1644_v30, %v657_v23  ;;  %v590_v44 = vadd.f32 %v589_v13, %v450_v57  ;;  %v875_v62 = vadd.f32 %v1801_v42, %v1800_v40  ;;  %v505_v31 = vadd.f32 %v896_v12, %v365_v47 }
 0x12e   :  { %716 = vst.msk [vmem:[%s1797_s5 + $0x48] sm:$0xff] %vm182_vm1, %v701_v21  ;;  %v687_v43 = vadd.f32 %v1644_v30, %v665_v52  ;;  %v630_v46 = vadd.f32 %v629_v17, %v490_v32  ;;  %v947_v27 = vpop.f32.mrf.mxu0 }
 0x12f   :  { %v971_v29 = vpop.f32.mrf.mxu1  ;;  %v694_v7 = vmax.f32 %v679_v41, 0.0  ;;  %v658_v33 = vmul.f32 %v1636_v60, %v590_v44 }
 0x130   :  { %v702_v56 = vmax.f32 %v687_v43, 0.0  ;;  %v666_v35 = vmul.f32 %v1636_v60, %v630_v46  ;;  %v594_v18 = vpop.f32.mrf.mxu0 }
 0x131   :  { %v634_v38 = vpop.f32.mrf.mxu1  ;;  %709 = vst.msk [vmem:[%s1797_s5 + $0x10] sm:$0xff] %vm182_vm1, %v694_v7  ;;  %v680_v53 = vadd.f32 %v1644_v30, %v658_v33  ;;  %v595_v10 = vadd.f32 %v594_v18, %v455_v61  ;;  %v470_v61 = vadd.f32 %v875_v62, %v330_v39 }
 0x132   :  { %717 = vst.msk [vmem:[%s1797_s5 + $0x50] sm:$0xff] %vm182_vm1, %v702_v56  ;;  %v688_v58 = vadd.f32 %v1644_v30, %v666_v35  ;;  %v635_v11 = vadd.f32 %v634_v38, %v495_v6  ;;  %v950_v26 = vpop.f32.mrf.mxu0 }
 0x133   :  { %v974_v28 = vpop.f32.mrf.mxu1  ;;  %v695_v3 = vmax.f32 %v680_v53, 0.0  ;;  %v659_v8 = vmul.f32 %v1636_v60, %v595_v10 }
 0x134   :  { %v703_v4 = vmax.f32 %v688_v58, 0.0  ;;  %v667_v57 = vmul.f32 %v1636_v60, %v635_v11  ;;  %v599_v59 = vpop.f32.mrf.mxu0 }
 0x135   :  { %v639_v37 = vpop.f32.mrf.mxu1  ;;  %710 = vst.msk [vmem:[%s1797_s5 + $0x18] sm:$0xff] %vm182_vm1, %v695_v3  ;;  %v681_v48 = vadd.f32 %v1644_v30, %v659_v8  ;;  %v600_v22 = vadd.f32 %v599_v59, %v460_v49 }
 0x136   :  { %718 = vst.msk [vmem:[%s1797_s5 + $0x58] sm:$0xff] %vm182_vm1, %v703_v4  ;;  %v689_v50 = vadd.f32 %v1644_v30, %v667_v57  ;;  %v640_v55 = vadd.f32 %v639_v37, %v500_v51  ;;  %v953_v15 = vpop.f32.mrf.mxu0 }
 0x137   :  { %v977_v16 = vpop.f32.mrf.mxu1  ;;  %v696_v32 = vmax.f32 %v681_v48, 0.0  ;;  %v660_v20 = vmul.f32 %v1636_v60, %v600_v22 }
 0x138   :  { %v704_v34 = vmax.f32 %v689_v50, 0.0  ;;  %v668_v21 = vmul.f32 %v1636_v60, %v640_v55  ;;  %v604_v23 = vpop.f32.mrf.mxu0 }
 0x139   :  { %v644_v52 = vpop.f32.mrf.mxu1  ;;  %711 = vst.msk [vmem:[%s1797_s5 + $0x20] sm:$0xff] %vm182_vm1, %v696_v32  ;;  %v682_v54 = vadd.f32 %v1644_v30, %v660_v20  ;;  %v605_v9 = vadd.f32 %v604_v23, %v465_v19 }
 0x13a   :  { %719 = vst.msk [vmem:[%s1797_s5 + $0x60] sm:$0xff] %vm182_vm1, %v704_v34  ;;  %v690_v5 = vadd.f32 %v1644_v30, %v668_v21  ;;  %v645_v13 = vadd.f32 %v644_v52, %v505_v31  ;;  %v956_v17 = vpop.f32.mrf.mxu0 }
 0x13b   :  { %v980_v63 = vpop.f32.mrf.mxu1  ;;  %v697_v41 = vmax.f32 %v682_v54, 0.0  ;;  %v661_v44 = vmul.f32 %v1636_v60, %v605_v9 }
 0x13c   :  { %v705_v43 = vmax.f32 %v690_v5, 0.0  ;;  %v669_v46 = vmul.f32 %v1636_v60, %v645_v13  ;;  %v609_v0 = vpop.f32.mrf.mxu0 }
 0x13d   :  { %712 = vst.msk [vmem:[%s1797_s5 + $0x28] sm:$0xff] %vm182_vm1, %v697_v41  ;;  %v683_v2 = vadd.f32 %v1644_v30, %v661_v44  ;;  %v610_v27 = vadd.f32 %v609_v0, %v470_v61 }
 0x13e   :  { %720 = vst.msk [vmem:[%s1797_s5 + $0x68] sm:$0xff] %vm182_vm1, %v705_v43  ;;  %v691_v24 = vadd.f32 %v1644_v30, %v669_v46  ;;  %v959_v29 = vpop.f32.mrf.mxu0 }
 0x13f   :  { %v698_v6 = vmax.f32 %v683_v2, 0.0  ;;  %v662_v7 = vmul.f32 %v1636_v60, %v610_v27 }
 0x140   :  { %v706_v25 = vmax.f32 %v691_v24, 0.0 }
 0x141   :  { %713 = vst.msk [vmem:[%s1797_s5 + $0x30] sm:$0xff] %vm182_vm1, %v698_v6  ;;  %v684_v56 = vadd.f32 %v1644_v30, %v662_v7 }
 0x142   :  { %721 = vst.msk [vmem:[%s1797_s5 + $0x70] sm:$0xff] %vm182_vm1, %v706_v25 }
 0x143   :  { %v699_v33 = vmax.f32 %v684_v56, 0.0 }
 0x145   :  { %714 = vst.msk [vmem:[%s1797_s5 + $0x38] sm:$0xff] %vm182_vm1, %v699_v33 }

// kernel: dronet_forward.15
= control target key start
LH: loop header
LB: loop body
LE: loop exit
PB: predicated region body
PF: predicated region fallthrough
CT: control target
= control target key end

     0   :  { %vm114_vm0 = vcmask 523264   ;;  %s1076_s1 = inlined_call_operand.vmem [shape: f32[576,128], index: 1, kind: input, shape index: {}]   ;;  %s1077_s0 = inlined_call_operand.vmem [shape: f32[30,576], index: 0, kind: input, shape index: {}]   ;;  %s1078_s2 = inlined_call_operand.vmem [shape: f32[64,128], index: 2, kind: input, shape index: {}]   ;;  %s1079_s3 = inlined_call_operand.vmem [shape: f32[1,128], index: 3, kind: input, shape index: {}]   ;;  %s1080_s4 = inlined_call_operand.vmem [shape: f32[1,128], index: 4, kind: input, shape index: {}]   ;;  %s1081_s6 = inlined_call_operand.vmem [shape: f32[30,128], index: 6, kind: output, shape index: {1}]   ;;  %s1082_s5 = inlined_call_operand.vmem [shape: f32[30,128], index: 5, kind: output, shape index: {0}]  }
   0x1   :  { %v73_v0 = vld [vmem:[%s1076_s1 + $0xf8] sm:$0xff]  ;;  %v72_v4 = vld [vmem:[%s1076_s1 + $0xf0] sm:$0xff]  ;;  %v71_v8 = vld [vmem:[%s1076_s1 + $0xe8] sm:$0xff] }
   0x2   :  { %v105_v1 = vld [vmem:[%s1076_s1 + $0x1f8] sm:$0xff]  ;;  %539 = vmatprep.subr.mxu0 %v73_v0  ;;  %v104_v5 = vld [vmem:[%s1076_s1 + $0x1f0] sm:$0xff]  ;;  %v103_v9 = vld [vmem:[%s1076_s1 + $0x1e8] sm:$0xff] }
   0x3   :  { %v57_v2 = vld [vmem:[%s1076_s1 + $0x78] sm:$0xff]  ;;  %583 = vmatprep.subr.mxu1 %v105_v1  ;;  %v56_v6 = vld [vmem:[%s1076_s1 + $0x70] sm:$0xff]  ;;  %v55_v10 = vld [vmem:[%s1076_s1 + $0x68] sm:$0xff] }
   0x4   :  { %v89_v3 = vld [vmem:[%s1076_s1 + $0x178] sm:$0xff]  ;;  %540 = vmatpush3.msra.mxu0 %v57_v2  ;;  %v88_v7 = vld [vmem:[%s1076_s1 + $0x170] sm:$0xff]  ;;  %v87_v11 = vld [vmem:[%s1076_s1 + $0x168] sm:$0xff] }
   0x5   :  { %584 = vmatpush3.msra.mxu1 %v89_v3  ;;  %541 = vmatprep.subr.mxu0 %v72_v4  ;;  %v70_v12 = vld [vmem:[%s1076_s1 + $0xe0] sm:$0xff]  ;;  %v69_v16 = vld [vmem:[%s1076_s1 + $0xd8] sm:$0xff]  ;;  %v68_v20 = vld [vmem:[%s1076_s1 + $0xd0] sm:$0xff] }
   0x6   :  { %585 = vmatprep.subr.mxu1 %v104_v5  ;;  %542 = vmatpush3.msra.mxu0 %v56_v6  ;;  %v102_v13 = vld [vmem:[%s1076_s1 + $0x1e0] sm:$0xff]  ;;  %v101_v17 = vld [vmem:[%s1076_s1 + $0x1d8] sm:$0xff]  ;;  %v100_v21 = vld [vmem:[%s1076_s1 + $0x1d0] sm:$0xff] }
   0x7   :  { %586 = vmatpush3.msra.mxu1 %v88_v7  ;;  %543 = vmatprep.subr.mxu0 %v71_v8  ;;  %v54_v14 = vld [vmem:[%s1076_s1 + $0x60] sm:$0xff]  ;;  %v53_v18 = vld [vmem:[%s1076_s1 + $0x58] sm:$0xff]  ;;  %v52_v22 = vld [vmem:[%s1076_s1 + $0x50] sm:$0xff] }
   0x8   :  { %587 = vmatprep.subr.mxu1 %v103_v9  ;;  %v86_v15 = vld [vmem:[%s1076_s1 + $0x160] sm:$0xff]  ;;  %544 = vmatpush3.msra.mxu0 %v55_v10  ;;  %v85_v19 = vld [vmem:[%s1076_s1 + $0x158] sm:$0xff]  ;;  %v84_v23 = vld [vmem:[%s1076_s1 + $0x150] sm:$0xff] }
   0x9   :  { %588 = vmatpush3.msra.mxu1 %v87_v11  ;;  %545 = vmatprep.subr.mxu0 %v70_v12  ;;  %v67_v24 = vld [vmem:[%s1076_s1 + $0xc8] sm:$0xff]  ;;  %v66_v28 = vld [vmem:[%s1076_s1 + $0xc0] sm:$0xff]  ;;  %v65_v32 = vld [vmem:[%s1076_s1 + $0xb8] sm:$0xff] }
   0xa   :  { %589 = vmatprep.subr.mxu1 %v102_v13  ;;  %546 = vmatpush3.msra.mxu0 %v54_v14  ;;  %v99_v25 = vld [vmem:[%s1076_s1 + $0x1c8] sm:$0xff]  ;;  %v98_v29 = vld [vmem:[%s1076_s1 + $0x1c0] sm:$0xff]  ;;  %v97_v33 = vld [vmem:[%s1076_s1 + $0x1b8] sm:$0xff] }
   0xb   :  { %590 = vmatpush3.msra.mxu1 %v86_v15  ;;  %547 = vmatprep.subr.mxu0 %v69_v16  ;;  %v51_v26 = vld [vmem:[%s1076_s1 + $0x48] sm:$0xff]  ;;  %v50_v30 = vld [vmem:[%s1076_s1 + $0x40] sm:$0xff]  ;;  %v49_v34 = vld [vmem:[%s1076_s1 + $0x38] sm:$0xff] }
   0xc   :  { %591 = vmatprep.subr.mxu1 %v101_v17  ;;  %548 = vmatpush3.msra.mxu0 %v53_v18  ;;  %v83_v27 = vld [vmem:[%s1076_s1 + $0x148] sm:$0xff]  ;;  %v82_v31 = vld [vmem:[%s1076_s1 + $0x140] sm:$0xff]  ;;  %v81_v35 = vld [vmem:[%s1076_s1 + $0x138] sm:$0xff] }
   0xd   :  { %592 = vmatpush3.msra.mxu1 %v85_v19  ;;  %549 = vmatprep.subr.mxu0 %v68_v20  ;;  %v64_v36 = vld [vmem:[%s1076_s1 + $0xb0] sm:$0xff]  ;;  %v63_v40 = vld [vmem:[%s1076_s1 + $0xa8] sm:$0xff]  ;;  %v62_v44 = vld [vmem:[%s1076_s1 + $0xa0] sm:$0xff] }
   0xe   :  { %593 = vmatprep.subr.mxu1 %v100_v21  ;;  %550 = vmatpush3.msra.mxu0 %v52_v22  ;;  %v96_v37 = vld [vmem:[%s1076_s1 + $0x1b0] sm:$0xff]  ;;  %v95_v41 = vld [vmem:[%s1076_s1 + $0x1a8] sm:$0xff]  ;;  %v94_v45 = vld [vmem:[%s1076_s1 + $0x1a0] sm:$0xff] }
   0xf   :  { %594 = vmatpush3.msra.mxu1 %v84_v23  ;;  %551 = vmatprep.subr.mxu0 %v67_v24  ;;  %v48_v38 = vld [vmem:[%s1076_s1 + $0x30] sm:$0xff]  ;;  %v47_v42 = vld [vmem:[%s1076_s1 + $0x28] sm:$0xff]  ;;  %v46_v46 = vld [vmem:[%s1076_s1 + $0x20] sm:$0xff] }
  0x10   :  { %595 = vmatprep.subr.mxu1 %v99_v25  ;;  %552 = vmatpush3.msra.mxu0 %v51_v26  ;;  %v80_v39 = vld [vmem:[%s1076_s1 + $0x130] sm:$0xff]  ;;  %v79_v43 = vld [vmem:[%s1076_s1 + $0x128] sm:$0xff]  ;;  %v78_v47 = vld [vmem:[%s1076_s1 + $0x120] sm:$0xff] }
  0x11   :  { %596 = vmatpush3.msra.mxu1 %v83_v27  ;;  %553 = vmatprep.subr.mxu0 %v66_v28  ;;  %v61_v48 = vld [vmem:[%s1076_s1 + $0x98] sm:$0xff]  ;;  %v60_v52 = vld [vmem:[%s1076_s1 + $0x90] sm:$0xff]  ;;  %v59_v56 = vld [vmem:[%s1076_s1 + $0x88] sm:$0xff] }
  0x12   :  { %597 = vmatprep.subr.mxu1 %v98_v29  ;;  %554 = vmatpush3.msra.mxu0 %v50_v30  ;;  %v93_v49 = vld [vmem:[%s1076_s1 + $0x198] sm:$0xff]  ;;  %v92_v53 = vld [vmem:[%s1076_s1 + $0x190] sm:$0xff]  ;;  %v91_v57 = vld [vmem:[%s1076_s1 + $0x188] sm:$0xff] }
  0x13   :  { %598 = vmatpush3.msra.mxu1 %v82_v31  ;;  %555 = vmatprep.subr.mxu0 %v65_v32  ;;  %v45_v50 = vld [vmem:[%s1076_s1 + $0x18] sm:$0xff]  ;;  %v44_v54 = vld [vmem:[%s1076_s1 + $0x10] sm:$0xff]  ;;  %v43_v58 = vld [vmem:[%s1076_s1 + $0x8] sm:$0xff] }
  0x14   :  { %599 = vmatprep.subr.mxu1 %v97_v33  ;;  %556 = vmatpush3.msra.mxu0 %v49_v34  ;;  %v77_v51 = vld [vmem:[%s1076_s1 + $0x118] sm:$0xff]  ;;  %v76_v55 = vld [vmem:[%s1076_s1 + $0x110] sm:$0xff]  ;;  %v75_v59 = vld [vmem:[%s1076_s1 + $0x108] sm:$0xff] }
  0x15   :  { %600 = vmatpush3.msra.mxu1 %v81_v35  ;;  %557 = vmatprep.subr.mxu0 %v64_v36  ;;  %v58_v60 = vld [vmem:[%s1076_s1 + $0x80] sm:$0xff]  ;;  %v23_v63 = vld [vmem:[%s1077_s0 + $0x8] sm:$0xff]  ;;  %v25_v1 = vld [vmem:[%s1077_s0 + $0x18] sm:$0xff] }
  0x16   :  { %601 = vmatprep.subr.mxu1 %v96_v37  ;;  %558 = vmatpush3.msra.mxu0 %v48_v38  ;;  %v90_v61 = vld [vmem:[%s1076_s1 + $0x180] sm:$0xff]  ;;  %v934_v3 = vld [vmem:[%s1077_s0 + $0x10] sm:$0xff]  ;;  %v113_v4 = vld [vmem:[%s1076_s1 + $0x238] sm:$0xff] }
  0x17   :  { %602 = vmatpush3.msra.mxu1 %v80_v39  ;;  %559 = vmatprep.subr.mxu0 %v63_v40  ;;  %v42_v62 = vld [vmem:[%s1076_s1] sm:$0xff]  ;;  %v28_v5 = vld [vmem:[%s1077_s0 + $0x30] sm:$0xff]  ;;  %v419_v8 = vld [vmem:[%s1078_s2 + $0x38] sm:$0xff] }
  0x18   :  { %603 = vmatprep.subr.mxu1 %v95_v41  ;;  %560 = vmatpush3.msra.mxu0 %v47_v42  ;;  %v74_v0 = vld [vmem:[%s1076_s1 + $0x100] sm:$0xff]  ;;  %v112_v7 = vld [vmem:[%s1076_s1 + $0x230] sm:$0xff]  ;;  %v955_v9 = vld [vmem:[%s1077_s0 + $0x38] sm:$0xff] }
  0x19   :  { %604 = vmatpush3.msra.mxu1 %v79_v43  ;;  %561 = vmatprep.subr.mxu0 %v62_v44  ;;  %v22_v2 = vld [vmem:[%s1077_s0] sm:$0xff]  ;;  %v27_v10 = vld [vmem:[%s1077_s0 + $0x28] sm:$0xff]  ;;  %v33_v12 = vld [vmem:[%s1077_s0 + $0x58] sm:$0xff] }
  0x1a   :  { %605 = vmatprep.subr.mxu1 %v94_v45  ;;  %562 = vmatpush3.msra.mxu0 %v46_v46  ;;  %v30_v6 = vld [vmem:[%s1077_s0 + $0x40] sm:$0xff]  ;;  %v111_v11 = vld [vmem:[%s1076_s1 + $0x228] sm:$0xff]  ;;  %v32_v16 = vld [vmem:[%s1077_s0 + $0x50] sm:$0xff] }
  0x1b   :  { %606 = vmatpush3.msra.mxu1 %v78_v47  ;;  %563 = vmatprep.subr.mxu0 %v61_v48  ;;  %v110_v13 = vld [vmem:[%s1076_s1 + $0x220] sm:$0xff]  ;;  %v35_v14 = vld [vmem:[%s1077_s0 + $0x68] sm:$0xff]  ;;  %v109_v17 = vld [vmem:[%s1076_s1 + $0x218] sm:$0xff] }
  0x1c   :  { %607 = vmatprep.subr.mxu1 %v93_v49  ;;  %564 = vmatpush3.msra.mxu0 %v45_v50  ;;  %v34_v15 = vld [vmem:[%s1077_s0 + $0x60] sm:$0xff]  ;;  %v418_v18 = vld [vmem:[%s1078_s2 + $0x30] sm:$0xff]  ;;  %v417_v22 = vld [vmem:[%s1078_s2 + $0x28] sm:$0xff] }
  0x1d   :  { %608 = vmatpush3.msra.mxu1 %v77_v51  ;;  %565 = vmatprep.subr.mxu0 %v60_v52  ;;  %v108_v19 = vld [vmem:[%s1076_s1 + $0x210] sm:$0xff]  ;;  %v38_v20 = vld [vmem:[%s1077_s0 + $0x80] sm:$0x3f]  ;;  %v37_v23 = vld [vmem:[%s1077_s0 + $0x78] sm:$0x3f] }
  0x1e   :  { %609 = vmatprep.subr.mxu1 %v92_v53  ;;  %566 = vmatpush3.msra.mxu0 %v44_v54  ;;  %v40_v21 = vld [vmem:[%s1077_s0 + $0x90] sm:$0x3f]  ;;  %v39_v24 = vld [vmem:[%s1077_s0 + $0x88] sm:$0x3f]  ;;  %v416_v26 = vld [vmem:[%s1078_s2 + $0x20] sm:$0xff] }
  0x1f   :  { %610 = vmatpush3.msra.mxu1 %v76_v55  ;;  %567 = vmatprep.subr.mxu0 %v59_v56  ;;  %v107_v25 = vld [vmem:[%s1076_s1 + $0x208] sm:$0xff]  ;;  %v106_v27 = vld [vmem:[%s1076_s1 + $0x200] sm:$0xff]  ;;  %v415_v29 = vld [vmem:[%s1078_s2 + $0x18] sm:$0xff] }
  0x20   :  { %611 = vmatprep.subr.mxu1 %v91_v57  ;;  %568 = vmatpush3.msra.mxu0 %v43_v58  ;;  %v26_v28 = vld [vmem:[%s1077_s0 + $0x20] sm:$0xff]  ;;  %v31_v30 = vld [vmem:[%s1077_s0 + $0x48] sm:$0xff]  ;;  %v414_v31 = vld [vmem:[%s1078_s2 + $0x10] sm:$0xff] }
  0x21   :  { %612 = vmatpush3.msra.mxu1 %v75_v59  ;;  %569 = vmatprep.subr.mxu0 %v58_v60  ;;  %v36_v32 = vld [vmem:[%s1077_s0 + $0x70] sm:$0xff]  ;;  %v413_v33 = vld [vmem:[%s1078_s2 + $0x8] sm:$0xff]  ;;  %v41_v34 = vld [vmem:[%s1077_s0 + $0x98] sm:$0x3f] }
  0x22   :  { %613 = vmatprep.subr.mxu1 %v90_v61  ;;  %570 = vmatpush3.msra.mxu0 %v42_v62  ;;  %v412_v35 = vld [vmem:[%s1078_s2] sm:$0xff] }
  0x23   :  { %191 = vmatprep.mubr.f32.mxu0 %v23_v63  ;;  %614 = vmatpush3.msra.mxu1 %v74_v0  ;;  %v533_v60 = vld [vmem:[%s1079_s3] ss:$0 sm:$0xff] }
  0x24   :  { %276 = vmatprep.mubr.f32.mxu1 %v25_v1  ;;  %192 = vmatmul.mubr.f32.vlgmr.msra.gmra.mxu0 %v22_v2  ;;  %v534_v1 = vld [vmem:[%s1080_s4] ss:$0 sm:$0xff] }
  0x25   :  { %277 = vmatmul.mubr.f32.vlgmr.msra.gmra.mxu1 %v934_v3  ;;  %651 = vmatprep.subr.mxu0 %v113_v4 }
  0x26   :  { %196 = vmatprep.mubr.f32.mxu0 %v28_v5  ;;  %652 = vmatpush3.msra.mxu0 %v113_v4 }
  0x27   :  { %281 = vmatprep.mubr.f32.mxu1 %v30_v6  ;;  %653 = vmatprep.subr.mxu0 %v112_v7 }
  0x28   :  { %673 = vmatprep.subr.mxu1 %v419_v8  ;;  %654 = vmatpush3.msra.mxu0 %v112_v7 }
  0x29   :  { %282 = vmatmul.mubr.f32.gmra.mxu1 %v955_v9  ;;  %197 = vmatmul.mubr.f32.gmra.mxu0 %v27_v10 }
  0x2a   :  { %655 = vmatprep.subr.mxu0 %v111_v11  ;;  %201 = vmatprep.mubr.f32.mxu0 %v33_v12 }
  0x2b   :  { %656 = vmatpush3.msra.mxu0 %v111_v11  ;;  %286 = vmatprep.mubr.f32.mxu1 %v35_v14 }
  0x2c   :  { %657 = vmatprep.subr.mxu0 %v110_v13  ;;  %674 = vmatpush3.msra.mxu1 %v419_v8 }
  0x2d   :  { %658 = vmatpush3.msra.mxu0 %v110_v13  ;;  %287 = vmatmul.mubr.f32.gmra.mxu1 %v34_v15 }
  0x2e   :  { %202 = vmatmul.mubr.f32.gmra.mxu0 %v32_v16  ;;  %659 = vmatprep.subr.mxu0 %v109_v17 }
  0x2f   :  { %660 = vmatpush3.msra.mxu0 %v109_v17  ;;  %675 = vmatprep.subr.mxu1 %v418_v18 }
  0x30   :  { %661 = vmatprep.subr.mxu0 %v108_v19  ;;  %676 = vmatpush3.msra.mxu1 %v418_v18 }
  0x31   :  { %206 = vmatprep.mubr.f32.mxu0 %v38_v20  ;;  %291 = vmatprep.mubr.f32.mxu1 %v40_v21 }
  0x32   :  { %662 = vmatpush3.msra.mxu0 %v108_v19  ;;  %677 = vmatprep.subr.mxu1 %v417_v22 }
  0x33   :  { %207 = vmatmul.mubr.f32.gmra.mxu0 %v37_v23  ;;  %292 = vmatmul.mubr.f32.gmra.mxu1 %v39_v24 }
  0x34   :  { %663 = vmatprep.subr.mxu0 %v107_v25  ;;  %678 = vmatpush3.msra.mxu1 %v417_v22 }
  0x35   :  { %664 = vmatpush3.msra.mxu0 %v107_v25  ;;  %679 = vmatprep.subr.mxu1 %v416_v26 }
  0x36   :  { %665 = vmatprep.subr.mxu0 %v106_v27  ;;  %680 = vmatpush3.msra.mxu1 %v416_v26 }
  0x37   :  { %666 = vmatpush3.msra.mxu0 %v106_v27  ;;  %667 = vmatprep.mubr.msk.f32.mxu0 %vm114_vm0, %v26_v28 }
  0x38   :  { %681 = vmatprep.subr.mxu1 %v415_v29  ;;  %668 = vmatmul.mubr.msk.f32.vlgmr.msra.gmra.mxu0 %vm114_vm0, %v31_v30 }
  0x39   :  { %682 = vmatpush3.msra.mxu1 %v415_v29  ;;  %670 = vmatprep.mubr.msk.f32.mxu0 %vm114_vm0, %v36_v32 }
  0x3a   :  { %683 = vmatprep.subr.mxu1 %v414_v31  ;;  %689 = vmatprep.mubr.msk.f32.mxu1 %vm114_vm0, %v934_v3 }
  0x3b   :  { %684 = vmatpush3.msra.mxu1 %v414_v31 }
  0x3c   :  { %685 = vmatprep.subr.mxu1 %v413_v33  ;;  %671 = vmatmul.mubr.msk.f32.gmra.mxu0 %vm114_vm0, %v41_v34 }
  0x3d   :  { %686 = vmatpush3.msra.mxu1 %v413_v33 }
  0x3e   :  { %687 = vmatprep.subr.mxu1 %v412_v35 }
  0x3f   :  { %688 = vmatpush3.msra.mxu1 %v412_v35 }
  0x40   :  { %690 = vmatmul.mubr.msk.f32.vlgmr.msra.gmra.mxu1 %vm114_vm0, %v955_v9 }
  0x41   :  { %692 = vmatprep.mubr.msk.f32.mxu1 %vm114_vm0, %v34_v15 }
  0x44   :  { %693 = vmatmul.mubr.msk.f32.gmra.mxu1 %vm114_vm0, %v39_v24 }
  0xe4   :  { %v571_v36 = vpop.f32.mrf.mxu0 }
  0xe5   :  { %v615_v37 = vpop.f32.mrf.mxu1 }
  0xe6   :  { %v572_v38 = vpop.f32.mrf.mxu0 }
  0xe7   :  { %v616_v39 = vpop.f32.mrf.mxu1  ;;  %v573_v53 = vadd.f32 %v572_v38, %v571_v36 }
  0xe8   :  { %v617_v54 = vadd.f32 %v616_v39, %v615_v37 }
  0xe9   :  { %v618_v40 = vpop.f32.mrf.mxu1  ;;  %v574_v41 = vpop.f32.mrf.mxu0 }
  0xea   :  { %v279_v0 = vadd.f32 %v617_v54, %v573_v53 }
  0xeb   :  { %v619_v42 = vpop.f32.mrf.mxu1  ;;  %v575_v43 = vpop.f32.mrf.mxu0 }
  0xec   :  { %v576_v49 = vadd.f32 %v575_v43, %v574_v41  ;;  %v620_v50 = vadd.f32 %v619_v42, %v618_v40 }
  0xed   :  { %v621_v44 = vpop.f32.mrf.mxu1 }
  0xee   :  { %v577_v45 = vpop.f32.mrf.mxu0  ;;  %v284_v58 = vadd.f32 %v620_v50, %v576_v49 }
  0xef   :  { %v622_v47 = vpop.f32.mrf.mxu1 }
  0xf0   :  { %v578_v46 = vpop.f32.mrf.mxu0  ;;  %v623_v62 = vadd.f32 %v622_v47, %v621_v44 }
  0xf1   :  { %v579_v61 = vadd.f32 %v578_v46, %v577_v45 }
  0xf3   :  { %v580_v48 = vpop.f32.mrf.mxu0  ;;  %v624_v51 = vpop.f32.mrf.mxu1  ;;  %v289_v10 = vadd.f32 %v623_v62, %v579_v61 }
  0xf5   :  { %v581_v52 = vpop.f32.mrf.mxu0  ;;  %v625_v55 = vpop.f32.mrf.mxu1 }
  0xf6   :  { %v582_v56 = vadd.f32 %v581_v52, %v580_v48  ;;  %v626_v57 = vadd.f32 %v625_v55, %v624_v51 }
  0xf8   :  { %v669_v59 = vpop.f32.mrf.mxu0  ;;  %v294_v5 = vadd.f32 %v626_v57, %v582_v56 }
  0xf9   :  { %v369_v63 = vadd.f32 %v669_v59, %v284_v58 }
  0xfa   :  { %v363_v2 = vpop.f32.mrf.mxu0 }
  0xfb   :  { %v390_v3 = vmul.f32 %v533_v60, %v369_v63  ;;  %v364_v4 = vadd.f32 %v363_v2, %v279_v0 }
  0xfc   :  { %v672_v6 = vpop.f32.mrf.mxu0 }
  0xfd   :  { %v401_v7 = vadd.f32 %v534_v1, %v390_v3  ;;  %v389_v8 = vmul.f32 %v533_v60, %v364_v4  ;;  %v379_v9 = vadd.f32 %v672_v6, %v294_v5 }
  0xfe   :  { %v373_v11 = vpop.f32.mrf.mxu0 }
  0xff   :  { %v405_v12 = vmax.f32 %v401_v7, 0.0  ;;  %v400_v13 = vadd.f32 %v534_v1, %v389_v8  ;;  %v392_v14 = vmul.f32 %v533_v60, %v379_v9  ;;  %v374_v15 = vadd.f32 %v373_v11, %v289_v10 }
 0x100   :  { %v691_v16 = vpop.f32.mrf.mxu1 }
 0x101   :  { %518 = vst [vmem:[%s1081_s6 + $0x8] sm:$0xff] %v691_v16  ;;  %409 = vst [vmem:[%s1082_s5 + $0x8] sm:$0xff] %v405_v12  ;;  %v404_v17 = vmax.f32 %v400_v13, 0.0  ;;  %v403_v18 = vadd.f32 %v534_v1, %v392_v14  ;;  %v391_v19 = vmul.f32 %v533_v60, %v374_v15 }
 0x102   :  { %v498_v20 = vpop.f32.mrf.mxu1 }
 0x103   :  { %517 = vst [vmem:[%s1081_s6] sm:$0xff] %v498_v20  ;;  %408 = vst [vmem:[%s1082_s5] sm:$0xff] %v404_v17  ;;  %v407_v21 = vmax.f32 %v403_v18, 0.0  ;;  %v402_v22 = vadd.f32 %v534_v1, %v391_v19 }
 0x104   :  { %v694_v23 = vpop.f32.mrf.mxu1 }
 0x105   :  { %520 = vst [vmem:[%s1081_s6 + $0x18] sm:$0x3f] %v694_v23  ;;  %411 = vst [vmem:[%s1082_s5 + $0x18] sm:$0x3f] %v407_v21  ;;  %v406_v24 = vmax.f32 %v402_v22, 0.0 }
 0x106   :  { %v508_v25 = vpop.f32.mrf.mxu1 }
 0x107   :  { %519 = vst [vmem:[%s1081_s6 + $0x10] sm:$0xff] %v508_v25  ;;  %410 = vst [vmem:[%s1082_s5 + $0x10] sm:$0xff] %v406_v24 }

// kernel: dronet_forward.17
= control target key start
LH: loop header
LB: loop body
LE: loop exit
PB: predicated region body
PF: predicated region fallthrough
CT: control target
= control target key end

     0   :  { %v1222_v27 = vmov 1983009808   ;;  %v273_v29 = vlaneseq  ;;  %vm1224_vm0 = vmmov 0   ;;  %vm911_vm1 = vcmask 25600   ;;  %s2028_s1 = inlined_call_operand.vmem [shape: f32[1920,4], index: 1, kind: input, shape index: {}]   ;;  %s2029_s0 = inlined_call_operand.vmem [shape: f32[2,1920], index: 0, kind: input, shape index: {}]   ;;  %s2030_s2 = inlined_call_operand.vmem [shape: f32[1,4], index: 2, kind: input, shape index: {}]   ;;  %s2031_s3 = inlined_call_operand.vmem [shape: f32[2,4], index: 3, kind: output, shape index: {}]  }
   0x1   :  { %v49_v0 = vld [vmem:[%s2028_s1 + $0xf8] sm:$0xff]  ;;  %v48_v2 = vld [vmem:[%s2028_s1 + $0xf0] sm:$0xff]  ;;  %v47_v6 = vld [vmem:[%s2028_s1 + $0xe8] sm:$0xff]  ;;  %v271_v28 = vunpack.c.l.s4 %v1222_v27 }
   0x2   :  { %v33_v1 = vld [vmem:[%s2028_s1 + $0x78] sm:$0xff]  ;;  %918 = vmatprep.subr.mxu0 %v49_v0  ;;  %v32_v4 = vld [vmem:[%s2028_s1 + $0x70] sm:$0xff]  ;;  %v31_v8 = vld [vmem:[%s2028_s1 + $0x68] sm:$0xff]  ;;  %v274_v39 = vshrl.u32 %v273_v29, 7 }
   0x3   :  { %v81_v3 = vld [vmem:[%s2028_s1 + $0x1f8] sm:$0xff]  ;;  %919 = vmatpush3.msra.mxu0 %v33_v1  ;;  %v80_v7 = vld [vmem:[%s2028_s1 + $0x1f0] sm:$0xff]  ;;  %v79_v10 = vld [vmem:[%s2028_s1 + $0x1e8] sm:$0xff]  ;;  %v272_v38 = vunpack.c.0.s8 %v271_v28 }
   0x4   :  { %v65_v5 = vld [vmem:[%s2028_s1 + $0x178] sm:$0xff]  ;;  %953 = vmatprep.subr.mxu1 %v81_v3  ;;  %920 = vmatprep.subr.mxu0 %v48_v2  ;;  %v64_v9 = vld [vmem:[%s2028_s1 + $0x170] sm:$0xff]  ;;  %v46_v11 = vld [vmem:[%s2028_s1 + $0xe0] sm:$0xff] }
   0x5   :  { %954 = vmatpush3.msra.mxu1 %v65_v5  ;;  %921 = vmatpush3.msra.mxu0 %v32_v4  ;;  %v63_v12 = vld [vmem:[%s2028_s1 + $0x168] sm:$0xff]  ;;  %v30_v13 = vld [vmem:[%s2028_s1 + $0x60] sm:$0xff]  ;;  %v45_v15 = vld [vmem:[%s2028_s1 + $0xd8] sm:$0xff]  ;;  %v1374_v48 = vsub.s32 %v272_v38, %v274_v39 }
   0x6   :  { %955 = vmatprep.subr.mxu1 %v80_v7  ;;  %922 = vmatprep.subr.mxu0 %v47_v6  ;;  %v78_v14 = vld [vmem:[%s2028_s1 + $0x1e0] sm:$0xff]  ;;  %v29_v17 = vld [vmem:[%s2028_s1 + $0x58] sm:$0xff]  ;;  %v44_v19 = vld [vmem:[%s2028_s1 + $0xd0] sm:$0xff] }
   0x7   :  { %956 = vmatpush3.msra.mxu1 %v64_v9  ;;  %923 = vmatpush3.msra.mxu0 %v31_v8  ;;  %v62_v16 = vld [vmem:[%s2028_s1 + $0x160] sm:$0xff]  ;;  %v77_v18 = vld [vmem:[%s2028_s1 + $0x1d8] sm:$0xff]  ;;  %v28_v21 = vld [vmem:[%s2028_s1 + $0x50] sm:$0xff] }
   0x8   :  { %957 = vmatprep.subr.mxu1 %v79_v10  ;;  %924 = vmatprep.subr.mxu0 %v46_v11  ;;  %v61_v20 = vld [vmem:[%s2028_s1 + $0x158] sm:$0xff]  ;;  %v76_v22 = vld [vmem:[%s2028_s1 + $0x1d0] sm:$0xff]  ;;  %v43_v23 = vld [vmem:[%s2028_s1 + $0xc8] sm:$0xff] }
   0x9   :  { %958 = vmatpush3.msra.mxu1 %v63_v12  ;;  %925 = vmatpush3.msra.mxu0 %v30_v13  ;;  %v60_v24 = vld [vmem:[%s2028_s1 + $0x150] sm:$0xff]  ;;  %v27_v25 = vld [vmem:[%s2028_s1 + $0x48] sm:$0xff]  ;;  %v42_v30 = vld [vmem:[%s2028_s1 + $0xc0] sm:$0xff] }
   0xa   :  { %959 = vmatprep.subr.mxu1 %v78_v14  ;;  %926 = vmatprep.subr.mxu0 %v45_v15  ;;  %v75_v26 = vld [vmem:[%s2028_s1 + $0x1c8] sm:$0xff]  ;;  %v26_v32 = vld [vmem:[%s2028_s1 + $0x40] sm:$0xff]  ;;  %v41_v34 = vld [vmem:[%s2028_s1 + $0xb8] sm:$0xff] }
   0xb   :  { %960 = vmatpush3.msra.mxu1 %v62_v16  ;;  %927 = vmatpush3.msra.mxu0 %v29_v17  ;;  %v59_v31 = vld [vmem:[%s2028_s1 + $0x148] sm:$0xff]  ;;  %v74_v33 = vld [vmem:[%s2028_s1 + $0x1c0] sm:$0xff]  ;;  %v25_v36 = vld [vmem:[%s2028_s1 + $0x38] sm:$0xff] }
   0xc   :  { %961 = vmatprep.subr.mxu1 %v77_v18  ;;  %928 = vmatprep.subr.mxu0 %v44_v19  ;;  %v58_v35 = vld [vmem:[%s2028_s1 + $0x140] sm:$0xff]  ;;  %v73_v37 = vld [vmem:[%s2028_s1 + $0x1b8] sm:$0xff]  ;;  %v40_v40 = vld [vmem:[%s2028_s1 + $0xb0] sm:$0xff] }
   0xd   :  { %962 = vmatpush3.msra.mxu1 %v61_v20  ;;  %929 = vmatpush3.msra.mxu0 %v28_v21  ;;  %v57_v41 = vld [vmem:[%s2028_s1 + $0x138] sm:$0xff]  ;;  %v24_v42 = vld [vmem:[%s2028_s1 + $0x30] sm:$0xff]  ;;  %v39_v44 = vld [vmem:[%s2028_s1 + $0xa8] sm:$0xff] }
   0xe   :  { %963 = vmatprep.subr.mxu1 %v76_v22  ;;  %930 = vmatprep.subr.mxu0 %v43_v23  ;;  %v72_v43 = vld [vmem:[%s2028_s1 + $0x1b0] sm:$0xff]  ;;  %v23_v46 = vld [vmem:[%s2028_s1 + $0x28] sm:$0xff]  ;;  %v38_v49 = vld [vmem:[%s2028_s1 + $0xa0] sm:$0xff] }
   0xf   :  { %964 = vmatpush3.msra.mxu1 %v60_v24  ;;  %931 = vmatpush3.msra.mxu0 %v27_v25  ;;  %v56_v45 = vld [vmem:[%s2028_s1 + $0x130] sm:$0xff]  ;;  %v71_v47 = vld [vmem:[%s2028_s1 + $0x1a8] sm:$0xff]  ;;  %v14_v51 = vld [vmem:[%s2029_s0] sm:$0xff] }
  0x10   :  { %965 = vmatprep.subr.mxu1 %v75_v26  ;;  %932 = vmatprep.subr.mxu0 %v42_v30  ;;  %v55_v50 = vld [vmem:[%s2028_s1 + $0x128] sm:$0xff]  ;;  %v22_v52 = vld [vmem:[%s2028_s1 + $0x20] sm:$0xff]  ;;  %v37_v54 = vld [vmem:[%s2028_s1 + $0x98] sm:$0xff]  ;;  %v276_v58 = vrot.slane %v14_v51, %v1374_v48  ;;  %v269_v59 = vcombine.high %v14_v51, %v14_v51 }
  0x11   :  { %966 = vmatpush3.msra.mxu1 %v59_v31  ;;  %933 = vmatpush3.msra.mxu0 %v26_v32  ;;  %v70_v53 = vld [vmem:[%s2028_s1 + $0x1a0] sm:$0xff]  ;;  %v21_v56 = vld [vmem:[%s2028_s1 + $0x18] sm:$0xff]  ;;  %v36_v60 = vld [vmem:[%s2028_s1 + $0x90] sm:$0xff] }
  0x12   :  { %967 = vmatprep.subr.mxu1 %v74_v33  ;;  %934 = vmatprep.subr.mxu0 %v41_v34  ;;  %v54_v55 = vld [vmem:[%s2028_s1 + $0x120] sm:$0xff]  ;;  %v69_v57 = vld [vmem:[%s2028_s1 + $0x198] sm:$0xff]  ;;  %v20_v62 = vld [vmem:[%s2028_s1 + $0x10] sm:$0xff]  ;;  %v284_v4 = vcombine.high %v276_v58, %v276_v58  ;;  %v283_v5 = vrot.slane %v269_v59, %v1374_v48 }
  0x13   :  { %968 = vmatpush3.msra.mxu1 %v58_v35  ;;  %935 = vmatpush3.msra.mxu0 %v25_v36  ;;  %v53_v61 = vld [vmem:[%s2028_s1 + $0x118] sm:$0xff]  ;;  %v68_v63 = vld [vmem:[%s2028_s1 + $0x190] sm:$0xff]  ;;  %v35_v0 = vld [vmem:[%s2028_s1 + $0x88] sm:$0xff] }
  0x14   :  { %969 = vmatprep.subr.mxu1 %v73_v37  ;;  %936 = vmatprep.subr.mxu0 %v40_v40  ;;  %v52_v1 = vld [vmem:[%s2028_s1 + $0x110] sm:$0xff]  ;;  %v19_v2 = vld [vmem:[%s2028_s1 + $0x8] sm:$0xff]  ;;  %v34_v6 = vld [vmem:[%s2028_s1 + $0x80] sm:$0xff]  ;;  %v285_v12 = vcombine.high %v283_v5, %v283_v5 }
  0x15   :  { %970 = vmatpush3.msra.mxu1 %v57_v41  ;;  %937 = vmatpush3.msra.mxu0 %v24_v42  ;;  %v67_v3 = vld [vmem:[%s2028_s1 + $0x188] sm:$0xff]  ;;  %v18_v7 = vld [vmem:[%s2028_s1] sm:$0xff]  ;;  %v113_v10 = vld [vmem:[%s2028_s1 + $0x2f8] sm:$0xff] }
  0x16   :  { %971 = vmatprep.subr.mxu1 %v72_v43  ;;  %938 = vmatprep.subr.mxu0 %v39_v44  ;;  %v51_v8 = vld [vmem:[%s2028_s1 + $0x108] sm:$0xff]  ;;  %v66_v9 = vld [vmem:[%s2028_s1 + $0x180] sm:$0xff]  ;;  %v97_v13 = vld [vmem:[%s2028_s1 + $0x278] sm:$0xff] }
  0x17   :  { %972 = vmatpush3.msra.mxu1 %v56_v45  ;;  %939 = vmatpush3.msra.mxu0 %v23_v46  ;;  %v50_v11 = vld [vmem:[%s2028_s1 + $0x100] sm:$0xff]  ;;  %v112_v14 = vld [vmem:[%s2028_s1 + $0x2f0] sm:$0xff]  ;;  %v145_v15 = vld [vmem:[%s2028_s1 + $0x3f8] sm:$0xff] }
  0x18   :  { %973 = vmatprep.subr.mxu1 %v71_v47  ;;  %940 = vmatprep.subr.mxu0 %v38_v49  ;;  %v96_v16 = vld [vmem:[%s2028_s1 + $0x270] sm:$0xff]  ;;  %v129_v17 = vld [vmem:[%s2028_s1 + $0x378] sm:$0xff]  ;;  %v111_v18 = vld [vmem:[%s2028_s1 + $0x2e8] sm:$0xff] }
  0x19   :  { %974 = vmatpush3.msra.mxu1 %v55_v50  ;;  %941 = vmatpush3.msra.mxu0 %v22_v52  ;;  %v144_v19 = vld [vmem:[%s2028_s1 + $0x3f0] sm:$0xff]  ;;  %v95_v20 = vld [vmem:[%s2028_s1 + $0x268] sm:$0xff]  ;;  %v110_v22 = vld [vmem:[%s2028_s1 + $0x2e0] sm:$0xff] }
  0x1a   :  { %975 = vmatprep.subr.mxu1 %v70_v53  ;;  %942 = vmatprep.subr.mxu0 %v37_v54  ;;  %v128_v21 = vld [vmem:[%s2028_s1 + $0x370] sm:$0xff]  ;;  %v143_v23 = vld [vmem:[%s2028_s1 + $0x3e8] sm:$0xff]  ;;  %v94_v24 = vld [vmem:[%s2028_s1 + $0x260] sm:$0xff] }
  0x1b   :  { %976 = vmatpush3.msra.mxu1 %v54_v55  ;;  %943 = vmatpush3.msra.mxu0 %v21_v56  ;;  %v127_v25 = vld [vmem:[%s2028_s1 + $0x368] sm:$0xff]  ;;  %v109_v26 = vld [vmem:[%s2028_s1 + $0x2d8] sm:$0xff]  ;;  %v142_v27 = vld [vmem:[%s2028_s1 + $0x3e0] sm:$0xff] }
  0x1c   :  { %977 = vmatprep.subr.mxu1 %v69_v57  ;;  %944 = vmatprep.subr.mxu0 %v36_v60  ;;  %v93_v28 = vld [vmem:[%s2028_s1 + $0x258] sm:$0xff]  ;;  %v126_v29 = vld [vmem:[%s2028_s1 + $0x360] sm:$0xff]  ;;  %v108_v30 = vld [vmem:[%s2028_s1 + $0x2d0] sm:$0xff] }
  0x1d   :  { %978 = vmatpush3.msra.mxu1 %v53_v61  ;;  %945 = vmatpush3.msra.mxu0 %v20_v62  ;;  %v141_v31 = vld [vmem:[%s2028_s1 + $0x3d8] sm:$0xff]  ;;  %v92_v32 = vld [vmem:[%s2028_s1 + $0x250] sm:$0xff]  ;;  %v107_v34 = vld [vmem:[%s2028_s1 + $0x2c8] sm:$0xff] }
  0x1e   :  { %979 = vmatprep.subr.mxu1 %v68_v63  ;;  %946 = vmatprep.subr.mxu0 %v35_v0  ;;  %v125_v33 = vld [vmem:[%s2028_s1 + $0x358] sm:$0xff]  ;;  %v140_v35 = vld [vmem:[%s2028_s1 + $0x3d0] sm:$0xff]  ;;  %v91_v36 = vld [vmem:[%s2028_s1 + $0x248] sm:$0xff] }
  0x1f   :  { %980 = vmatpush3.msra.mxu1 %v52_v1  ;;  %947 = vmatpush3.msra.mxu0 %v19_v2  ;;  %v124_v37 = vld [vmem:[%s2028_s1 + $0x350] sm:$0xff]  ;;  %v106_v38 = vld [vmem:[%s2028_s1 + $0x2c0] sm:$0xff]  ;;  %v139_v39 = vld [vmem:[%s2028_s1 + $0x3c8] sm:$0xff] }
  0x20   :  { %981 = vmatprep.subr.mxu1 %v67_v3  ;;  %948 = vmatprep.subr.mxu0 %v34_v6  ;;  %v90_v40 = vld [vmem:[%s2028_s1 + $0x240] sm:$0xff]  ;;  %v123_v41 = vld [vmem:[%s2028_s1 + $0x348] sm:$0xff]  ;;  %v105_v42 = vld [vmem:[%s2028_s1 + $0x2b8] sm:$0xff] }
  0x21   :  { %415 = vmatprep.mubr.f32.mxu0 %v284_v4  ;;  %949 = vmatpush3.msra.mxu0 %v18_v7  ;;  %v138_v43 = vld [vmem:[%s2028_s1 + $0x3c0] sm:$0xff]  ;;  %v89_v44 = vld [vmem:[%s2028_s1 + $0x238] sm:$0xff]  ;;  %v104_v46 = vld [vmem:[%s2028_s1 + $0x2b0] sm:$0xff] }
  0x22   :  { %982 = vmatpush3.msra.mxu1 %v51_v8  ;;  %416 = vmatmul.mubr.f32.vlgmr.msra.gmra.mxu0 %v276_v58  ;;  %v122_v45 = vld [vmem:[%s2028_s1 + $0x340] sm:$0xff]  ;;  %v137_v47 = vld [vmem:[%s2028_s1 + $0x3b8] sm:$0xff]  ;;  %v88_v49 = vld [vmem:[%s2028_s1 + $0x230] sm:$0xff] }
  0x23   :  { %983 = vmatprep.subr.mxu1 %v66_v9  ;;  %988 = vmatprep.subr.mxu0 %v113_v10  ;;  %v121_v50 = vld [vmem:[%s2028_s1 + $0x338] sm:$0xff]  ;;  %v103_v51 = vld [vmem:[%s2028_s1 + $0x2a8] sm:$0xff]  ;;  %v136_v52 = vld [vmem:[%s2028_s1 + $0x3b0] sm:$0xff] }
  0x24   :  { %984 = vmatpush3.msra.mxu1 %v50_v11  ;;  %485 = vmatprep.mubr.f32.mxu1 %v285_v12  ;;  %v87_v53 = vld [vmem:[%s2028_s1 + $0x228] sm:$0xff]  ;;  %v120_v54 = vld [vmem:[%s2028_s1 + $0x330] sm:$0xff]  ;;  %v102_v55 = vld [vmem:[%s2028_s1 + $0x2a0] sm:$0xff] }
  0x25   :  { %989 = vmatpush3.msra.mxu0 %v97_v13  ;;  %486 = vmatmul.mubr.f32.vlgmr.msra.gmra.mxu1 %v283_v5  ;;  %v135_v56 = vld [vmem:[%s2028_s1 + $0x3a8] sm:$0xff]  ;;  %v86_v57 = vld [vmem:[%s2028_s1 + $0x220] sm:$0xff]  ;;  %v101_v60 = vld [vmem:[%s2028_s1 + $0x298] sm:$0xff] }
  0x26   :  { %990 = vmatprep.subr.mxu0 %v112_v14  ;;  %1023 = vmatprep.subr.mxu1 %v145_v15  ;;  %v15_v58 = vld [vmem:[%s2029_s0 + $0x8] sm:$0xff]  ;;  %v134_v61 = vld [vmem:[%s2028_s1 + $0x3a0] sm:$0xff]  ;;  %v85_v62 = vld [vmem:[%s2028_s1 + $0x218] sm:$0xff] }
  0x27   :  { %991 = vmatpush3.msra.mxu0 %v96_v16  ;;  %1024 = vmatpush3.msra.mxu1 %v129_v17  ;;  %v119_v59 = vld [vmem:[%s2028_s1 + $0x328] sm:$0xff]  ;;  %v118_v63 = vld [vmem:[%s2028_s1 + $0x320] sm:$0xff]  ;;  %v100_v0 = vld [vmem:[%s2028_s1 + $0x290] sm:$0xff]  ;;  %v286_v1 = vcombine.high %v15_v58, %v15_v58  ;;  %v293_v4 = vrot.slane %v15_v58, %v1374_v48 }
  0x28   :  { %992 = vmatprep.subr.mxu0 %v111_v18  ;;  %1025 = vmatprep.subr.mxu1 %v144_v19  ;;  %v133_v2 = vld [vmem:[%s2028_s1 + $0x398] sm:$0xff]  ;;  %v84_v3 = vld [vmem:[%s2028_s1 + $0x210] sm:$0xff]  ;;  %v99_v6 = vld [vmem:[%s2028_s1 + $0x288] sm:$0xff] }
  0x29   :  { %993 = vmatpush3.msra.mxu0 %v95_v20  ;;  %1026 = vmatpush3.msra.mxu1 %v128_v21  ;;  %v117_v5 = vld [vmem:[%s2028_s1 + $0x318] sm:$0xff]  ;;  %v132_v7 = vld [vmem:[%s2028_s1 + $0x390] sm:$0xff]  ;;  %v83_v8 = vld [vmem:[%s2028_s1 + $0x208] sm:$0xff]  ;;  %v300_v11 = vrot.slane %v286_v1, %v1374_v48  ;;  %v301_v14 = vcombine.high %v293_v4, %v293_v4 }
  0x2a   :  { %994 = vmatprep.subr.mxu0 %v110_v22  ;;  %1027 = vmatprep.subr.mxu1 %v143_v23  ;;  %v116_v9 = vld [vmem:[%s2028_s1 + $0x310] sm:$0xff]  ;;  %v98_v10 = vld [vmem:[%s2028_s1 + $0x280] sm:$0xff]  ;;  %v131_v12 = vld [vmem:[%s2028_s1 + $0x388] sm:$0xff] }
  0x2b   :  { %995 = vmatpush3.msra.mxu0 %v94_v24  ;;  %1028 = vmatpush3.msra.mxu1 %v127_v25  ;;  %v82_v13 = vld [vmem:[%s2028_s1 + $0x200] sm:$0xff]  ;;  %v115_v15 = vld [vmem:[%s2028_s1 + $0x308] sm:$0xff]  ;;  %v16_v16 = vld [vmem:[%s2029_s0 + $0x10] sm:$0xff]  ;;  %v302_v22 = vcombine.high %v300_v11, %v300_v11 }
  0x2c   :  { %996 = vmatprep.subr.mxu0 %v109_v26  ;;  %1029 = vmatprep.subr.mxu1 %v142_v27  ;;  %v130_v17 = vld [vmem:[%s2028_s1 + $0x380] sm:$0xff]  ;;  %v1642_v18 = vrot.slane %v16_v16, %v1374_v48  ;;  %v303_v19 = vcombine.high %v16_v16, %v16_v16  ;;  %v177_v20 = vld [vmem:[%s2028_s1 + $0x4f8] sm:$0xff]  ;;  %v176_v25 = vld [vmem:[%s2028_s1 + $0x4f0] sm:$0xff] }
  0x2d   :  { %997 = vmatpush3.msra.mxu0 %v93_v28  ;;  %1030 = vmatpush3.msra.mxu1 %v126_v29  ;;  %v114_v21 = vld [vmem:[%s2028_s1 + $0x300] sm:$0xff]  ;;  %v161_v23 = vld [vmem:[%s2028_s1 + $0x478] sm:$0xff]  ;;  %v160_v27 = vld [vmem:[%s2028_s1 + $0x470] sm:$0xff] }
  0x2e   :  { %998 = vmatprep.subr.mxu0 %v108_v30  ;;  %1031 = vmatprep.subr.mxu1 %v141_v31  ;;  %v1654_v24 = vrot.slane %v303_v19, %v1374_v48  ;;  %v209_v26 = vld [vmem:[%s2028_s1 + $0x5f8] sm:$0xff]  ;;  %v175_v29 = vld [vmem:[%s2028_s1 + $0x4e8] sm:$0xff]  ;;  %v208_v30 = vld [vmem:[%s2028_s1 + $0x5f0] sm:$0xff] }
  0x2f   :  { %999 = vmatpush3.msra.mxu0 %v92_v32  ;;  %1032 = vmatpush3.msra.mxu1 %v125_v33  ;;  %v193_v28 = vld [vmem:[%s2028_s1 + $0x578] sm:$0xff]  ;;  %v159_v31 = vld [vmem:[%s2028_s1 + $0x468] sm:$0xff]  ;;  %v192_v32 = vld [vmem:[%s2028_s1 + $0x570] sm:$0xff] }
  0x30   :  { %1000 = vmatprep.subr.mxu0 %v107_v34  ;;  %1033 = vmatprep.subr.mxu1 %v140_v35  ;;  %v174_v33 = vld [vmem:[%s2028_s1 + $0x4e0] sm:$0xff]  ;;  %v207_v34 = vld [vmem:[%s2028_s1 + $0x5e8] sm:$0xff]  ;;  %v185_v1 = vld [vmem:[%s2028_s1 + $0x538] sm:$0xff] }
  0x31   :  { %1001 = vmatpush3.msra.mxu0 %v91_v36  ;;  %1034 = vmatpush3.msra.mxu1 %v124_v37  ;;  %v158_v35 = vld [vmem:[%s2028_s1 + $0x460] sm:$0xff]  ;;  %v191_v36 = vld [vmem:[%s2028_s1 + $0x568] sm:$0xff]  ;;  %v173_v37 = vld [vmem:[%s2028_s1 + $0x4d8] sm:$0xff] }
  0x32   :  { %1002 = vmatprep.subr.mxu0 %v106_v38  ;;  %1035 = vmatprep.subr.mxu1 %v139_v39  ;;  %v206_v38 = vld [vmem:[%s2028_s1 + $0x5e0] sm:$0xff]  ;;  %v157_v39 = vld [vmem:[%s2028_s1 + $0x458] sm:$0xff]  ;;  %v196_v19 = vld [vmem:[%s2028_s1 + $0x590] sm:$0xff] }
  0x33   :  { %1003 = vmatpush3.msra.mxu0 %v90_v40  ;;  %1036 = vmatpush3.msra.mxu1 %v123_v41  ;;  %v190_v40 = vld [vmem:[%s2028_s1 + $0x560] sm:$0xff]  ;;  %v172_v41 = vld [vmem:[%s2028_s1 + $0x4d0] sm:$0xff]  ;;  %v181_v16 = vld [vmem:[%s2028_s1 + $0x518] sm:$0xff] }
  0x34   :  { %1004 = vmatprep.subr.mxu0 %v105_v42  ;;  %1037 = vmatprep.subr.mxu1 %v138_v43  ;;  %v205_v42 = vld [vmem:[%s2028_s1 + $0x5d8] sm:$0xff]  ;;  %v156_v43 = vld [vmem:[%s2028_s1 + $0x450] sm:$0xff]  ;;  %v202_v58 = vld [vmem:[%s2028_s1 + $0x5c0] sm:$0xff] }
  0x35   :  { %1005 = vmatpush3.msra.mxu0 %v89_v44  ;;  %1038 = vmatpush3.msra.mxu1 %v122_v45  ;;  %v189_v44 = vld [vmem:[%s2028_s1 + $0x558] sm:$0xff]  ;;  %v171_v45 = vld [vmem:[%s2028_s1 + $0x4c8] sm:$0xff] }
  0x36   :  { %1006 = vmatprep.subr.mxu0 %v104_v46  ;;  %1039 = vmatprep.subr.mxu1 %v137_v47  ;;  %v204_v46 = vld [vmem:[%s2028_s1 + $0x5d0] sm:$0xff]  ;;  %v155_v47 = vld [vmem:[%s2028_s1 + $0x448] sm:$0xff] }
  0x37   :  { %1007 = vmatpush3.msra.mxu0 %v88_v49  ;;  %1040 = vmatpush3.msra.mxu1 %v121_v50  ;;  %v188_v49 = vld [vmem:[%s2028_s1 + $0x550] sm:$0xff]  ;;  %v170_v50 = vld [vmem:[%s2028_s1 + $0x4c0] sm:$0xff] }
  0x38   :  { %1008 = vmatprep.subr.mxu0 %v103_v51  ;;  %1041 = vmatprep.subr.mxu1 %v136_v52  ;;  %v203_v51 = vld [vmem:[%s2028_s1 + $0x5c8] sm:$0xff]  ;;  %v154_v52 = vld [vmem:[%s2028_s1 + $0x440] sm:$0xff] }
  0x39   :  { %1009 = vmatpush3.msra.mxu0 %v87_v53  ;;  %1042 = vmatpush3.msra.mxu1 %v120_v54  ;;  %v17_v53 = vld [vmem:[%s2029_s0 + $0x18] sm:$0x3f]  ;;  %v187_v54 = vld [vmem:[%s2028_s1 + $0x548] sm:$0xff] }
  0x3a   :  { %1010 = vmatprep.subr.mxu0 %v102_v55  ;;  %1043 = vmatprep.subr.mxu1 %v135_v56  ;;  %v169_v55 = vld [vmem:[%s2028_s1 + $0x4b8] sm:$0xff]  ;;  %v320_v56 = vcombine.high %v17_v53, %v17_v53 }
  0x3b   :  { %1011 = vmatpush3.msra.mxu0 %v86_v57  ;;  %1044 = vmatpush3.msra.mxu1 %v119_v59  ;;  %v1747_v57 = vrot.slane %v17_v53, %v1374_v48  ;;  %v153_v59 = vld [vmem:[%s2028_s1 + $0x438] sm:$0xff] }
  0x3c   :  { %1012 = vmatprep.subr.mxu0 %v101_v60  ;;  %1045 = vmatprep.subr.mxu1 %v134_v61  ;;  %v186_v60 = vld [vmem:[%s2028_s1 + $0x540] sm:$0xff]  ;;  %v168_v61 = vld [vmem:[%s2028_s1 + $0x4b0] sm:$0xff]  ;;  %v233_v53 = vld [vmem:[%s2028_s1 + $0x6b8] sm:$0xff] }
  0x3d   :  { %1013 = vmatpush3.msra.mxu0 %v85_v62  ;;  %1046 = vmatpush3.msra.mxu1 %v118_v63  ;;  %v1762_v62 = vrot.slane %v320_v56, %v1374_v48  ;;  %v201_v63 = vld [vmem:[%s2028_s1 + $0x5b8] sm:$0xff]  ;;  %v167_v48 = vld [vmem:[%s2028_s1 + $0x4a8] sm:$0xff]  ;;  %v232_v56 = vld [vmem:[%s2028_s1 + $0x6b0] sm:$0xff] }
  0x3e   :  { %1014 = vmatprep.subr.mxu0 %v100_v0  ;;  %1047 = vmatprep.subr.mxu1 %v133_v2  ;;  %v152_v0 = vld [vmem:[%s2028_s1 + $0x430] sm:$0xff] }
  0x3f   :  { %1015 = vmatpush3.msra.mxu0 %v84_v3  ;;  %1048 = vmatpush3.msra.mxu1 %v117_v5  ;;  %v200_v2 = vld [vmem:[%s2028_s1 + $0x5b0] sm:$0xff]  ;;  %v151_v3 = vld [vmem:[%s2028_s1 + $0x428] sm:$0xff]  ;;  %v166_v5 = vld [vmem:[%s2028_s1 + $0x4a0] sm:$0xff] }
  0x40   :  { %1016 = vmatprep.subr.mxu0 %v99_v6  ;;  %1049 = vmatprep.subr.mxu1 %v132_v7  ;;  %v199_v6 = vld [vmem:[%s2028_s1 + $0x5a8] sm:$0xff]  ;;  %v150_v7 = vld [vmem:[%s2028_s1 + $0x420] sm:$0xff] }
  0x41   :  { %1017 = vmatpush3.msra.mxu0 %v83_v8  ;;  %1050 = vmatpush3.msra.mxu1 %v116_v9  ;;  %v183_v8 = vld [vmem:[%s2028_s1 + $0x528] sm:$0xff]  ;;  %v165_v9 = vld [vmem:[%s2028_s1 + $0x498] sm:$0xff] }
  0x42   :  { %1018 = vmatprep.subr.mxu0 %v98_v10  ;;  %1051 = vmatprep.subr.mxu1 %v131_v12  ;;  %v198_v10 = vld [vmem:[%s2028_s1 + $0x5a0] sm:$0xff] }
  0x43   :  { %1019 = vmatpush3.msra.mxu0 %v82_v13  ;;  %555 = vmatprep.mubr.f32.mxu0 %v301_v14  ;;  %v182_v12 = vld [vmem:[%s2028_s1 + $0x520] sm:$0xff]  ;;  %v164_v13 = vld [vmem:[%s2028_s1 + $0x490] sm:$0xff]  ;;  %v197_v14 = vld [vmem:[%s2028_s1 + $0x598] sm:$0xff] }
  0x44   :  { %1052 = vmatpush3.msra.mxu1 %v115_v15  ;;  %556 = vmatmul.mubr.f32.vlgmr.msra.gmra.mxu0 %v293_v4  ;;  %v184_v4 = vld [vmem:[%s2028_s1 + $0x530] sm:$0xff] }
  0x45   :  { %1053 = vmatprep.subr.mxu1 %v130_v17  ;;  %1058 = vmatprep.subr.mxu0 %v177_v20  ;;  %v148_v15 = vld [vmem:[%s2028_s1 + $0x410] sm:$0xff]  ;;  %v163_v17 = vld [vmem:[%s2028_s1 + $0x488] sm:$0xff] }
  0x46   :  { %1054 = vmatpush3.msra.mxu1 %v114_v21  ;;  %625 = vmatprep.mubr.f32.mxu1 %v302_v22  ;;  %v147_v20 = vld [vmem:[%s2028_s1 + $0x408] sm:$0xff]  ;;  %v180_v21 = vld [vmem:[%s2028_s1 + $0x510] sm:$0xff]  ;;  %v162_v22 = vld [vmem:[%s2028_s1 + $0x480] sm:$0xff] }
  0x47   :  { %1059 = vmatpush3.msra.mxu0 %v161_v23  ;;  %626 = vmatmul.mubr.f32.vlgmr.msra.gmra.mxu1 %v300_v11  ;;  %v149_v11 = vld [vmem:[%s2028_s1 + $0x418] sm:$0xff]  ;;  %v195_v23 = vld [vmem:[%s2028_s1 + $0x588] sm:$0xff] }
  0x48   :  { %1060 = vmatprep.subr.mxu0 %v176_v25  ;;  %1093 = vmatprep.subr.mxu1 %v209_v26  ;;  %v146_v25 = vld [vmem:[%s2028_s1 + $0x400] sm:$0xff]  ;;  %v318_v26 = vcombine.high %v1642_v18, %v1642_v18 }
  0x49   :  { %1061 = vmatpush3.msra.mxu0 %v160_v27  ;;  %1094 = vmatpush3.msra.mxu1 %v193_v28  ;;  %v179_v27 = vld [vmem:[%s2028_s1 + $0x508] sm:$0xff]  ;;  %v194_v28 = vld [vmem:[%s2028_s1 + $0x580] sm:$0xff] }
  0x4a   :  { %1062 = vmatprep.subr.mxu0 %v175_v29  ;;  %1095 = vmatprep.subr.mxu1 %v208_v30  ;;  %v241_v29 = vld [vmem:[%s2028_s1 + $0x6f8] sm:$0xff]  ;;  %v178_v30 = vld [vmem:[%s2028_s1 + $0x500] sm:$0xff] }
  0x4b   :  { %1063 = vmatpush3.msra.mxu0 %v159_v31  ;;  %1096 = vmatpush3.msra.mxu1 %v192_v32  ;;  %v319_v31 = vcombine.high %v1654_v24, %v1654_v24  ;;  %v225_v32 = vld [vmem:[%s2028_s1 + $0x678] sm:$0xff] }
  0x4c   :  { %1064 = vmatprep.subr.mxu0 %v174_v33  ;;  %1097 = vmatprep.subr.mxu1 %v207_v34  ;;  %v240_v33 = vld [vmem:[%s2028_s1 + $0x6f0] sm:$0xff] }
  0x4d   :  { %1065 = vmatpush3.msra.mxu0 %v158_v35  ;;  %1098 = vmatpush3.msra.mxu1 %v191_v36  ;;  %v224_v34 = vld [vmem:[%s2028_s1 + $0x670] sm:$0xff]  ;;  %v239_v35 = vld [vmem:[%s2028_s1 + $0x6e8] sm:$0xff] }
  0x4e   :  { %1066 = vmatprep.subr.mxu0 %v173_v37  ;;  %1099 = vmatprep.subr.mxu1 %v206_v38  ;;  %v223_v36 = vld [vmem:[%s2028_s1 + $0x668] sm:$0xff]  ;;  %v1223_v37 = vmov 0.0   ;;  %v238_v38 = vld [vmem:[%s2028_s1 + $0x6e0] sm:$0xff] }
  0x4f   :  { %1067 = vmatpush3.msra.mxu0 %v157_v39  ;;  %1100 = vmatpush3.msra.mxu1 %v190_v40  ;;  %v256_v39 = vld [vmem:[%s2028_s1 + $0x770] sm:$0xff]  ;;  %v237_v40 = vld [vmem:[%s2028_s1 + $0x6d8] sm:$0xff] }
  0x50   :  { %1068 = vmatprep.subr.mxu0 %v172_v41  ;;  %1101 = vmatprep.subr.mxu1 %v205_v42  ;;  %v255_v41 = vld [vmem:[%s2028_s1 + $0x768] sm:$0xff]  ;;  %v221_v42 = vld [vmem:[%s2028_s1 + $0x658] sm:$0xff] }
  0x51   :  { %1069 = vmatpush3.msra.mxu0 %v156_v43  ;;  %1102 = vmatpush3.msra.mxu1 %v189_v44  ;;  %v236_v43 = vld [vmem:[%s2028_s1 + $0x6d0] sm:$0xff]  ;;  %v254_v44 = vld [vmem:[%s2028_s1 + $0x760] sm:$0xff] }
  0x52   :  { %1070 = vmatprep.subr.mxu0 %v171_v45  ;;  %1103 = vmatprep.subr.mxu1 %v204_v46  ;;  %v220_v45 = vld [vmem:[%s2028_s1 + $0x650] sm:$0xff]  ;;  %v235_v46 = vld [vmem:[%s2028_s1 + $0x6c8] sm:$0xff] }
  0x53   :  { %1071 = vmatpush3.msra.mxu0 %v155_v47  ;;  %1104 = vmatpush3.msra.mxu1 %v188_v49  ;;  %v253_v47 = vld [vmem:[%s2028_s1 + $0x758] sm:$0xff]  ;;  %v219_v49 = vld [vmem:[%s2028_s1 + $0x648] sm:$0xff] }
  0x54   :  { %1072 = vmatprep.subr.mxu0 %v170_v50  ;;  %1105 = vmatprep.subr.mxu1 %v203_v51  ;;  %v234_v50 = vld [vmem:[%s2028_s1 + $0x6c0] sm:$0xff]  ;;  %v252_v51 = vld [vmem:[%s2028_s1 + $0x750] sm:$0xff] }
  0x55   :  { %1073 = vmatpush3.msra.mxu0 %v154_v52  ;;  %1106 = vmatpush3.msra.mxu1 %v187_v54  ;;  %v218_v52 = vld [vmem:[%s2028_s1 + $0x640] sm:$0xff]  ;;  %v251_v54 = vld [vmem:[%s2028_s1 + $0x748] sm:$0xff] }
  0x56   :  { %1074 = vmatprep.subr.mxu0 %v169_v55  ;;  %1107 = vmatprep.subr.mxu1 %v202_v58  ;;  %v217_v55 = vld [vmem:[%s2028_s1 + $0x638] sm:$0xff]  ;;  %v250_v58 = vld [vmem:[%s2028_s1 + $0x740] sm:$0xff] }
  0x57   :  { %1075 = vmatpush3.msra.mxu0 %v153_v59  ;;  %1108 = vmatpush3.msra.mxu1 %v186_v60  ;;  %v216_v59 = vld [vmem:[%s2028_s1 + $0x630] sm:$0xff]  ;;  %v231_v60 = vld [vmem:[%s2028_s1 + $0x6a8] sm:$0xff] }
  0x58   :  { %1076 = vmatprep.subr.mxu0 %v168_v61  ;;  %1109 = vmatprep.subr.mxu1 %v201_v63  ;;  %v249_v61 = vld [vmem:[%s2028_s1 + $0x738] sm:$0xff]  ;;  %v215_v63 = vld [vmem:[%s2028_s1 + $0x628] sm:$0xff] }
  0x59   :  { %1077 = vmatpush3.msra.mxu0 %v152_v0  ;;  %1110 = vmatpush3.msra.mxu1 %v185_v1  ;;  %v230_v0 = vld [vmem:[%s2028_s1 + $0x6a0] sm:$0xff]  ;;  %v248_v1 = vld [vmem:[%s2028_s1 + $0x730] sm:$0xff] }
  0x5a   :  { %1078 = vmatprep.subr.mxu0 %v167_v48  ;;  %1111 = vmatprep.subr.mxu1 %v200_v2  ;;  %v214_v48 = vld [vmem:[%s2028_s1 + $0x620] sm:$0xff]  ;;  %v229_v2 = vld [vmem:[%s2028_s1 + $0x698] sm:$0xff] }
  0x5b   :  { %1079 = vmatpush3.msra.mxu0 %v151_v3  ;;  %1112 = vmatpush3.msra.mxu1 %v184_v4  ;;  %v247_v3 = vld [vmem:[%s2028_s1 + $0x728] sm:$0xff]  ;;  %v213_v4 = vld [vmem:[%s2028_s1 + $0x618] sm:$0xff] }
  0x5c   :  { %1080 = vmatprep.subr.mxu0 %v166_v5  ;;  %1113 = vmatprep.subr.mxu1 %v199_v6  ;;  %v228_v5 = vld [vmem:[%s2028_s1 + $0x690] sm:$0xff]  ;;  %v246_v6 = vld [vmem:[%s2028_s1 + $0x720] sm:$0xff] }
  0x5d   :  { %1081 = vmatpush3.msra.mxu0 %v150_v7  ;;  %1114 = vmatpush3.msra.mxu1 %v183_v8  ;;  %v212_v7 = vld [vmem:[%s2028_s1 + $0x610] sm:$0xff]  ;;  %v227_v8 = vld [vmem:[%s2028_s1 + $0x688] sm:$0xff] }
  0x5e   :  { %1082 = vmatprep.subr.mxu0 %v165_v9  ;;  %1115 = vmatprep.subr.mxu1 %v198_v10  ;;  %v245_v9 = vld [vmem:[%s2028_s1 + $0x718] sm:$0xff]  ;;  %v211_v10 = vld [vmem:[%s2028_s1 + $0x608] sm:$0xff] }
  0x5f   :  { %1083 = vmatpush3.msra.mxu0 %v149_v11  ;;  %1116 = vmatpush3.msra.mxu1 %v182_v12  ;;  %v335_v11 = vcombine.high %v1747_v57, %v1747_v57  ;;  %v226_v12 = vld [vmem:[%s2028_s1 + $0x680] sm:$0xff] }
  0x60   :  { %1084 = vmatprep.subr.mxu0 %v164_v13  ;;  %1117 = vmatprep.subr.mxu1 %v197_v14  ;;  %v210_v13 = vld [vmem:[%s2028_s1 + $0x600] sm:$0xff]  ;;  %v244_v14 = vld [vmem:[%s2028_s1 + $0x710] sm:$0xff] }
  0x61   :  { %1085 = vmatpush3.msra.mxu0 %v148_v15  ;;  %1118 = vmatpush3.msra.mxu1 %v181_v16  ;;  %v243_v15 = vld [vmem:[%s2028_s1 + $0x708] sm:$0xff]  ;;  %v242_v16 = vld [vmem:[%s2028_s1 + $0x700] sm:$0xff] }
  0x62   :  { %1086 = vmatprep.subr.mxu0 %v163_v17  ;;  %1119 = vmatprep.subr.mxu1 %v196_v19 }
  0x63   :  { %1087 = vmatpush3.msra.mxu0 %v147_v20  ;;  %1120 = vmatpush3.msra.mxu1 %v180_v21 }
  0x64   :  { %1088 = vmatprep.subr.mxu0 %v162_v22  ;;  %1121 = vmatprep.subr.mxu1 %v195_v23  ;;  %v917_v22 = vld [vmem:[%s2030_s2] ss:$0 sm:$0xff] }
  0x65   :  { %1089 = vmatpush3.msra.mxu0 %v146_v25  ;;  %695 = vmatprep.mubr.f32.mxu0 %v318_v26 }
  0x66   :  { %1122 = vmatpush3.msra.mxu1 %v179_v27  ;;  %696 = vmatmul.mubr.f32.vlgmr.msra.gmra.mxu0 %v1642_v18  ;;  %v257_v18 = vld [vmem:[%s2028_s1 + $0x778] sm:$0xff] }
  0x67   :  { %1123 = vmatprep.subr.mxu1 %v194_v28  ;;  %1128 = vmatprep.subr.mxu0 %v241_v29 }
  0x68   :  { %1124 = vmatpush3.msra.mxu1 %v178_v30  ;;  %765 = vmatprep.mubr.f32.mxu1 %v319_v31 }
  0x69   :  { %1129 = vmatpush3.msra.mxu0 %v225_v32  ;;  %766 = vmatmul.mubr.f32.vlgmr.msra.gmra.mxu1 %v1654_v24  ;;  %v222_v24 = vld [vmem:[%s2028_s1 + $0x660] sm:$0xff] }
  0x6a   :  { %1130 = vmatprep.subr.mxu0 %v240_v33  ;;  %1180 = vmatprep.subr.mxu1 %v1223_v37 }
  0x6b   :  { %1131 = vmatpush3.msra.mxu0 %v224_v34  ;;  %1181 = vmatpush3.msra.mxu1 %v257_v18 }
  0x6c   :  { %1132 = vmatprep.subr.mxu0 %v239_v35  ;;  %1182 = vmatprep.subr.mxu1 %v1223_v37 }
  0x6d   :  { %1133 = vmatpush3.msra.mxu0 %v223_v36  ;;  %1183 = vmatpush3.msra.mxu1 %v256_v39 }
  0x6e   :  { %1134 = vmatprep.subr.mxu0 %v238_v38  ;;  %1184 = vmatprep.subr.mxu1 %v1223_v37 }
  0x6f   :  { %1135 = vmatpush3.msra.mxu0 %v222_v24  ;;  %1185 = vmatpush3.msra.mxu1 %v255_v41 }
  0x70   :  { %1136 = vmatprep.subr.mxu0 %v237_v40  ;;  %1186 = vmatprep.subr.mxu1 %v1223_v37 }
  0x71   :  { %1137 = vmatpush3.msra.mxu0 %v221_v42  ;;  %1187 = vmatpush3.msra.mxu1 %v254_v44 }
  0x72   :  { %1138 = vmatprep.subr.mxu0 %v236_v43  ;;  %1188 = vmatprep.subr.mxu1 %v1223_v37 }
  0x73   :  { %1139 = vmatpush3.msra.mxu0 %v220_v45  ;;  %1189 = vmatpush3.msra.mxu1 %v253_v47 }
  0x74   :  { %1140 = vmatprep.subr.mxu0 %v235_v46  ;;  %1190 = vmatprep.subr.mxu1 %v1223_v37 }
  0x75   :  { %1141 = vmatpush3.msra.mxu0 %v219_v49  ;;  %1191 = vmatpush3.msra.mxu1 %v252_v51 }
  0x76   :  { %1142 = vmatprep.subr.mxu0 %v234_v50  ;;  %1192 = vmatprep.subr.mxu1 %v1223_v37 }
  0x77   :  { %1143 = vmatpush3.msra.mxu0 %v218_v52  ;;  %1193 = vmatpush3.msra.mxu1 %v251_v54 }
  0x78   :  { %1144 = vmatprep.subr.mxu0 %v233_v53  ;;  %1194 = vmatprep.subr.mxu1 %v1223_v37 }
  0x79   :  { %1145 = vmatpush3.msra.mxu0 %v217_v55  ;;  %1195 = vmatpush3.msra.mxu1 %v250_v58 }
  0x7a   :  { %1146 = vmatprep.subr.mxu0 %v232_v56  ;;  %1196 = vmatprep.subr.mxu1 %v1223_v37 }
  0x7b   :  { %1147 = vmatpush3.msra.mxu0 %v216_v59  ;;  %1197 = vmatpush3.msra.mxu1 %v249_v61 }
  0x7c   :  { %1148 = vmatprep.subr.mxu0 %v231_v60  ;;  %1198 = vmatprep.subr.mxu1 %v1223_v37 }
  0x7d   :  { %1149 = vmatpush3.msra.mxu0 %v215_v63  ;;  %1199 = vmatpush3.msra.mxu1 %v248_v1 }
  0x7e   :  { %1150 = vmatprep.subr.mxu0 %v230_v0  ;;  %1200 = vmatprep.subr.mxu1 %v1223_v37 }
  0x7f   :  { %1151 = vmatpush3.msra.mxu0 %v214_v48  ;;  %1201 = vmatpush3.msra.mxu1 %v247_v3 }
  0x80   :  { %1152 = vmatprep.subr.mxu0 %v229_v2  ;;  %1202 = vmatprep.subr.mxu1 %v1223_v37 }
  0x81   :  { %1153 = vmatpush3.msra.mxu0 %v213_v4  ;;  %1203 = vmatpush3.msra.mxu1 %v246_v6 }
  0x82   :  { %1154 = vmatprep.subr.mxu0 %v228_v5  ;;  %1204 = vmatprep.subr.mxu1 %v1223_v37 }
  0x83   :  { %1155 = vmatpush3.msra.mxu0 %v212_v7  ;;  %1205 = vmatpush3.msra.mxu1 %v245_v9 }
  0x84   :  { %1156 = vmatprep.subr.mxu0 %v227_v8  ;;  %1206 = vmatprep.subr.mxu1 %v1223_v37 }
  0x85   :  { %1157 = vmatpush3.msra.mxu0 %v211_v10  ;;  %835 = vmatprep.mubr.f32.mxu0 %v335_v11 }
  0x86   :  { %1158 = vmatprep.subr.mxu0 %v226_v12  ;;  %1207 = vmatpush3.msra.mxu1 %v244_v14 }
  0x87   :  { %1159 = vmatpush3.msra.mxu0 %v210_v13  ;;  %1208 = vmatprep.subr.mxu1 %v1223_v37 }
  0x88   :  { %836 = vmatmul.mubr.f32.vlgmr.msra.gmra.mxu0 %v1747_v57  ;;  %1209 = vmatpush3.msra.mxu1 %v243_v15 }
  0x89   :  { %1212 = vmatprep.mubr.msk.f32.mxu1 %vm1224_vm0, %v1223_v37  ;;  %1210 = vmatprep.subr.mxu1 %v1223_v37 }
  0x8a   :  { %1211 = vmatpush3.msra.mxu1 %v242_v16 }
  0x8b   :  { %1213 = vmatmul.mubr.f32.vlgmr.msra.gmra.mxu1 %v1762_v62 }
  0xe2   :  { %v950_v17 = vpop.f32.mrf.mxu0 }
  0xe4   :  { %v951_v19 = vpop.f32.mrf.mxu0 }
  0xe5   :  { %v985_v20 = vpop.f32.mrf.mxu1  ;;  %v952_v57 = vadd.f32 %v951_v19, %v950_v17 }
  0xe7   :  { %v986_v23 = vpop.f32.mrf.mxu1  ;;  %v418_v27 = vadd.f32 %v952_v57, %v917_v22 }
  0xe8   :  { %v987_v28 = vadd.f32 %v986_v23, %v985_v20 }
  0xea   :  { %v488_v32 = vadd.f32 %v987_v28, %v418_v27 }
 0x104   :  { %v1020_v21 = vpop.f32.mrf.mxu0 }
 0x106   :  { %v1021_v25 = vpop.f32.mrf.mxu0 }
 0x107   :  { %v1055_v26 = vpop.f32.mrf.mxu1  ;;  %v1022_v30 = vadd.f32 %v1021_v25, %v1020_v21 }
 0x109   :  { %v1056_v31 = vpop.f32.mrf.mxu1  ;;  %v558_v34 = vadd.f32 %v1022_v30, %v488_v32 }
 0x10a   :  { %v1057_v35 = vadd.f32 %v1056_v31, %v1055_v26 }
 0x10c   :  { %v628_v37 = vadd.f32 %v1057_v35, %v558_v34 }
 0x126   :  { %v1090_v29 = vpop.f32.mrf.mxu0 }
 0x128   :  { %v1091_v33 = vpop.f32.mrf.mxu0 }
 0x129   :  { %v1125_v62 = vpop.f32.mrf.mxu1  ;;  %v1092_v18 = vadd.f32 %v1091_v33, %v1090_v29 }
 0x12b   :  { %v1126_v36 = vpop.f32.mrf.mxu1  ;;  %v698_v38 = vadd.f32 %v1092_v18, %v628_v37 }
 0x12c   :  { %v1127_v39 = vadd.f32 %v1126_v36, %v1125_v62 }
 0x12e   :  { %v768_v41 = vadd.f32 %v1127_v39, %v698_v38 }
 0x148   :  { %v1160_v24 = vpop.f32.mrf.mxu0 }
 0x14a   :  { %v1161_v40 = vpop.f32.mrf.mxu0 }
 0x14b   :  { %v1162_v42 = vadd.f32 %v1161_v40, %v1160_v24  ;;  %v907_v43 = vpop.f32.mrf.mxu1 }
 0x14d   :  { %v838_v44 = vadd.f32 %v1162_v42, %v768_v41  ;;  %v1214_v45 = vpop.f32.mrf.mxu1 }
 0x14f   :  { %v908_v46 = vadd.f32 %v907_v43, %v838_v44 }
 0x151   :  { %912 = vst.msk [vmem:[%s2031_s3] sm:$0x3] %vm911_vm1, %v908_v46 }

// kernel: dronet_forward.16
= control target key start
LH: loop header
LB: loop body
LE: loop exit
PB: predicated region body
PF: predicated region fallthrough
CT: control target
= control target key end

     0   :  { %s1531_s1 = inlined_call_operand.vmem [shape: f32[1152,128], index: 1, kind: input, shape index: {}]   ;;  %s1532_s0 = inlined_call_operand.vmem [shape: f32[30,1152], index: 0, kind: input, shape index: {}]   ;;  %s1533_s2 = inlined_call_operand.vmem [shape: f32[30,128], index: 2, kind: input, shape index: {}]   ;;  %s1534_s3 = inlined_call_operand.vmem [shape: f32[1,128], index: 3, kind: input, shape index: {}]   ;;  %s1535_s4 = inlined_call_operand.vmem [shape: f32[1,128], index: 4, kind: input, shape index: {}]   ;;  %s1536_s5 = inlined_call_operand.vmem [shape: f32[30,128], index: 5, kind: output, shape index: {}]  }
   0x1   :  { %v87_v0 = vld [vmem:[%s1531_s1 + $0xf8] sm:$0xff]  ;;  %v86_v4 = vld [vmem:[%s1531_s1 + $0xf0] sm:$0xff]  ;;  %v85_v8 = vld [vmem:[%s1531_s1 + $0xe8] sm:$0xff] }
   0x2   :  { %v119_v1 = vld [vmem:[%s1531_s1 + $0x1f8] sm:$0xff]  ;;  %665 = vmatprep.subr.mxu0 %v87_v0  ;;  %v118_v5 = vld [vmem:[%s1531_s1 + $0x1f0] sm:$0xff]  ;;  %v117_v9 = vld [vmem:[%s1531_s1 + $0x1e8] sm:$0xff] }
   0x3   :  { %v71_v2 = vld [vmem:[%s1531_s1 + $0x78] sm:$0xff]  ;;  %709 = vmatprep.subr.mxu1 %v119_v1  ;;  %v70_v6 = vld [vmem:[%s1531_s1 + $0x70] sm:$0xff]  ;;  %v69_v10 = vld [vmem:[%s1531_s1 + $0x68] sm:$0xff] }
   0x4   :  { %v103_v3 = vld [vmem:[%s1531_s1 + $0x178] sm:$0xff]  ;;  %666 = vmatpush3.msra.mxu0 %v71_v2  ;;  %v102_v7 = vld [vmem:[%s1531_s1 + $0x170] sm:$0xff]  ;;  %v101_v11 = vld [vmem:[%s1531_s1 + $0x168] sm:$0xff] }
   0x5   :  { %710 = vmatpush3.msra.mxu1 %v103_v3  ;;  %667 = vmatprep.subr.mxu0 %v86_v4  ;;  %v84_v12 = vld [vmem:[%s1531_s1 + $0xe0] sm:$0xff]  ;;  %v83_v16 = vld [vmem:[%s1531_s1 + $0xd8] sm:$0xff]  ;;  %v82_v20 = vld [vmem:[%s1531_s1 + $0xd0] sm:$0xff] }
   0x6   :  { %711 = vmatprep.subr.mxu1 %v118_v5  ;;  %668 = vmatpush3.msra.mxu0 %v70_v6  ;;  %v116_v13 = vld [vmem:[%s1531_s1 + $0x1e0] sm:$0xff]  ;;  %v115_v17 = vld [vmem:[%s1531_s1 + $0x1d8] sm:$0xff]  ;;  %v114_v21 = vld [vmem:[%s1531_s1 + $0x1d0] sm:$0xff] }
   0x7   :  { %712 = vmatpush3.msra.mxu1 %v102_v7  ;;  %669 = vmatprep.subr.mxu0 %v85_v8  ;;  %v68_v14 = vld [vmem:[%s1531_s1 + $0x60] sm:$0xff]  ;;  %v67_v18 = vld [vmem:[%s1531_s1 + $0x58] sm:$0xff]  ;;  %v66_v22 = vld [vmem:[%s1531_s1 + $0x50] sm:$0xff] }
   0x8   :  { %713 = vmatprep.subr.mxu1 %v117_v9  ;;  %v100_v15 = vld [vmem:[%s1531_s1 + $0x160] sm:$0xff]  ;;  %670 = vmatpush3.msra.mxu0 %v69_v10  ;;  %v99_v19 = vld [vmem:[%s1531_s1 + $0x158] sm:$0xff]  ;;  %v98_v23 = vld [vmem:[%s1531_s1 + $0x150] sm:$0xff] }
   0x9   :  { %714 = vmatpush3.msra.mxu1 %v101_v11  ;;  %671 = vmatprep.subr.mxu0 %v84_v12  ;;  %v81_v24 = vld [vmem:[%s1531_s1 + $0xc8] sm:$0xff]  ;;  %v80_v28 = vld [vmem:[%s1531_s1 + $0xc0] sm:$0xff]  ;;  %v79_v32 = vld [vmem:[%s1531_s1 + $0xb8] sm:$0xff] }
   0xa   :  { %715 = vmatprep.subr.mxu1 %v116_v13  ;;  %672 = vmatpush3.msra.mxu0 %v68_v14  ;;  %v113_v25 = vld [vmem:[%s1531_s1 + $0x1c8] sm:$0xff]  ;;  %v112_v29 = vld [vmem:[%s1531_s1 + $0x1c0] sm:$0xff]  ;;  %v111_v33 = vld [vmem:[%s1531_s1 + $0x1b8] sm:$0xff] }
   0xb   :  { %716 = vmatpush3.msra.mxu1 %v100_v15  ;;  %673 = vmatprep.subr.mxu0 %v83_v16  ;;  %v65_v26 = vld [vmem:[%s1531_s1 + $0x48] sm:$0xff]  ;;  %v64_v30 = vld [vmem:[%s1531_s1 + $0x40] sm:$0xff]  ;;  %v63_v34 = vld [vmem:[%s1531_s1 + $0x38] sm:$0xff] }
   0xc   :  { %717 = vmatprep.subr.mxu1 %v115_v17  ;;  %674 = vmatpush3.msra.mxu0 %v67_v18  ;;  %v97_v27 = vld [vmem:[%s1531_s1 + $0x148] sm:$0xff]  ;;  %v96_v31 = vld [vmem:[%s1531_s1 + $0x140] sm:$0xff]  ;;  %v95_v35 = vld [vmem:[%s1531_s1 + $0x138] sm:$0xff] }
   0xd   :  { %718 = vmatpush3.msra.mxu1 %v99_v19  ;;  %675 = vmatprep.subr.mxu0 %v82_v20  ;;  %v78_v36 = vld [vmem:[%s1531_s1 + $0xb0] sm:$0xff]  ;;  %v77_v40 = vld [vmem:[%s1531_s1 + $0xa8] sm:$0xff]  ;;  %v76_v44 = vld [vmem:[%s1531_s1 + $0xa0] sm:$0xff] }
   0xe   :  { %719 = vmatprep.subr.mxu1 %v114_v21  ;;  %676 = vmatpush3.msra.mxu0 %v66_v22  ;;  %v110_v37 = vld [vmem:[%s1531_s1 + $0x1b0] sm:$0xff]  ;;  %v109_v41 = vld [vmem:[%s1531_s1 + $0x1a8] sm:$0xff]  ;;  %v108_v45 = vld [vmem:[%s1531_s1 + $0x1a0] sm:$0xff] }
   0xf   :  { %720 = vmatpush3.msra.mxu1 %v98_v23  ;;  %677 = vmatprep.subr.mxu0 %v81_v24  ;;  %v62_v38 = vld [vmem:[%s1531_s1 + $0x30] sm:$0xff]  ;;  %v61_v42 = vld [vmem:[%s1531_s1 + $0x28] sm:$0xff]  ;;  %v60_v46 = vld [vmem:[%s1531_s1 + $0x20] sm:$0xff] }
  0x10   :  { %721 = vmatprep.subr.mxu1 %v113_v25  ;;  %678 = vmatpush3.msra.mxu0 %v65_v26  ;;  %v94_v39 = vld [vmem:[%s1531_s1 + $0x130] sm:$0xff]  ;;  %v93_v43 = vld [vmem:[%s1531_s1 + $0x128] sm:$0xff]  ;;  %v92_v47 = vld [vmem:[%s1531_s1 + $0x120] sm:$0xff] }
  0x11   :  { %722 = vmatpush3.msra.mxu1 %v97_v27  ;;  %679 = vmatprep.subr.mxu0 %v80_v28  ;;  %v75_v48 = vld [vmem:[%s1531_s1 + $0x98] sm:$0xff]  ;;  %v74_v52 = vld [vmem:[%s1531_s1 + $0x90] sm:$0xff]  ;;  %v73_v56 = vld [vmem:[%s1531_s1 + $0x88] sm:$0xff] }
  0x12   :  { %723 = vmatprep.subr.mxu1 %v112_v29  ;;  %680 = vmatpush3.msra.mxu0 %v64_v30  ;;  %v107_v49 = vld [vmem:[%s1531_s1 + $0x198] sm:$0xff]  ;;  %v106_v53 = vld [vmem:[%s1531_s1 + $0x190] sm:$0xff]  ;;  %v105_v57 = vld [vmem:[%s1531_s1 + $0x188] sm:$0xff] }
  0x13   :  { %724 = vmatpush3.msra.mxu1 %v96_v31  ;;  %681 = vmatprep.subr.mxu0 %v79_v32  ;;  %v59_v50 = vld [vmem:[%s1531_s1 + $0x18] sm:$0xff]  ;;  %v58_v54 = vld [vmem:[%s1531_s1 + $0x10] sm:$0xff]  ;;  %v57_v58 = vld [vmem:[%s1531_s1 + $0x8] sm:$0xff] }
  0x14   :  { %725 = vmatprep.subr.mxu1 %v111_v33  ;;  %682 = vmatpush3.msra.mxu0 %v63_v34  ;;  %v91_v51 = vld [vmem:[%s1531_s1 + $0x118] sm:$0xff]  ;;  %v90_v55 = vld [vmem:[%s1531_s1 + $0x110] sm:$0xff]  ;;  %v89_v59 = vld [vmem:[%s1531_s1 + $0x108] sm:$0xff] }
  0x15   :  { %726 = vmatpush3.msra.mxu1 %v95_v35  ;;  %683 = vmatprep.subr.mxu0 %v78_v36  ;;  %v72_v60 = vld [vmem:[%s1531_s1 + $0x80] sm:$0xff]  ;;  %v21_v63 = vld [vmem:[%s1532_s0 + $0x8] sm:$0xff]  ;;  %v23_v1 = vld [vmem:[%s1532_s0 + $0x18] sm:$0xff] }
  0x16   :  { %727 = vmatprep.subr.mxu1 %v110_v37  ;;  %684 = vmatpush3.msra.mxu0 %v62_v38  ;;  %v104_v61 = vld [vmem:[%s1531_s1 + $0x180] sm:$0xff]  ;;  %v22_v3 = vld [vmem:[%s1532_s0 + $0x10] sm:$0xff]  ;;  %v151_v4 = vld [vmem:[%s1531_s1 + $0x2f8] sm:$0xff] }
  0x17   :  { %728 = vmatpush3.msra.mxu1 %v94_v39  ;;  %685 = vmatprep.subr.mxu0 %v77_v40  ;;  %v56_v62 = vld [vmem:[%s1531_s1] sm:$0xff]  ;;  %v183_v5 = vld [vmem:[%s1531_s1 + $0x3f8] sm:$0xff]  ;;  %v150_v8 = vld [vmem:[%s1531_s1 + $0x2f0] sm:$0xff] }
  0x18   :  { %729 = vmatprep.subr.mxu1 %v109_v41  ;;  %686 = vmatpush3.msra.mxu0 %v61_v42  ;;  %v88_v0 = vld [vmem:[%s1531_s1 + $0x100] sm:$0xff]  ;;  %v135_v6 = vld [vmem:[%s1531_s1 + $0x278] sm:$0xff]  ;;  %v182_v9 = vld [vmem:[%s1531_s1 + $0x3f0] sm:$0xff] }
  0x19   :  { %730 = vmatpush3.msra.mxu1 %v93_v43  ;;  %687 = vmatprep.subr.mxu0 %v76_v44  ;;  %v20_v2 = vld [vmem:[%s1532_s0] sm:$0xff]  ;;  %v167_v7 = vld [vmem:[%s1531_s1 + $0x378] sm:$0xff]  ;;  %v134_v10 = vld [vmem:[%s1531_s1 + $0x270] sm:$0xff] }
  0x1a   :  { %731 = vmatprep.subr.mxu1 %v108_v45  ;;  %688 = vmatpush3.msra.mxu0 %v60_v46  ;;  %v166_v11 = vld [vmem:[%s1531_s1 + $0x370] sm:$0xff]  ;;  %v149_v12 = vld [vmem:[%s1531_s1 + $0x2e8] sm:$0xff]  ;;  %v148_v16 = vld [vmem:[%s1531_s1 + $0x2e0] sm:$0xff] }
  0x1b   :  { %732 = vmatpush3.msra.mxu1 %v92_v47  ;;  %689 = vmatprep.subr.mxu0 %v75_v48  ;;  %v181_v13 = vld [vmem:[%s1531_s1 + $0x3e8] sm:$0xff]  ;;  %v180_v17 = vld [vmem:[%s1531_s1 + $0x3e0] sm:$0xff]  ;;  %v147_v20 = vld [vmem:[%s1531_s1 + $0x2d8] sm:$0xff] }
  0x1c   :  { %733 = vmatprep.subr.mxu1 %v107_v49  ;;  %690 = vmatpush3.msra.mxu0 %v59_v50  ;;  %v133_v14 = vld [vmem:[%s1531_s1 + $0x268] sm:$0xff]  ;;  %v132_v18 = vld [vmem:[%s1531_s1 + $0x260] sm:$0xff]  ;;  %v179_v21 = vld [vmem:[%s1531_s1 + $0x3d8] sm:$0xff] }
  0x1d   :  { %734 = vmatpush3.msra.mxu1 %v91_v51  ;;  %691 = vmatprep.subr.mxu0 %v74_v52  ;;  %v165_v15 = vld [vmem:[%s1531_s1 + $0x368] sm:$0xff]  ;;  %v164_v19 = vld [vmem:[%s1531_s1 + $0x360] sm:$0xff]  ;;  %v131_v22 = vld [vmem:[%s1531_s1 + $0x258] sm:$0xff] }
  0x1e   :  { %735 = vmatprep.subr.mxu1 %v106_v53  ;;  %692 = vmatpush3.msra.mxu0 %v58_v54  ;;  %v163_v23 = vld [vmem:[%s1531_s1 + $0x358] sm:$0xff]  ;;  %v146_v24 = vld [vmem:[%s1531_s1 + $0x2d0] sm:$0xff]  ;;  %v145_v28 = vld [vmem:[%s1531_s1 + $0x2c8] sm:$0xff] }
  0x1f   :  { %736 = vmatpush3.msra.mxu1 %v90_v55  ;;  %693 = vmatprep.subr.mxu0 %v73_v56  ;;  %v178_v25 = vld [vmem:[%s1531_s1 + $0x3d0] sm:$0xff]  ;;  %v177_v29 = vld [vmem:[%s1531_s1 + $0x3c8] sm:$0xff]  ;;  %v144_v32 = vld [vmem:[%s1531_s1 + $0x2c0] sm:$0xff] }
  0x20   :  { %737 = vmatprep.subr.mxu1 %v105_v57  ;;  %694 = vmatpush3.msra.mxu0 %v57_v58  ;;  %v130_v26 = vld [vmem:[%s1531_s1 + $0x250] sm:$0xff]  ;;  %v129_v30 = vld [vmem:[%s1531_s1 + $0x248] sm:$0xff]  ;;  %v176_v33 = vld [vmem:[%s1531_s1 + $0x3c0] sm:$0xff] }
  0x21   :  { %738 = vmatpush3.msra.mxu1 %v89_v59  ;;  %695 = vmatprep.subr.mxu0 %v72_v60  ;;  %v162_v27 = vld [vmem:[%s1531_s1 + $0x350] sm:$0xff]  ;;  %v161_v31 = vld [vmem:[%s1531_s1 + $0x348] sm:$0xff]  ;;  %v128_v34 = vld [vmem:[%s1531_s1 + $0x240] sm:$0xff] }
  0x22   :  { %739 = vmatprep.subr.mxu1 %v104_v61  ;;  %696 = vmatpush3.msra.mxu0 %v56_v62  ;;  %v160_v35 = vld [vmem:[%s1531_s1 + $0x340] sm:$0xff]  ;;  %v30_v36 = vld [vmem:[%s1532_s0 + $0x50] sm:$0xff]  ;;  %v143_v37 = vld [vmem:[%s1531_s1 + $0x2b8] sm:$0xff] }
  0x23   :  { %268 = vmatprep.mubr.f32.mxu0 %v21_v63  ;;  %740 = vmatpush3.msra.mxu1 %v88_v0  ;;  %v175_v38 = vld [vmem:[%s1531_s1 + $0x3b8] sm:$0xff]  ;;  %v29_v39 = vld [vmem:[%s1532_s0 + $0x48] sm:$0xff]  ;;  %v32_v42 = vld [vmem:[%s1532_s0 + $0x60] sm:$0xff] }
  0x24   :  { %353 = vmatprep.mubr.f32.mxu1 %v23_v1  ;;  %269 = vmatmul.mubr.f32.vlgmr.msra.gmra.mxu0 %v20_v2  ;;  %v127_v40 = vld [vmem:[%s1531_s1 + $0x238] sm:$0xff]  ;;  %v142_v43 = vld [vmem:[%s1531_s1 + $0x2b0] sm:$0xff]  ;;  %v141_v49 = vld [vmem:[%s1531_s1 + $0x2a8] sm:$0xff] }
  0x25   :  { %354 = vmatmul.mubr.f32.vlgmr.msra.gmra.mxu1 %v22_v3  ;;  %753 = vmatprep.subr.mxu0 %v151_v4  ;;  %v159_v41 = vld [vmem:[%s1531_s1 + $0x338] sm:$0xff]  ;;  %v174_v44 = vld [vmem:[%s1531_s1 + $0x3b0] sm:$0xff]  ;;  %v173_v50 = vld [vmem:[%s1531_s1 + $0x3a8] sm:$0xff] }
  0x26   :  { %797 = vmatprep.subr.mxu1 %v183_v5  ;;  %754 = vmatpush3.msra.mxu0 %v135_v6  ;;  %v31_v45 = vld [vmem:[%s1532_s0 + $0x58] sm:$0xff]  ;;  %v126_v46 = vld [vmem:[%s1531_s1 + $0x230] sm:$0xff]  ;;  %v125_v52 = vld [vmem:[%s1531_s1 + $0x228] sm:$0xff] }
  0x27   :  { %798 = vmatpush3.msra.mxu1 %v167_v7  ;;  %755 = vmatprep.subr.mxu0 %v150_v8  ;;  %v158_v47 = vld [vmem:[%s1531_s1 + $0x330] sm:$0xff]  ;;  %v39_v48 = vld [vmem:[%s1532_s0 + $0x98] sm:$0xff]  ;;  %v157_v53 = vld [vmem:[%s1531_s1 + $0x328] sm:$0xff] }
  0x28   :  { %799 = vmatprep.subr.mxu1 %v182_v9  ;;  %756 = vmatpush3.msra.mxu0 %v134_v10  ;;  %v38_v51 = vld [vmem:[%s1532_s0 + $0x90] sm:$0xff]  ;;  %v41_v54 = vld [vmem:[%s1532_s0 + $0xa8] sm:$0xff]  ;;  %v140_v55 = vld [vmem:[%s1531_s1 + $0x2a0] sm:$0xff] }
  0x29   :  { %800 = vmatpush3.msra.mxu1 %v166_v11  ;;  %757 = vmatprep.subr.mxu0 %v149_v12  ;;  %v172_v56 = vld [vmem:[%s1531_s1 + $0x3a0] sm:$0xff]  ;;  %v139_v61 = vld [vmem:[%s1531_s1 + $0x298] sm:$0xff]  ;;  %v50_v2 = vld [vmem:[%s1532_s0 + $0xf0] sm:$0x3f] }
  0x2a   :  { %801 = vmatprep.subr.mxu1 %v181_v13  ;;  %758 = vmatpush3.msra.mxu0 %v133_v14  ;;  %v40_v57 = vld [vmem:[%s1532_s0 + $0xa0] sm:$0xff]  ;;  %v171_v62 = vld [vmem:[%s1531_s1 + $0x398] sm:$0xff]  ;;  %v138_v3 = vld [vmem:[%s1531_s1 + $0x290] sm:$0xff] }
  0x2b   :  { %802 = vmatpush3.msra.mxu1 %v165_v15  ;;  %759 = vmatprep.subr.mxu0 %v148_v16  ;;  %v124_v58 = vld [vmem:[%s1531_s1 + $0x220] sm:$0xff]  ;;  %v47_v63 = vld [vmem:[%s1532_s0 + $0xd8] sm:$0x3f]  ;;  %v170_v4 = vld [vmem:[%s1531_s1 + $0x390] sm:$0xff] }
  0x2c   :  { %803 = vmatprep.subr.mxu1 %v180_v17  ;;  %760 = vmatpush3.msra.mxu0 %v132_v18  ;;  %v156_v59 = vld [vmem:[%s1531_s1 + $0x320] sm:$0xff]  ;;  %v123_v0 = vld [vmem:[%s1531_s1 + $0x218] sm:$0xff]  ;;  %v49_v5 = vld [vmem:[%s1532_s0 + $0xe8] sm:$0x3f] }
  0x2d   :  { %804 = vmatpush3.msra.mxu1 %v164_v19  ;;  %761 = vmatprep.subr.mxu0 %v147_v20  ;;  %v48_v60 = vld [vmem:[%s1532_s0 + $0xe0] sm:$0x3f]  ;;  %v155_v1 = vld [vmem:[%s1531_s1 + $0x318] sm:$0xff]  ;;  %v122_v6 = vld [vmem:[%s1531_s1 + $0x210] sm:$0xff] }
  0x2e   :  { %805 = vmatprep.subr.mxu1 %v179_v21  ;;  %762 = vmatpush3.msra.mxu0 %v131_v22  ;;  %v154_v7 = vld [vmem:[%s1531_s1 + $0x310] sm:$0xff]  ;;  %v137_v8 = vld [vmem:[%s1531_s1 + $0x288] sm:$0xff]  ;;  %v136_v12 = vld [vmem:[%s1531_s1 + $0x280] sm:$0xff] }
  0x2f   :  { %806 = vmatpush3.msra.mxu1 %v163_v23  ;;  %763 = vmatprep.subr.mxu0 %v146_v24  ;;  %v169_v9 = vld [vmem:[%s1531_s1 + $0x388] sm:$0xff]  ;;  %v168_v13 = vld [vmem:[%s1531_s1 + $0x380] sm:$0xff]  ;;  %v27_v17 = vld [vmem:[%s1532_s0 + $0x38] sm:$0xff] }
  0x30   :  { %807 = vmatprep.subr.mxu1 %v178_v25  ;;  %764 = vmatpush3.msra.mxu0 %v130_v26  ;;  %v121_v10 = vld [vmem:[%s1531_s1 + $0x208] sm:$0xff]  ;;  %v120_v14 = vld [vmem:[%s1531_s1 + $0x200] sm:$0xff]  ;;  %v26_v19 = vld [vmem:[%s1532_s0 + $0x30] sm:$0xff] }
  0x31   :  { %808 = vmatpush3.msra.mxu1 %v162_v27  ;;  %765 = vmatprep.subr.mxu0 %v145_v28  ;;  %v153_v11 = vld [vmem:[%s1531_s1 + $0x308] sm:$0xff]  ;;  %v152_v16 = vld [vmem:[%s1531_s1 + $0x300] sm:$0xff]  ;;  %v199_v20 = vld [vmem:[%s1531_s1 + $0x478] sm:$0xff] }
  0x32   :  { %809 = vmatprep.subr.mxu1 %v177_v29  ;;  %766 = vmatpush3.msra.mxu0 %v129_v30  ;;  %v25_v15 = vld [vmem:[%s1532_s0 + $0x28] sm:$0xff]  ;;  %v24_v18 = vld [vmem:[%s1532_s0 + $0x20] sm:$0xff]  ;;  %v198_v21 = vld [vmem:[%s1531_s1 + $0x470] sm:$0xff] }
  0x33   :  { %810 = vmatpush3.msra.mxu1 %v161_v31  ;;  %767 = vmatprep.subr.mxu0 %v144_v32  ;;  %v34_v22 = vld [vmem:[%s1532_s0 + $0x70] sm:$0xff]  ;;  %v33_v23 = vld [vmem:[%s1532_s0 + $0x68] sm:$0xff]  ;;  %v36_v25 = vld [vmem:[%s1532_s0 + $0x80] sm:$0xff] }
  0x34   :  { %811 = vmatprep.subr.mxu1 %v176_v33  ;;  %768 = vmatpush3.msra.mxu0 %v128_v34  ;;  %v197_v24 = vld [vmem:[%s1531_s1 + $0x468] sm:$0xff]  ;;  %v196_v26 = vld [vmem:[%s1531_s1 + $0x460] sm:$0xff]  ;;  %v35_v27 = vld [vmem:[%s1532_s0 + $0x78] sm:$0xff] }
  0x35   :  { %812 = vmatpush3.msra.mxu1 %v160_v35  ;;  %273 = vmatprep.mubr.f32.mxu0 %v30_v36  ;;  %v43_v28 = vld [vmem:[%s1532_s0 + $0xb8] sm:$0xff]  ;;  %v42_v29 = vld [vmem:[%s1532_s0 + $0xb0] sm:$0xff]  ;;  %v45_v31 = vld [vmem:[%s1532_s0 + $0xc8] sm:$0xff] }
  0x36   :  { %769 = vmatprep.subr.mxu0 %v143_v37  ;;  %813 = vmatprep.subr.mxu1 %v175_v38  ;;  %v195_v30 = vld [vmem:[%s1531_s1 + $0x458] sm:$0xff]  ;;  %v194_v32 = vld [vmem:[%s1531_s1 + $0x450] sm:$0xff]  ;;  %v44_v33 = vld [vmem:[%s1532_s0 + $0xc0] sm:$0xff] }
  0x37   :  { %274 = vmatmul.mubr.f32.gmra.mxu0 %v29_v39  ;;  %814 = vmatpush3.msra.mxu1 %v159_v41  ;;  %v52_v34 = vld [vmem:[%s1532_s0 + $0x100] sm:$0x3f]  ;;  %v51_v35 = vld [vmem:[%s1532_s0 + $0xf8] sm:$0x3f]  ;;  %v193_v36 = vld [vmem:[%s1531_s1 + $0x448] sm:$0xff] }
  0x38   :  { %770 = vmatpush3.msra.mxu0 %v127_v40  ;;  %358 = vmatprep.mubr.f32.mxu1 %v32_v42  ;;  %v54_v37 = vld [vmem:[%s1532_s0 + $0x110] sm:$0x3f]  ;;  %v192_v38 = vld [vmem:[%s1531_s1 + $0x440] sm:$0xff]  ;;  %v53_v39 = vld [vmem:[%s1532_s0 + $0x108] sm:$0x3f] }
  0x39   :  { %771 = vmatprep.subr.mxu0 %v142_v43  ;;  %815 = vmatprep.subr.mxu1 %v174_v44  ;;  %v191_v40 = vld [vmem:[%s1531_s1 + $0x438] sm:$0xff]  ;;  %v190_v41 = vld [vmem:[%s1531_s1 + $0x430] sm:$0xff]  ;;  %v189_v42 = vld [vmem:[%s1531_s1 + $0x428] sm:$0xff] }
  0x3a   :  { %359 = vmatmul.mubr.f32.gmra.mxu1 %v31_v45  ;;  %772 = vmatpush3.msra.mxu0 %v126_v46  ;;  %v188_v43 = vld [vmem:[%s1531_s1 + $0x420] sm:$0xff]  ;;  %v187_v44 = vld [vmem:[%s1531_s1 + $0x418] sm:$0xff]  ;;  %v186_v45 = vld [vmem:[%s1531_s1 + $0x410] sm:$0xff] }
  0x3b   :  { %816 = vmatpush3.msra.mxu1 %v158_v47  ;;  %278 = vmatprep.mubr.f32.mxu0 %v39_v48  ;;  %v185_v46 = vld [vmem:[%s1531_s1 + $0x408] sm:$0xff]  ;;  %v184_v47 = vld [vmem:[%s1531_s1 + $0x400] sm:$0xff] }
  0x3c   :  { %773 = vmatprep.subr.mxu0 %v141_v49  ;;  %817 = vmatprep.subr.mxu1 %v173_v50  ;;  %v28_v48 = vld [vmem:[%s1532_s0 + $0x40] sm:$0xff]  ;;  %v46_v49 = vld [vmem:[%s1532_s0 + $0xd0] sm:$0xff]  ;;  %v37_v50 = vld [vmem:[%s1532_s0 + $0x88] sm:$0xff] }
  0x3d   :  { %279 = vmatmul.mubr.f32.gmra.mxu0 %v38_v51  ;;  %818 = vmatpush3.msra.mxu1 %v157_v53  ;;  %v55_v51 = vld [vmem:[%s1532_s0 + $0x118] sm:$0x3f] }
  0x3e   :  { %774 = vmatpush3.msra.mxu0 %v125_v52  ;;  %363 = vmatprep.mubr.f32.mxu1 %v41_v54 }
  0x3f   :  { %775 = vmatprep.subr.mxu0 %v140_v55  ;;  %819 = vmatprep.subr.mxu1 %v172_v56 }
  0x40   :  { %364 = vmatmul.mubr.f32.gmra.mxu1 %v40_v57  ;;  %776 = vmatpush3.msra.mxu0 %v124_v58 }
  0x41   :  { %820 = vmatpush3.msra.mxu1 %v156_v59  ;;  %283 = vmatprep.mubr.f32.mxu0 %v48_v60 }
  0x42   :  { %777 = vmatprep.subr.mxu0 %v139_v61  ;;  %821 = vmatprep.subr.mxu1 %v171_v62 }
  0x43   :  { %284 = vmatmul.mubr.f32.gmra.mxu0 %v47_v63  ;;  %822 = vmatpush3.msra.mxu1 %v155_v1 }
  0x44   :  { %778 = vmatpush3.msra.mxu0 %v123_v0  ;;  %368 = vmatprep.mubr.f32.mxu1 %v50_v2 }
  0x45   :  { %779 = vmatprep.subr.mxu0 %v138_v3  ;;  %823 = vmatprep.subr.mxu1 %v170_v4 }
  0x46   :  { %369 = vmatmul.mubr.f32.gmra.mxu1 %v49_v5  ;;  %780 = vmatpush3.msra.mxu0 %v122_v6 }
  0x47   :  { %824 = vmatpush3.msra.mxu1 %v154_v7  ;;  %781 = vmatprep.subr.mxu0 %v137_v8 }
  0x48   :  { %825 = vmatprep.subr.mxu1 %v169_v9  ;;  %782 = vmatpush3.msra.mxu0 %v121_v10 }
  0x49   :  { %826 = vmatpush3.msra.mxu1 %v153_v11  ;;  %783 = vmatprep.subr.mxu0 %v136_v12 }
  0x4a   :  { %827 = vmatprep.subr.mxu1 %v168_v13  ;;  %784 = vmatpush3.msra.mxu0 %v120_v14 }
  0x4b   :  { %438 = vmatprep.mubr.f32.mxu0 %v25_v15  ;;  %828 = vmatpush3.msra.mxu1 %v152_v16 }
  0x4c   :  { %523 = vmatprep.mubr.f32.mxu1 %v27_v17  ;;  %439 = vmatmul.mubr.f32.vlgmr.msra.gmra.mxu0 %v24_v18 }
  0x4d   :  { %524 = vmatmul.mubr.f32.vlgmr.msra.gmra.mxu1 %v26_v19  ;;  %861 = vmatprep.subr.mxu0 %v199_v20 }
  0x4e   :  { %899 = vmatprep.subr.mxu1 %v199_v20  ;;  %862 = vmatpush3.msra.mxu0 %v199_v20 }
  0x4f   :  { %915 = vmatpush3.msra.mxu1 %v199_v20  ;;  %863 = vmatprep.subr.mxu0 %v198_v21  ;;  %v201_v20 = vld [vmem:[%s1533_s2 + $0x8] sm:$0xff] }
  0x50   :  { %900 = vmatprep.subr.mxu1 %v198_v21  ;;  %443 = vmatprep.mubr.f32.mxu0 %v34_v22  ;;  %v203_v22 = vld [vmem:[%s1533_s2 + $0x18] sm:$0x3f] }
  0x51   :  { %864 = vmatpush3.msra.mxu0 %v198_v21  ;;  %916 = vmatpush3.msra.mxu1 %v198_v21 }
  0x52   :  { %444 = vmatmul.mubr.f32.gmra.mxu0 %v33_v23  ;;  %865 = vmatprep.subr.mxu0 %v197_v24  ;;  %v200_v23 = vld [vmem:[%s1533_s2] sm:$0xff] }
  0x53   :  { %901 = vmatprep.subr.mxu1 %v197_v24  ;;  %528 = vmatprep.mubr.f32.mxu1 %v36_v25 }
  0x54   :  { %866 = vmatpush3.msra.mxu0 %v197_v24  ;;  %917 = vmatpush3.msra.mxu1 %v197_v24  ;;  %v202_v24 = vld [vmem:[%s1533_s2 + $0x10] sm:$0xff] }
  0x55   :  { %867 = vmatprep.subr.mxu0 %v196_v26  ;;  %529 = vmatmul.mubr.f32.gmra.mxu1 %v35_v27 }
  0x56   :  { %902 = vmatprep.subr.mxu1 %v196_v26  ;;  %448 = vmatprep.mubr.f32.mxu0 %v43_v28 }
  0x57   :  { %868 = vmatpush3.msra.mxu0 %v196_v26  ;;  %918 = vmatpush3.msra.mxu1 %v196_v26 }
  0x58   :  { %449 = vmatmul.mubr.f32.gmra.mxu0 %v42_v29  ;;  %869 = vmatprep.subr.mxu0 %v195_v30 }
  0x59   :  { %903 = vmatprep.subr.mxu1 %v195_v30  ;;  %533 = vmatprep.mubr.f32.mxu1 %v45_v31 }
  0x5a   :  { %870 = vmatpush3.msra.mxu0 %v195_v30  ;;  %919 = vmatpush3.msra.mxu1 %v195_v30 }
  0x5b   :  { %871 = vmatprep.subr.mxu0 %v194_v32  ;;  %534 = vmatmul.mubr.f32.gmra.mxu1 %v44_v33 }
  0x5c   :  { %904 = vmatprep.subr.mxu1 %v194_v32  ;;  %453 = vmatprep.mubr.f32.mxu0 %v52_v34 }
  0x5d   :  { %872 = vmatpush3.msra.mxu0 %v194_v32  ;;  %920 = vmatpush3.msra.mxu1 %v194_v32 }
  0x5e   :  { %454 = vmatmul.mubr.f32.gmra.mxu0 %v51_v35  ;;  %873 = vmatprep.subr.mxu0 %v193_v36 }
  0x5f   :  { %905 = vmatprep.subr.mxu1 %v193_v36  ;;  %538 = vmatprep.mubr.f32.mxu1 %v54_v37 }
  0x60   :  { %874 = vmatpush3.msra.mxu0 %v193_v36  ;;  %921 = vmatpush3.msra.mxu1 %v193_v36 }
  0x61   :  { %875 = vmatprep.subr.mxu0 %v192_v38  ;;  %539 = vmatmul.mubr.f32.gmra.mxu1 %v53_v39 }
  0x62   :  { %906 = vmatprep.subr.mxu1 %v192_v38  ;;  %876 = vmatpush3.msra.mxu0 %v192_v38 }
  0x63   :  { %922 = vmatpush3.msra.mxu1 %v192_v38  ;;  %877 = vmatprep.subr.mxu0 %v191_v40 }
  0x64   :  { %907 = vmatprep.subr.mxu1 %v191_v40  ;;  %878 = vmatpush3.msra.mxu0 %v191_v40 }
  0x65   :  { %923 = vmatpush3.msra.mxu1 %v191_v40  ;;  %879 = vmatprep.subr.mxu0 %v190_v41 }
  0x66   :  { %908 = vmatprep.subr.mxu1 %v190_v41  ;;  %880 = vmatpush3.msra.mxu0 %v190_v41 }
  0x67   :  { %924 = vmatpush3.msra.mxu1 %v190_v41  ;;  %881 = vmatprep.subr.mxu0 %v189_v42 }
  0x68   :  { %909 = vmatprep.subr.mxu1 %v189_v42  ;;  %882 = vmatpush3.msra.mxu0 %v189_v42 }
  0x69   :  { %925 = vmatpush3.msra.mxu1 %v189_v42  ;;  %883 = vmatprep.subr.mxu0 %v188_v43 }
  0x6a   :  { %910 = vmatprep.subr.mxu1 %v188_v43  ;;  %884 = vmatpush3.msra.mxu0 %v188_v43 }
  0x6b   :  { %926 = vmatpush3.msra.mxu1 %v188_v43  ;;  %885 = vmatprep.subr.mxu0 %v187_v44 }
  0x6c   :  { %911 = vmatprep.subr.mxu1 %v187_v44  ;;  %886 = vmatpush3.msra.mxu0 %v187_v44 }
  0x6d   :  { %927 = vmatpush3.msra.mxu1 %v187_v44  ;;  %887 = vmatprep.subr.mxu0 %v186_v45 }
  0x6e   :  { %912 = vmatprep.subr.mxu1 %v186_v45  ;;  %888 = vmatpush3.msra.mxu0 %v186_v45 }
  0x6f   :  { %928 = vmatpush3.msra.mxu1 %v186_v45  ;;  %889 = vmatprep.subr.mxu0 %v185_v46 }
  0x70   :  { %913 = vmatprep.subr.mxu1 %v185_v46  ;;  %890 = vmatpush3.msra.mxu0 %v185_v46 }
  0x71   :  { %929 = vmatpush3.msra.mxu1 %v185_v46  ;;  %891 = vmatprep.subr.mxu0 %v184_v47 }
  0x72   :  { %914 = vmatprep.subr.mxu1 %v184_v47  ;;  %892 = vmatpush3.msra.mxu0 %v184_v47 }
  0x73   :  { %930 = vmatpush3.msra.mxu1 %v184_v47  ;;  %893 = vmatprep.mubr.f32.mxu0 %v28_v48 }
  0x74   :  { %896 = vmatprep.mubr.f32.mxu1 %v46_v49  ;;  %894 = vmatmul.mubr.f32.vlgmr.msra.gmra.mxu0 %v37_v50 }
  0x75   :  { %897 = vmatmul.mubr.f32.vlgmr.msra.gmra.mxu1 %v55_v51 }
  0xe4   :  { %v697_v52 = vpop.f32.mrf.mxu0 }
  0xe5   :  { %v741_v53 = vpop.f32.mrf.mxu1 }
  0xe6   :  { %v698_v54 = vpop.f32.mrf.mxu0 }
  0xe7   :  { %v742_v56 = vpop.f32.mrf.mxu1  ;;  %v699_v19 = vadd.f32 %v698_v54, %v697_v52 }
  0xe8   :  { %v743_v36 = vadd.f32 %v742_v56, %v741_v53  ;;  %v663_v53 = vld [vmem:[%s1534_s3] ss:$0 sm:$0xff] }
  0xe9   :  { %v271_v31 = vadd.f32 %v699_v19, %v200_v23 }
  0xeb   :  { %v356_v42 = vadd.f32 %v743_v36, %v271_v31 }
  0xf7   :  { %v700_v55 = vpop.f32.mrf.mxu0 }
  0xf9   :  { %v701_v57 = vpop.f32.mrf.mxu0 }
  0xfa   :  { %v744_v58 = vpop.f32.mrf.mxu1  ;;  %v702_v17 = vadd.f32 %v701_v57, %v700_v55 }
  0xfc   :  { %v745_v60 = vpop.f32.mrf.mxu1  ;;  %v276_v27 = vadd.f32 %v702_v17, %v201_v20 }
  0xfd   :  { %v703_v59 = vpop.f32.mrf.mxu0  ;;  %v746_v28 = vadd.f32 %v745_v60, %v744_v58 }
  0xff   :  { %v704_v61 = vpop.f32.mrf.mxu0  ;;  %v361_v38 = vadd.f32 %v746_v28, %v276_v27 }
 0x100   :  { %v747_v62 = vpop.f32.mrf.mxu1  ;;  %v705_v21 = vadd.f32 %v704_v61, %v703_v59  ;;  %v664_v61 = vld [vmem:[%s1535_s4] ss:$0 sm:$0xff] }
 0x102   :  { %v748_v0 = vpop.f32.mrf.mxu1  ;;  %v281_v32 = vadd.f32 %v705_v21, %v202_v24 }
 0x103   :  { %v706_v63 = vpop.f32.mrf.mxu0  ;;  %v749_v33 = vadd.f32 %v748_v0, %v747_v62 }
 0x105   :  { %v707_v1 = vpop.f32.mrf.mxu0  ;;  %v366_v43 = vadd.f32 %v749_v33, %v281_v32 }
 0x106   :  { %v750_v2 = vpop.f32.mrf.mxu1  ;;  %v708_v18 = vadd.f32 %v707_v1, %v706_v63 }
 0x108   :  { %v751_v4 = vpop.f32.mrf.mxu1  ;;  %v286_v29 = vadd.f32 %v708_v18, %v203_v22 }
 0x109   :  { %v752_v30 = vadd.f32 %v751_v4, %v750_v2 }
 0x10b   :  { %v371_v39 = vadd.f32 %v752_v30, %v286_v29 }
 0x10c   :  { %v785_v3 = vpop.f32.mrf.mxu0 }
 0x10d   :  { %v829_v6 = vpop.f32.mrf.mxu1 }
 0x10e   :  { %v786_v5 = vpop.f32.mrf.mxu0 }
 0x10f   :  { %v830_v8 = vpop.f32.mrf.mxu1  ;;  %v787_v40 = vadd.f32 %v786_v5, %v785_v3 }
 0x110   :  { %v831_v51 = vadd.f32 %v830_v8, %v829_v6 }
 0x111   :  { %v441_v48 = vadd.f32 %v787_v40, %v356_v42 }
 0x112   :  { %v788_v7 = vpop.f32.mrf.mxu0 }
 0x113   :  { %v526_v59 = vadd.f32 %v831_v51, %v441_v48 }
 0x114   :  { %v789_v9 = vpop.f32.mrf.mxu0 }
 0x115   :  { %v832_v10 = vpop.f32.mrf.mxu1  ;;  %v790_v34 = vadd.f32 %v789_v9, %v788_v7 }
 0x117   :  { %v833_v12 = vpop.f32.mrf.mxu1  ;;  %v446_v44 = vadd.f32 %v790_v34, %v361_v38 }
 0x118   :  { %v791_v11 = vpop.f32.mrf.mxu0  ;;  %v834_v45 = vadd.f32 %v833_v12, %v832_v10 }
 0x11a   :  { %v792_v13 = vpop.f32.mrf.mxu0  ;;  %v531_v52 = vadd.f32 %v834_v45, %v446_v44 }
 0x11b   :  { %v835_v14 = vpop.f32.mrf.mxu1  ;;  %v793_v41 = vadd.f32 %v792_v13, %v791_v11 }
 0x11d   :  { %v836_v16 = vpop.f32.mrf.mxu1  ;;  %v451_v49 = vadd.f32 %v793_v41, %v366_v43 }
 0x11e   :  { %v794_v15 = vpop.f32.mrf.mxu0  ;;  %v837_v50 = vadd.f32 %v836_v16, %v835_v14 }
 0x120   :  { %v795_v25 = vpop.f32.mrf.mxu0  ;;  %v536_v60 = vadd.f32 %v837_v50, %v451_v49 }
 0x121   :  { %v838_v26 = vpop.f32.mrf.mxu1  ;;  %v796_v35 = vadd.f32 %v795_v25, %v794_v15 }
 0x123   :  { %v839_v37 = vpop.f32.mrf.mxu1  ;;  %v456_v46 = vadd.f32 %v796_v35, %v371_v39 }
 0x124   :  { %v840_v47 = vadd.f32 %v839_v37, %v838_v26 }
 0x126   :  { %v541_v54 = vadd.f32 %v840_v47, %v456_v46 }
 0x134   :  { %v895_v55 = vpop.f32.mrf.mxu0 }
 0x135   :  { %v898_v56 = vpop.f32.mrf.mxu1  ;;  %v616_v57 = vadd.f32 %v895_v55, %v531_v52 }
 0x136   :  { %v626_v58 = vadd.f32 %v898_v56, %v541_v54  ;;  %v610_v62 = vpop.f32.mrf.mxu0 }
 0x137   :  { %v620_v63 = vpop.f32.mrf.mxu1  ;;  %v637_v0 = vmul.f32 %v663_v53, %v616_v57  ;;  %v611_v2 = vadd.f32 %v610_v62, %v526_v59 }
 0x138   :  { %v639_v1 = vmul.f32 %v663_v53, %v626_v58  ;;  %v621_v3 = vadd.f32 %v620_v63, %v536_v60 }
 0x139   :  { %v648_v4 = vadd.f32 %v664_v61, %v637_v0  ;;  %v636_v6 = vmul.f32 %v663_v53, %v611_v2 }
 0x13a   :  { %v650_v5 = vadd.f32 %v664_v61, %v639_v1  ;;  %v638_v7 = vmul.f32 %v663_v53, %v621_v3 }
 0x13b   :  { %v652_v8 = vmax.f32 %v648_v4, 0.0  ;;  %v647_v10 = vadd.f32 %v664_v61, %v636_v6 }
 0x13c   :  { %v654_v9 = vmax.f32 %v650_v5, 0.0  ;;  %v649_v11 = vadd.f32 %v664_v61, %v638_v7 }
 0x13d   :  { %656 = vst [vmem:[%s1536_s5 + $0x8] sm:$0xff] %v652_v8  ;;  %v651_v12 = vmax.f32 %v647_v10, 0.0 }
 0x13e   :  { %658 = vst [vmem:[%s1536_s5 + $0x18] sm:$0x3f] %v654_v9  ;;  %v653_v13 = vmax.f32 %v649_v11, 0.0 }
 0x13f   :  { %655 = vst [vmem:[%s1536_s5] sm:$0xff] %v651_v12 }
 0x140   :  { %657 = vst [vmem:[%s1536_s5 + $0x10] sm:$0xff] %v653_v13 }

</bundles_post_ra>
